<compile_context>
chip_gen: v5e
topology: v5e:2x2
jax: 0.10.0
libtpu: 0.0.40
codegen_flags: <defaults>
</compile_context>

<pallas_src>
import functools

import jax
import jax.numpy as jnp
from jax import lax
from jax.experimental import pallas as pl
from jax.experimental.pallas import tpu as pltpu

H = 32          # hidden size (= embedding size, as in the chatbot tutorial)
V = 64          # vocab size
V_PAD = 128     # vocab / one-hot padded to a full 128-lane vreg
EOS_IDX = 2     # end-of-sentence token index
SOS_TOKEN = 1   # decoder start token (torch.ones(..., dtype=int64))
NEG_BIG = -1e30


# ----------------------------------------------------------------------------
# fused encoder + greedy-decode kernel
# ----------------------------------------------------------------------------
def greedy_kernel(qlen_ref, tokens_ref,                       # SMEM inputs
                  eih_ref, ewhh_ref, ebih_ref, ebhh_ref,      # encoder weights
                  dih_ref, dwhh_ref, dbih_ref, dbhh_ref,      # decoder weights
                  wch_ref, wcc_ref, bc_ref, wo_ref, bo_ref,   # projections
                  out_tok_ref, out_len_ref,                   # SMEM outputs
                  enc_ref, h_ref, oh_ref, len_ref, done_ref,  # scratch
                  *, l_max, max_len):
    qlen = qlen_ref[0]
    lane = lax.broadcasted_iota(jnp.int32, (1, V_PAD), 1)

    def onehot_of(tok):
        return jnp.where(lane == tok, 1.0, 0.0).astype(jnp.bfloat16)

    def gru(onehot, h, ih_ref, whh_ref, bih_ref, bhh_ref):
        # Fused embedding + input projection: onehot @ (emb @ W_ih).
        gi = jnp.dot(onehot, ih_ref[...],
                     preferred_element_type=jnp.float32) + bih_ref[...]
        gh = jnp.dot(h.astype(jnp.bfloat16), whh_ref[...],
                     preferred_element_type=jnp.float32) + bhh_ref[...]
        r = jax.nn.sigmoid(gi[:, 0:H] + gh[:, 0:H])
        z = jax.nn.sigmoid(gi[:, H:2 * H] + gh[:, H:2 * H])
        n = jnp.tanh(gi[:, 2 * H:3 * H] + r * gh[:, 2 * H:3 * H])
        return (1.0 - z) * n + z * h

    # ---- encoder GRU over the input tokens (fully unrolled, masked) --------
    enc_ref[...] = jnp.zeros((l_max, H), jnp.float32)
    h = jnp.zeros((1, H), jnp.float32)
    for t in range(l_max):
        x = onehot_of(tokens_ref[t])
        h_new = gru(x, h, eih_ref, ewhh_ref, ebih_ref, ebhh_ref)
        valid = t < qlen
        h = jnp.where(valid, h_new, h)

        @pl.when(valid)
        def _(t=t, h_new=h_new):
            enc_ref[pl.ds(t, 1), :] = h_new          # direct row write

    # ---- decode-loop invariants (computed once) ----------------------------
    enc = enc_ref[...]                                # (l_max, H)
    # Pre-apply the context half of the concat projection to the encoder
    # states: ctx @ Wc == sum_i attn_i * (enc_i @ Wc).
    enc_proj = jnp.dot(enc.astype(jnp.bfloat16), wcc_ref[...],
                       preferred_element_type=jnp.float32)          # (l_max, H)
    valid_rows = lax.broadcasted_iota(jnp.int32, (l_max, 1), 0) < qlen

    h_ref[...] = h                                    # decoder hidden <- enc final
    oh_ref[...] = onehot_of(SOS_TOKEN)                # decoder input one-hot
    len_ref[0] = jnp.int32(0)
    done_ref[0] = jnp.int32(0)
    for i in range(max_len):                          # deterministic output buf
        out_tok_ref[i] = jnp.int32(0)

    # ---- greedy decode (fully unrolled; post-EOS steps skipped) ------------
    for _ in range(max_len):
        @pl.when(done_ref[0] == 0)
        def _():
            h_prev = h_ref[...]
            h_new = gru(oh_ref[...], h_prev, dih_ref, dwhh_ref, dbih_ref, dbhh_ref)

            # Luong "dot" attention: VPU multiply + XLU reduces, approx-recip
            # softmax (EUP slot).
            scores = jnp.sum(enc * h_new, axis=-1, keepdims=True)    # (l_max, 1)
            scores = jnp.where(valid_rows, scores, NEG_BIG)
            m = jnp.max(scores, axis=0, keepdims=True)
            e = jnp.exp(scores - m)
            attn = e * pl.reciprocal(jnp.sum(e, axis=0, keepdims=True), approx=True)
            ctx_proj = jnp.sum(attn * enc_proj, axis=0, keepdims=True)   # (1, H)

            concat_out = jnp.tanh(
                jnp.dot(h_new.astype(jnp.bfloat16), wch_ref[...],
                        preferred_element_type=jnp.float32)
                + ctx_proj + bc_ref[...])                                # (1, H)

            # padded vocab projection; softmax dropped (argmax is invariant)
            logits = jnp.dot(concat_out.astype(jnp.bfloat16), wo_ref[...],
                             preferred_element_type=jnp.float32) + bo_ref[...]
            logits = jnp.where(lane < V, logits, NEG_BIG)   # pad lanes can't win

            # first-occurrence argmax; next-token one-hot never leaves vregs
            mx = jnp.max(logits, axis=-1, keepdims=True)
            cand = jnp.where(logits == mx, lane, V_PAD)
            min_lane = jnp.min(cand, axis=-1, keepdims=True)            # (1, 1)
            oh_ref[...] = jnp.where(lane == min_lane, 1.0, 0.0).astype(jnp.bfloat16)
            h_ref[...] = h_new

            # scalar bookkeeping (SMEM), off the vector recurrence
            idx = jnp.min(cand)
            n = len_ref[0]
            out_tok_ref[n] = idx
            len_ref[0] = n + 1
            done_ref[0] = jnp.where(idx == EOS_IDX, 1, 0).astype(jnp.int32)

    out_len_ref[0] = len_ref[0]


# ----------------------------------------------------------------------------
# pallas_call wrapper (one launch, no grid)
# ----------------------------------------------------------------------------
_VMEM = pl.BlockSpec(memory_space=pltpu.MemorySpace.VMEM)
_SMEM = pl.BlockSpec(memory_space=pltpu.MemorySpace.SMEM)


@functools.partial(jax.jit, static_argnames=("l_max", "max_len"))
def _run_sampler(qlen, tokens, *weights, l_max, max_len):
    kernel = functools.partial(greedy_kernel, l_max=l_max, max_len=max_len)
    return pl.pallas_call(
        kernel,
        out_shape=(jax.ShapeDtypeStruct((max_len,), jnp.int32),   # tokens
                   jax.ShapeDtypeStruct((1,), jnp.int32)),        # produced length
        in_specs=[_SMEM, _SMEM] + [_VMEM] * len(weights),
        out_specs=(_SMEM, _SMEM),
        scratch_shapes=[
            pltpu.VMEM((l_max, H), jnp.float32),     # encoder states
            pltpu.VMEM((1, H), jnp.float32),         # decoder hidden
            pltpu.VMEM((1, V_PAD), jnp.bfloat16),    # next-token one-hot
            pltpu.SMEM((1,), jnp.int32),             # produced length
            pltpu.SMEM((1,), jnp.int32),             # EOS / done flag
        ],
    )(qlen, tokens, *weights)


# ----------------------------------------------------------------------------
# GreedySearchSampler forward (one kernel launch + one host sync)
# ----------------------------------------------------------------------------
def greedy_search(kernel_params, input_seq, query_length, max_seq_length):
    """input_seq: (L_in, 1) int32, query_length: (1,) int32.
    Returns a 1-D int32 numpy array of predicted token indices (EOS included,
    length <= max_seq_length), matching the torch greedy loop."""
    l_max = int(input_seq.shape[0])
    tokens = input_seq[:, 0].astype(jnp.int32)                # (l_max,)
    qlen = query_length.astype(jnp.int32).reshape((1,))       # (1,)

    toks, out_len = jax.block_until_ready(
        _run_sampler(qlen, tokens, *kernel_params,
                     l_max=l_max, max_len=int(max_seq_length)))
    toks_host, len_host = jax.device_get((toks, out_len))     # single host sync
    n = int(len_host[0])
    return toks_host[:n]                                      # numpy; no re-upload


# ----------------------------------------------------------------------------
# parameter init (torch-equivalent layout) + one-time kernel prep
# ----------------------------------------------------------------------------
def init_params(key):
    ks = jax.random.split(key, 11)
    u = lambda k, shape: jax.random.uniform(k, shape, jnp.float32, -0.1, 0.1)
    return {
        "embedding": u(ks[0], (V, H)),
        # encoder GRU (single layer, single direction)
        "enc_wih": u(ks[1], (H, 3 * H)),
        "enc_whh": u(ks[2], (H, 3 * H)),
        "enc_bih": u(ks[3], (1, 3 * H)),
        "enc_bhh": u(ks[4], (1, 3 * H)),
        # LuongAttnDecoderGRU
        "dec_wih": u(ks[5], (H, 3 * H)),
        "dec_whh": u(ks[6], (H, 3 * H)),
        "dec_bih": u(ks[7], (1, 3 * H)),
        "dec_bhh": u(ks[8], (1, 3 * H)),
        "w_concat": u(ks[9], (2 * H, H)),
        "b_concat": jnp.zeros((1, H), jnp.float32),
        "w_out": u(ks[10], (H, V)),
        "b_out": jnp.zeros((1, V), jnp.float32),
    }


def prepare_params(p):
    """One-time host-side prep: fuse the embedding into the GRU input
    projections, pad to 128 lanes/rows, cast MXU operands to bf16."""
    emb = p["embedding"]

    def fuse_pad(wih):                                   # (V,3H) -> (V_PAD,3H) bf16
        t = jnp.dot(emb, wih)                            # f32 precompute
        return (jnp.zeros((V_PAD, 3 * H), jnp.float32).at[:V].set(t)
                .astype(jnp.bfloat16))

    wo_pad = (jnp.zeros((H, V_PAD), jnp.float32).at[:, :V].set(p["w_out"])
              .astype(jnp.bfloat16))
    bo_pad = jnp.zeros((1, V_PAD), jnp.float32).at[:, :V].set(p["b_out"])

    kp = (
        fuse_pad(p["enc_wih"]), p["enc_whh"].astype(jnp.bfloat16),
        p["enc_bih"], p["enc_bhh"],
        fuse_pad(p["dec_wih"]), p["dec_whh"].astype(jnp.bfloat16),
        p["dec_bih"], p["dec_bhh"],
        p["w_concat"][:H, :].astype(jnp.bfloat16),   # hidden half of W_concat
        p["w_concat"][H:, :].astype(jnp.bfloat16),   # context half (pre-applied to enc)
        p["b_concat"],
        wo_pad, bo_pad,
    )
    return jax.device_put(kp)


if __name__ == "__main__":
    key = jax.random.PRNGKey(0)
    pkey, skey = jax.random.split(key)
    params = init_params(pkey)
    kparams = prepare_params(params)          # built ONCE, reused per call

    L_in = 8
    max_seq_length = 10
    input_seq = jax.random.randint(skey, (L_in, 1), 3, V, jnp.int32)  # (L_in, 1)
    query_length = jnp.array([L_in], jnp.int32)                       # (1,)

    out = greedy_search(kparams, input_seq, query_length, max_seq_length)
    out = jax.block_until_ready(out)          # numpy result; no-op, kept per contract
    assert out.ndim == 1 and 1 <= out.shape[0] <= max_seq_length
    print("KERNEL_OK")
</pallas_src>

<mosaic_0001>
module attributes {stable_mosaic.version = 11 : i64} {
  func.func @greedy_kernel(%arg0: memref<1xi32, #tpu.memory_space<smem>>, %arg1: memref<8xi32, #tpu.memory_space<smem>>, %arg2: memref<128x96xbf16, #tpu.memory_space<vmem>>, %arg3: memref<32x96xbf16, #tpu.memory_space<vmem>>, %arg4: memref<1x96xf32, #tpu.memory_space<vmem>>, %arg5: memref<1x96xf32, #tpu.memory_space<vmem>>, %arg6: memref<128x96xbf16, #tpu.memory_space<vmem>>, %arg7: memref<32x96xbf16, #tpu.memory_space<vmem>>, %arg8: memref<1x96xf32, #tpu.memory_space<vmem>>, %arg9: memref<1x96xf32, #tpu.memory_space<vmem>>, %arg10: memref<32x32xbf16, #tpu.memory_space<vmem>>, %arg11: memref<32x32xbf16, #tpu.memory_space<vmem>>, %arg12: memref<1x32xf32, #tpu.memory_space<vmem>>, %arg13: memref<32x128xbf16, #tpu.memory_space<vmem>>, %arg14: memref<1x128xf32, #tpu.memory_space<vmem>>, %arg15: memref<10xi32, #tpu.memory_space<smem>>, %arg16: memref<1xi32, #tpu.memory_space<smem>>, %arg17: memref<8x32xf32, #tpu.memory_space<vmem>>, %arg18: memref<1x32xf32, #tpu.memory_space<vmem>>, %arg19: memref<1x128xbf16, #tpu.memory_space<vmem>>, %arg20: memref<1xi32, #tpu.memory_space<smem>>, %arg21: memref<1xi32, #tpu.memory_space<smem>>) attributes {dimension_semantics = [], scalar_prefetch = 0 : i64, scratch_operands = 5 : i64, tpu.core_type = #tpu.core_type<tc>} {
    %c0 = arith.constant 0 : index
    %0 = memref.load %arg0[%c0] : memref<1xi32, #tpu.memory_space<smem>>
    %1 = tpu.iota {dimensions = array<i32: 1>} : vector<1x128xi32>
    %cst = arith.constant 0.000000e+00 : f32
    %2 = vector.broadcast %cst : f32 to vector<8x32xf32>
    %c0_0 = arith.constant 0 : index
    %c0_1 = arith.constant 0 : index
    %3 = vector.load %arg17[%c0_0, %c0_1] : memref<8x32xf32, #tpu.memory_space<vmem>>, vector<8x32xf32>
    tpu.vector_store %arg17[%c0_0, %c0_1], %2 {strides = array<i32>} : memref<8x32xf32, #tpu.memory_space<vmem>>, vector<8x32xf32>,
    %cst_2 = arith.constant 0.000000e+00 : f32
    %4 = vector.broadcast %cst_2 : f32 to vector<1x32xf32>
    %c0_3 = arith.constant 0 : index
    %5 = memref.load %arg1[%c0_3] : memref<8xi32, #tpu.memory_space<smem>>
    %6 = vector.broadcast %5 : i32 to vector<1x128xi32>
    %7 = arith.cmpi eq, %1, %6 : vector<1x128xi32>
    %cst_4 = arith.constant 1.000000e+00 : f32
    %cst_5 = arith.constant 0.000000e+00 : f32
    %8 = vector.broadcast %cst_4 : f32 to vector<1x128xf32>
    %9 = vector.broadcast %cst_5 : f32 to vector<1x128xf32>
    %10 = arith.select %7, %8, %9 : vector<1x128xi1>, vector<1x128xf32>
    %11 = arith.truncf %10 : vector<1x128xf32> to vector<1x128xbf16>
    %c0_6 = arith.constant 0 : index
    %c0_7 = arith.constant 0 : index
    %12 = vector.load %arg2[%c0_6, %c0_7] : memref<128x96xbf16, #tpu.memory_space<vmem>>, vector<128x96xbf16>
    %cst_8 = arith.constant dense<0.000000e+00> : vector<1x96xf32>
    %13 = tpu.matmul %11, %12, %cst_8 {dimension_numbers = #tpu.dot_dimension_numbers<[1], [0], [0], [1], [0, 0, 1, 1], [], []>} : vector<1x128xbf16>, vector<128x96xbf16>, vector<1x96xf32> -> vector<1x96xf32>
    %c0_9 = arith.constant 0 : index
    %c0_10 = arith.constant 0 : index
    %14 = vector.load %arg4[%c0_9, %c0_10] : memref<1x96xf32, #tpu.memory_space<vmem>>, vector<1x96xf32>
    %15 = arith.addf %13, %14 : vector<1x96xf32>
    %16 = arith.truncf %4 : vector<1x32xf32> to vector<1x32xbf16>
    %c0_11 = arith.constant 0 : index
    %c0_12 = arith.constant 0 : index
    %17 = vector.load %arg3[%c0_11, %c0_12] : memref<32x96xbf16, #tpu.memory_space<vmem>>, vector<32x96xbf16>
    %cst_13 = arith.constant dense<0.000000e+00> : vector<1x96xf32>
    %18 = tpu.matmul %16, %17, %cst_13 {dimension_numbers = #tpu.dot_dimension_numbers<[1], [0], [0], [1], [0, 0, 1, 1], [], []>} : vector<1x32xbf16>, vector<32x96xbf16>, vector<1x96xf32> -> vector<1x96xf32>
    %c0_14 = arith.constant 0 : index
    %c0_15 = arith.constant 0 : index
    %19 = vector.load %arg5[%c0_14, %c0_15] : memref<1x96xf32, #tpu.memory_space<vmem>>, vector<1x96xf32>
    %20 = arith.addf %18, %19 : vector<1x96xf32>
    %21 = vector.extract_strided_slice %15 {offsets = [0, 0], sizes = [1, 32], strides = [1, 1]} : vector<1x96xf32> to vector<1x32xf32>
    %22 = vector.extract_strided_slice %20 {offsets = [0, 0], sizes = [1, 32], strides = [1, 1]} : vector<1x96xf32> to vector<1x32xf32>
    %23 = arith.addf %21, %22 : vector<1x32xf32>
    %24 = arith.negf %23 : vector<1x32xf32>
    %25 = math.exp %24 : vector<1x32xf32>
    %cst_16 = arith.constant 1.000000e+00 : f32
    %26 = vector.broadcast %cst_16 : f32 to vector<1x32xf32>
    %27 = arith.addf %26, %25 : vector<1x32xf32>
    %28 = arith.divf %26, %27 : vector<1x32xf32>
    %29 = vector.extract_strided_slice %15 {offsets = [0, 32], sizes = [1, 32], strides = [1, 1]} : vector<1x96xf32> to vector<1x32xf32>
    %30 = vector.extract_strided_slice %20 {offsets = [0, 32], sizes = [1, 32], strides = [1, 1]} : vector<1x96xf32> to vector<1x32xf32>
    %31 = arith.addf %29, %30 : vector<1x32xf32>
    %32 = arith.negf %31 : vector<1x32xf32>
    %33 = math.exp %32 : vector<1x32xf32>
    %cst_17 = arith.constant 1.000000e+00 : f32
    %34 = vector.broadcast %cst_17 : f32 to vector<1x32xf32>
    %35 = arith.addf %34, %33 : vector<1x32xf32>
    %36 = arith.divf %34, %35 : vector<1x32xf32>
    %37 = vector.extract_strided_slice %15 {offsets = [0, 64], sizes = [1, 32], strides = [1, 1]} : vector<1x96xf32> to vector<1x32xf32>
    %38 = vector.extract_strided_slice %20 {offsets = [0, 64], sizes = [1, 32], strides = [1, 1]} : vector<1x96xf32> to vector<1x32xf32>
    %39 = arith.mulf %28, %38 : vector<1x32xf32>
    %40 = arith.addf %37, %39 : vector<1x32xf32>
    %41 = math.tanh %40 : vector<1x32xf32>
    %cst_18 = arith.constant 1.000000e+00 : f32
    %42 = vector.broadcast %cst_18 : f32 to vector<1x32xf32>
    %43 = arith.subf %42, %36 : vector<1x32xf32>
    %44 = arith.mulf %43, %41 : vector<1x32xf32>
    %45 = arith.mulf %36, %4 : vector<1x32xf32>
    %46 = arith.addf %44, %45 : vector<1x32xf32>
    %c0_i32 = arith.constant 0 : i32
    %47 = arith.cmpi sgt, %0, %c0_i32 : i32
    %48 = arith.select %47, %46, %4 : vector<1x32xf32>
    %49 = arith.extui %47 : i1 to i32
    %c0_i32_19 = arith.constant 0 : i32
    %50 = arith.cmpi ne, %49, %c0_i32_19 : i32
    scf.if %50 {
      %c0_198 = arith.constant 0 : index
      %c0_199 = arith.constant 0 : index
      %442 = vector.load %arg17[%c0_198, %c0_199] : memref<8x32xf32, #tpu.memory_space<vmem>>, vector<1x32xf32>
      tpu.vector_store %arg17[%c0_198, %c0_199], %46 {strides = array<i32>} : memref<8x32xf32, #tpu.memory_space<vmem>>, vector<1x32xf32>,
    } else {
    }
    %c1 = arith.constant 1 : index
    %51 = memref.load %arg1[%c1] : memref<8xi32, #tpu.memory_space<smem>>
    %52 = vector.broadcast %51 : i32 to vector<1x128xi32>
    %53 = arith.cmpi eq, %1, %52 : vector<1x128xi32>
    %cst_20 = arith.constant 1.000000e+00 : f32
    %cst_21 = arith.constant 0.000000e+00 : f32
    %54 = vector.broadcast %cst_20 : f32 to vector<1x128xf32>
    %55 = vector.broadcast %cst_21 : f32 to vector<1x128xf32>
    %56 = arith.select %53, %54, %55 : vector<1x128xi1>, vector<1x128xf32>
    %57 = arith.truncf %56 : vector<1x128xf32> to vector<1x128xbf16>
    %c0_22 = arith.constant 0 : index
    %c0_23 = arith.constant 0 : index
    %58 = vector.load %arg2[%c0_22, %c0_23] : memref<128x96xbf16, #tpu.memory_space<vmem>>, vector<128x96xbf16>
    %cst_24 = arith.constant dense<0.000000e+00> : vector<1x96xf32>
    %59 = tpu.matmul %57, %58, %cst_24 {dimension_numbers = #tpu.dot_dimension_numbers<[1], [0], [0], [1], [0, 0, 1, 1], [], []>} : vector<1x128xbf16>, vector<128x96xbf16>, vector<1x96xf32> -> vector<1x96xf32>
    %c0_25 = arith.constant 0 : index
    %c0_26 = arith.constant 0 : index
    %60 = vector.load %arg4[%c0_25, %c0_26] : memref<1x96xf32, #tpu.memory_space<vmem>>, vector<1x96xf32>
    %61 = arith.addf %59, %60 : vector<1x96xf32>
    %62 = arith.truncf %48 : vector<1x32xf32> to vector<1x32xbf16>
    %c0_27 = arith.constant 0 : index
    %c0_28 = arith.constant 0 : index
    %63 = vector.load %arg3[%c0_27, %c0_28] : memref<32x96xbf16, #tpu.memory_space<vmem>>, vector<32x96xbf16>
    %cst_29 = arith.constant dense<0.000000e+00> : vector<1x96xf32>
    %64 = tpu.matmul %62, %63, %cst_29 {dimension_numbers = #tpu.dot_dimension_numbers<[1], [0], [0], [1], [0, 0, 1, 1], [], []>} : vector<1x32xbf16>, vector<32x96xbf16>, vector<1x96xf32> -> vector<1x96xf32>
    %c0_30 = arith.constant 0 : index
    %c0_31 = arith.constant 0 : index
    %65 = vector.load %arg5[%c0_30, %c0_31] : memref<1x96xf32, #tpu.memory_space<vmem>>, vector<1x96xf32>
    %66 = arith.addf %64, %65 : vector<1x96xf32>
    %67 = vector.extract_strided_slice %61 {offsets = [0, 0], sizes = [1, 32], strides = [1, 1]} : vector<1x96xf32> to vector<1x32xf32>
    %68 = vector.extract_strided_slice %66 {offsets = [0, 0], sizes = [1, 32], strides = [1, 1]} : vector<1x96xf32> to vector<1x32xf32>
    %69 = arith.addf %67, %68 : vector<1x32xf32>
    %70 = arith.negf %69 : vector<1x32xf32>
    %71 = math.exp %70 : vector<1x32xf32>
    %cst_32 = arith.constant 1.000000e+00 : f32
    %72 = vector.broadcast %cst_32 : f32 to vector<1x32xf32>
    %73 = arith.addf %72, %71 : vector<1x32xf32>
    %74 = arith.divf %72, %73 : vector<1x32xf32>
    %75 = vector.extract_strided_slice %61 {offsets = [0, 32], sizes = [1, 32], strides = [1, 1]} : vector<1x96xf32> to vector<1x32xf32>
    %76 = vector.extract_strided_slice %66 {offsets = [0, 32], sizes = [1, 32], strides = [1, 1]} : vector<1x96xf32> to vector<1x32xf32>
    %77 = arith.addf %75, %76 : vector<1x32xf32>
    %78 = arith.negf %77 : vector<1x32xf32>
    %79 = math.exp %78 : vector<1x32xf32>
    %cst_33 = arith.constant 1.000000e+00 : f32
    %80 = vector.broadcast %cst_33 : f32 to vector<1x32xf32>
    %81 = arith.addf %80, %79 : vector<1x32xf32>
    %82 = arith.divf %80, %81 : vector<1x32xf32>
    %83 = vector.extract_strided_slice %61 {offsets = [0, 64], sizes = [1, 32], strides = [1, 1]} : vector<1x96xf32> to vector<1x32xf32>
    %84 = vector.extract_strided_slice %66 {offsets = [0, 64], sizes = [1, 32], strides = [1, 1]} : vector<1x96xf32> to vector<1x32xf32>
    %85 = arith.mulf %74, %84 : vector<1x32xf32>
    %86 = arith.addf %83, %85 : vector<1x32xf32>
    %87 = math.tanh %86 : vector<1x32xf32>
    %cst_34 = arith.constant 1.000000e+00 : f32
    %88 = vector.broadcast %cst_34 : f32 to vector<1x32xf32>
    %89 = arith.subf %88, %82 : vector<1x32xf32>
    %90 = arith.mulf %89, %87 : vector<1x32xf32>
    %91 = arith.mulf %82, %48 : vector<1x32xf32>
    %92 = arith.addf %90, %91 : vector<1x32xf32>
    %c1_i32 = arith.constant 1 : i32
    %93 = arith.cmpi sgt, %0, %c1_i32 : i32
    %94 = arith.select %93, %92, %48 : vector<1x32xf32>
    %95 = arith.extui %93 : i1 to i32
    %c0_i32_35 = arith.constant 0 : i32
    %96 = arith.cmpi ne, %95, %c0_i32_35 : i32
    scf.if %96 {
      %c1_198 = arith.constant 1 : index
      %c0_199 = arith.constant 0 : index
      %442 = vector.load %arg17[%c1_198, %c0_199] : memref<8x32xf32, #tpu.memory_space<vmem>>, vector<1x32xf32>
      tpu.vector_store %arg17[%c1_198, %c0_199], %92 {strides = array<i32>} : memref<8x32xf32, #tpu.memory_space<vmem>>, vector<1x32xf32>,
    } else {
    }
    %c2 = arith.constant 2 : index
    %97 = memref.load %arg1[%c2] : memref<8xi32, #tpu.memory_space<smem>>
    %98 = vector.broadcast %97 : i32 to vector<1x128xi32>
    %99 = arith.cmpi eq, %1, %98 : vector<1x128xi32>
    %cst_36 = arith.constant 1.000000e+00 : f32
    %cst_37 = arith.constant 0.000000e+00 : f32
    %100 = vector.broadcast %cst_36 : f32 to vector<1x128xf32>
    %101 = vector.broadcast %cst_37 : f32 to vector<1x128xf32>
    %102 = arith.select %99, %100, %101 : vector<1x128xi1>, vector<1x128xf32>
    %103 = arith.truncf %102 : vector<1x128xf32> to vector<1x128xbf16>
    %c0_38 = arith.constant 0 : index
    %c0_39 = arith.constant 0 : index
    %104 = vector.load %arg2[%c0_38, %c0_39] : memref<128x96xbf16, #tpu.memory_space<vmem>>, vector<128x96xbf16>
    %cst_40 = arith.constant dense<0.000000e+00> : vector<1x96xf32>
    %105 = tpu.matmul %103, %104, %cst_40 {dimension_numbers = #tpu.dot_dimension_numbers<[1], [0], [0], [1], [0, 0, 1, 1], [], []>} : vector<1x128xbf16>, vector<128x96xbf16>, vector<1x96xf32> -> vector<1x96xf32>
    %c0_41 = arith.constant 0 : index
    %c0_42 = arith.constant 0 : index
    %106 = vector.load %arg4[%c0_41, %c0_42] : memref<1x96xf32, #tpu.memory_space<vmem>>, vector<1x96xf32>
    %107 = arith.addf %105, %106 : vector<1x96xf32>
    %108 = arith.truncf %94 : vector<1x32xf32> to vector<1x32xbf16>
    %c0_43 = arith.constant 0 : index
    %c0_44 = arith.constant 0 : index
    %109 = vector.load %arg3[%c0_43, %c0_44] : memref<32x96xbf16, #tpu.memory_space<vmem>>, vector<32x96xbf16>
    %cst_45 = arith.constant dense<0.000000e+00> : vector<1x96xf32>
    %110 = tpu.matmul %108, %109, %cst_45 {dimension_numbers = #tpu.dot_dimension_numbers<[1], [0], [0], [1], [0, 0, 1, 1], [], []>} : vector<1x32xbf16>, vector<32x96xbf16>, vector<1x96xf32> -> vector<1x96xf32>
    %c0_46 = arith.constant 0 : index
    %c0_47 = arith.constant 0 : index
    %111 = vector.load %arg5[%c0_46, %c0_47] : memref<1x96xf32, #tpu.memory_space<vmem>>, vector<1x96xf32>
    %112 = arith.addf %110, %111 : vector<1x96xf32>
    %113 = vector.extract_strided_slice %107 {offsets = [0, 0], sizes = [1, 32], strides = [1, 1]} : vector<1x96xf32> to vector<1x32xf32>
    %114 = vector.extract_strided_slice %112 {offsets = [0, 0], sizes = [1, 32], strides = [1, 1]} : vector<1x96xf32> to vector<1x32xf32>
    %115 = arith.addf %113, %114 : vector<1x32xf32>
    %116 = arith.negf %115 : vector<1x32xf32>
    %117 = math.exp %116 : vector<1x32xf32>
    %cst_48 = arith.constant 1.000000e+00 : f32
    %118 = vector.broadcast %cst_48 : f32 to vector<1x32xf32>
    %119 = arith.addf %118, %117 : vector<1x32xf32>
    %120 = arith.divf %118, %119 : vector<1x32xf32>
    %121 = vector.extract_strided_slice %107 {offsets = [0, 32], sizes = [1, 32], strides = [1, 1]} : vector<1x96xf32> to vector<1x32xf32>
    %122 = vector.extract_strided_slice %112 {offsets = [0, 32], sizes = [1, 32], strides = [1, 1]} : vector<1x96xf32> to vector<1x32xf32>
    %123 = arith.addf %121, %122 : vector<1x32xf32>
    %124 = arith.negf %123 : vector<1x32xf32>
    %125 = math.exp %124 : vector<1x32xf32>
    %cst_49 = arith.constant 1.000000e+00 : f32
    %126 = vector.broadcast %cst_49 : f32 to vector<1x32xf32>
    %127 = arith.addf %126, %125 : vector<1x32xf32>
    %128 = arith.divf %126, %127 : vector<1x32xf32>
    %129 = vector.extract_strided_slice %107 {offsets = [0, 64], sizes = [1, 32], strides = [1, 1]} : vector<1x96xf32> to vector<1x32xf32>
    %130 = vector.extract_strided_slice %112 {offsets = [0, 64], sizes = [1, 32], strides = [1, 1]} : vector<1x96xf32> to vector<1x32xf32>
    %131 = arith.mulf %120, %130 : vector<1x32xf32>
    %132 = arith.addf %129, %131 : vector<1x32xf32>
    %133 = math.tanh %132 : vector<1x32xf32>
    %cst_50 = arith.constant 1.000000e+00 : f32
    %134 = vector.broadcast %cst_50 : f32 to vector<1x32xf32>
    %135 = arith.subf %134, %128 : vector<1x32xf32>
    %136 = arith.mulf %135, %133 : vector<1x32xf32>
    %137 = arith.mulf %128, %94 : vector<1x32xf32>
    %138 = arith.addf %136, %137 : vector<1x32xf32>
    %c2_i32 = arith.constant 2 : i32
    %139 = arith.cmpi sgt, %0, %c2_i32 : i32
    %140 = arith.select %139, %138, %94 : vector<1x32xf32>
    %141 = arith.extui %139 : i1 to i32
    %c0_i32_51 = arith.constant 0 : i32
    %142 = arith.cmpi ne, %141, %c0_i32_51 : i32
    scf.if %142 {
      %c2_198 = arith.constant 2 : index
      %c0_199 = arith.constant 0 : index
      %442 = vector.load %arg17[%c2_198, %c0_199] : memref<8x32xf32, #tpu.memory_space<vmem>>, vector<1x32xf32>
      tpu.vector_store %arg17[%c2_198, %c0_199], %138 {strides = array<i32>} : memref<8x32xf32, #tpu.memory_space<vmem>>, vector<1x32xf32>,
    } else {
    }
    %c3 = arith.constant 3 : index
    %143 = memref.load %arg1[%c3] : memref<8xi32, #tpu.memory_space<smem>>
    %144 = vector.broadcast %143 : i32 to vector<1x128xi32>
    %145 = arith.cmpi eq, %1, %144 : vector<1x128xi32>
    %cst_52 = arith.constant 1.000000e+00 : f32
    %cst_53 = arith.constant 0.000000e+00 : f32
    %146 = vector.broadcast %cst_52 : f32 to vector<1x128xf32>
    %147 = vector.broadcast %cst_53 : f32 to vector<1x128xf32>
    %148 = arith.select %145, %146, %147 : vector<1x128xi1>, vector<1x128xf32>
    %149 = arith.truncf %148 : vector<1x128xf32> to vector<1x128xbf16>
    %c0_54 = arith.constant 0 : index
    %c0_55 = arith.constant 0 : index
    %150 = vector.load %arg2[%c0_54, %c0_55] : memref<128x96xbf16, #tpu.memory_space<vmem>>, vector<128x96xbf16>
    %cst_56 = arith.constant dense<0.000000e+00> : vector<1x96xf32>
    %151 = tpu.matmul %149, %150, %cst_56 {dimension_numbers = #tpu.dot_dimension_numbers<[1], [0], [0], [1], [0, 0, 1, 1], [], []>} : vector<1x128xbf16>, vector<128x96xbf16>, vector<1x96xf32> -> vector<1x96xf32>
    %c0_57 = arith.constant 0 : index
    %c0_58 = arith.constant 0 : index
    %152 = vector.load %arg4[%c0_57, %c0_58] : memref<1x96xf32, #tpu.memory_space<vmem>>, vector<1x96xf32>
    %153 = arith.addf %151, %152 : vector<1x96xf32>
    %154 = arith.truncf %140 : vector<1x32xf32> to vector<1x32xbf16>
    %c0_59 = arith.constant 0 : index
    %c0_60 = arith.constant 0 : index
    %155 = vector.load %arg3[%c0_59, %c0_60] : memref<32x96xbf16, #tpu.memory_space<vmem>>, vector<32x96xbf16>
    %cst_61 = arith.constant dense<0.000000e+00> : vector<1x96xf32>
    %156 = tpu.matmul %154, %155, %cst_61 {dimension_numbers = #tpu.dot_dimension_numbers<[1], [0], [0], [1], [0, 0, 1, 1], [], []>} : vector<1x32xbf16>, vector<32x96xbf16>, vector<1x96xf32> -> vector<1x96xf32>
    %c0_62 = arith.constant 0 : index
    %c0_63 = arith.constant 0 : index
    %157 = vector.load %arg5[%c0_62, %c0_63] : memref<1x96xf32, #tpu.memory_space<vmem>>, vector<1x96xf32>
    %158 = arith.addf %156, %157 : vector<1x96xf32>
    %159 = vector.extract_strided_slice %153 {offsets = [0, 0], sizes = [1, 32], strides = [1, 1]} : vector<1x96xf32> to vector<1x32xf32>
    %160 = vector.extract_strided_slice %158 {offsets = [0, 0], sizes = [1, 32], strides = [1, 1]} : vector<1x96xf32> to vector<1x32xf32>
    %161 = arith.addf %159, %160 : vector<1x32xf32>
    %162 = arith.negf %161 : vector<1x32xf32>
    %163 = math.exp %162 : vector<1x32xf32>
    %cst_64 = arith.constant 1.000000e+00 : f32
    %164 = vector.broadcast %cst_64 : f32 to vector<1x32xf32>
    %165 = arith.addf %164, %163 : vector<1x32xf32>
    %166 = arith.divf %164, %165 : vector<1x32xf32>
    %167 = vector.extract_strided_slice %153 {offsets = [0, 32], sizes = [1, 32], strides = [1, 1]} : vector<1x96xf32> to vector<1x32xf32>
    %168 = vector.extract_strided_slice %158 {offsets = [0, 32], sizes = [1, 32], strides = [1, 1]} : vector<1x96xf32> to vector<1x32xf32>
    %169 = arith.addf %167, %168 : vector<1x32xf32>
    %170 = arith.negf %169 : vector<1x32xf32>
    %171 = math.exp %170 : vector<1x32xf32>
    %cst_65 = arith.constant 1.000000e+00 : f32
    %172 = vector.broadcast %cst_65 : f32 to vector<1x32xf32>
    %173 = arith.addf %172, %171 : vector<1x32xf32>
    %174 = arith.divf %172, %173 : vector<1x32xf32>
    %175 = vector.extract_strided_slice %153 {offsets = [0, 64], sizes = [1, 32], strides = [1, 1]} : vector<1x96xf32> to vector<1x32xf32>
    %176 = vector.extract_strided_slice %158 {offsets = [0, 64], sizes = [1, 32], strides = [1, 1]} : vector<1x96xf32> to vector<1x32xf32>
    %177 = arith.mulf %166, %176 : vector<1x32xf32>
    %178 = arith.addf %175, %177 : vector<1x32xf32>
    %179 = math.tanh %178 : vector<1x32xf32>
    %cst_66 = arith.constant 1.000000e+00 : f32
    %180 = vector.broadcast %cst_66 : f32 to vector<1x32xf32>
    %181 = arith.subf %180, %174 : vector<1x32xf32>
    %182 = arith.mulf %181, %179 : vector<1x32xf32>
    %183 = arith.mulf %174, %140 : vector<1x32xf32>
    %184 = arith.addf %182, %183 : vector<1x32xf32>
    %c3_i32 = arith.constant 3 : i32
    %185 = arith.cmpi sgt, %0, %c3_i32 : i32
    %186 = arith.select %185, %184, %140 : vector<1x32xf32>
    %187 = arith.extui %185 : i1 to i32
    %c0_i32_67 = arith.constant 0 : i32
    %188 = arith.cmpi ne, %187, %c0_i32_67 : i32
    scf.if %188 {
      %c3_198 = arith.constant 3 : index
      %c0_199 = arith.constant 0 : index
      %442 = vector.load %arg17[%c3_198, %c0_199] : memref<8x32xf32, #tpu.memory_space<vmem>>, vector<1x32xf32>
      tpu.vector_store %arg17[%c3_198, %c0_199], %184 {strides = array<i32>} : memref<8x32xf32, #tpu.memory_space<vmem>>, vector<1x32xf32>,
    } else {
    }
    %c4 = arith.constant 4 : index
    %189 = memref.load %arg1[%c4] : memref<8xi32, #tpu.memory_space<smem>>
    %190 = vector.broadcast %189 : i32 to vector<1x128xi32>
    %191 = arith.cmpi eq, %1, %190 : vector<1x128xi32>
    %cst_68 = arith.constant 1.000000e+00 : f32
    %cst_69 = arith.constant 0.000000e+00 : f32
    %192 = vector.broadcast %cst_68 : f32 to vector<1x128xf32>
    %193 = vector.broadcast %cst_69 : f32 to vector<1x128xf32>
    %194 = arith.select %191, %192, %193 : vector<1x128xi1>, vector<1x128xf32>
    %195 = arith.truncf %194 : vector<1x128xf32> to vector<1x128xbf16>
    %c0_70 = arith.constant 0 : index
    %c0_71 = arith.constant 0 : index
    %196 = vector.load %arg2[%c0_70, %c0_71] : memref<128x96xbf16, #tpu.memory_space<vmem>>, vector<128x96xbf16>
    %cst_72 = arith.constant dense<0.000000e+00> : vector<1x96xf32>
    %197 = tpu.matmul %195, %196, %cst_72 {dimension_numbers = #tpu.dot_dimension_numbers<[1], [0], [0], [1], [0, 0, 1, 1], [], []>} : vector<1x128xbf16>, vector<128x96xbf16>, vector<1x96xf32> -> vector<1x96xf32>
    %c0_73 = arith.constant 0 : index
    %c0_74 = arith.constant 0 : index
    %198 = vector.load %arg4[%c0_73, %c0_74] : memref<1x96xf32, #tpu.memory_space<vmem>>, vector<1x96xf32>
    %199 = arith.addf %197, %198 : vector<1x96xf32>
    %200 = arith.truncf %186 : vector<1x32xf32> to vector<1x32xbf16>
    %c0_75 = arith.constant 0 : index
    %c0_76 = arith.constant 0 : index
    %201 = vector.load %arg3[%c0_75, %c0_76] : memref<32x96xbf16, #tpu.memory_space<vmem>>, vector<32x96xbf16>
    %cst_77 = arith.constant dense<0.000000e+00> : vector<1x96xf32>
    %202 = tpu.matmul %200, %201, %cst_77 {dimension_numbers = #tpu.dot_dimension_numbers<[1], [0], [0], [1], [0, 0, 1, 1], [], []>} : vector<1x32xbf16>, vector<32x96xbf16>, vector<1x96xf32> -> vector<1x96xf32>
    %c0_78 = arith.constant 0 : index
    %c0_79 = arith.constant 0 : index
    %203 = vector.load %arg5[%c0_78, %c0_79] : memref<1x96xf32, #tpu.memory_space<vmem>>, vector<1x96xf32>
    %204 = arith.addf %202, %203 : vector<1x96xf32>
    %205 = vector.extract_strided_slice %199 {offsets = [0, 0], sizes = [1, 32], strides = [1, 1]} : vector<1x96xf32> to vector<1x32xf32>
    %206 = vector.extract_strided_slice %204 {offsets = [0, 0], sizes = [1, 32], strides = [1, 1]} : vector<1x96xf32> to vector<1x32xf32>
    %207 = arith.addf %205, %206 : vector<1x32xf32>
    %208 = arith.negf %207 : vector<1x32xf32>
    %209 = math.exp %208 : vector<1x32xf32>
    %cst_80 = arith.constant 1.000000e+00 : f32
    %210 = vector.broadcast %cst_80 : f32 to vector<1x32xf32>
    %211 = arith.addf %210, %209 : vector<1x32xf32>
    %212 = arith.divf %210, %211 : vector<1x32xf32>
    %213 = vector.extract_strided_slice %199 {offsets = [0, 32], sizes = [1, 32], strides = [1, 1]} : vector<1x96xf32> to vector<1x32xf32>
    %214 = vector.extract_strided_slice %204 {offsets = [0, 32], sizes = [1, 32], strides = [1, 1]} : vector<1x96xf32> to vector<1x32xf32>
    %215 = arith.addf %213, %214 : vector<1x32xf32>
    %216 = arith.negf %215 : vector<1x32xf32>
    %217 = math.exp %216 : vector<1x32xf32>
    %cst_81 = arith.constant 1.000000e+00 : f32
    %218 = vector.broadcast %cst_81 : f32 to vector<1x32xf32>
    %219 = arith.addf %218, %217 : vector<1x32xf32>
    %220 = arith.divf %218, %219 : vector<1x32xf32>
    %221 = vector.extract_strided_slice %199 {offsets = [0, 64], sizes = [1, 32], strides = [1, 1]} : vector<1x96xf32> to vector<1x32xf32>
    %222 = vector.extract_strided_slice %204 {offsets = [0, 64], sizes = [1, 32], strides = [1, 1]} : vector<1x96xf32> to vector<1x32xf32>
    %223 = arith.mulf %212, %222 : vector<1x32xf32>
    %224 = arith.addf %221, %223 : vector<1x32xf32>
    %225 = math.tanh %224 : vector<1x32xf32>
    %cst_82 = arith.constant 1.000000e+00 : f32
    %226 = vector.broadcast %cst_82 : f32 to vector<1x32xf32>
    %227 = arith.subf %226, %220 : vector<1x32xf32>
    %228 = arith.mulf %227, %225 : vector<1x32xf32>
    %229 = arith.mulf %220, %186 : vector<1x32xf32>
    %230 = arith.addf %228, %229 : vector<1x32xf32>
    %c4_i32 = arith.constant 4 : i32
    %231 = arith.cmpi sgt, %0, %c4_i32 : i32
    %232 = arith.select %231, %230, %186 : vector<1x32xf32>
    %233 = arith.extui %231 : i1 to i32
    %c0_i32_83 = arith.constant 0 : i32
    %234 = arith.cmpi ne, %233, %c0_i32_83 : i32
    scf.if %234 {
      %c4_198 = arith.constant 4 : index
      %c0_199 = arith.constant 0 : index
      %442 = vector.load %arg17[%c4_198, %c0_199] : memref<8x32xf32, #tpu.memory_space<vmem>>, vector<1x32xf32>
      tpu.vector_store %arg17[%c4_198, %c0_199], %230 {strides = array<i32>} : memref<8x32xf32, #tpu.memory_space<vmem>>, vector<1x32xf32>,
    } else {
    }
    %c5 = arith.constant 5 : index
    %235 = memref.load %arg1[%c5] : memref<8xi32, #tpu.memory_space<smem>>
    %236 = vector.broadcast %235 : i32 to vector<1x128xi32>
    %237 = arith.cmpi eq, %1, %236 : vector<1x128xi32>
    %cst_84 = arith.constant 1.000000e+00 : f32
    %cst_85 = arith.constant 0.000000e+00 : f32
    %238 = vector.broadcast %cst_84 : f32 to vector<1x128xf32>
    %239 = vector.broadcast %cst_85 : f32 to vector<1x128xf32>
    %240 = arith.select %237, %238, %239 : vector<1x128xi1>, vector<1x128xf32>
    %241 = arith.truncf %240 : vector<1x128xf32> to vector<1x128xbf16>
    %c0_86 = arith.constant 0 : index
    %c0_87 = arith.constant 0 : index
    %242 = vector.load %arg2[%c0_86, %c0_87] : memref<128x96xbf16, #tpu.memory_space<vmem>>, vector<128x96xbf16>
    %cst_88 = arith.constant dense<0.000000e+00> : vector<1x96xf32>
    %243 = tpu.matmul %241, %242, %cst_88 {dimension_numbers = #tpu.dot_dimension_numbers<[1], [0], [0], [1], [0, 0, 1, 1], [], []>} : vector<1x128xbf16>, vector<128x96xbf16>, vector<1x96xf32> -> vector<1x96xf32>
    %c0_89 = arith.constant 0 : index
    %c0_90 = arith.constant 0 : index
    %244 = vector.load %arg4[%c0_89, %c0_90] : memref<1x96xf32, #tpu.memory_space<vmem>>, vector<1x96xf32>
    %245 = arith.addf %243, %244 : vector<1x96xf32>
    %246 = arith.truncf %232 : vector<1x32xf32> to vector<1x32xbf16>
    %c0_91 = arith.constant 0 : index
    %c0_92 = arith.constant 0 : index
    %247 = vector.load %arg3[%c0_91, %c0_92] : memref<32x96xbf16, #tpu.memory_space<vmem>>, vector<32x96xbf16>
    %cst_93 = arith.constant dense<0.000000e+00> : vector<1x96xf32>
    %248 = tpu.matmul %246, %247, %cst_93 {dimension_numbers = #tpu.dot_dimension_numbers<[1], [0], [0], [1], [0, 0, 1, 1], [], []>} : vector<1x32xbf16>, vector<32x96xbf16>, vector<1x96xf32> -> vector<1x96xf32>
    %c0_94 = arith.constant 0 : index
    %c0_95 = arith.constant 0 : index
    %249 = vector.load %arg5[%c0_94, %c0_95] : memref<1x96xf32, #tpu.memory_space<vmem>>, vector<1x96xf32>
    %250 = arith.addf %248, %249 : vector<1x96xf32>
    %251 = vector.extract_strided_slice %245 {offsets = [0, 0], sizes = [1, 32], strides = [1, 1]} : vector<1x96xf32> to vector<1x32xf32>
    %252 = vector.extract_strided_slice %250 {offsets = [0, 0], sizes = [1, 32], strides = [1, 1]} : vector<1x96xf32> to vector<1x32xf32>
    %253 = arith.addf %251, %252 : vector<1x32xf32>
    %254 = arith.negf %253 : vector<1x32xf32>
    %255 = math.exp %254 : vector<1x32xf32>
    %cst_96 = arith.constant 1.000000e+00 : f32
    %256 = vector.broadcast %cst_96 : f32 to vector<1x32xf32>
    %257 = arith.addf %256, %255 : vector<1x32xf32>
    %258 = arith.divf %256, %257 : vector<1x32xf32>
    %259 = vector.extract_strided_slice %245 {offsets = [0, 32], sizes = [1, 32], strides = [1, 1]} : vector<1x96xf32> to vector<1x32xf32>
    %260 = vector.extract_strided_slice %250 {offsets = [0, 32], sizes = [1, 32], strides = [1, 1]} : vector<1x96xf32> to vector<1x32xf32>
    %261 = arith.addf %259, %260 : vector<1x32xf32>
    %262 = arith.negf %261 : vector<1x32xf32>
    %263 = math.exp %262 : vector<1x32xf32>
    %cst_97 = arith.constant 1.000000e+00 : f32
    %264 = vector.broadcast %cst_97 : f32 to vector<1x32xf32>
    %265 = arith.addf %264, %263 : vector<1x32xf32>
    %266 = arith.divf %264, %265 : vector<1x32xf32>
    %267 = vector.extract_strided_slice %245 {offsets = [0, 64], sizes = [1, 32], strides = [1, 1]} : vector<1x96xf32> to vector<1x32xf32>
    %268 = vector.extract_strided_slice %250 {offsets = [0, 64], sizes = [1, 32], strides = [1, 1]} : vector<1x96xf32> to vector<1x32xf32>
    %269 = arith.mulf %258, %268 : vector<1x32xf32>
    %270 = arith.addf %267, %269 : vector<1x32xf32>
    %271 = math.tanh %270 : vector<1x32xf32>
    %cst_98 = arith.constant 1.000000e+00 : f32
    %272 = vector.broadcast %cst_98 : f32 to vector<1x32xf32>
    %273 = arith.subf %272, %266 : vector<1x32xf32>
    %274 = arith.mulf %273, %271 : vector<1x32xf32>
    %275 = arith.mulf %266, %232 : vector<1x32xf32>
    %276 = arith.addf %274, %275 : vector<1x32xf32>
    %c5_i32 = arith.constant 5 : i32
    %277 = arith.cmpi sgt, %0, %c5_i32 : i32
    %278 = arith.select %277, %276, %232 : vector<1x32xf32>
    %279 = arith.extui %277 : i1 to i32
    %c0_i32_99 = arith.constant 0 : i32
    %280 = arith.cmpi ne, %279, %c0_i32_99 : i32
    scf.if %280 {
      %c5_198 = arith.constant 5 : index
      %c0_199 = arith.constant 0 : index
      %442 = vector.load %arg17[%c5_198, %c0_199] : memref<8x32xf32, #tpu.memory_space<vmem>>, vector<1x32xf32>
      tpu.vector_store %arg17[%c5_198, %c0_199], %276 {strides = array<i32>} : memref<8x32xf32, #tpu.memory_space<vmem>>, vector<1x32xf32>,
    } else {
    }
    %c6 = arith.constant 6 : index
    %281 = memref.load %arg1[%c6] : memref<8xi32, #tpu.memory_space<smem>>
    %282 = vector.broadcast %281 : i32 to vector<1x128xi32>
    %283 = arith.cmpi eq, %1, %282 : vector<1x128xi32>
    %cst_100 = arith.constant 1.000000e+00 : f32
    %cst_101 = arith.constant 0.000000e+00 : f32
    %284 = vector.broadcast %cst_100 : f32 to vector<1x128xf32>
    %285 = vector.broadcast %cst_101 : f32 to vector<1x128xf32>
    %286 = arith.select %283, %284, %285 : vector<1x128xi1>, vector<1x128xf32>
    %287 = arith.truncf %286 : vector<1x128xf32> to vector<1x128xbf16>
    %c0_102 = arith.constant 0 : index
    %c0_103 = arith.constant 0 : index
    %288 = vector.load %arg2[%c0_102, %c0_103] : memref<128x96xbf16, #tpu.memory_space<vmem>>, vector<128x96xbf16>
    %cst_104 = arith.constant dense<0.000000e+00> : vector<1x96xf32>
    %289 = tpu.matmul %287, %288, %cst_104 {dimension_numbers = #tpu.dot_dimension_numbers<[1], [0], [0], [1], [0, 0, 1, 1], [], []>} : vector<1x128xbf16>, vector<128x96xbf16>, vector<1x96xf32> -> vector<1x96xf32>
    %c0_105 = arith.constant 0 : index
    %c0_106 = arith.constant 0 : index
    %290 = vector.load %arg4[%c0_105, %c0_106] : memref<1x96xf32, #tpu.memory_space<vmem>>, vector<1x96xf32>
    %291 = arith.addf %289, %290 : vector<1x96xf32>
    %292 = arith.truncf %278 : vector<1x32xf32> to vector<1x32xbf16>
    %c0_107 = arith.constant 0 : index
    %c0_108 = arith.constant 0 : index
    %293 = vector.load %arg3[%c0_107, %c0_108] : memref<32x96xbf16, #tpu.memory_space<vmem>>, vector<32x96xbf16>
    %cst_109 = arith.constant dense<0.000000e+00> : vector<1x96xf32>
    %294 = tpu.matmul %292, %293, %cst_109 {dimension_numbers = #tpu.dot_dimension_numbers<[1], [0], [0], [1], [0, 0, 1, 1], [], []>} : vector<1x32xbf16>, vector<32x96xbf16>, vector<1x96xf32> -> vector<1x96xf32>
    %c0_110 = arith.constant 0 : index
    %c0_111 = arith.constant 0 : index
    %295 = vector.load %arg5[%c0_110, %c0_111] : memref<1x96xf32, #tpu.memory_space<vmem>>, vector<1x96xf32>
    %296 = arith.addf %294, %295 : vector<1x96xf32>
    %297 = vector.extract_strided_slice %291 {offsets = [0, 0], sizes = [1, 32], strides = [1, 1]} : vector<1x96xf32> to vector<1x32xf32>
    %298 = vector.extract_strided_slice %296 {offsets = [0, 0], sizes = [1, 32], strides = [1, 1]} : vector<1x96xf32> to vector<1x32xf32>
    %299 = arith.addf %297, %298 : vector<1x32xf32>
    %300 = arith.negf %299 : vector<1x32xf32>
    %301 = math.exp %300 : vector<1x32xf32>
    %cst_112 = arith.constant 1.000000e+00 : f32
    %302 = vector.broadcast %cst_112 : f32 to vector<1x32xf32>
    %303 = arith.addf %302, %301 : vector<1x32xf32>
    %304 = arith.divf %302, %303 : vector<1x32xf32>
    %305 = vector.extract_strided_slice %291 {offsets = [0, 32], sizes = [1, 32], strides = [1, 1]} : vector<1x96xf32> to vector<1x32xf32>
    %306 = vector.extract_strided_slice %296 {offsets = [0, 32], sizes = [1, 32], strides = [1, 1]} : vector<1x96xf32> to vector<1x32xf32>
    %307 = arith.addf %305, %306 : vector<1x32xf32>
    %308 = arith.negf %307 : vector<1x32xf32>
    %309 = math.exp %308 : vector<1x32xf32>
    %cst_113 = arith.constant 1.000000e+00 : f32
    %310 = vector.broadcast %cst_113 : f32 to vector<1x32xf32>
    %311 = arith.addf %310, %309 : vector<1x32xf32>
    %312 = arith.divf %310, %311 : vector<1x32xf32>
    %313 = vector.extract_strided_slice %291 {offsets = [0, 64], sizes = [1, 32], strides = [1, 1]} : vector<1x96xf32> to vector<1x32xf32>
    %314 = vector.extract_strided_slice %296 {offsets = [0, 64], sizes = [1, 32], strides = [1, 1]} : vector<1x96xf32> to vector<1x32xf32>
    %315 = arith.mulf %304, %314 : vector<1x32xf32>
    %316 = arith.addf %313, %315 : vector<1x32xf32>
    %317 = math.tanh %316 : vector<1x32xf32>
    %cst_114 = arith.constant 1.000000e+00 : f32
    %318 = vector.broadcast %cst_114 : f32 to vector<1x32xf32>
    %319 = arith.subf %318, %312 : vector<1x32xf32>
    %320 = arith.mulf %319, %317 : vector<1x32xf32>
    %321 = arith.mulf %312, %278 : vector<1x32xf32>
    %322 = arith.addf %320, %321 : vector<1x32xf32>
    %c6_i32 = arith.constant 6 : i32
    %323 = arith.cmpi sgt, %0, %c6_i32 : i32
    %324 = arith.select %323, %322, %278 : vector<1x32xf32>
    %325 = arith.extui %323 : i1 to i32
    %c0_i32_115 = arith.constant 0 : i32
    %326 = arith.cmpi ne, %325, %c0_i32_115 : i32
    scf.if %326 {
      %c6_198 = arith.constant 6 : index
      %c0_199 = arith.constant 0 : index
      %442 = vector.load %arg17[%c6_198, %c0_199] : memref<8x32xf32, #tpu.memory_space<vmem>>, vector<1x32xf32>
      tpu.vector_store %arg17[%c6_198, %c0_199], %322 {strides = array<i32>} : memref<8x32xf32, #tpu.memory_space<vmem>>, vector<1x32xf32>,
    } else {
    }
    %c7 = arith.constant 7 : index
    %327 = memref.load %arg1[%c7] : memref<8xi32, #tpu.memory_space<smem>>
    %328 = vector.broadcast %327 : i32 to vector<1x128xi32>
    %329 = arith.cmpi eq, %1, %328 : vector<1x128xi32>
    %cst_116 = arith.constant 1.000000e+00 : f32
    %cst_117 = arith.constant 0.000000e+00 : f32
    %330 = vector.broadcast %cst_116 : f32 to vector<1x128xf32>
    %331 = vector.broadcast %cst_117 : f32 to vector<1x128xf32>
    %332 = arith.select %329, %330, %331 : vector<1x128xi1>, vector<1x128xf32>
    %333 = arith.truncf %332 : vector<1x128xf32> to vector<1x128xbf16>
    %c0_118 = arith.constant 0 : index
    %c0_119 = arith.constant 0 : index
    %334 = vector.load %arg2[%c0_118, %c0_119] : memref<128x96xbf16, #tpu.memory_space<vmem>>, vector<128x96xbf16>
    %cst_120 = arith.constant dense<0.000000e+00> : vector<1x96xf32>
    %335 = tpu.matmul %333, %334, %cst_120 {dimension_numbers = #tpu.dot_dimension_numbers<[1], [0], [0], [1], [0, 0, 1, 1], [], []>} : vector<1x128xbf16>, vector<128x96xbf16>, vector<1x96xf32> -> vector<1x96xf32>
    %c0_121 = arith.constant 0 : index
    %c0_122 = arith.constant 0 : index
    %336 = vector.load %arg4[%c0_121, %c0_122] : memref<1x96xf32, #tpu.memory_space<vmem>>, vector<1x96xf32>
    %337 = arith.addf %335, %336 : vector<1x96xf32>
    %338 = arith.truncf %324 : vector<1x32xf32> to vector<1x32xbf16>
    %c0_123 = arith.constant 0 : index
    %c0_124 = arith.constant 0 : index
    %339 = vector.load %arg3[%c0_123, %c0_124] : memref<32x96xbf16, #tpu.memory_space<vmem>>, vector<32x96xbf16>
    %cst_125 = arith.constant dense<0.000000e+00> : vector<1x96xf32>
    %340 = tpu.matmul %338, %339, %cst_125 {dimension_numbers = #tpu.dot_dimension_numbers<[1], [0], [0], [1], [0, 0, 1, 1], [], []>} : vector<1x32xbf16>, vector<32x96xbf16>, vector<1x96xf32> -> vector<1x96xf32>
    %c0_126 = arith.constant 0 : index
    %c0_127 = arith.constant 0 : index
    %341 = vector.load %arg5[%c0_126, %c0_127] : memref<1x96xf32, #tpu.memory_space<vmem>>, vector<1x96xf32>
    %342 = arith.addf %340, %341 : vector<1x96xf32>
    %343 = vector.extract_strided_slice %337 {offsets = [0, 0], sizes = [1, 32], strides = [1, 1]} : vector<1x96xf32> to vector<1x32xf32>
    %344 = vector.extract_strided_slice %342 {offsets = [0, 0], sizes = [1, 32], strides = [1, 1]} : vector<1x96xf32> to vector<1x32xf32>
    %345 = arith.addf %343, %344 : vector<1x32xf32>
    %346 = arith.negf %345 : vector<1x32xf32>
    %347 = math.exp %346 : vector<1x32xf32>
    %cst_128 = arith.constant 1.000000e+00 : f32
    %348 = vector.broadcast %cst_128 : f32 to vector<1x32xf32>
    %349 = arith.addf %348, %347 : vector<1x32xf32>
    %350 = arith.divf %348, %349 : vector<1x32xf32>
    %351 = vector.extract_strided_slice %337 {offsets = [0, 32], sizes = [1, 32], strides = [1, 1]} : vector<1x96xf32> to vector<1x32xf32>
    %352 = vector.extract_strided_slice %342 {offsets = [0, 32], sizes = [1, 32], strides = [1, 1]} : vector<1x96xf32> to vector<1x32xf32>
    %353 = arith.addf %351, %352 : vector<1x32xf32>
    %354 = arith.negf %353 : vector<1x32xf32>
    %355 = math.exp %354 : vector<1x32xf32>
    %cst_129 = arith.constant 1.000000e+00 : f32
    %356 = vector.broadcast %cst_129 : f32 to vector<1x32xf32>
    %357 = arith.addf %356, %355 : vector<1x32xf32>
    %358 = arith.divf %356, %357 : vector<1x32xf32>
    %359 = vector.extract_strided_slice %337 {offsets = [0, 64], sizes = [1, 32], strides = [1, 1]} : vector<1x96xf32> to vector<1x32xf32>
    %360 = vector.extract_strided_slice %342 {offsets = [0, 64], sizes = [1, 32], strides = [1, 1]} : vector<1x96xf32> to vector<1x32xf32>
    %361 = arith.mulf %350, %360 : vector<1x32xf32>
    %362 = arith.addf %359, %361 : vector<1x32xf32>
    %363 = math.tanh %362 : vector<1x32xf32>
    %cst_130 = arith.constant 1.000000e+00 : f32
    %364 = vector.broadcast %cst_130 : f32 to vector<1x32xf32>
    %365 = arith.subf %364, %358 : vector<1x32xf32>
    %366 = arith.mulf %365, %363 : vector<1x32xf32>
    %367 = arith.mulf %358, %324 : vector<1x32xf32>
    %368 = arith.addf %366, %367 : vector<1x32xf32>
    %c7_i32 = arith.constant 7 : i32
    %369 = arith.cmpi sgt, %0, %c7_i32 : i32
    %370 = arith.select %369, %368, %324 : vector<1x32xf32>
    %371 = arith.extui %369 : i1 to i32
    %c0_i32_131 = arith.constant 0 : i32
    %372 = arith.cmpi ne, %371, %c0_i32_131 : i32
    scf.if %372 {
      %c7_198 = arith.constant 7 : index
      %c0_199 = arith.constant 0 : index
      %442 = vector.load %arg17[%c7_198, %c0_199] : memref<8x32xf32, #tpu.memory_space<vmem>>, vector<1x32xf32>
      tpu.vector_store %arg17[%c7_198, %c0_199], %368 {strides = array<i32>} : memref<8x32xf32, #tpu.memory_space<vmem>>, vector<1x32xf32>,
    } else {
    }
    %c0_132 = arith.constant 0 : index
    %c0_133 = arith.constant 0 : index
    %373 = vector.load %arg17[%c0_132, %c0_133] : memref<8x32xf32, #tpu.memory_space<vmem>>, vector<8x32xf32>
    %374 = arith.truncf %373 : vector<8x32xf32> to vector<8x32xbf16>
    %c0_134 = arith.constant 0 : index
    %c0_135 = arith.constant 0 : index
    %375 = vector.load %arg11[%c0_134, %c0_135] : memref<32x32xbf16, #tpu.memory_space<vmem>>, vector<32x32xbf16>
    %cst_136 = arith.constant dense<0.000000e+00> : vector<8x32xf32>
    %376 = tpu.matmul %374, %375, %cst_136 {dimension_numbers = #tpu.dot_dimension_numbers<[1], [0], [0], [1], [0, 0, 1, 1], [], []>} : vector<8x32xbf16>, vector<32x32xbf16>, vector<8x32xf32> -> vector<8x32xf32>
    %377 = tpu.iota {dimensions = array<i32: 0>} : vector<8x1xi32>
    %378 = vector.broadcast %0 : i32 to vector<8x1xi32>
    %379 = arith.cmpi slt, %377, %378 : vector<8x1xi32>
    %c0_137 = arith.constant 0 : index
    %c0_138 = arith.constant 0 : index
    %380 = vector.load %arg18[%c0_137, %c0_138] : memref<1x32xf32, #tpu.memory_space<vmem>>, vector<1x32xf32>
    tpu.vector_store %arg18[%c0_137, %c0_138], %370 {strides = array<i32>} : memref<1x32xf32, #tpu.memory_space<vmem>>, vector<1x32xf32>,
    %c1_i32_139 = arith.constant 1 : i32
    %381 = vector.broadcast %c1_i32_139 : i32 to vector<1x128xi32>
    %382 = arith.cmpi eq, %1, %381 : vector<1x128xi32>
    %cst_140 = arith.constant 1.000000e+00 : f32
    %cst_141 = arith.constant 0.000000e+00 : f32
    %383 = vector.broadcast %cst_140 : f32 to vector<1x128xf32>
    %384 = vector.broadcast %cst_141 : f32 to vector<1x128xf32>
    %385 = arith.select %382, %383, %384 : vector<1x128xi1>, vector<1x128xf32>
    %386 = arith.truncf %385 : vector<1x128xf32> to vector<1x128xbf16>
    %c0_142 = arith.constant 0 : index
    %c0_143 = arith.constant 0 : index
    %387 = vector.load %arg19[%c0_142, %c0_143] : memref<1x128xbf16, #tpu.memory_space<vmem>>, vector<1x128xbf16>
    tpu.vector_store %arg19[%c0_142, %c0_143], %386 {strides = array<i32>} : memref<1x128xbf16, #tpu.memory_space<vmem>>, vector<1x128xbf16>,
    %c0_i32_144 = arith.constant 0 : i32
    %c0_145 = arith.constant 0 : index
    %388 = memref.load %arg20[%c0_145] : memref<1xi32, #tpu.memory_space<smem>>
    memref.store %c0_i32_144, %arg20[%c0_145] : memref<1xi32, #tpu.memory_space<smem>>
    %c0_i32_146 = arith.constant 0 : i32
    %c0_147 = arith.constant 0 : index
    %389 = memref.load %arg21[%c0_147] : memref<1xi32, #tpu.memory_space<smem>>
    memref.store %c0_i32_146, %arg21[%c0_147] : memref<1xi32, #tpu.memory_space<smem>>
    %c0_i32_148 = arith.constant 0 : i32
    %c0_149 = arith.constant 0 : index
    %390 = memref.load %arg15[%c0_149] : memref<10xi32, #tpu.memory_space<smem>>
    memref.store %c0_i32_148, %arg15[%c0_149] : memref<10xi32, #tpu.memory_space<smem>>
    %c0_i32_150 = arith.constant 0 : i32
    %c1_151 = arith.constant 1 : index
    %391 = memref.load %arg15[%c1_151] : memref<10xi32, #tpu.memory_space<smem>>
    memref.store %c0_i32_150, %arg15[%c1_151] : memref<10xi32, #tpu.memory_space<smem>>
    %c0_i32_152 = arith.constant 0 : i32
    %c2_153 = arith.constant 2 : index
    %392 = memref.load %arg15[%c2_153] : memref<10xi32, #tpu.memory_space<smem>>
    memref.store %c0_i32_152, %arg15[%c2_153] : memref<10xi32, #tpu.memory_space<smem>>
    %c0_i32_154 = arith.constant 0 : i32
    %c3_155 = arith.constant 3 : index
    %393 = memref.load %arg15[%c3_155] : memref<10xi32, #tpu.memory_space<smem>>
    memref.store %c0_i32_154, %arg15[%c3_155] : memref<10xi32, #tpu.memory_space<smem>>
    %c0_i32_156 = arith.constant 0 : i32
    %c4_157 = arith.constant 4 : index
    %394 = memref.load %arg15[%c4_157] : memref<10xi32, #tpu.memory_space<smem>>
    memref.store %c0_i32_156, %arg15[%c4_157] : memref<10xi32, #tpu.memory_space<smem>>
    %c0_i32_158 = arith.constant 0 : i32
    %c5_159 = arith.constant 5 : index
    %395 = memref.load %arg15[%c5_159] : memref<10xi32, #tpu.memory_space<smem>>
    memref.store %c0_i32_158, %arg15[%c5_159] : memref<10xi32, #tpu.memory_space<smem>>
    %c0_i32_160 = arith.constant 0 : i32
    %c6_161 = arith.constant 6 : index
    %396 = memref.load %arg15[%c6_161] : memref<10xi32, #tpu.memory_space<smem>>
    memref.store %c0_i32_160, %arg15[%c6_161] : memref<10xi32, #tpu.memory_space<smem>>
    %c0_i32_162 = arith.constant 0 : i32
    %c7_163 = arith.constant 7 : index
    %397 = memref.load %arg15[%c7_163] : memref<10xi32, #tpu.memory_space<smem>>
    memref.store %c0_i32_162, %arg15[%c7_163] : memref<10xi32, #tpu.memory_space<smem>>
    %c0_i32_164 = arith.constant 0 : i32
    %c8 = arith.constant 8 : index
    %398 = memref.load %arg15[%c8] : memref<10xi32, #tpu.memory_space<smem>>
    memref.store %c0_i32_164, %arg15[%c8] : memref<10xi32, #tpu.memory_space<smem>>
    %c0_i32_165 = arith.constant 0 : i32
    %c9 = arith.constant 9 : index
    %399 = memref.load %arg15[%c9] : memref<10xi32, #tpu.memory_space<smem>>
    memref.store %c0_i32_165, %arg15[%c9] : memref<10xi32, #tpu.memory_space<smem>>
    %c0_166 = arith.constant 0 : index
    %400 = memref.load %arg21[%c0_166] : memref<1xi32, #tpu.memory_space<smem>>
    %c0_i32_167 = arith.constant 0 : i32
    %401 = arith.cmpi eq, %400, %c0_i32_167 : i32
    %402 = arith.extui %401 : i1 to i32
    %c0_i32_168 = arith.constant 0 : i32
    %403 = arith.cmpi ne, %402, %c0_i32_168 : i32
    scf.if %403 {
      %c0_198 = arith.constant 0 : index
      %c0_199 = arith.constant 0 : index
      %442 = vector.load %arg18[%c0_198, %c0_199] : memref<1x32xf32, #tpu.memory_space<vmem>>, vector<1x32xf32>
      %c0_200 = arith.constant 0 : index
      %c0_201 = arith.constant 0 : index
      %443 = vector.load %arg19[%c0_200, %c0_201] : memref<1x128xbf16, #tpu.memory_space<vmem>>, vector<1x128xbf16>
      %c0_202 = arith.constant 0 : index
      %c0_203 = arith.constant 0 : index
      %444 = vector.load %arg6[%c0_202, %c0_203] : memref<128x96xbf16, #tpu.memory_space<vmem>>, vector<128x96xbf16>
      %cst_204 = arith.constant dense<0.000000e+00> : vector<1x96xf32>
      %445 = tpu.matmul %443, %444, %cst_204 {dimension_numbers = #tpu.dot_dimension_numbers<[1], [0], [0], [1], [0, 0, 1, 1], [], []>} : vector<1x128xbf16>, vector<128x96xbf16>, vector<1x96xf32> -> vector<1x96xf32>
      %c0_205 = arith.constant 0 : index
      %c0_206 = arith.constant 0 : index
      %446 = vector.load %arg8[%c0_205, %c0_206] : memref<1x96xf32, #tpu.memory_space<vmem>>, vector<1x96xf32>
      %447 = arith.addf %445, %446 : vector<1x96xf32>
      %448 = arith.truncf %442 : vector<1x32xf32> to vector<1x32xbf16>
      %c0_207 = arith.constant 0 : index
      %c0_208 = arith.constant 0 : index
      %449 = vector.load %arg7[%c0_207, %c0_208] : memref<32x96xbf16, #tpu.memory_space<vmem>>, vector<32x96xbf16>
      %cst_209 = arith.constant dense<0.000000e+00> : vector<1x96xf32>
      %450 = tpu.matmul %448, %449, %cst_209 {dimension_numbers = #tpu.dot_dimension_numbers<[1], [0], [0], [1], [0, 0, 1, 1], [], []>} : vector<1x32xbf16>, vector<32x96xbf16>, vector<1x96xf32> -> vector<1x96xf32>
      %c0_210 = arith.constant 0 : index
      %c0_211 = arith.constant 0 : index
      %451 = vector.load %arg9[%c0_210, %c0_211] : memref<1x96xf32, #tpu.memory_space<vmem>>, vector<1x96xf32>
      %452 = arith.addf %450, %451 : vector<1x96xf32>
      %453 = vector.extract_strided_slice %447 {offsets = [0, 0], sizes = [1, 32], strides = [1, 1]} : vector<1x96xf32> to vector<1x32xf32>
      %454 = vector.extract_strided_slice %452 {offsets = [0, 0], sizes = [1, 32], strides = [1, 1]} : vector<1x96xf32> to vector<1x32xf32>
      %455 = arith.addf %453, %454 : vector<1x32xf32>
      %456 = arith.negf %455 : vector<1x32xf32>
      %457 = math.exp %456 : vector<1x32xf32>
      %cst_212 = arith.constant 1.000000e+00 : f32
      %458 = vector.broadcast %cst_212 : f32 to vector<1x32xf32>
      %459 = arith.addf %458, %457 : vector<1x32xf32>
      %460 = arith.divf %458, %459 : vector<1x32xf32>
      %461 = vector.extract_strided_slice %447 {offsets = [0, 32], sizes = [1, 32], strides = [1, 1]} : vector<1x96xf32> to vector<1x32xf32>
      %462 = vector.extract_strided_slice %452 {offsets = [0, 32], sizes = [1, 32], strides = [1, 1]} : vector<1x96xf32> to vector<1x32xf32>
      %463 = arith.addf %461, %462 : vector<1x32xf32>
      %464 = arith.negf %463 : vector<1x32xf32>
      %465 = math.exp %464 : vector<1x32xf32>
      %cst_213 = arith.constant 1.000000e+00 : f32
      %466 = vector.broadcast %cst_213 : f32 to vector<1x32xf32>
      %467 = arith.addf %466, %465 : vector<1x32xf32>
      %468 = arith.divf %466, %467 : vector<1x32xf32>
      %469 = vector.extract_strided_slice %447 {offsets = [0, 64], sizes = [1, 32], strides = [1, 1]} : vector<1x96xf32> to vector<1x32xf32>
      %470 = vector.extract_strided_slice %452 {offsets = [0, 64], sizes = [1, 32], strides = [1, 1]} : vector<1x96xf32> to vector<1x32xf32>
      %471 = arith.mulf %460, %470 : vector<1x32xf32>
      %472 = arith.addf %469, %471 : vector<1x32xf32>
      %473 = math.tanh %472 : vector<1x32xf32>
      %cst_214 = arith.constant 1.000000e+00 : f32
      %474 = vector.broadcast %cst_214 : f32 to vector<1x32xf32>
      %475 = arith.subf %474, %468 : vector<1x32xf32>
      %476 = arith.mulf %475, %473 : vector<1x32xf32>
      %477 = arith.mulf %468, %442 : vector<1x32xf32>
      %478 = arith.addf %476, %477 : vector<1x32xf32>
      %479 = vector.broadcast %478 : vector<1x32xf32> to vector<8x32xf32>
      %480 = arith.mulf %373, %479 : vector<8x32xf32>
      %cst_215 = arith.constant dense<0.000000e+00> : vector<8xf32>
      %481 = vector.multi_reduction <add>, %480, %cst_215 [1] : vector<8x32xf32> to vector<8xf32>
      %482 = vector.shape_cast %481 : vector<8xf32> to vector<8x1xf32>
      %cst_216 = arith.constant -1.000000e+30 : f32
      %483 = vector.broadcast %cst_216 : f32 to vector<8x1xf32>
      %484 = arith.select %379, %482, %483 : vector<8x1xi1>, vector<8x1xf32>
      %cst_217 = arith.constant dense<0xFF800000> : vector<1xf32>
      %485 = vector.multi_reduction <maximumf>, %484, %cst_217 [0] : vector<8x1xf32> to vector<1xf32>
      %486 = vector.shape_cast %485 : vector<1xf32> to vector<1x1xf32>
      %487 = vector.broadcast %486 : vector<1x1xf32> to vector<8x1xf32>
      %488 = arith.subf %484, %487 : vector<8x1xf32>
      %489 = math.exp %488 : vector<8x1xf32>
      %cst_218 = arith.constant dense<0.000000e+00> : vector<1xf32>
      %490 = vector.multi_reduction <add>, %489, %cst_218 [0] : vector<8x1xf32> to vector<1xf32>
      %491 = vector.shape_cast %490 : vector<1xf32> to vector<1x1xf32>
      %492 = tpu.reciprocal %491 {approx = true} : vector<1x1xf32> -> vector<1x1xf32>
      %493 = vector.broadcast %492 : vector<1x1xf32> to vector<8x1xf32>
      %494 = arith.mulf %489, %493 : vector<8x1xf32>
      %495 = vector.broadcast %494 : vector<8x1xf32> to vector<8x32xf32>
      %496 = arith.mulf %495, %376 : vector<8x32xf32>
      %cst_219 = arith.constant dense<0.000000e+00> : vector<32xf32>
      %497 = vector.multi_reduction <add>, %496, %cst_219 [0] : vector<8x32xf32> to vector<32xf32>
      %498 = vector.shape_cast %497 : vector<32xf32> to vector<1x32xf32>
      %499 = arith.truncf %478 : vector<1x32xf32> to vector<1x32xbf16>
      %c0_220 = arith.constant 0 : index
      %c0_221 = arith.constant 0 : index
      %500 = vector.load %arg10[%c0_220, %c0_221] : memref<32x32xbf16, #tpu.memory_space<vmem>>, vector<32x32xbf16>
      %cst_222 = arith.constant dense<0.000000e+00> : vector<1x32xf32>
      %501 = tpu.matmul %499, %500, %cst_222 {dimension_numbers = #tpu.dot_dimension_numbers<[1], [0], [0], [1], [0, 0, 1, 1], [], []>} : vector<1x32xbf16>, vector<32x32xbf16>, vector<1x32xf32> -> vector<1x32xf32>
      %502 = arith.addf %501, %498 : vector<1x32xf32>
      %c0_223 = arith.constant 0 : index
      %c0_224 = arith.constant 0 : index
      %503 = vector.load %arg12[%c0_223, %c0_224] : memref<1x32xf32, #tpu.memory_space<vmem>>, vector<1x32xf32>
      %504 = arith.addf %502, %503 : vector<1x32xf32>
      %505 = math.tanh %504 : vector<1x32xf32>
      %506 = arith.truncf %505 : vector<1x32xf32> to vector<1x32xbf16>
      %c0_225 = arith.constant 0 : index
      %c0_226 = arith.constant 0 : index
      %507 = vector.load %arg13[%c0_225, %c0_226] : memref<32x128xbf16, #tpu.memory_space<vmem>>, vector<32x128xbf16>
      %cst_227 = arith.constant dense<0.000000e+00> : vector<1x128xf32>
      %508 = tpu.matmul %506, %507, %cst_227 {dimension_numbers = #tpu.dot_dimension_numbers<[1], [0], [0], [1], [0, 0, 1, 1], [], []>} : vector<1x32xbf16>, vector<32x128xbf16>, vector<1x128xf32> -> vector<1x128xf32>
      %c0_228 = arith.constant 0 : index
      %c0_229 = arith.constant 0 : index
      %509 = vector.load %arg14[%c0_228, %c0_229] : memref<1x128xf32, #tpu.memory_space<vmem>>, vector<1x128xf32>
      %510 = arith.addf %508, %509 : vector<1x128xf32>
      %c64_i32 = arith.constant 64 : i32
      %511 = vector.broadcast %c64_i32 : i32 to vector<1x128xi32>
      %512 = arith.cmpi slt, %1, %511 : vector<1x128xi32>
      %cst_230 = arith.constant -1.000000e+30 : f32
      %513 = vector.broadcast %cst_230 : f32 to vector<1x128xf32>
      %514 = arith.select %512, %510, %513 : vector<1x128xi1>, vector<1x128xf32>
      %cst_231 = arith.constant dense<0xFF800000> : vector<1xf32>
      %515 = vector.multi_reduction <maximumf>, %514, %cst_231 [1] : vector<1x128xf32> to vector<1xf32>
      %516 = vector.shape_cast %515 : vector<1xf32> to vector<1x1xf32>
      %517 = vector.broadcast %516 : vector<1x1xf32> to vector<1x128xf32>
      %518 = arith.cmpf oeq, %514, %517 : vector<1x128xf32>
      %c128_i32 = arith.constant 128 : i32
      %519 = vector.broadcast %c128_i32 : i32 to vector<1x128xi32>
      %520 = arith.select %518, %1, %519 : vector<1x128xi1>, vector<1x128xi32>
      %cst_232 = arith.constant dense<2147483647> : vector<1xi32>
      %521 = vector.multi_reduction <minsi>, %520, %cst_232 [1] : vector<1x128xi32> to vector<1xi32>
      %522 = vector.shape_cast %521 : vector<1xi32> to vector<1x1xi32>
      %523 = vector.broadcast %522 : vector<1x1xi32> to vector<1x128xi32>
      %524 = arith.cmpi eq, %1, %523 : vector<1x128xi32>
      %cst_233 = arith.constant 1.000000e+00 : f32
      %cst_234 = arith.constant 0.000000e+00 : f32
      %525 = vector.broadcast %cst_233 : f32 to vector<1x128xf32>
      %526 = vector.broadcast %cst_234 : f32 to vector<1x128xf32>
      %527 = arith.select %524, %525, %526 : vector<1x128xi1>, vector<1x128xf32>
      %528 = arith.truncf %527 : vector<1x128xf32> to vector<1x128xbf16>
      %c0_235 = arith.constant 0 : index
      %c0_236 = arith.constant 0 : index
      %529 = vector.load %arg19[%c0_235, %c0_236] : memref<1x128xbf16, #tpu.memory_space<vmem>>, vector<1x128xbf16>
      tpu.vector_store %arg19[%c0_235, %c0_236], %528 {strides = array<i32>} : memref<1x128xbf16, #tpu.memory_space<vmem>>, vector<1x128xbf16>,
      %c0_237 = arith.constant 0 : index
      %c0_238 = arith.constant 0 : index
      %530 = vector.load %arg18[%c0_237, %c0_238] : memref<1x32xf32, #tpu.memory_space<vmem>>, vector<1x32xf32>
      tpu.vector_store %arg18[%c0_237, %c0_238], %478 {strides = array<i32>} : memref<1x32xf32, #tpu.memory_space<vmem>>, vector<1x32xf32>,
      %531 = vector.shape_cast %520 : vector<1x128xi32> to vector<1x1x128xi32>
      %cst_239 = arith.constant dense<2147483647> : vector<1xi32>
      %532 = vector.multi_reduction <minsi>, %531, %cst_239 [1, 2] : vector<1x1x128xi32> to vector<1xi32>
      %533 = vector.shape_cast %532 : vector<1xi32> to vector<1x1x1xi32>
      %534 = vector.extract %533[0, 0, 0] : i32 from vector<1x1x1xi32>
      %c0_240 = arith.constant 0 : index
      %535 = memref.load %arg20[%c0_240] : memref<1xi32, #tpu.memory_space<smem>>
      %536 = arith.index_cast %535 : i32 to index
      %537 = memref.load %arg15[%536] : memref<10xi32, #tpu.memory_space<smem>>
      memref.store %534, %arg15[%536] : memref<10xi32, #tpu.memory_space<smem>>
      %c1_i32_241 = arith.constant 1 : i32
      %538 = arith.addi %535, %c1_i32_241 : i32
      %c0_242 = arith.constant 0 : index
      %539 = memref.load %arg20[%c0_242] : memref<1xi32, #tpu.memory_space<smem>>
      memref.store %538, %arg20[%c0_242] : memref<1xi32, #tpu.memory_space<smem>>
      %c2_i32_243 = arith.constant 2 : i32
      %540 = arith.cmpi eq, %534, %c2_i32_243 : i32
      %c1_i32_244 = arith.constant 1 : i32
      %c0_i32_245 = arith.constant 0 : i32
      %541 = arith.select %540, %c1_i32_244, %c0_i32_245 : i32
      %c0_246 = arith.constant 0 : index
      %542 = memref.load %arg21[%c0_246] : memref<1xi32, #tpu.memory_space<smem>>
      memref.store %541, %arg21[%c0_246] : memref<1xi32, #tpu.memory_space<smem>>
    } else {
    }
    %c0_169 = arith.constant 0 : index
    %404 = memref.load %arg21[%c0_169] : memref<1xi32, #tpu.memory_space<smem>>
    %c0_i32_170 = arith.constant 0 : i32
    %405 = arith.cmpi eq, %404, %c0_i32_170 : i32
    %406 = arith.extui %405 : i1 to i32
    %c0_i32_171 = arith.constant 0 : i32
    %407 = arith.cmpi ne, %406, %c0_i32_171 : i32
    scf.if %407 {
      %c0_198 = arith.constant 0 : index
      %c0_199 = arith.constant 0 : index
      %442 = vector.load %arg18[%c0_198, %c0_199] : memref<1x32xf32, #tpu.memory_space<vmem>>, vector<1x32xf32>
      %c0_200 = arith.constant 0 : index
      %c0_201 = arith.constant 0 : index
      %443 = vector.load %arg19[%c0_200, %c0_201] : memref<1x128xbf16, #tpu.memory_space<vmem>>, vector<1x128xbf16>
      %c0_202 = arith.constant 0 : index
      %c0_203 = arith.constant 0 : index
      %444 = vector.load %arg6[%c0_202, %c0_203] : memref<128x96xbf16, #tpu.memory_space<vmem>>, vector<128x96xbf16>
      %cst_204 = arith.constant dense<0.000000e+00> : vector<1x96xf32>
      %445 = tpu.matmul %443, %444, %cst_204 {dimension_numbers = #tpu.dot_dimension_numbers<[1], [0], [0], [1], [0, 0, 1, 1], [], []>} : vector<1x128xbf16>, vector<128x96xbf16>, vector<1x96xf32> -> vector<1x96xf32>
      %c0_205 = arith.constant 0 : index
      %c0_206 = arith.constant 0 : index
      %446 = vector.load %arg8[%c0_205, %c0_206] : memref<1x96xf32, #tpu.memory_space<vmem>>, vector<1x96xf32>
      %447 = arith.addf %445, %446 : vector<1x96xf32>
      %448 = arith.truncf %442 : vector<1x32xf32> to vector<1x32xbf16>
      %c0_207 = arith.constant 0 : index
      %c0_208 = arith.constant 0 : index
      %449 = vector.load %arg7[%c0_207, %c0_208] : memref<32x96xbf16, #tpu.memory_space<vmem>>, vector<32x96xbf16>
      %cst_209 = arith.constant dense<0.000000e+00> : vector<1x96xf32>
      %450 = tpu.matmul %448, %449, %cst_209 {dimension_numbers = #tpu.dot_dimension_numbers<[1], [0], [0], [1], [0, 0, 1, 1], [], []>} : vector<1x32xbf16>, vector<32x96xbf16>, vector<1x96xf32> -> vector<1x96xf32>
      %c0_210 = arith.constant 0 : index
      %c0_211 = arith.constant 0 : index
      %451 = vector.load %arg9[%c0_210, %c0_211] : memref<1x96xf32, #tpu.memory_space<vmem>>, vector<1x96xf32>
      %452 = arith.addf %450, %451 : vector<1x96xf32>
      %453 = vector.extract_strided_slice %447 {offsets = [0, 0], sizes = [1, 32], strides = [1, 1]} : vector<1x96xf32> to vector<1x32xf32>
      %454 = vector.extract_strided_slice %452 {offsets = [0, 0], sizes = [1, 32], strides = [1, 1]} : vector<1x96xf32> to vector<1x32xf32>
      %455 = arith.addf %453, %454 : vector<1x32xf32>
      %456 = arith.negf %455 : vector<1x32xf32>
      %457 = math.exp %456 : vector<1x32xf32>
      %cst_212 = arith.constant 1.000000e+00 : f32
      %458 = vector.broadcast %cst_212 : f32 to vector<1x32xf32>
      %459 = arith.addf %458, %457 : vector<1x32xf32>
      %460 = arith.divf %458, %459 : vector<1x32xf32>
      %461 = vector.extract_strided_slice %447 {offsets = [0, 32], sizes = [1, 32], strides = [1, 1]} : vector<1x96xf32> to vector<1x32xf32>
      %462 = vector.extract_strided_slice %452 {offsets = [0, 32], sizes = [1, 32], strides = [1, 1]} : vector<1x96xf32> to vector<1x32xf32>
      %463 = arith.addf %461, %462 : vector<1x32xf32>
      %464 = arith.negf %463 : vector<1x32xf32>
      %465 = math.exp %464 : vector<1x32xf32>
      %cst_213 = arith.constant 1.000000e+00 : f32
      %466 = vector.broadcast %cst_213 : f32 to vector<1x32xf32>
      %467 = arith.addf %466, %465 : vector<1x32xf32>
      %468 = arith.divf %466, %467 : vector<1x32xf32>
      %469 = vector.extract_strided_slice %447 {offsets = [0, 64], sizes = [1, 32], strides = [1, 1]} : vector<1x96xf32> to vector<1x32xf32>
      %470 = vector.extract_strided_slice %452 {offsets = [0, 64], sizes = [1, 32], strides = [1, 1]} : vector<1x96xf32> to vector<1x32xf32>
      %471 = arith.mulf %460, %470 : vector<1x32xf32>
      %472 = arith.addf %469, %471 : vector<1x32xf32>
      %473 = math.tanh %472 : vector<1x32xf32>
      %cst_214 = arith.constant 1.000000e+00 : f32
      %474 = vector.broadcast %cst_214 : f32 to vector<1x32xf32>
      %475 = arith.subf %474, %468 : vector<1x32xf32>
      %476 = arith.mulf %475, %473 : vector<1x32xf32>
      %477 = arith.mulf %468, %442 : vector<1x32xf32>
      %478 = arith.addf %476, %477 : vector<1x32xf32>
      %479 = vector.broadcast %478 : vector<1x32xf32> to vector<8x32xf32>
      %480 = arith.mulf %373, %479 : vector<8x32xf32>
      %cst_215 = arith.constant dense<0.000000e+00> : vector<8xf32>
      %481 = vector.multi_reduction <add>, %480, %cst_215 [1] : vector<8x32xf32> to vector<8xf32>
      %482 = vector.shape_cast %481 : vector<8xf32> to vector<8x1xf32>
      %cst_216 = arith.constant -1.000000e+30 : f32
      %483 = vector.broadcast %cst_216 : f32 to vector<8x1xf32>
      %484 = arith.select %379, %482, %483 : vector<8x1xi1>, vector<8x1xf32>
      %cst_217 = arith.constant dense<0xFF800000> : vector<1xf32>
      %485 = vector.multi_reduction <maximumf>, %484, %cst_217 [0] : vector<8x1xf32> to vector<1xf32>
      %486 = vector.shape_cast %485 : vector<1xf32> to vector<1x1xf32>
      %487 = vector.broadcast %486 : vector<1x1xf32> to vector<8x1xf32>
      %488 = arith.subf %484, %487 : vector<8x1xf32>
      %489 = math.exp %488 : vector<8x1xf32>
      %cst_218 = arith.constant dense<0.000000e+00> : vector<1xf32>
      %490 = vector.multi_reduction <add>, %489, %cst_218 [0] : vector<8x1xf32> to vector<1xf32>
      %491 = vector.shape_cast %490 : vector<1xf32> to vector<1x1xf32>
      %492 = tpu.reciprocal %491 {approx = true} : vector<1x1xf32> -> vector<1x1xf32>
      %493 = vector.broadcast %492 : vector<1x1xf32> to vector<8x1xf32>
      %494 = arith.mulf %489, %493 : vector<8x1xf32>
      %495 = vector.broadcast %494 : vector<8x1xf32> to vector<8x32xf32>
      %496 = arith.mulf %495, %376 : vector<8x32xf32>
      %cst_219 = arith.constant dense<0.000000e+00> : vector<32xf32>
      %497 = vector.multi_reduction <add>, %496, %cst_219 [0] : vector<8x32xf32> to vector<32xf32>
      %498 = vector.shape_cast %497 : vector<32xf32> to vector<1x32xf32>
      %499 = arith.truncf %478 : vector<1x32xf32> to vector<1x32xbf16>
      %c0_220 = arith.constant 0 : index
      %c0_221 = arith.constant 0 : index
      %500 = vector.load %arg10[%c0_220, %c0_221] : memref<32x32xbf16, #tpu.memory_space<vmem>>, vector<32x32xbf16>
      %cst_222 = arith.constant dense<0.000000e+00> : vector<1x32xf32>
      %501 = tpu.matmul %499, %500, %cst_222 {dimension_numbers = #tpu.dot_dimension_numbers<[1], [0], [0], [1], [0, 0, 1, 1], [], []>} : vector<1x32xbf16>, vector<32x32xbf16>, vector<1x32xf32> -> vector<1x32xf32>
      %502 = arith.addf %501, %498 : vector<1x32xf32>
      %c0_223 = arith.constant 0 : index
      %c0_224 = arith.constant 0 : index
      %503 = vector.load %arg12[%c0_223, %c0_224] : memref<1x32xf32, #tpu.memory_space<vmem>>, vector<1x32xf32>
      %504 = arith.addf %502, %503 : vector<1x32xf32>
      %505 = math.tanh %504 : vector<1x32xf32>
      %506 = arith.truncf %505 : vector<1x32xf32> to vector<1x32xbf16>
      %c0_225 = arith.constant 0 : index
      %c0_226 = arith.constant 0 : index
      %507 = vector.load %arg13[%c0_225, %c0_226] : memref<32x128xbf16, #tpu.memory_space<vmem>>, vector<32x128xbf16>
      %cst_227 = arith.constant dense<0.000000e+00> : vector<1x128xf32>
      %508 = tpu.matmul %506, %507, %cst_227 {dimension_numbers = #tpu.dot_dimension_numbers<[1], [0], [0], [1], [0, 0, 1, 1], [], []>} : vector<1x32xbf16>, vector<32x128xbf16>, vector<1x128xf32> -> vector<1x128xf32>
      %c0_228 = arith.constant 0 : index
      %c0_229 = arith.constant 0 : index
      %509 = vector.load %arg14[%c0_228, %c0_229] : memref<1x128xf32, #tpu.memory_space<vmem>>, vector<1x128xf32>
      %510 = arith.addf %508, %509 : vector<1x128xf32>
      %c64_i32 = arith.constant 64 : i32
      %511 = vector.broadcast %c64_i32 : i32 to vector<1x128xi32>
      %512 = arith.cmpi slt, %1, %511 : vector<1x128xi32>
      %cst_230 = arith.constant -1.000000e+30 : f32
      %513 = vector.broadcast %cst_230 : f32 to vector<1x128xf32>
      %514 = arith.select %512, %510, %513 : vector<1x128xi1>, vector<1x128xf32>
      %cst_231 = arith.constant dense<0xFF800000> : vector<1xf32>
      %515 = vector.multi_reduction <maximumf>, %514, %cst_231 [1] : vector<1x128xf32> to vector<1xf32>
      %516 = vector.shape_cast %515 : vector<1xf32> to vector<1x1xf32>
      %517 = vector.broadcast %516 : vector<1x1xf32> to vector<1x128xf32>
      %518 = arith.cmpf oeq, %514, %517 : vector<1x128xf32>
      %c128_i32 = arith.constant 128 : i32
      %519 = vector.broadcast %c128_i32 : i32 to vector<1x128xi32>
      %520 = arith.select %518, %1, %519 : vector<1x128xi1>, vector<1x128xi32>
      %cst_232 = arith.constant dense<2147483647> : vector<1xi32>
      %521 = vector.multi_reduction <minsi>, %520, %cst_232 [1] : vector<1x128xi32> to vector<1xi32>
      %522 = vector.shape_cast %521 : vector<1xi32> to vector<1x1xi32>
      %523 = vector.broadcast %522 : vector<1x1xi32> to vector<1x128xi32>
      %524 = arith.cmpi eq, %1, %523 : vector<1x128xi32>
      %cst_233 = arith.constant 1.000000e+00 : f32
      %cst_234 = arith.constant 0.000000e+00 : f32
      %525 = vector.broadcast %cst_233 : f32 to vector<1x128xf32>
      %526 = vector.broadcast %cst_234 : f32 to vector<1x128xf32>
      %527 = arith.select %524, %525, %526 : vector<1x128xi1>, vector<1x128xf32>
      %528 = arith.truncf %527 : vector<1x128xf32> to vector<1x128xbf16>
      %c0_235 = arith.constant 0 : index
      %c0_236 = arith.constant 0 : index
      %529 = vector.load %arg19[%c0_235, %c0_236] : memref<1x128xbf16, #tpu.memory_space<vmem>>, vector<1x128xbf16>
      tpu.vector_store %arg19[%c0_235, %c0_236], %528 {strides = array<i32>} : memref<1x128xbf16, #tpu.memory_space<vmem>>, vector<1x128xbf16>,
      %c0_237 = arith.constant 0 : index
      %c0_238 = arith.constant 0 : index
      %530 = vector.load %arg18[%c0_237, %c0_238] : memref<1x32xf32, #tpu.memory_space<vmem>>, vector<1x32xf32>
      tpu.vector_store %arg18[%c0_237, %c0_238], %478 {strides = array<i32>} : memref<1x32xf32, #tpu.memory_space<vmem>>, vector<1x32xf32>,
      %531 = vector.shape_cast %520 : vector<1x128xi32> to vector<1x1x128xi32>
      %cst_239 = arith.constant dense<2147483647> : vector<1xi32>
      %532 = vector.multi_reduction <minsi>, %531, %cst_239 [1, 2] : vector<1x1x128xi32> to vector<1xi32>
      %533 = vector.shape_cast %532 : vector<1xi32> to vector<1x1x1xi32>
      %534 = vector.extract %533[0, 0, 0] : i32 from vector<1x1x1xi32>
      %c0_240 = arith.constant 0 : index
      %535 = memref.load %arg20[%c0_240] : memref<1xi32, #tpu.memory_space<smem>>
      %536 = arith.index_cast %535 : i32 to index
      %537 = memref.load %arg15[%536] : memref<10xi32, #tpu.memory_space<smem>>
      memref.store %534, %arg15[%536] : memref<10xi32, #tpu.memory_space<smem>>
      %c1_i32_241 = arith.constant 1 : i32
      %538 = arith.addi %535, %c1_i32_241 : i32
      %c0_242 = arith.constant 0 : index
      %539 = memref.load %arg20[%c0_242] : memref<1xi32, #tpu.memory_space<smem>>
      memref.store %538, %arg20[%c0_242] : memref<1xi32, #tpu.memory_space<smem>>
      %c2_i32_243 = arith.constant 2 : i32
      %540 = arith.cmpi eq, %534, %c2_i32_243 : i32
      %c1_i32_244 = arith.constant 1 : i32
      %c0_i32_245 = arith.constant 0 : i32
      %541 = arith.select %540, %c1_i32_244, %c0_i32_245 : i32
      %c0_246 = arith.constant 0 : index
      %542 = memref.load %arg21[%c0_246] : memref<1xi32, #tpu.memory_space<smem>>
      memref.store %541, %arg21[%c0_246] : memref<1xi32, #tpu.memory_space<smem>>
    } else {
    }
    %c0_172 = arith.constant 0 : index
    %408 = memref.load %arg21[%c0_172] : memref<1xi32, #tpu.memory_space<smem>>
    %c0_i32_173 = arith.constant 0 : i32
    %409 = arith.cmpi eq, %408, %c0_i32_173 : i32
    %410 = arith.extui %409 : i1 to i32
    %c0_i32_174 = arith.constant 0 : i32
    %411 = arith.cmpi ne, %410, %c0_i32_174 : i32
    scf.if %411 {
      %c0_198 = arith.constant 0 : index
      %c0_199 = arith.constant 0 : index
      %442 = vector.load %arg18[%c0_198, %c0_199] : memref<1x32xf32, #tpu.memory_space<vmem>>, vector<1x32xf32>
      %c0_200 = arith.constant 0 : index
      %c0_201 = arith.constant 0 : index
      %443 = vector.load %arg19[%c0_200, %c0_201] : memref<1x128xbf16, #tpu.memory_space<vmem>>, vector<1x128xbf16>
      %c0_202 = arith.constant 0 : index
      %c0_203 = arith.constant 0 : index
      %444 = vector.load %arg6[%c0_202, %c0_203] : memref<128x96xbf16, #tpu.memory_space<vmem>>, vector<128x96xbf16>
      %cst_204 = arith.constant dense<0.000000e+00> : vector<1x96xf32>
      %445 = tpu.matmul %443, %444, %cst_204 {dimension_numbers = #tpu.dot_dimension_numbers<[1], [0], [0], [1], [0, 0, 1, 1], [], []>} : vector<1x128xbf16>, vector<128x96xbf16>, vector<1x96xf32> -> vector<1x96xf32>
      %c0_205 = arith.constant 0 : index
      %c0_206 = arith.constant 0 : index
      %446 = vector.load %arg8[%c0_205, %c0_206] : memref<1x96xf32, #tpu.memory_space<vmem>>, vector<1x96xf32>
      %447 = arith.addf %445, %446 : vector<1x96xf32>
      %448 = arith.truncf %442 : vector<1x32xf32> to vector<1x32xbf16>
      %c0_207 = arith.constant 0 : index
      %c0_208 = arith.constant 0 : index
      %449 = vector.load %arg7[%c0_207, %c0_208] : memref<32x96xbf16, #tpu.memory_space<vmem>>, vector<32x96xbf16>
      %cst_209 = arith.constant dense<0.000000e+00> : vector<1x96xf32>
      %450 = tpu.matmul %448, %449, %cst_209 {dimension_numbers = #tpu.dot_dimension_numbers<[1], [0], [0], [1], [0, 0, 1, 1], [], []>} : vector<1x32xbf16>, vector<32x96xbf16>, vector<1x96xf32> -> vector<1x96xf32>
      %c0_210 = arith.constant 0 : index
      %c0_211 = arith.constant 0 : index
      %451 = vector.load %arg9[%c0_210, %c0_211] : memref<1x96xf32, #tpu.memory_space<vmem>>, vector<1x96xf32>
      %452 = arith.addf %450, %451 : vector<1x96xf32>
      %453 = vector.extract_strided_slice %447 {offsets = [0, 0], sizes = [1, 32], strides = [1, 1]} : vector<1x96xf32> to vector<1x32xf32>
      %454 = vector.extract_strided_slice %452 {offsets = [0, 0], sizes = [1, 32], strides = [1, 1]} : vector<1x96xf32> to vector<1x32xf32>
      %455 = arith.addf %453, %454 : vector<1x32xf32>
      %456 = arith.negf %455 : vector<1x32xf32>
      %457 = math.exp %456 : vector<1x32xf32>
      %cst_212 = arith.constant 1.000000e+00 : f32
      %458 = vector.broadcast %cst_212 : f32 to vector<1x32xf32>
      %459 = arith.addf %458, %457 : vector<1x32xf32>
      %460 = arith.divf %458, %459 : vector<1x32xf32>
      %461 = vector.extract_strided_slice %447 {offsets = [0, 32], sizes = [1, 32], strides = [1, 1]} : vector<1x96xf32> to vector<1x32xf32>
      %462 = vector.extract_strided_slice %452 {offsets = [0, 32], sizes = [1, 32], strides = [1, 1]} : vector<1x96xf32> to vector<1x32xf32>
      %463 = arith.addf %461, %462 : vector<1x32xf32>
      %464 = arith.negf %463 : vector<1x32xf32>
      %465 = math.exp %464 : vector<1x32xf32>
      %cst_213 = arith.constant 1.000000e+00 : f32
      %466 = vector.broadcast %cst_213 : f32 to vector<1x32xf32>
      %467 = arith.addf %466, %465 : vector<1x32xf32>
      %468 = arith.divf %466, %467 : vector<1x32xf32>
      %469 = vector.extract_strided_slice %447 {offsets = [0, 64], sizes = [1, 32], strides = [1, 1]} : vector<1x96xf32> to vector<1x32xf32>
      %470 = vector.extract_strided_slice %452 {offsets = [0, 64], sizes = [1, 32], strides = [1, 1]} : vector<1x96xf32> to vector<1x32xf32>
      %471 = arith.mulf %460, %470 : vector<1x32xf32>
      %472 = arith.addf %469, %471 : vector<1x32xf32>
      %473 = math.tanh %472 : vector<1x32xf32>
      %cst_214 = arith.constant 1.000000e+00 : f32
      %474 = vector.broadcast %cst_214 : f32 to vector<1x32xf32>
      %475 = arith.subf %474, %468 : vector<1x32xf32>
      %476 = arith.mulf %475, %473 : vector<1x32xf32>
      %477 = arith.mulf %468, %442 : vector<1x32xf32>
      %478 = arith.addf %476, %477 : vector<1x32xf32>
      %479 = vector.broadcast %478 : vector<1x32xf32> to vector<8x32xf32>
      %480 = arith.mulf %373, %479 : vector<8x32xf32>
      %cst_215 = arith.constant dense<0.000000e+00> : vector<8xf32>
      %481 = vector.multi_reduction <add>, %480, %cst_215 [1] : vector<8x32xf32> to vector<8xf32>
      %482 = vector.shape_cast %481 : vector<8xf32> to vector<8x1xf32>
      %cst_216 = arith.constant -1.000000e+30 : f32
      %483 = vector.broadcast %cst_216 : f32 to vector<8x1xf32>
      %484 = arith.select %379, %482, %483 : vector<8x1xi1>, vector<8x1xf32>
      %cst_217 = arith.constant dense<0xFF800000> : vector<1xf32>
      %485 = vector.multi_reduction <maximumf>, %484, %cst_217 [0] : vector<8x1xf32> to vector<1xf32>
      %486 = vector.shape_cast %485 : vector<1xf32> to vector<1x1xf32>
      %487 = vector.broadcast %486 : vector<1x1xf32> to vector<8x1xf32>
      %488 = arith.subf %484, %487 : vector<8x1xf32>
      %489 = math.exp %488 : vector<8x1xf32>
      %cst_218 = arith.constant dense<0.000000e+00> : vector<1xf32>
      %490 = vector.multi_reduction <add>, %489, %cst_218 [0] : vector<8x1xf32> to vector<1xf32>
      %491 = vector.shape_cast %490 : vector<1xf32> to vector<1x1xf32>
      %492 = tpu.reciprocal %491 {approx = true} : vector<1x1xf32> -> vector<1x1xf32>
      %493 = vector.broadcast %492 : vector<1x1xf32> to vector<8x1xf32>
      %494 = arith.mulf %489, %493 : vector<8x1xf32>
      %495 = vector.broadcast %494 : vector<8x1xf32> to vector<8x32xf32>
      %496 = arith.mulf %495, %376 : vector<8x32xf32>
      %cst_219 = arith.constant dense<0.000000e+00> : vector<32xf32>
      %497 = vector.multi_reduction <add>, %496, %cst_219 [0] : vector<8x32xf32> to vector<32xf32>
      %498 = vector.shape_cast %497 : vector<32xf32> to vector<1x32xf32>
      %499 = arith.truncf %478 : vector<1x32xf32> to vector<1x32xbf16>
      %c0_220 = arith.constant 0 : index
      %c0_221 = arith.constant 0 : index
      %500 = vector.load %arg10[%c0_220, %c0_221] : memref<32x32xbf16, #tpu.memory_space<vmem>>, vector<32x32xbf16>
      %cst_222 = arith.constant dense<0.000000e+00> : vector<1x32xf32>
      %501 = tpu.matmul %499, %500, %cst_222 {dimension_numbers = #tpu.dot_dimension_numbers<[1], [0], [0], [1], [0, 0, 1, 1], [], []>} : vector<1x32xbf16>, vector<32x32xbf16>, vector<1x32xf32> -> vector<1x32xf32>
      %502 = arith.addf %501, %498 : vector<1x32xf32>
      %c0_223 = arith.constant 0 : index
      %c0_224 = arith.constant 0 : index
      %503 = vector.load %arg12[%c0_223, %c0_224] : memref<1x32xf32, #tpu.memory_space<vmem>>, vector<1x32xf32>
      %504 = arith.addf %502, %503 : vector<1x32xf32>
      %505 = math.tanh %504 : vector<1x32xf32>
      %506 = arith.truncf %505 : vector<1x32xf32> to vector<1x32xbf16>
      %c0_225 = arith.constant 0 : index
      %c0_226 = arith.constant 0 : index
      %507 = vector.load %arg13[%c0_225, %c0_226] : memref<32x128xbf16, #tpu.memory_space<vmem>>, vector<32x128xbf16>
      %cst_227 = arith.constant dense<0.000000e+00> : vector<1x128xf32>
      %508 = tpu.matmul %506, %507, %cst_227 {dimension_numbers = #tpu.dot_dimension_numbers<[1], [0], [0], [1], [0, 0, 1, 1], [], []>} : vector<1x32xbf16>, vector<32x128xbf16>, vector<1x128xf32> -> vector<1x128xf32>
      %c0_228 = arith.constant 0 : index
      %c0_229 = arith.constant 0 : index
      %509 = vector.load %arg14[%c0_228, %c0_229] : memref<1x128xf32, #tpu.memory_space<vmem>>, vector<1x128xf32>
      %510 = arith.addf %508, %509 : vector<1x128xf32>
      %c64_i32 = arith.constant 64 : i32
      %511 = vector.broadcast %c64_i32 : i32 to vector<1x128xi32>
      %512 = arith.cmpi slt, %1, %511 : vector<1x128xi32>
      %cst_230 = arith.constant -1.000000e+30 : f32
      %513 = vector.broadcast %cst_230 : f32 to vector<1x128xf32>
      %514 = arith.select %512, %510, %513 : vector<1x128xi1>, vector<1x128xf32>
      %cst_231 = arith.constant dense<0xFF800000> : vector<1xf32>
      %515 = vector.multi_reduction <maximumf>, %514, %cst_231 [1] : vector<1x128xf32> to vector<1xf32>
      %516 = vector.shape_cast %515 : vector<1xf32> to vector<1x1xf32>
      %517 = vector.broadcast %516 : vector<1x1xf32> to vector<1x128xf32>
      %518 = arith.cmpf oeq, %514, %517 : vector<1x128xf32>
      %c128_i32 = arith.constant 128 : i32
      %519 = vector.broadcast %c128_i32 : i32 to vector<1x128xi32>
      %520 = arith.select %518, %1, %519 : vector<1x128xi1>, vector<1x128xi32>
      %cst_232 = arith.constant dense<2147483647> : vector<1xi32>
      %521 = vector.multi_reduction <minsi>, %520, %cst_232 [1] : vector<1x128xi32> to vector<1xi32>
      %522 = vector.shape_cast %521 : vector<1xi32> to vector<1x1xi32>
      %523 = vector.broadcast %522 : vector<1x1xi32> to vector<1x128xi32>
      %524 = arith.cmpi eq, %1, %523 : vector<1x128xi32>
      %cst_233 = arith.constant 1.000000e+00 : f32
      %cst_234 = arith.constant 0.000000e+00 : f32
      %525 = vector.broadcast %cst_233 : f32 to vector<1x128xf32>
      %526 = vector.broadcast %cst_234 : f32 to vector<1x128xf32>
      %527 = arith.select %524, %525, %526 : vector<1x128xi1>, vector<1x128xf32>
      %528 = arith.truncf %527 : vector<1x128xf32> to vector<1x128xbf16>
      %c0_235 = arith.constant 0 : index
      %c0_236 = arith.constant 0 : index
      %529 = vector.load %arg19[%c0_235, %c0_236] : memref<1x128xbf16, #tpu.memory_space<vmem>>, vector<1x128xbf16>
      tpu.vector_store %arg19[%c0_235, %c0_236], %528 {strides = array<i32>} : memref<1x128xbf16, #tpu.memory_space<vmem>>, vector<1x128xbf16>,
      %c0_237 = arith.constant 0 : index
      %c0_238 = arith.constant 0 : index
      %530 = vector.load %arg18[%c0_237, %c0_238] : memref<1x32xf32, #tpu.memory_space<vmem>>, vector<1x32xf32>
      tpu.vector_store %arg18[%c0_237, %c0_238], %478 {strides = array<i32>} : memref<1x32xf32, #tpu.memory_space<vmem>>, vector<1x32xf32>,
      %531 = vector.shape_cast %520 : vector<1x128xi32> to vector<1x1x128xi32>
      %cst_239 = arith.constant dense<2147483647> : vector<1xi32>
      %532 = vector.multi_reduction <minsi>, %531, %cst_239 [1, 2] : vector<1x1x128xi32> to vector<1xi32>
      %533 = vector.shape_cast %532 : vector<1xi32> to vector<1x1x1xi32>
      %534 = vector.extract %533[0, 0, 0] : i32 from vector<1x1x1xi32>
      %c0_240 = arith.constant 0 : index
      %535 = memref.load %arg20[%c0_240] : memref<1xi32, #tpu.memory_space<smem>>
      %536 = arith.index_cast %535 : i32 to index
      %537 = memref.load %arg15[%536] : memref<10xi32, #tpu.memory_space<smem>>
      memref.store %534, %arg15[%536] : memref<10xi32, #tpu.memory_space<smem>>
      %c1_i32_241 = arith.constant 1 : i32
      %538 = arith.addi %535, %c1_i32_241 : i32
      %c0_242 = arith.constant 0 : index
      %539 = memref.load %arg20[%c0_242] : memref<1xi32, #tpu.memory_space<smem>>
      memref.store %538, %arg20[%c0_242] : memref<1xi32, #tpu.memory_space<smem>>
      %c2_i32_243 = arith.constant 2 : i32
      %540 = arith.cmpi eq, %534, %c2_i32_243 : i32
      %c1_i32_244 = arith.constant 1 : i32
      %c0_i32_245 = arith.constant 0 : i32
      %541 = arith.select %540, %c1_i32_244, %c0_i32_245 : i32
      %c0_246 = arith.constant 0 : index
      %542 = memref.load %arg21[%c0_246] : memref<1xi32, #tpu.memory_space<smem>>
      memref.store %541, %arg21[%c0_246] : memref<1xi32, #tpu.memory_space<smem>>
    } else {
    }
    %c0_175 = arith.constant 0 : index
    %412 = memref.load %arg21[%c0_175] : memref<1xi32, #tpu.memory_space<smem>>
    %c0_i32_176 = arith.constant 0 : i32
    %413 = arith.cmpi eq, %412, %c0_i32_176 : i32
    %414 = arith.extui %413 : i1 to i32
    %c0_i32_177 = arith.constant 0 : i32
    %415 = arith.cmpi ne, %414, %c0_i32_177 : i32
    scf.if %415 {
      %c0_198 = arith.constant 0 : index
      %c0_199 = arith.constant 0 : index
      %442 = vector.load %arg18[%c0_198, %c0_199] : memref<1x32xf32, #tpu.memory_space<vmem>>, vector<1x32xf32>
      %c0_200 = arith.constant 0 : index
      %c0_201 = arith.constant 0 : index
      %443 = vector.load %arg19[%c0_200, %c0_201] : memref<1x128xbf16, #tpu.memory_space<vmem>>, vector<1x128xbf16>
      %c0_202 = arith.constant 0 : index
      %c0_203 = arith.constant 0 : index
      %444 = vector.load %arg6[%c0_202, %c0_203] : memref<128x96xbf16, #tpu.memory_space<vmem>>, vector<128x96xbf16>
      %cst_204 = arith.constant dense<0.000000e+00> : vector<1x96xf32>
      %445 = tpu.matmul %443, %444, %cst_204 {dimension_numbers = #tpu.dot_dimension_numbers<[1], [0], [0], [1], [0, 0, 1, 1], [], []>} : vector<1x128xbf16>, vector<128x96xbf16>, vector<1x96xf32> -> vector<1x96xf32>
      %c0_205 = arith.constant 0 : index
      %c0_206 = arith.constant 0 : index
      %446 = vector.load %arg8[%c0_205, %c0_206] : memref<1x96xf32, #tpu.memory_space<vmem>>, vector<1x96xf32>
      %447 = arith.addf %445, %446 : vector<1x96xf32>
      %448 = arith.truncf %442 : vector<1x32xf32> to vector<1x32xbf16>
      %c0_207 = arith.constant 0 : index
      %c0_208 = arith.constant 0 : index
      %449 = vector.load %arg7[%c0_207, %c0_208] : memref<32x96xbf16, #tpu.memory_space<vmem>>, vector<32x96xbf16>
      %cst_209 = arith.constant dense<0.000000e+00> : vector<1x96xf32>
      %450 = tpu.matmul %448, %449, %cst_209 {dimension_numbers = #tpu.dot_dimension_numbers<[1], [0], [0], [1], [0, 0, 1, 1], [], []>} : vector<1x32xbf16>, vector<32x96xbf16>, vector<1x96xf32> -> vector<1x96xf32>
      %c0_210 = arith.constant 0 : index
      %c0_211 = arith.constant 0 : index
      %451 = vector.load %arg9[%c0_210, %c0_211] : memref<1x96xf32, #tpu.memory_space<vmem>>, vector<1x96xf32>
      %452 = arith.addf %450, %451 : vector<1x96xf32>
      %453 = vector.extract_strided_slice %447 {offsets = [0, 0], sizes = [1, 32], strides = [1, 1]} : vector<1x96xf32> to vector<1x32xf32>
      %454 = vector.extract_strided_slice %452 {offsets = [0, 0], sizes = [1, 32], strides = [1, 1]} : vector<1x96xf32> to vector<1x32xf32>
      %455 = arith.addf %453, %454 : vector<1x32xf32>
      %456 = arith.negf %455 : vector<1x32xf32>
      %457 = math.exp %456 : vector<1x32xf32>
      %cst_212 = arith.constant 1.000000e+00 : f32
      %458 = vector.broadcast %cst_212 : f32 to vector<1x32xf32>
      %459 = arith.addf %458, %457 : vector<1x32xf32>
      %460 = arith.divf %458, %459 : vector<1x32xf32>
      %461 = vector.extract_strided_slice %447 {offsets = [0, 32], sizes = [1, 32], strides = [1, 1]} : vector<1x96xf32> to vector<1x32xf32>
      %462 = vector.extract_strided_slice %452 {offsets = [0, 32], sizes = [1, 32], strides = [1, 1]} : vector<1x96xf32> to vector<1x32xf32>
      %463 = arith.addf %461, %462 : vector<1x32xf32>
      %464 = arith.negf %463 : vector<1x32xf32>
      %465 = math.exp %464 : vector<1x32xf32>
      %cst_213 = arith.constant 1.000000e+00 : f32
      %466 = vector.broadcast %cst_213 : f32 to vector<1x32xf32>
      %467 = arith.addf %466, %465 : vector<1x32xf32>
      %468 = arith.divf %466, %467 : vector<1x32xf32>
      %469 = vector.extract_strided_slice %447 {offsets = [0, 64], sizes = [1, 32], strides = [1, 1]} : vector<1x96xf32> to vector<1x32xf32>
      %470 = vector.extract_strided_slice %452 {offsets = [0, 64], sizes = [1, 32], strides = [1, 1]} : vector<1x96xf32> to vector<1x32xf32>
      %471 = arith.mulf %460, %470 : vector<1x32xf32>
      %472 = arith.addf %469, %471 : vector<1x32xf32>
      %473 = math.tanh %472 : vector<1x32xf32>
      %cst_214 = arith.constant 1.000000e+00 : f32
      %474 = vector.broadcast %cst_214 : f32 to vector<1x32xf32>
      %475 = arith.subf %474, %468 : vector<1x32xf32>
      %476 = arith.mulf %475, %473 : vector<1x32xf32>
      %477 = arith.mulf %468, %442 : vector<1x32xf32>
      %478 = arith.addf %476, %477 : vector<1x32xf32>
      %479 = vector.broadcast %478 : vector<1x32xf32> to vector<8x32xf32>
      %480 = arith.mulf %373, %479 : vector<8x32xf32>
      %cst_215 = arith.constant dense<0.000000e+00> : vector<8xf32>
      %481 = vector.multi_reduction <add>, %480, %cst_215 [1] : vector<8x32xf32> to vector<8xf32>
      %482 = vector.shape_cast %481 : vector<8xf32> to vector<8x1xf32>
      %cst_216 = arith.constant -1.000000e+30 : f32
      %483 = vector.broadcast %cst_216 : f32 to vector<8x1xf32>
      %484 = arith.select %379, %482, %483 : vector<8x1xi1>, vector<8x1xf32>
      %cst_217 = arith.constant dense<0xFF800000> : vector<1xf32>
      %485 = vector.multi_reduction <maximumf>, %484, %cst_217 [0] : vector<8x1xf32> to vector<1xf32>
      %486 = vector.shape_cast %485 : vector<1xf32> to vector<1x1xf32>
      %487 = vector.broadcast %486 : vector<1x1xf32> to vector<8x1xf32>
      %488 = arith.subf %484, %487 : vector<8x1xf32>
      %489 = math.exp %488 : vector<8x1xf32>
      %cst_218 = arith.constant dense<0.000000e+00> : vector<1xf32>
      %490 = vector.multi_reduction <add>, %489, %cst_218 [0] : vector<8x1xf32> to vector<1xf32>
      %491 = vector.shape_cast %490 : vector<1xf32> to vector<1x1xf32>
      %492 = tpu.reciprocal %491 {approx = true} : vector<1x1xf32> -> vector<1x1xf32>
      %493 = vector.broadcast %492 : vector<1x1xf32> to vector<8x1xf32>
      %494 = arith.mulf %489, %493 : vector<8x1xf32>
      %495 = vector.broadcast %494 : vector<8x1xf32> to vector<8x32xf32>
      %496 = arith.mulf %495, %376 : vector<8x32xf32>
      %cst_219 = arith.constant dense<0.000000e+00> : vector<32xf32>
      %497 = vector.multi_reduction <add>, %496, %cst_219 [0] : vector<8x32xf32> to vector<32xf32>
      %498 = vector.shape_cast %497 : vector<32xf32> to vector<1x32xf32>
      %499 = arith.truncf %478 : vector<1x32xf32> to vector<1x32xbf16>
      %c0_220 = arith.constant 0 : index
      %c0_221 = arith.constant 0 : index
      %500 = vector.load %arg10[%c0_220, %c0_221] : memref<32x32xbf16, #tpu.memory_space<vmem>>, vector<32x32xbf16>
      %cst_222 = arith.constant dense<0.000000e+00> : vector<1x32xf32>
      %501 = tpu.matmul %499, %500, %cst_222 {dimension_numbers = #tpu.dot_dimension_numbers<[1], [0], [0], [1], [0, 0, 1, 1], [], []>} : vector<1x32xbf16>, vector<32x32xbf16>, vector<1x32xf32> -> vector<1x32xf32>
      %502 = arith.addf %501, %498 : vector<1x32xf32>
      %c0_223 = arith.constant 0 : index
      %c0_224 = arith.constant 0 : index
      %503 = vector.load %arg12[%c0_223, %c0_224] : memref<1x32xf32, #tpu.memory_space<vmem>>, vector<1x32xf32>
      %504 = arith.addf %502, %503 : vector<1x32xf32>
      %505 = math.tanh %504 : vector<1x32xf32>
      %506 = arith.truncf %505 : vector<1x32xf32> to vector<1x32xbf16>
      %c0_225 = arith.constant 0 : index
      %c0_226 = arith.constant 0 : index
      %507 = vector.load %arg13[%c0_225, %c0_226] : memref<32x128xbf16, #tpu.memory_space<vmem>>, vector<32x128xbf16>
      %cst_227 = arith.constant dense<0.000000e+00> : vector<1x128xf32>
      %508 = tpu.matmul %506, %507, %cst_227 {dimension_numbers = #tpu.dot_dimension_numbers<[1], [0], [0], [1], [0, 0, 1, 1], [], []>} : vector<1x32xbf16>, vector<32x128xbf16>, vector<1x128xf32> -> vector<1x128xf32>
      %c0_228 = arith.constant 0 : index
      %c0_229 = arith.constant 0 : index
      %509 = vector.load %arg14[%c0_228, %c0_229] : memref<1x128xf32, #tpu.memory_space<vmem>>, vector<1x128xf32>
      %510 = arith.addf %508, %509 : vector<1x128xf32>
      %c64_i32 = arith.constant 64 : i32
      %511 = vector.broadcast %c64_i32 : i32 to vector<1x128xi32>
      %512 = arith.cmpi slt, %1, %511 : vector<1x128xi32>
      %cst_230 = arith.constant -1.000000e+30 : f32
      %513 = vector.broadcast %cst_230 : f32 to vector<1x128xf32>
      %514 = arith.select %512, %510, %513 : vector<1x128xi1>, vector<1x128xf32>
      %cst_231 = arith.constant dense<0xFF800000> : vector<1xf32>
      %515 = vector.multi_reduction <maximumf>, %514, %cst_231 [1] : vector<1x128xf32> to vector<1xf32>
      %516 = vector.shape_cast %515 : vector<1xf32> to vector<1x1xf32>
      %517 = vector.broadcast %516 : vector<1x1xf32> to vector<1x128xf32>
      %518 = arith.cmpf oeq, %514, %517 : vector<1x128xf32>
      %c128_i32 = arith.constant 128 : i32
      %519 = vector.broadcast %c128_i32 : i32 to vector<1x128xi32>
      %520 = arith.select %518, %1, %519 : vector<1x128xi1>, vector<1x128xi32>
      %cst_232 = arith.constant dense<2147483647> : vector<1xi32>
      %521 = vector.multi_reduction <minsi>, %520, %cst_232 [1] : vector<1x128xi32> to vector<1xi32>
      %522 = vector.shape_cast %521 : vector<1xi32> to vector<1x1xi32>
      %523 = vector.broadcast %522 : vector<1x1xi32> to vector<1x128xi32>
      %524 = arith.cmpi eq, %1, %523 : vector<1x128xi32>
      %cst_233 = arith.constant 1.000000e+00 : f32
      %cst_234 = arith.constant 0.000000e+00 : f32
      %525 = vector.broadcast %cst_233 : f32 to vector<1x128xf32>
      %526 = vector.broadcast %cst_234 : f32 to vector<1x128xf32>
      %527 = arith.select %524, %525, %526 : vector<1x128xi1>, vector<1x128xf32>
      %528 = arith.truncf %527 : vector<1x128xf32> to vector<1x128xbf16>
      %c0_235 = arith.constant 0 : index
      %c0_236 = arith.constant 0 : index
      %529 = vector.load %arg19[%c0_235, %c0_236] : memref<1x128xbf16, #tpu.memory_space<vmem>>, vector<1x128xbf16>
      tpu.vector_store %arg19[%c0_235, %c0_236], %528 {strides = array<i32>} : memref<1x128xbf16, #tpu.memory_space<vmem>>, vector<1x128xbf16>,
      %c0_237 = arith.constant 0 : index
      %c0_238 = arith.constant 0 : index
      %530 = vector.load %arg18[%c0_237, %c0_238] : memref<1x32xf32, #tpu.memory_space<vmem>>, vector<1x32xf32>
      tpu.vector_store %arg18[%c0_237, %c0_238], %478 {strides = array<i32>} : memref<1x32xf32, #tpu.memory_space<vmem>>, vector<1x32xf32>,
      %531 = vector.shape_cast %520 : vector<1x128xi32> to vector<1x1x128xi32>
      %cst_239 = arith.constant dense<2147483647> : vector<1xi32>
      %532 = vector.multi_reduction <minsi>, %531, %cst_239 [1, 2] : vector<1x1x128xi32> to vector<1xi32>
      %533 = vector.shape_cast %532 : vector<1xi32> to vector<1x1x1xi32>
      %534 = vector.extract %533[0, 0, 0] : i32 from vector<1x1x1xi32>
      %c0_240 = arith.constant 0 : index
      %535 = memref.load %arg20[%c0_240] : memref<1xi32, #tpu.memory_space<smem>>
      %536 = arith.index_cast %535 : i32 to index
      %537 = memref.load %arg15[%536] : memref<10xi32, #tpu.memory_space<smem>>
      memref.store %534, %arg15[%536] : memref<10xi32, #tpu.memory_space<smem>>
      %c1_i32_241 = arith.constant 1 : i32
      %538 = arith.addi %535, %c1_i32_241 : i32
      %c0_242 = arith.constant 0 : index
      %539 = memref.load %arg20[%c0_242] : memref<1xi32, #tpu.memory_space<smem>>
      memref.store %538, %arg20[%c0_242] : memref<1xi32, #tpu.memory_space<smem>>
      %c2_i32_243 = arith.constant 2 : i32
      %540 = arith.cmpi eq, %534, %c2_i32_243 : i32
      %c1_i32_244 = arith.constant 1 : i32
      %c0_i32_245 = arith.constant 0 : i32
      %541 = arith.select %540, %c1_i32_244, %c0_i32_245 : i32
      %c0_246 = arith.constant 0 : index
      %542 = memref.load %arg21[%c0_246] : memref<1xi32, #tpu.memory_space<smem>>
      memref.store %541, %arg21[%c0_246] : memref<1xi32, #tpu.memory_space<smem>>
    } else {
    }
    %c0_178 = arith.constant 0 : index
    %416 = memref.load %arg21[%c0_178] : memref<1xi32, #tpu.memory_space<smem>>
    %c0_i32_179 = arith.constant 0 : i32
    %417 = arith.cmpi eq, %416, %c0_i32_179 : i32
    %418 = arith.extui %417 : i1 to i32
    %c0_i32_180 = arith.constant 0 : i32
    %419 = arith.cmpi ne, %418, %c0_i32_180 : i32
    scf.if %419 {
      %c0_198 = arith.constant 0 : index
      %c0_199 = arith.constant 0 : index
      %442 = vector.load %arg18[%c0_198, %c0_199] : memref<1x32xf32, #tpu.memory_space<vmem>>, vector<1x32xf32>
      %c0_200 = arith.constant 0 : index
      %c0_201 = arith.constant 0 : index
      %443 = vector.load %arg19[%c0_200, %c0_201] : memref<1x128xbf16, #tpu.memory_space<vmem>>, vector<1x128xbf16>
      %c0_202 = arith.constant 0 : index
      %c0_203 = arith.constant 0 : index
      %444 = vector.load %arg6[%c0_202, %c0_203] : memref<128x96xbf16, #tpu.memory_space<vmem>>, vector<128x96xbf16>
      %cst_204 = arith.constant dense<0.000000e+00> : vector<1x96xf32>
      %445 = tpu.matmul %443, %444, %cst_204 {dimension_numbers = #tpu.dot_dimension_numbers<[1], [0], [0], [1], [0, 0, 1, 1], [], []>} : vector<1x128xbf16>, vector<128x96xbf16>, vector<1x96xf32> -> vector<1x96xf32>
      %c0_205 = arith.constant 0 : index
      %c0_206 = arith.constant 0 : index
      %446 = vector.load %arg8[%c0_205, %c0_206] : memref<1x96xf32, #tpu.memory_space<vmem>>, vector<1x96xf32>
      %447 = arith.addf %445, %446 : vector<1x96xf32>
      %448 = arith.truncf %442 : vector<1x32xf32> to vector<1x32xbf16>
      %c0_207 = arith.constant 0 : index
      %c0_208 = arith.constant 0 : index
      %449 = vector.load %arg7[%c0_207, %c0_208] : memref<32x96xbf16, #tpu.memory_space<vmem>>, vector<32x96xbf16>
      %cst_209 = arith.constant dense<0.000000e+00> : vector<1x96xf32>
      %450 = tpu.matmul %448, %449, %cst_209 {dimension_numbers = #tpu.dot_dimension_numbers<[1], [0], [0], [1], [0, 0, 1, 1], [], []>} : vector<1x32xbf16>, vector<32x96xbf16>, vector<1x96xf32> -> vector<1x96xf32>
      %c0_210 = arith.constant 0 : index
      %c0_211 = arith.constant 0 : index
      %451 = vector.load %arg9[%c0_210, %c0_211] : memref<1x96xf32, #tpu.memory_space<vmem>>, vector<1x96xf32>
      %452 = arith.addf %450, %451 : vector<1x96xf32>
      %453 = vector.extract_strided_slice %447 {offsets = [0, 0], sizes = [1, 32], strides = [1, 1]} : vector<1x96xf32> to vector<1x32xf32>
      %454 = vector.extract_strided_slice %452 {offsets = [0, 0], sizes = [1, 32], strides = [1, 1]} : vector<1x96xf32> to vector<1x32xf32>
      %455 = arith.addf %453, %454 : vector<1x32xf32>
      %456 = arith.negf %455 : vector<1x32xf32>
      %457 = math.exp %456 : vector<1x32xf32>
      %cst_212 = arith.constant 1.000000e+00 : f32
      %458 = vector.broadcast %cst_212 : f32 to vector<1x32xf32>
      %459 = arith.addf %458, %457 : vector<1x32xf32>
      %460 = arith.divf %458, %459 : vector<1x32xf32>
      %461 = vector.extract_strided_slice %447 {offsets = [0, 32], sizes = [1, 32], strides = [1, 1]} : vector<1x96xf32> to vector<1x32xf32>
      %462 = vector.extract_strided_slice %452 {offsets = [0, 32], sizes = [1, 32], strides = [1, 1]} : vector<1x96xf32> to vector<1x32xf32>
      %463 = arith.addf %461, %462 : vector<1x32xf32>
      %464 = arith.negf %463 : vector<1x32xf32>
      %465 = math.exp %464 : vector<1x32xf32>
      %cst_213 = arith.constant 1.000000e+00 : f32
      %466 = vector.broadcast %cst_213 : f32 to vector<1x32xf32>
      %467 = arith.addf %466, %465 : vector<1x32xf32>
      %468 = arith.divf %466, %467 : vector<1x32xf32>
      %469 = vector.extract_strided_slice %447 {offsets = [0, 64], sizes = [1, 32], strides = [1, 1]} : vector<1x96xf32> to vector<1x32xf32>
      %470 = vector.extract_strided_slice %452 {offsets = [0, 64], sizes = [1, 32], strides = [1, 1]} : vector<1x96xf32> to vector<1x32xf32>
      %471 = arith.mulf %460, %470 : vector<1x32xf32>
      %472 = arith.addf %469, %471 : vector<1x32xf32>
      %473 = math.tanh %472 : vector<1x32xf32>
      %cst_214 = arith.constant 1.000000e+00 : f32
      %474 = vector.broadcast %cst_214 : f32 to vector<1x32xf32>
      %475 = arith.subf %474, %468 : vector<1x32xf32>
      %476 = arith.mulf %475, %473 : vector<1x32xf32>
      %477 = arith.mulf %468, %442 : vector<1x32xf32>
      %478 = arith.addf %476, %477 : vector<1x32xf32>
      %479 = vector.broadcast %478 : vector<1x32xf32> to vector<8x32xf32>
      %480 = arith.mulf %373, %479 : vector<8x32xf32>
      %cst_215 = arith.constant dense<0.000000e+00> : vector<8xf32>
      %481 = vector.multi_reduction <add>, %480, %cst_215 [1] : vector<8x32xf32> to vector<8xf32>
      %482 = vector.shape_cast %481 : vector<8xf32> to vector<8x1xf32>
      %cst_216 = arith.constant -1.000000e+30 : f32
      %483 = vector.broadcast %cst_216 : f32 to vector<8x1xf32>
      %484 = arith.select %379, %482, %483 : vector<8x1xi1>, vector<8x1xf32>
      %cst_217 = arith.constant dense<0xFF800000> : vector<1xf32>
      %485 = vector.multi_reduction <maximumf>, %484, %cst_217 [0] : vector<8x1xf32> to vector<1xf32>
      %486 = vector.shape_cast %485 : vector<1xf32> to vector<1x1xf32>
      %487 = vector.broadcast %486 : vector<1x1xf32> to vector<8x1xf32>
      %488 = arith.subf %484, %487 : vector<8x1xf32>
      %489 = math.exp %488 : vector<8x1xf32>
      %cst_218 = arith.constant dense<0.000000e+00> : vector<1xf32>
      %490 = vector.multi_reduction <add>, %489, %cst_218 [0] : vector<8x1xf32> to vector<1xf32>
      %491 = vector.shape_cast %490 : vector<1xf32> to vector<1x1xf32>
      %492 = tpu.reciprocal %491 {approx = true} : vector<1x1xf32> -> vector<1x1xf32>
      %493 = vector.broadcast %492 : vector<1x1xf32> to vector<8x1xf32>
      %494 = arith.mulf %489, %493 : vector<8x1xf32>
      %495 = vector.broadcast %494 : vector<8x1xf32> to vector<8x32xf32>
      %496 = arith.mulf %495, %376 : vector<8x32xf32>
      %cst_219 = arith.constant dense<0.000000e+00> : vector<32xf32>
      %497 = vector.multi_reduction <add>, %496, %cst_219 [0] : vector<8x32xf32> to vector<32xf32>
      %498 = vector.shape_cast %497 : vector<32xf32> to vector<1x32xf32>
      %499 = arith.truncf %478 : vector<1x32xf32> to vector<1x32xbf16>
      %c0_220 = arith.constant 0 : index
      %c0_221 = arith.constant 0 : index
      %500 = vector.load %arg10[%c0_220, %c0_221] : memref<32x32xbf16, #tpu.memory_space<vmem>>, vector<32x32xbf16>
      %cst_222 = arith.constant dense<0.000000e+00> : vector<1x32xf32>
      %501 = tpu.matmul %499, %500, %cst_222 {dimension_numbers = #tpu.dot_dimension_numbers<[1], [0], [0], [1], [0, 0, 1, 1], [], []>} : vector<1x32xbf16>, vector<32x32xbf16>, vector<1x32xf32> -> vector<1x32xf32>
      %502 = arith.addf %501, %498 : vector<1x32xf32>
      %c0_223 = arith.constant 0 : index
      %c0_224 = arith.constant 0 : index
      %503 = vector.load %arg12[%c0_223, %c0_224] : memref<1x32xf32, #tpu.memory_space<vmem>>, vector<1x32xf32>
      %504 = arith.addf %502, %503 : vector<1x32xf32>
      %505 = math.tanh %504 : vector<1x32xf32>
      %506 = arith.truncf %505 : vector<1x32xf32> to vector<1x32xbf16>
      %c0_225 = arith.constant 0 : index
      %c0_226 = arith.constant 0 : index
      %507 = vector.load %arg13[%c0_225, %c0_226] : memref<32x128xbf16, #tpu.memory_space<vmem>>, vector<32x128xbf16>
      %cst_227 = arith.constant dense<0.000000e+00> : vector<1x128xf32>
      %508 = tpu.matmul %506, %507, %cst_227 {dimension_numbers = #tpu.dot_dimension_numbers<[1], [0], [0], [1], [0, 0, 1, 1], [], []>} : vector<1x32xbf16>, vector<32x128xbf16>, vector<1x128xf32> -> vector<1x128xf32>
      %c0_228 = arith.constant 0 : index
      %c0_229 = arith.constant 0 : index
      %509 = vector.load %arg14[%c0_228, %c0_229] : memref<1x128xf32, #tpu.memory_space<vmem>>, vector<1x128xf32>
      %510 = arith.addf %508, %509 : vector<1x128xf32>
      %c64_i32 = arith.constant 64 : i32
      %511 = vector.broadcast %c64_i32 : i32 to vector<1x128xi32>
      %512 = arith.cmpi slt, %1, %511 : vector<1x128xi32>
      %cst_230 = arith.constant -1.000000e+30 : f32
      %513 = vector.broadcast %cst_230 : f32 to vector<1x128xf32>
      %514 = arith.select %512, %510, %513 : vector<1x128xi1>, vector<1x128xf32>
      %cst_231 = arith.constant dense<0xFF800000> : vector<1xf32>
      %515 = vector.multi_reduction <maximumf>, %514, %cst_231 [1] : vector<1x128xf32> to vector<1xf32>
      %516 = vector.shape_cast %515 : vector<1xf32> to vector<1x1xf32>
      %517 = vector.broadcast %516 : vector<1x1xf32> to vector<1x128xf32>
      %518 = arith.cmpf oeq, %514, %517 : vector<1x128xf32>
      %c128_i32 = arith.constant 128 : i32
      %519 = vector.broadcast %c128_i32 : i32 to vector<1x128xi32>
      %520 = arith.select %518, %1, %519 : vector<1x128xi1>, vector<1x128xi32>
      %cst_232 = arith.constant dense<2147483647> : vector<1xi32>
      %521 = vector.multi_reduction <minsi>, %520, %cst_232 [1] : vector<1x128xi32> to vector<1xi32>
      %522 = vector.shape_cast %521 : vector<1xi32> to vector<1x1xi32>
      %523 = vector.broadcast %522 : vector<1x1xi32> to vector<1x128xi32>
      %524 = arith.cmpi eq, %1, %523 : vector<1x128xi32>
      %cst_233 = arith.constant 1.000000e+00 : f32
      %cst_234 = arith.constant 0.000000e+00 : f32
      %525 = vector.broadcast %cst_233 : f32 to vector<1x128xf32>
      %526 = vector.broadcast %cst_234 : f32 to vector<1x128xf32>
      %527 = arith.select %524, %525, %526 : vector<1x128xi1>, vector<1x128xf32>
      %528 = arith.truncf %527 : vector<1x128xf32> to vector<1x128xbf16>
      %c0_235 = arith.constant 0 : index
      %c0_236 = arith.constant 0 : index
      %529 = vector.load %arg19[%c0_235, %c0_236] : memref<1x128xbf16, #tpu.memory_space<vmem>>, vector<1x128xbf16>
      tpu.vector_store %arg19[%c0_235, %c0_236], %528 {strides = array<i32>} : memref<1x128xbf16, #tpu.memory_space<vmem>>, vector<1x128xbf16>,
      %c0_237 = arith.constant 0 : index
      %c0_238 = arith.constant 0 : index
      %530 = vector.load %arg18[%c0_237, %c0_238] : memref<1x32xf32, #tpu.memory_space<vmem>>, vector<1x32xf32>
      tpu.vector_store %arg18[%c0_237, %c0_238], %478 {strides = array<i32>} : memref<1x32xf32, #tpu.memory_space<vmem>>, vector<1x32xf32>,
      %531 = vector.shape_cast %520 : vector<1x128xi32> to vector<1x1x128xi32>
      %cst_239 = arith.constant dense<2147483647> : vector<1xi32>
      %532 = vector.multi_reduction <minsi>, %531, %cst_239 [1, 2] : vector<1x1x128xi32> to vector<1xi32>
      %533 = vector.shape_cast %532 : vector<1xi32> to vector<1x1x1xi32>
      %534 = vector.extract %533[0, 0, 0] : i32 from vector<1x1x1xi32>
      %c0_240 = arith.constant 0 : index
      %535 = memref.load %arg20[%c0_240] : memref<1xi32, #tpu.memory_space<smem>>
      %536 = arith.index_cast %535 : i32 to index
      %537 = memref.load %arg15[%536] : memref<10xi32, #tpu.memory_space<smem>>
      memref.store %534, %arg15[%536] : memref<10xi32, #tpu.memory_space<smem>>
      %c1_i32_241 = arith.constant 1 : i32
      %538 = arith.addi %535, %c1_i32_241 : i32
      %c0_242 = arith.constant 0 : index
      %539 = memref.load %arg20[%c0_242] : memref<1xi32, #tpu.memory_space<smem>>
      memref.store %538, %arg20[%c0_242] : memref<1xi32, #tpu.memory_space<smem>>
      %c2_i32_243 = arith.constant 2 : i32
      %540 = arith.cmpi eq, %534, %c2_i32_243 : i32
      %c1_i32_244 = arith.constant 1 : i32
      %c0_i32_245 = arith.constant 0 : i32
      %541 = arith.select %540, %c1_i32_244, %c0_i32_245 : i32
      %c0_246 = arith.constant 0 : index
      %542 = memref.load %arg21[%c0_246] : memref<1xi32, #tpu.memory_space<smem>>
      memref.store %541, %arg21[%c0_246] : memref<1xi32, #tpu.memory_space<smem>>
    } else {
    }
    %c0_181 = arith.constant 0 : index
    %420 = memref.load %arg21[%c0_181] : memref<1xi32, #tpu.memory_space<smem>>
    %c0_i32_182 = arith.constant 0 : i32
    %421 = arith.cmpi eq, %420, %c0_i32_182 : i32
    %422 = arith.extui %421 : i1 to i32
    %c0_i32_183 = arith.constant 0 : i32
    %423 = arith.cmpi ne, %422, %c0_i32_183 : i32
    scf.if %423 {
      %c0_198 = arith.constant 0 : index
      %c0_199 = arith.constant 0 : index
      %442 = vector.load %arg18[%c0_198, %c0_199] : memref<1x32xf32, #tpu.memory_space<vmem>>, vector<1x32xf32>
      %c0_200 = arith.constant 0 : index
      %c0_201 = arith.constant 0 : index
      %443 = vector.load %arg19[%c0_200, %c0_201] : memref<1x128xbf16, #tpu.memory_space<vmem>>, vector<1x128xbf16>
      %c0_202 = arith.constant 0 : index
      %c0_203 = arith.constant 0 : index
      %444 = vector.load %arg6[%c0_202, %c0_203] : memref<128x96xbf16, #tpu.memory_space<vmem>>, vector<128x96xbf16>
      %cst_204 = arith.constant dense<0.000000e+00> : vector<1x96xf32>
      %445 = tpu.matmul %443, %444, %cst_204 {dimension_numbers = #tpu.dot_dimension_numbers<[1], [0], [0], [1], [0, 0, 1, 1], [], []>} : vector<1x128xbf16>, vector<128x96xbf16>, vector<1x96xf32> -> vector<1x96xf32>
      %c0_205 = arith.constant 0 : index
      %c0_206 = arith.constant 0 : index
      %446 = vector.load %arg8[%c0_205, %c0_206] : memref<1x96xf32, #tpu.memory_space<vmem>>, vector<1x96xf32>
      %447 = arith.addf %445, %446 : vector<1x96xf32>
      %448 = arith.truncf %442 : vector<1x32xf32> to vector<1x32xbf16>
      %c0_207 = arith.constant 0 : index
      %c0_208 = arith.constant 0 : index
      %449 = vector.load %arg7[%c0_207, %c0_208] : memref<32x96xbf16, #tpu.memory_space<vmem>>, vector<32x96xbf16>
      %cst_209 = arith.constant dense<0.000000e+00> : vector<1x96xf32>
      %450 = tpu.matmul %448, %449, %cst_209 {dimension_numbers = #tpu.dot_dimension_numbers<[1], [0], [0], [1], [0, 0, 1, 1], [], []>} : vector<1x32xbf16>, vector<32x96xbf16>, vector<1x96xf32> -> vector<1x96xf32>
      %c0_210 = arith.constant 0 : index
      %c0_211 = arith.constant 0 : index
      %451 = vector.load %arg9[%c0_210, %c0_211] : memref<1x96xf32, #tpu.memory_space<vmem>>, vector<1x96xf32>
      %452 = arith.addf %450, %451 : vector<1x96xf32>
      %453 = vector.extract_strided_slice %447 {offsets = [0, 0], sizes = [1, 32], strides = [1, 1]} : vector<1x96xf32> to vector<1x32xf32>
      %454 = vector.extract_strided_slice %452 {offsets = [0, 0], sizes = [1, 32], strides = [1, 1]} : vector<1x96xf32> to vector<1x32xf32>
      %455 = arith.addf %453, %454 : vector<1x32xf32>
      %456 = arith.negf %455 : vector<1x32xf32>
      %457 = math.exp %456 : vector<1x32xf32>
      %cst_212 = arith.constant 1.000000e+00 : f32
      %458 = vector.broadcast %cst_212 : f32 to vector<1x32xf32>
      %459 = arith.addf %458, %457 : vector<1x32xf32>
      %460 = arith.divf %458, %459 : vector<1x32xf32>
      %461 = vector.extract_strided_slice %447 {offsets = [0, 32], sizes = [1, 32], strides = [1, 1]} : vector<1x96xf32> to vector<1x32xf32>
      %462 = vector.extract_strided_slice %452 {offsets = [0, 32], sizes = [1, 32], strides = [1, 1]} : vector<1x96xf32> to vector<1x32xf32>
      %463 = arith.addf %461, %462 : vector<1x32xf32>
      %464 = arith.negf %463 : vector<1x32xf32>
      %465 = math.exp %464 : vector<1x32xf32>
      %cst_213 = arith.constant 1.000000e+00 : f32
      %466 = vector.broadcast %cst_213 : f32 to vector<1x32xf32>
      %467 = arith.addf %466, %465 : vector<1x32xf32>
      %468 = arith.divf %466, %467 : vector<1x32xf32>
      %469 = vector.extract_strided_slice %447 {offsets = [0, 64], sizes = [1, 32], strides = [1, 1]} : vector<1x96xf32> to vector<1x32xf32>
      %470 = vector.extract_strided_slice %452 {offsets = [0, 64], sizes = [1, 32], strides = [1, 1]} : vector<1x96xf32> to vector<1x32xf32>
      %471 = arith.mulf %460, %470 : vector<1x32xf32>
      %472 = arith.addf %469, %471 : vector<1x32xf32>
      %473 = math.tanh %472 : vector<1x32xf32>
      %cst_214 = arith.constant 1.000000e+00 : f32
      %474 = vector.broadcast %cst_214 : f32 to vector<1x32xf32>
      %475 = arith.subf %474, %468 : vector<1x32xf32>
      %476 = arith.mulf %475, %473 : vector<1x32xf32>
      %477 = arith.mulf %468, %442 : vector<1x32xf32>
      %478 = arith.addf %476, %477 : vector<1x32xf32>
      %479 = vector.broadcast %478 : vector<1x32xf32> to vector<8x32xf32>
      %480 = arith.mulf %373, %479 : vector<8x32xf32>
      %cst_215 = arith.constant dense<0.000000e+00> : vector<8xf32>
      %481 = vector.multi_reduction <add>, %480, %cst_215 [1] : vector<8x32xf32> to vector<8xf32>
      %482 = vector.shape_cast %481 : vector<8xf32> to vector<8x1xf32>
      %cst_216 = arith.constant -1.000000e+30 : f32
      %483 = vector.broadcast %cst_216 : f32 to vector<8x1xf32>
      %484 = arith.select %379, %482, %483 : vector<8x1xi1>, vector<8x1xf32>
      %cst_217 = arith.constant dense<0xFF800000> : vector<1xf32>
      %485 = vector.multi_reduction <maximumf>, %484, %cst_217 [0] : vector<8x1xf32> to vector<1xf32>
      %486 = vector.shape_cast %485 : vector<1xf32> to vector<1x1xf32>
      %487 = vector.broadcast %486 : vector<1x1xf32> to vector<8x1xf32>
      %488 = arith.subf %484, %487 : vector<8x1xf32>
      %489 = math.exp %488 : vector<8x1xf32>
      %cst_218 = arith.constant dense<0.000000e+00> : vector<1xf32>
      %490 = vector.multi_reduction <add>, %489, %cst_218 [0] : vector<8x1xf32> to vector<1xf32>
      %491 = vector.shape_cast %490 : vector<1xf32> to vector<1x1xf32>
      %492 = tpu.reciprocal %491 {approx = true} : vector<1x1xf32> -> vector<1x1xf32>
      %493 = vector.broadcast %492 : vector<1x1xf32> to vector<8x1xf32>
      %494 = arith.mulf %489, %493 : vector<8x1xf32>
      %495 = vector.broadcast %494 : vector<8x1xf32> to vector<8x32xf32>
      %496 = arith.mulf %495, %376 : vector<8x32xf32>
      %cst_219 = arith.constant dense<0.000000e+00> : vector<32xf32>
      %497 = vector.multi_reduction <add>, %496, %cst_219 [0] : vector<8x32xf32> to vector<32xf32>
      %498 = vector.shape_cast %497 : vector<32xf32> to vector<1x32xf32>
      %499 = arith.truncf %478 : vector<1x32xf32> to vector<1x32xbf16>
      %c0_220 = arith.constant 0 : index
      %c0_221 = arith.constant 0 : index
      %500 = vector.load %arg10[%c0_220, %c0_221] : memref<32x32xbf16, #tpu.memory_space<vmem>>, vector<32x32xbf16>
      %cst_222 = arith.constant dense<0.000000e+00> : vector<1x32xf32>
      %501 = tpu.matmul %499, %500, %cst_222 {dimension_numbers = #tpu.dot_dimension_numbers<[1], [0], [0], [1], [0, 0, 1, 1], [], []>} : vector<1x32xbf16>, vector<32x32xbf16>, vector<1x32xf32> -> vector<1x32xf32>
      %502 = arith.addf %501, %498 : vector<1x32xf32>
      %c0_223 = arith.constant 0 : index
      %c0_224 = arith.constant 0 : index
      %503 = vector.load %arg12[%c0_223, %c0_224] : memref<1x32xf32, #tpu.memory_space<vmem>>, vector<1x32xf32>
      %504 = arith.addf %502, %503 : vector<1x32xf32>
      %505 = math.tanh %504 : vector<1x32xf32>
      %506 = arith.truncf %505 : vector<1x32xf32> to vector<1x32xbf16>
      %c0_225 = arith.constant 0 : index
      %c0_226 = arith.constant 0 : index
      %507 = vector.load %arg13[%c0_225, %c0_226] : memref<32x128xbf16, #tpu.memory_space<vmem>>, vector<32x128xbf16>
      %cst_227 = arith.constant dense<0.000000e+00> : vector<1x128xf32>
      %508 = tpu.matmul %506, %507, %cst_227 {dimension_numbers = #tpu.dot_dimension_numbers<[1], [0], [0], [1], [0, 0, 1, 1], [], []>} : vector<1x32xbf16>, vector<32x128xbf16>, vector<1x128xf32> -> vector<1x128xf32>
      %c0_228 = arith.constant 0 : index
      %c0_229 = arith.constant 0 : index
      %509 = vector.load %arg14[%c0_228, %c0_229] : memref<1x128xf32, #tpu.memory_space<vmem>>, vector<1x128xf32>
      %510 = arith.addf %508, %509 : vector<1x128xf32>
      %c64_i32 = arith.constant 64 : i32
      %511 = vector.broadcast %c64_i32 : i32 to vector<1x128xi32>
      %512 = arith.cmpi slt, %1, %511 : vector<1x128xi32>
      %cst_230 = arith.constant -1.000000e+30 : f32
      %513 = vector.broadcast %cst_230 : f32 to vector<1x128xf32>
      %514 = arith.select %512, %510, %513 : vector<1x128xi1>, vector<1x128xf32>
      %cst_231 = arith.constant dense<0xFF800000> : vector<1xf32>
      %515 = vector.multi_reduction <maximumf>, %514, %cst_231 [1] : vector<1x128xf32> to vector<1xf32>
      %516 = vector.shape_cast %515 : vector<1xf32> to vector<1x1xf32>
      %517 = vector.broadcast %516 : vector<1x1xf32> to vector<1x128xf32>
      %518 = arith.cmpf oeq, %514, %517 : vector<1x128xf32>
      %c128_i32 = arith.constant 128 : i32
      %519 = vector.broadcast %c128_i32 : i32 to vector<1x128xi32>
      %520 = arith.select %518, %1, %519 : vector<1x128xi1>, vector<1x128xi32>
      %cst_232 = arith.constant dense<2147483647> : vector<1xi32>
      %521 = vector.multi_reduction <minsi>, %520, %cst_232 [1] : vector<1x128xi32> to vector<1xi32>
      %522 = vector.shape_cast %521 : vector<1xi32> to vector<1x1xi32>
      %523 = vector.broadcast %522 : vector<1x1xi32> to vector<1x128xi32>
      %524 = arith.cmpi eq, %1, %523 : vector<1x128xi32>
      %cst_233 = arith.constant 1.000000e+00 : f32
      %cst_234 = arith.constant 0.000000e+00 : f32
      %525 = vector.broadcast %cst_233 : f32 to vector<1x128xf32>
      %526 = vector.broadcast %cst_234 : f32 to vector<1x128xf32>
      %527 = arith.select %524, %525, %526 : vector<1x128xi1>, vector<1x128xf32>
      %528 = arith.truncf %527 : vector<1x128xf32> to vector<1x128xbf16>
      %c0_235 = arith.constant 0 : index
      %c0_236 = arith.constant 0 : index
      %529 = vector.load %arg19[%c0_235, %c0_236] : memref<1x128xbf16, #tpu.memory_space<vmem>>, vector<1x128xbf16>
      tpu.vector_store %arg19[%c0_235, %c0_236], %528 {strides = array<i32>} : memref<1x128xbf16, #tpu.memory_space<vmem>>, vector<1x128xbf16>,
      %c0_237 = arith.constant 0 : index
      %c0_238 = arith.constant 0 : index
      %530 = vector.load %arg18[%c0_237, %c0_238] : memref<1x32xf32, #tpu.memory_space<vmem>>, vector<1x32xf32>
      tpu.vector_store %arg18[%c0_237, %c0_238], %478 {strides = array<i32>} : memref<1x32xf32, #tpu.memory_space<vmem>>, vector<1x32xf32>,
      %531 = vector.shape_cast %520 : vector<1x128xi32> to vector<1x1x128xi32>
      %cst_239 = arith.constant dense<2147483647> : vector<1xi32>
      %532 = vector.multi_reduction <minsi>, %531, %cst_239 [1, 2] : vector<1x1x128xi32> to vector<1xi32>
      %533 = vector.shape_cast %532 : vector<1xi32> to vector<1x1x1xi32>
      %534 = vector.extract %533[0, 0, 0] : i32 from vector<1x1x1xi32>
      %c0_240 = arith.constant 0 : index
      %535 = memref.load %arg20[%c0_240] : memref<1xi32, #tpu.memory_space<smem>>
      %536 = arith.index_cast %535 : i32 to index
      %537 = memref.load %arg15[%536] : memref<10xi32, #tpu.memory_space<smem>>
      memref.store %534, %arg15[%536] : memref<10xi32, #tpu.memory_space<smem>>
      %c1_i32_241 = arith.constant 1 : i32
      %538 = arith.addi %535, %c1_i32_241 : i32
      %c0_242 = arith.constant 0 : index
      %539 = memref.load %arg20[%c0_242] : memref<1xi32, #tpu.memory_space<smem>>
      memref.store %538, %arg20[%c0_242] : memref<1xi32, #tpu.memory_space<smem>>
      %c2_i32_243 = arith.constant 2 : i32
      %540 = arith.cmpi eq, %534, %c2_i32_243 : i32
      %c1_i32_244 = arith.constant 1 : i32
      %c0_i32_245 = arith.constant 0 : i32
      %541 = arith.select %540, %c1_i32_244, %c0_i32_245 : i32
      %c0_246 = arith.constant 0 : index
      %542 = memref.load %arg21[%c0_246] : memref<1xi32, #tpu.memory_space<smem>>
      memref.store %541, %arg21[%c0_246] : memref<1xi32, #tpu.memory_space<smem>>
    } else {
    }
    %c0_184 = arith.constant 0 : index
    %424 = memref.load %arg21[%c0_184] : memref<1xi32, #tpu.memory_space<smem>>
    %c0_i32_185 = arith.constant 0 : i32
    %425 = arith.cmpi eq, %424, %c0_i32_185 : i32
    %426 = arith.extui %425 : i1 to i32
    %c0_i32_186 = arith.constant 0 : i32
    %427 = arith.cmpi ne, %426, %c0_i32_186 : i32
    scf.if %427 {
      %c0_198 = arith.constant 0 : index
      %c0_199 = arith.constant 0 : index
      %442 = vector.load %arg18[%c0_198, %c0_199] : memref<1x32xf32, #tpu.memory_space<vmem>>, vector<1x32xf32>
      %c0_200 = arith.constant 0 : index
      %c0_201 = arith.constant 0 : index
      %443 = vector.load %arg19[%c0_200, %c0_201] : memref<1x128xbf16, #tpu.memory_space<vmem>>, vector<1x128xbf16>
      %c0_202 = arith.constant 0 : index
      %c0_203 = arith.constant 0 : index
      %444 = vector.load %arg6[%c0_202, %c0_203] : memref<128x96xbf16, #tpu.memory_space<vmem>>, vector<128x96xbf16>
      %cst_204 = arith.constant dense<0.000000e+00> : vector<1x96xf32>
      %445 = tpu.matmul %443, %444, %cst_204 {dimension_numbers = #tpu.dot_dimension_numbers<[1], [0], [0], [1], [0, 0, 1, 1], [], []>} : vector<1x128xbf16>, vector<128x96xbf16>, vector<1x96xf32> -> vector<1x96xf32>
      %c0_205 = arith.constant 0 : index
      %c0_206 = arith.constant 0 : index
      %446 = vector.load %arg8[%c0_205, %c0_206] : memref<1x96xf32, #tpu.memory_space<vmem>>, vector<1x96xf32>
      %447 = arith.addf %445, %446 : vector<1x96xf32>
      %448 = arith.truncf %442 : vector<1x32xf32> to vector<1x32xbf16>
      %c0_207 = arith.constant 0 : index
      %c0_208 = arith.constant 0 : index
      %449 = vector.load %arg7[%c0_207, %c0_208] : memref<32x96xbf16, #tpu.memory_space<vmem>>, vector<32x96xbf16>
      %cst_209 = arith.constant dense<0.000000e+00> : vector<1x96xf32>
      %450 = tpu.matmul %448, %449, %cst_209 {dimension_numbers = #tpu.dot_dimension_numbers<[1], [0], [0], [1], [0, 0, 1, 1], [], []>} : vector<1x32xbf16>, vector<32x96xbf16>, vector<1x96xf32> -> vector<1x96xf32>
      %c0_210 = arith.constant 0 : index
      %c0_211 = arith.constant 0 : index
      %451 = vector.load %arg9[%c0_210, %c0_211] : memref<1x96xf32, #tpu.memory_space<vmem>>, vector<1x96xf32>
      %452 = arith.addf %450, %451 : vector<1x96xf32>
      %453 = vector.extract_strided_slice %447 {offsets = [0, 0], sizes = [1, 32], strides = [1, 1]} : vector<1x96xf32> to vector<1x32xf32>
      %454 = vector.extract_strided_slice %452 {offsets = [0, 0], sizes = [1, 32], strides = [1, 1]} : vector<1x96xf32> to vector<1x32xf32>
      %455 = arith.addf %453, %454 : vector<1x32xf32>
      %456 = arith.negf %455 : vector<1x32xf32>
      %457 = math.exp %456 : vector<1x32xf32>
      %cst_212 = arith.constant 1.000000e+00 : f32
      %458 = vector.broadcast %cst_212 : f32 to vector<1x32xf32>
      %459 = arith.addf %458, %457 : vector<1x32xf32>
      %460 = arith.divf %458, %459 : vector<1x32xf32>
      %461 = vector.extract_strided_slice %447 {offsets = [0, 32], sizes = [1, 32], strides = [1, 1]} : vector<1x96xf32> to vector<1x32xf32>
      %462 = vector.extract_strided_slice %452 {offsets = [0, 32], sizes = [1, 32], strides = [1, 1]} : vector<1x96xf32> to vector<1x32xf32>
      %463 = arith.addf %461, %462 : vector<1x32xf32>
      %464 = arith.negf %463 : vector<1x32xf32>
      %465 = math.exp %464 : vector<1x32xf32>
      %cst_213 = arith.constant 1.000000e+00 : f32
      %466 = vector.broadcast %cst_213 : f32 to vector<1x32xf32>
      %467 = arith.addf %466, %465 : vector<1x32xf32>
      %468 = arith.divf %466, %467 : vector<1x32xf32>
      %469 = vector.extract_strided_slice %447 {offsets = [0, 64], sizes = [1, 32], strides = [1, 1]} : vector<1x96xf32> to vector<1x32xf32>
      %470 = vector.extract_strided_slice %452 {offsets = [0, 64], sizes = [1, 32], strides = [1, 1]} : vector<1x96xf32> to vector<1x32xf32>
      %471 = arith.mulf %460, %470 : vector<1x32xf32>
      %472 = arith.addf %469, %471 : vector<1x32xf32>
      %473 = math.tanh %472 : vector<1x32xf32>
      %cst_214 = arith.constant 1.000000e+00 : f32
      %474 = vector.broadcast %cst_214 : f32 to vector<1x32xf32>
      %475 = arith.subf %474, %468 : vector<1x32xf32>
      %476 = arith.mulf %475, %473 : vector<1x32xf32>
      %477 = arith.mulf %468, %442 : vector<1x32xf32>
      %478 = arith.addf %476, %477 : vector<1x32xf32>
      %479 = vector.broadcast %478 : vector<1x32xf32> to vector<8x32xf32>
      %480 = arith.mulf %373, %479 : vector<8x32xf32>
      %cst_215 = arith.constant dense<0.000000e+00> : vector<8xf32>
      %481 = vector.multi_reduction <add>, %480, %cst_215 [1] : vector<8x32xf32> to vector<8xf32>
      %482 = vector.shape_cast %481 : vector<8xf32> to vector<8x1xf32>
      %cst_216 = arith.constant -1.000000e+30 : f32
      %483 = vector.broadcast %cst_216 : f32 to vector<8x1xf32>
      %484 = arith.select %379, %482, %483 : vector<8x1xi1>, vector<8x1xf32>
      %cst_217 = arith.constant dense<0xFF800000> : vector<1xf32>
      %485 = vector.multi_reduction <maximumf>, %484, %cst_217 [0] : vector<8x1xf32> to vector<1xf32>
      %486 = vector.shape_cast %485 : vector<1xf32> to vector<1x1xf32>
      %487 = vector.broadcast %486 : vector<1x1xf32> to vector<8x1xf32>
      %488 = arith.subf %484, %487 : vector<8x1xf32>
      %489 = math.exp %488 : vector<8x1xf32>
      %cst_218 = arith.constant dense<0.000000e+00> : vector<1xf32>
      %490 = vector.multi_reduction <add>, %489, %cst_218 [0] : vector<8x1xf32> to vector<1xf32>
      %491 = vector.shape_cast %490 : vector<1xf32> to vector<1x1xf32>
      %492 = tpu.reciprocal %491 {approx = true} : vector<1x1xf32> -> vector<1x1xf32>
      %493 = vector.broadcast %492 : vector<1x1xf32> to vector<8x1xf32>
      %494 = arith.mulf %489, %493 : vector<8x1xf32>
      %495 = vector.broadcast %494 : vector<8x1xf32> to vector<8x32xf32>
      %496 = arith.mulf %495, %376 : vector<8x32xf32>
      %cst_219 = arith.constant dense<0.000000e+00> : vector<32xf32>
      %497 = vector.multi_reduction <add>, %496, %cst_219 [0] : vector<8x32xf32> to vector<32xf32>
      %498 = vector.shape_cast %497 : vector<32xf32> to vector<1x32xf32>
      %499 = arith.truncf %478 : vector<1x32xf32> to vector<1x32xbf16>
      %c0_220 = arith.constant 0 : index
      %c0_221 = arith.constant 0 : index
      %500 = vector.load %arg10[%c0_220, %c0_221] : memref<32x32xbf16, #tpu.memory_space<vmem>>, vector<32x32xbf16>
      %cst_222 = arith.constant dense<0.000000e+00> : vector<1x32xf32>
      %501 = tpu.matmul %499, %500, %cst_222 {dimension_numbers = #tpu.dot_dimension_numbers<[1], [0], [0], [1], [0, 0, 1, 1], [], []>} : vector<1x32xbf16>, vector<32x32xbf16>, vector<1x32xf32> -> vector<1x32xf32>
      %502 = arith.addf %501, %498 : vector<1x32xf32>
      %c0_223 = arith.constant 0 : index
      %c0_224 = arith.constant 0 : index
      %503 = vector.load %arg12[%c0_223, %c0_224] : memref<1x32xf32, #tpu.memory_space<vmem>>, vector<1x32xf32>
      %504 = arith.addf %502, %503 : vector<1x32xf32>
      %505 = math.tanh %504 : vector<1x32xf32>
      %506 = arith.truncf %505 : vector<1x32xf32> to vector<1x32xbf16>
      %c0_225 = arith.constant 0 : index
      %c0_226 = arith.constant 0 : index
      %507 = vector.load %arg13[%c0_225, %c0_226] : memref<32x128xbf16, #tpu.memory_space<vmem>>, vector<32x128xbf16>
      %cst_227 = arith.constant dense<0.000000e+00> : vector<1x128xf32>
      %508 = tpu.matmul %506, %507, %cst_227 {dimension_numbers = #tpu.dot_dimension_numbers<[1], [0], [0], [1], [0, 0, 1, 1], [], []>} : vector<1x32xbf16>, vector<32x128xbf16>, vector<1x128xf32> -> vector<1x128xf32>
      %c0_228 = arith.constant 0 : index
      %c0_229 = arith.constant 0 : index
      %509 = vector.load %arg14[%c0_228, %c0_229] : memref<1x128xf32, #tpu.memory_space<vmem>>, vector<1x128xf32>
      %510 = arith.addf %508, %509 : vector<1x128xf32>
      %c64_i32 = arith.constant 64 : i32
      %511 = vector.broadcast %c64_i32 : i32 to vector<1x128xi32>
      %512 = arith.cmpi slt, %1, %511 : vector<1x128xi32>
      %cst_230 = arith.constant -1.000000e+30 : f32
      %513 = vector.broadcast %cst_230 : f32 to vector<1x128xf32>
      %514 = arith.select %512, %510, %513 : vector<1x128xi1>, vector<1x128xf32>
      %cst_231 = arith.constant dense<0xFF800000> : vector<1xf32>
      %515 = vector.multi_reduction <maximumf>, %514, %cst_231 [1] : vector<1x128xf32> to vector<1xf32>
      %516 = vector.shape_cast %515 : vector<1xf32> to vector<1x1xf32>
      %517 = vector.broadcast %516 : vector<1x1xf32> to vector<1x128xf32>
      %518 = arith.cmpf oeq, %514, %517 : vector<1x128xf32>
      %c128_i32 = arith.constant 128 : i32
      %519 = vector.broadcast %c128_i32 : i32 to vector<1x128xi32>
      %520 = arith.select %518, %1, %519 : vector<1x128xi1>, vector<1x128xi32>
      %cst_232 = arith.constant dense<2147483647> : vector<1xi32>
      %521 = vector.multi_reduction <minsi>, %520, %cst_232 [1] : vector<1x128xi32> to vector<1xi32>
      %522 = vector.shape_cast %521 : vector<1xi32> to vector<1x1xi32>
      %523 = vector.broadcast %522 : vector<1x1xi32> to vector<1x128xi32>
      %524 = arith.cmpi eq, %1, %523 : vector<1x128xi32>
      %cst_233 = arith.constant 1.000000e+00 : f32
      %cst_234 = arith.constant 0.000000e+00 : f32
      %525 = vector.broadcast %cst_233 : f32 to vector<1x128xf32>
      %526 = vector.broadcast %cst_234 : f32 to vector<1x128xf32>
      %527 = arith.select %524, %525, %526 : vector<1x128xi1>, vector<1x128xf32>
      %528 = arith.truncf %527 : vector<1x128xf32> to vector<1x128xbf16>
      %c0_235 = arith.constant 0 : index
      %c0_236 = arith.constant 0 : index
      %529 = vector.load %arg19[%c0_235, %c0_236] : memref<1x128xbf16, #tpu.memory_space<vmem>>, vector<1x128xbf16>
      tpu.vector_store %arg19[%c0_235, %c0_236], %528 {strides = array<i32>} : memref<1x128xbf16, #tpu.memory_space<vmem>>, vector<1x128xbf16>,
      %c0_237 = arith.constant 0 : index
      %c0_238 = arith.constant 0 : index
      %530 = vector.load %arg18[%c0_237, %c0_238] : memref<1x32xf32, #tpu.memory_space<vmem>>, vector<1x32xf32>
      tpu.vector_store %arg18[%c0_237, %c0_238], %478 {strides = array<i32>} : memref<1x32xf32, #tpu.memory_space<vmem>>, vector<1x32xf32>,
      %531 = vector.shape_cast %520 : vector<1x128xi32> to vector<1x1x128xi32>
      %cst_239 = arith.constant dense<2147483647> : vector<1xi32>
      %532 = vector.multi_reduction <minsi>, %531, %cst_239 [1, 2] : vector<1x1x128xi32> to vector<1xi32>
      %533 = vector.shape_cast %532 : vector<1xi32> to vector<1x1x1xi32>
      %534 = vector.extract %533[0, 0, 0] : i32 from vector<1x1x1xi32>
      %c0_240 = arith.constant 0 : index
      %535 = memref.load %arg20[%c0_240] : memref<1xi32, #tpu.memory_space<smem>>
      %536 = arith.index_cast %535 : i32 to index
      %537 = memref.load %arg15[%536] : memref<10xi32, #tpu.memory_space<smem>>
      memref.store %534, %arg15[%536] : memref<10xi32, #tpu.memory_space<smem>>
      %c1_i32_241 = arith.constant 1 : i32
      %538 = arith.addi %535, %c1_i32_241 : i32
      %c0_242 = arith.constant 0 : index
      %539 = memref.load %arg20[%c0_242] : memref<1xi32, #tpu.memory_space<smem>>
      memref.store %538, %arg20[%c0_242] : memref<1xi32, #tpu.memory_space<smem>>
      %c2_i32_243 = arith.constant 2 : i32
      %540 = arith.cmpi eq, %534, %c2_i32_243 : i32
      %c1_i32_244 = arith.constant 1 : i32
      %c0_i32_245 = arith.constant 0 : i32
      %541 = arith.select %540, %c1_i32_244, %c0_i32_245 : i32
      %c0_246 = arith.constant 0 : index
      %542 = memref.load %arg21[%c0_246] : memref<1xi32, #tpu.memory_space<smem>>
      memref.store %541, %arg21[%c0_246] : memref<1xi32, #tpu.memory_space<smem>>
    } else {
    }
    %c0_187 = arith.constant 0 : index
    %428 = memref.load %arg21[%c0_187] : memref<1xi32, #tpu.memory_space<smem>>
    %c0_i32_188 = arith.constant 0 : i32
    %429 = arith.cmpi eq, %428, %c0_i32_188 : i32
    %430 = arith.extui %429 : i1 to i32
    %c0_i32_189 = arith.constant 0 : i32
    %431 = arith.cmpi ne, %430, %c0_i32_189 : i32
    scf.if %431 {
      %c0_198 = arith.constant 0 : index
      %c0_199 = arith.constant 0 : index
      %442 = vector.load %arg18[%c0_198, %c0_199] : memref<1x32xf32, #tpu.memory_space<vmem>>, vector<1x32xf32>
      %c0_200 = arith.constant 0 : index
      %c0_201 = arith.constant 0 : index
      %443 = vector.load %arg19[%c0_200, %c0_201] : memref<1x128xbf16, #tpu.memory_space<vmem>>, vector<1x128xbf16>
      %c0_202 = arith.constant 0 : index
      %c0_203 = arith.constant 0 : index
      %444 = vector.load %arg6[%c0_202, %c0_203] : memref<128x96xbf16, #tpu.memory_space<vmem>>, vector<128x96xbf16>
      %cst_204 = arith.constant dense<0.000000e+00> : vector<1x96xf32>
      %445 = tpu.matmul %443, %444, %cst_204 {dimension_numbers = #tpu.dot_dimension_numbers<[1], [0], [0], [1], [0, 0, 1, 1], [], []>} : vector<1x128xbf16>, vector<128x96xbf16>, vector<1x96xf32> -> vector<1x96xf32>
      %c0_205 = arith.constant 0 : index
      %c0_206 = arith.constant 0 : index
      %446 = vector.load %arg8[%c0_205, %c0_206] : memref<1x96xf32, #tpu.memory_space<vmem>>, vector<1x96xf32>
      %447 = arith.addf %445, %446 : vector<1x96xf32>
      %448 = arith.truncf %442 : vector<1x32xf32> to vector<1x32xbf16>
      %c0_207 = arith.constant 0 : index
      %c0_208 = arith.constant 0 : index
      %449 = vector.load %arg7[%c0_207, %c0_208] : memref<32x96xbf16, #tpu.memory_space<vmem>>, vector<32x96xbf16>
      %cst_209 = arith.constant dense<0.000000e+00> : vector<1x96xf32>
      %450 = tpu.matmul %448, %449, %cst_209 {dimension_numbers = #tpu.dot_dimension_numbers<[1], [0], [0], [1], [0, 0, 1, 1], [], []>} : vector<1x32xbf16>, vector<32x96xbf16>, vector<1x96xf32> -> vector<1x96xf32>
      %c0_210 = arith.constant 0 : index
      %c0_211 = arith.constant 0 : index
      %451 = vector.load %arg9[%c0_210, %c0_211] : memref<1x96xf32, #tpu.memory_space<vmem>>, vector<1x96xf32>
      %452 = arith.addf %450, %451 : vector<1x96xf32>
      %453 = vector.extract_strided_slice %447 {offsets = [0, 0], sizes = [1, 32], strides = [1, 1]} : vector<1x96xf32> to vector<1x32xf32>
      %454 = vector.extract_strided_slice %452 {offsets = [0, 0], sizes = [1, 32], strides = [1, 1]} : vector<1x96xf32> to vector<1x32xf32>
      %455 = arith.addf %453, %454 : vector<1x32xf32>
      %456 = arith.negf %455 : vector<1x32xf32>
      %457 = math.exp %456 : vector<1x32xf32>
      %cst_212 = arith.constant 1.000000e+00 : f32
      %458 = vector.broadcast %cst_212 : f32 to vector<1x32xf32>
      %459 = arith.addf %458, %457 : vector<1x32xf32>
      %460 = arith.divf %458, %459 : vector<1x32xf32>
      %461 = vector.extract_strided_slice %447 {offsets = [0, 32], sizes = [1, 32], strides = [1, 1]} : vector<1x96xf32> to vector<1x32xf32>
      %462 = vector.extract_strided_slice %452 {offsets = [0, 32], sizes = [1, 32], strides = [1, 1]} : vector<1x96xf32> to vector<1x32xf32>
      %463 = arith.addf %461, %462 : vector<1x32xf32>
      %464 = arith.negf %463 : vector<1x32xf32>
      %465 = math.exp %464 : vector<1x32xf32>
      %cst_213 = arith.constant 1.000000e+00 : f32
      %466 = vector.broadcast %cst_213 : f32 to vector<1x32xf32>
      %467 = arith.addf %466, %465 : vector<1x32xf32>
      %468 = arith.divf %466, %467 : vector<1x32xf32>
      %469 = vector.extract_strided_slice %447 {offsets = [0, 64], sizes = [1, 32], strides = [1, 1]} : vector<1x96xf32> to vector<1x32xf32>
      %470 = vector.extract_strided_slice %452 {offsets = [0, 64], sizes = [1, 32], strides = [1, 1]} : vector<1x96xf32> to vector<1x32xf32>
      %471 = arith.mulf %460, %470 : vector<1x32xf32>
      %472 = arith.addf %469, %471 : vector<1x32xf32>
      %473 = math.tanh %472 : vector<1x32xf32>
      %cst_214 = arith.constant 1.000000e+00 : f32
      %474 = vector.broadcast %cst_214 : f32 to vector<1x32xf32>
      %475 = arith.subf %474, %468 : vector<1x32xf32>
      %476 = arith.mulf %475, %473 : vector<1x32xf32>
      %477 = arith.mulf %468, %442 : vector<1x32xf32>
      %478 = arith.addf %476, %477 : vector<1x32xf32>
      %479 = vector.broadcast %478 : vector<1x32xf32> to vector<8x32xf32>
      %480 = arith.mulf %373, %479 : vector<8x32xf32>
      %cst_215 = arith.constant dense<0.000000e+00> : vector<8xf32>
      %481 = vector.multi_reduction <add>, %480, %cst_215 [1] : vector<8x32xf32> to vector<8xf32>
      %482 = vector.shape_cast %481 : vector<8xf32> to vector<8x1xf32>
      %cst_216 = arith.constant -1.000000e+30 : f32
      %483 = vector.broadcast %cst_216 : f32 to vector<8x1xf32>
      %484 = arith.select %379, %482, %483 : vector<8x1xi1>, vector<8x1xf32>
      %cst_217 = arith.constant dense<0xFF800000> : vector<1xf32>
      %485 = vector.multi_reduction <maximumf>, %484, %cst_217 [0] : vector<8x1xf32> to vector<1xf32>
      %486 = vector.shape_cast %485 : vector<1xf32> to vector<1x1xf32>
      %487 = vector.broadcast %486 : vector<1x1xf32> to vector<8x1xf32>
      %488 = arith.subf %484, %487 : vector<8x1xf32>
      %489 = math.exp %488 : vector<8x1xf32>
      %cst_218 = arith.constant dense<0.000000e+00> : vector<1xf32>
      %490 = vector.multi_reduction <add>, %489, %cst_218 [0] : vector<8x1xf32> to vector<1xf32>
      %491 = vector.shape_cast %490 : vector<1xf32> to vector<1x1xf32>
      %492 = tpu.reciprocal %491 {approx = true} : vector<1x1xf32> -> vector<1x1xf32>
      %493 = vector.broadcast %492 : vector<1x1xf32> to vector<8x1xf32>
      %494 = arith.mulf %489, %493 : vector<8x1xf32>
      %495 = vector.broadcast %494 : vector<8x1xf32> to vector<8x32xf32>
      %496 = arith.mulf %495, %376 : vector<8x32xf32>
      %cst_219 = arith.constant dense<0.000000e+00> : vector<32xf32>
      %497 = vector.multi_reduction <add>, %496, %cst_219 [0] : vector<8x32xf32> to vector<32xf32>
      %498 = vector.shape_cast %497 : vector<32xf32> to vector<1x32xf32>
      %499 = arith.truncf %478 : vector<1x32xf32> to vector<1x32xbf16>
      %c0_220 = arith.constant 0 : index
      %c0_221 = arith.constant 0 : index
      %500 = vector.load %arg10[%c0_220, %c0_221] : memref<32x32xbf16, #tpu.memory_space<vmem>>, vector<32x32xbf16>
      %cst_222 = arith.constant dense<0.000000e+00> : vector<1x32xf32>
      %501 = tpu.matmul %499, %500, %cst_222 {dimension_numbers = #tpu.dot_dimension_numbers<[1], [0], [0], [1], [0, 0, 1, 1], [], []>} : vector<1x32xbf16>, vector<32x32xbf16>, vector<1x32xf32> -> vector<1x32xf32>
      %502 = arith.addf %501, %498 : vector<1x32xf32>
      %c0_223 = arith.constant 0 : index
      %c0_224 = arith.constant 0 : index
      %503 = vector.load %arg12[%c0_223, %c0_224] : memref<1x32xf32, #tpu.memory_space<vmem>>, vector<1x32xf32>
      %504 = arith.addf %502, %503 : vector<1x32xf32>
      %505 = math.tanh %504 : vector<1x32xf32>
      %506 = arith.truncf %505 : vector<1x32xf32> to vector<1x32xbf16>
      %c0_225 = arith.constant 0 : index
      %c0_226 = arith.constant 0 : index
      %507 = vector.load %arg13[%c0_225, %c0_226] : memref<32x128xbf16, #tpu.memory_space<vmem>>, vector<32x128xbf16>
      %cst_227 = arith.constant dense<0.000000e+00> : vector<1x128xf32>
      %508 = tpu.matmul %506, %507, %cst_227 {dimension_numbers = #tpu.dot_dimension_numbers<[1], [0], [0], [1], [0, 0, 1, 1], [], []>} : vector<1x32xbf16>, vector<32x128xbf16>, vector<1x128xf32> -> vector<1x128xf32>
      %c0_228 = arith.constant 0 : index
      %c0_229 = arith.constant 0 : index
      %509 = vector.load %arg14[%c0_228, %c0_229] : memref<1x128xf32, #tpu.memory_space<vmem>>, vector<1x128xf32>
      %510 = arith.addf %508, %509 : vector<1x128xf32>
      %c64_i32 = arith.constant 64 : i32
      %511 = vector.broadcast %c64_i32 : i32 to vector<1x128xi32>
      %512 = arith.cmpi slt, %1, %511 : vector<1x128xi32>
      %cst_230 = arith.constant -1.000000e+30 : f32
      %513 = vector.broadcast %cst_230 : f32 to vector<1x128xf32>
      %514 = arith.select %512, %510, %513 : vector<1x128xi1>, vector<1x128xf32>
      %cst_231 = arith.constant dense<0xFF800000> : vector<1xf32>
      %515 = vector.multi_reduction <maximumf>, %514, %cst_231 [1] : vector<1x128xf32> to vector<1xf32>
      %516 = vector.shape_cast %515 : vector<1xf32> to vector<1x1xf32>
      %517 = vector.broadcast %516 : vector<1x1xf32> to vector<1x128xf32>
      %518 = arith.cmpf oeq, %514, %517 : vector<1x128xf32>
      %c128_i32 = arith.constant 128 : i32
      %519 = vector.broadcast %c128_i32 : i32 to vector<1x128xi32>
      %520 = arith.select %518, %1, %519 : vector<1x128xi1>, vector<1x128xi32>
      %cst_232 = arith.constant dense<2147483647> : vector<1xi32>
      %521 = vector.multi_reduction <minsi>, %520, %cst_232 [1] : vector<1x128xi32> to vector<1xi32>
      %522 = vector.shape_cast %521 : vector<1xi32> to vector<1x1xi32>
      %523 = vector.broadcast %522 : vector<1x1xi32> to vector<1x128xi32>
      %524 = arith.cmpi eq, %1, %523 : vector<1x128xi32>
      %cst_233 = arith.constant 1.000000e+00 : f32
      %cst_234 = arith.constant 0.000000e+00 : f32
      %525 = vector.broadcast %cst_233 : f32 to vector<1x128xf32>
      %526 = vector.broadcast %cst_234 : f32 to vector<1x128xf32>
      %527 = arith.select %524, %525, %526 : vector<1x128xi1>, vector<1x128xf32>
      %528 = arith.truncf %527 : vector<1x128xf32> to vector<1x128xbf16>
      %c0_235 = arith.constant 0 : index
      %c0_236 = arith.constant 0 : index
      %529 = vector.load %arg19[%c0_235, %c0_236] : memref<1x128xbf16, #tpu.memory_space<vmem>>, vector<1x128xbf16>
      tpu.vector_store %arg19[%c0_235, %c0_236], %528 {strides = array<i32>} : memref<1x128xbf16, #tpu.memory_space<vmem>>, vector<1x128xbf16>,
      %c0_237 = arith.constant 0 : index
      %c0_238 = arith.constant 0 : index
      %530 = vector.load %arg18[%c0_237, %c0_238] : memref<1x32xf32, #tpu.memory_space<vmem>>, vector<1x32xf32>
      tpu.vector_store %arg18[%c0_237, %c0_238], %478 {strides = array<i32>} : memref<1x32xf32, #tpu.memory_space<vmem>>, vector<1x32xf32>,
      %531 = vector.shape_cast %520 : vector<1x128xi32> to vector<1x1x128xi32>
      %cst_239 = arith.constant dense<2147483647> : vector<1xi32>
      %532 = vector.multi_reduction <minsi>, %531, %cst_239 [1, 2] : vector<1x1x128xi32> to vector<1xi32>
      %533 = vector.shape_cast %532 : vector<1xi32> to vector<1x1x1xi32>
      %534 = vector.extract %533[0, 0, 0] : i32 from vector<1x1x1xi32>
      %c0_240 = arith.constant 0 : index
      %535 = memref.load %arg20[%c0_240] : memref<1xi32, #tpu.memory_space<smem>>
      %536 = arith.index_cast %535 : i32 to index
      %537 = memref.load %arg15[%536] : memref<10xi32, #tpu.memory_space<smem>>
      memref.store %534, %arg15[%536] : memref<10xi32, #tpu.memory_space<smem>>
      %c1_i32_241 = arith.constant 1 : i32
      %538 = arith.addi %535, %c1_i32_241 : i32
      %c0_242 = arith.constant 0 : index
      %539 = memref.load %arg20[%c0_242] : memref<1xi32, #tpu.memory_space<smem>>
      memref.store %538, %arg20[%c0_242] : memref<1xi32, #tpu.memory_space<smem>>
      %c2_i32_243 = arith.constant 2 : i32
      %540 = arith.cmpi eq, %534, %c2_i32_243 : i32
      %c1_i32_244 = arith.constant 1 : i32
      %c0_i32_245 = arith.constant 0 : i32
      %541 = arith.select %540, %c1_i32_244, %c0_i32_245 : i32
      %c0_246 = arith.constant 0 : index
      %542 = memref.load %arg21[%c0_246] : memref<1xi32, #tpu.memory_space<smem>>
      memref.store %541, %arg21[%c0_246] : memref<1xi32, #tpu.memory_space<smem>>
    } else {
    }
    %c0_190 = arith.constant 0 : index
    %432 = memref.load %arg21[%c0_190] : memref<1xi32, #tpu.memory_space<smem>>
    %c0_i32_191 = arith.constant 0 : i32
    %433 = arith.cmpi eq, %432, %c0_i32_191 : i32
    %434 = arith.extui %433 : i1 to i32
    %c0_i32_192 = arith.constant 0 : i32
    %435 = arith.cmpi ne, %434, %c0_i32_192 : i32
    scf.if %435 {
      %c0_198 = arith.constant 0 : index
      %c0_199 = arith.constant 0 : index
      %442 = vector.load %arg18[%c0_198, %c0_199] : memref<1x32xf32, #tpu.memory_space<vmem>>, vector<1x32xf32>
      %c0_200 = arith.constant 0 : index
      %c0_201 = arith.constant 0 : index
      %443 = vector.load %arg19[%c0_200, %c0_201] : memref<1x128xbf16, #tpu.memory_space<vmem>>, vector<1x128xbf16>
      %c0_202 = arith.constant 0 : index
      %c0_203 = arith.constant 0 : index
      %444 = vector.load %arg6[%c0_202, %c0_203] : memref<128x96xbf16, #tpu.memory_space<vmem>>, vector<128x96xbf16>
      %cst_204 = arith.constant dense<0.000000e+00> : vector<1x96xf32>
      %445 = tpu.matmul %443, %444, %cst_204 {dimension_numbers = #tpu.dot_dimension_numbers<[1], [0], [0], [1], [0, 0, 1, 1], [], []>} : vector<1x128xbf16>, vector<128x96xbf16>, vector<1x96xf32> -> vector<1x96xf32>
      %c0_205 = arith.constant 0 : index
      %c0_206 = arith.constant 0 : index
      %446 = vector.load %arg8[%c0_205, %c0_206] : memref<1x96xf32, #tpu.memory_space<vmem>>, vector<1x96xf32>
      %447 = arith.addf %445, %446 : vector<1x96xf32>
      %448 = arith.truncf %442 : vector<1x32xf32> to vector<1x32xbf16>
      %c0_207 = arith.constant 0 : index
      %c0_208 = arith.constant 0 : index
      %449 = vector.load %arg7[%c0_207, %c0_208] : memref<32x96xbf16, #tpu.memory_space<vmem>>, vector<32x96xbf16>
      %cst_209 = arith.constant dense<0.000000e+00> : vector<1x96xf32>
      %450 = tpu.matmul %448, %449, %cst_209 {dimension_numbers = #tpu.dot_dimension_numbers<[1], [0], [0], [1], [0, 0, 1, 1], [], []>} : vector<1x32xbf16>, vector<32x96xbf16>, vector<1x96xf32> -> vector<1x96xf32>
      %c0_210 = arith.constant 0 : index
      %c0_211 = arith.constant 0 : index
      %451 = vector.load %arg9[%c0_210, %c0_211] : memref<1x96xf32, #tpu.memory_space<vmem>>, vector<1x96xf32>
      %452 = arith.addf %450, %451 : vector<1x96xf32>
      %453 = vector.extract_strided_slice %447 {offsets = [0, 0], sizes = [1, 32], strides = [1, 1]} : vector<1x96xf32> to vector<1x32xf32>
      %454 = vector.extract_strided_slice %452 {offsets = [0, 0], sizes = [1, 32], strides = [1, 1]} : vector<1x96xf32> to vector<1x32xf32>
      %455 = arith.addf %453, %454 : vector<1x32xf32>
      %456 = arith.negf %455 : vector<1x32xf32>
      %457 = math.exp %456 : vector<1x32xf32>
      %cst_212 = arith.constant 1.000000e+00 : f32
      %458 = vector.broadcast %cst_212 : f32 to vector<1x32xf32>
      %459 = arith.addf %458, %457 : vector<1x32xf32>
      %460 = arith.divf %458, %459 : vector<1x32xf32>
      %461 = vector.extract_strided_slice %447 {offsets = [0, 32], sizes = [1, 32], strides = [1, 1]} : vector<1x96xf32> to vector<1x32xf32>
      %462 = vector.extract_strided_slice %452 {offsets = [0, 32], sizes = [1, 32], strides = [1, 1]} : vector<1x96xf32> to vector<1x32xf32>
      %463 = arith.addf %461, %462 : vector<1x32xf32>
      %464 = arith.negf %463 : vector<1x32xf32>
      %465 = math.exp %464 : vector<1x32xf32>
      %cst_213 = arith.constant 1.000000e+00 : f32
      %466 = vector.broadcast %cst_213 : f32 to vector<1x32xf32>
      %467 = arith.addf %466, %465 : vector<1x32xf32>
      %468 = arith.divf %466, %467 : vector<1x32xf32>
      %469 = vector.extract_strided_slice %447 {offsets = [0, 64], sizes = [1, 32], strides = [1, 1]} : vector<1x96xf32> to vector<1x32xf32>
      %470 = vector.extract_strided_slice %452 {offsets = [0, 64], sizes = [1, 32], strides = [1, 1]} : vector<1x96xf32> to vector<1x32xf32>
      %471 = arith.mulf %460, %470 : vector<1x32xf32>
      %472 = arith.addf %469, %471 : vector<1x32xf32>
      %473 = math.tanh %472 : vector<1x32xf32>
      %cst_214 = arith.constant 1.000000e+00 : f32
      %474 = vector.broadcast %cst_214 : f32 to vector<1x32xf32>
      %475 = arith.subf %474, %468 : vector<1x32xf32>
      %476 = arith.mulf %475, %473 : vector<1x32xf32>
      %477 = arith.mulf %468, %442 : vector<1x32xf32>
      %478 = arith.addf %476, %477 : vector<1x32xf32>
      %479 = vector.broadcast %478 : vector<1x32xf32> to vector<8x32xf32>
      %480 = arith.mulf %373, %479 : vector<8x32xf32>
      %cst_215 = arith.constant dense<0.000000e+00> : vector<8xf32>
      %481 = vector.multi_reduction <add>, %480, %cst_215 [1] : vector<8x32xf32> to vector<8xf32>
      %482 = vector.shape_cast %481 : vector<8xf32> to vector<8x1xf32>
      %cst_216 = arith.constant -1.000000e+30 : f32
      %483 = vector.broadcast %cst_216 : f32 to vector<8x1xf32>
      %484 = arith.select %379, %482, %483 : vector<8x1xi1>, vector<8x1xf32>
      %cst_217 = arith.constant dense<0xFF800000> : vector<1xf32>
      %485 = vector.multi_reduction <maximumf>, %484, %cst_217 [0] : vector<8x1xf32> to vector<1xf32>
      %486 = vector.shape_cast %485 : vector<1xf32> to vector<1x1xf32>
      %487 = vector.broadcast %486 : vector<1x1xf32> to vector<8x1xf32>
      %488 = arith.subf %484, %487 : vector<8x1xf32>
      %489 = math.exp %488 : vector<8x1xf32>
      %cst_218 = arith.constant dense<0.000000e+00> : vector<1xf32>
      %490 = vector.multi_reduction <add>, %489, %cst_218 [0] : vector<8x1xf32> to vector<1xf32>
      %491 = vector.shape_cast %490 : vector<1xf32> to vector<1x1xf32>
      %492 = tpu.reciprocal %491 {approx = true} : vector<1x1xf32> -> vector<1x1xf32>
      %493 = vector.broadcast %492 : vector<1x1xf32> to vector<8x1xf32>
      %494 = arith.mulf %489, %493 : vector<8x1xf32>
      %495 = vector.broadcast %494 : vector<8x1xf32> to vector<8x32xf32>
      %496 = arith.mulf %495, %376 : vector<8x32xf32>
      %cst_219 = arith.constant dense<0.000000e+00> : vector<32xf32>
      %497 = vector.multi_reduction <add>, %496, %cst_219 [0] : vector<8x32xf32> to vector<32xf32>
      %498 = vector.shape_cast %497 : vector<32xf32> to vector<1x32xf32>
      %499 = arith.truncf %478 : vector<1x32xf32> to vector<1x32xbf16>
      %c0_220 = arith.constant 0 : index
      %c0_221 = arith.constant 0 : index
      %500 = vector.load %arg10[%c0_220, %c0_221] : memref<32x32xbf16, #tpu.memory_space<vmem>>, vector<32x32xbf16>
      %cst_222 = arith.constant dense<0.000000e+00> : vector<1x32xf32>
      %501 = tpu.matmul %499, %500, %cst_222 {dimension_numbers = #tpu.dot_dimension_numbers<[1], [0], [0], [1], [0, 0, 1, 1], [], []>} : vector<1x32xbf16>, vector<32x32xbf16>, vector<1x32xf32> -> vector<1x32xf32>
      %502 = arith.addf %501, %498 : vector<1x32xf32>
      %c0_223 = arith.constant 0 : index
      %c0_224 = arith.constant 0 : index
      %503 = vector.load %arg12[%c0_223, %c0_224] : memref<1x32xf32, #tpu.memory_space<vmem>>, vector<1x32xf32>
      %504 = arith.addf %502, %503 : vector<1x32xf32>
      %505 = math.tanh %504 : vector<1x32xf32>
      %506 = arith.truncf %505 : vector<1x32xf32> to vector<1x32xbf16>
      %c0_225 = arith.constant 0 : index
      %c0_226 = arith.constant 0 : index
      %507 = vector.load %arg13[%c0_225, %c0_226] : memref<32x128xbf16, #tpu.memory_space<vmem>>, vector<32x128xbf16>
      %cst_227 = arith.constant dense<0.000000e+00> : vector<1x128xf32>
      %508 = tpu.matmul %506, %507, %cst_227 {dimension_numbers = #tpu.dot_dimension_numbers<[1], [0], [0], [1], [0, 0, 1, 1], [], []>} : vector<1x32xbf16>, vector<32x128xbf16>, vector<1x128xf32> -> vector<1x128xf32>
      %c0_228 = arith.constant 0 : index
      %c0_229 = arith.constant 0 : index
      %509 = vector.load %arg14[%c0_228, %c0_229] : memref<1x128xf32, #tpu.memory_space<vmem>>, vector<1x128xf32>
      %510 = arith.addf %508, %509 : vector<1x128xf32>
      %c64_i32 = arith.constant 64 : i32
      %511 = vector.broadcast %c64_i32 : i32 to vector<1x128xi32>
      %512 = arith.cmpi slt, %1, %511 : vector<1x128xi32>
      %cst_230 = arith.constant -1.000000e+30 : f32
      %513 = vector.broadcast %cst_230 : f32 to vector<1x128xf32>
      %514 = arith.select %512, %510, %513 : vector<1x128xi1>, vector<1x128xf32>
      %cst_231 = arith.constant dense<0xFF800000> : vector<1xf32>
      %515 = vector.multi_reduction <maximumf>, %514, %cst_231 [1] : vector<1x128xf32> to vector<1xf32>
      %516 = vector.shape_cast %515 : vector<1xf32> to vector<1x1xf32>
      %517 = vector.broadcast %516 : vector<1x1xf32> to vector<1x128xf32>
      %518 = arith.cmpf oeq, %514, %517 : vector<1x128xf32>
      %c128_i32 = arith.constant 128 : i32
      %519 = vector.broadcast %c128_i32 : i32 to vector<1x128xi32>
      %520 = arith.select %518, %1, %519 : vector<1x128xi1>, vector<1x128xi32>
      %cst_232 = arith.constant dense<2147483647> : vector<1xi32>
      %521 = vector.multi_reduction <minsi>, %520, %cst_232 [1] : vector<1x128xi32> to vector<1xi32>
      %522 = vector.shape_cast %521 : vector<1xi32> to vector<1x1xi32>
      %523 = vector.broadcast %522 : vector<1x1xi32> to vector<1x128xi32>
      %524 = arith.cmpi eq, %1, %523 : vector<1x128xi32>
      %cst_233 = arith.constant 1.000000e+00 : f32
      %cst_234 = arith.constant 0.000000e+00 : f32
      %525 = vector.broadcast %cst_233 : f32 to vector<1x128xf32>
      %526 = vector.broadcast %cst_234 : f32 to vector<1x128xf32>
      %527 = arith.select %524, %525, %526 : vector<1x128xi1>, vector<1x128xf32>
      %528 = arith.truncf %527 : vector<1x128xf32> to vector<1x128xbf16>
      %c0_235 = arith.constant 0 : index
      %c0_236 = arith.constant 0 : index
      %529 = vector.load %arg19[%c0_235, %c0_236] : memref<1x128xbf16, #tpu.memory_space<vmem>>, vector<1x128xbf16>
      tpu.vector_store %arg19[%c0_235, %c0_236], %528 {strides = array<i32>} : memref<1x128xbf16, #tpu.memory_space<vmem>>, vector<1x128xbf16>,
      %c0_237 = arith.constant 0 : index
      %c0_238 = arith.constant 0 : index
      %530 = vector.load %arg18[%c0_237, %c0_238] : memref<1x32xf32, #tpu.memory_space<vmem>>, vector<1x32xf32>
      tpu.vector_store %arg18[%c0_237, %c0_238], %478 {strides = array<i32>} : memref<1x32xf32, #tpu.memory_space<vmem>>, vector<1x32xf32>,
      %531 = vector.shape_cast %520 : vector<1x128xi32> to vector<1x1x128xi32>
      %cst_239 = arith.constant dense<2147483647> : vector<1xi32>
      %532 = vector.multi_reduction <minsi>, %531, %cst_239 [1, 2] : vector<1x1x128xi32> to vector<1xi32>
      %533 = vector.shape_cast %532 : vector<1xi32> to vector<1x1x1xi32>
      %534 = vector.extract %533[0, 0, 0] : i32 from vector<1x1x1xi32>
      %c0_240 = arith.constant 0 : index
      %535 = memref.load %arg20[%c0_240] : memref<1xi32, #tpu.memory_space<smem>>
      %536 = arith.index_cast %535 : i32 to index
      %537 = memref.load %arg15[%536] : memref<10xi32, #tpu.memory_space<smem>>
      memref.store %534, %arg15[%536] : memref<10xi32, #tpu.memory_space<smem>>
      %c1_i32_241 = arith.constant 1 : i32
      %538 = arith.addi %535, %c1_i32_241 : i32
      %c0_242 = arith.constant 0 : index
      %539 = memref.load %arg20[%c0_242] : memref<1xi32, #tpu.memory_space<smem>>
      memref.store %538, %arg20[%c0_242] : memref<1xi32, #tpu.memory_space<smem>>
      %c2_i32_243 = arith.constant 2 : i32
      %540 = arith.cmpi eq, %534, %c2_i32_243 : i32
      %c1_i32_244 = arith.constant 1 : i32
      %c0_i32_245 = arith.constant 0 : i32
      %541 = arith.select %540, %c1_i32_244, %c0_i32_245 : i32
      %c0_246 = arith.constant 0 : index
      %542 = memref.load %arg21[%c0_246] : memref<1xi32, #tpu.memory_space<smem>>
      memref.store %541, %arg21[%c0_246] : memref<1xi32, #tpu.memory_space<smem>>
    } else {
    }
    %c0_193 = arith.constant 0 : index
    %436 = memref.load %arg21[%c0_193] : memref<1xi32, #tpu.memory_space<smem>>
    %c0_i32_194 = arith.constant 0 : i32
    %437 = arith.cmpi eq, %436, %c0_i32_194 : i32
    %438 = arith.extui %437 : i1 to i32
    %c0_i32_195 = arith.constant 0 : i32
    %439 = arith.cmpi ne, %438, %c0_i32_195 : i32
    scf.if %439 {
      %c0_198 = arith.constant 0 : index
      %c0_199 = arith.constant 0 : index
      %442 = vector.load %arg18[%c0_198, %c0_199] : memref<1x32xf32, #tpu.memory_space<vmem>>, vector<1x32xf32>
      %c0_200 = arith.constant 0 : index
      %c0_201 = arith.constant 0 : index
      %443 = vector.load %arg19[%c0_200, %c0_201] : memref<1x128xbf16, #tpu.memory_space<vmem>>, vector<1x128xbf16>
      %c0_202 = arith.constant 0 : index
      %c0_203 = arith.constant 0 : index
      %444 = vector.load %arg6[%c0_202, %c0_203] : memref<128x96xbf16, #tpu.memory_space<vmem>>, vector<128x96xbf16>
      %cst_204 = arith.constant dense<0.000000e+00> : vector<1x96xf32>
      %445 = tpu.matmul %443, %444, %cst_204 {dimension_numbers = #tpu.dot_dimension_numbers<[1], [0], [0], [1], [0, 0, 1, 1], [], []>} : vector<1x128xbf16>, vector<128x96xbf16>, vector<1x96xf32> -> vector<1x96xf32>
      %c0_205 = arith.constant 0 : index
      %c0_206 = arith.constant 0 : index
      %446 = vector.load %arg8[%c0_205, %c0_206] : memref<1x96xf32, #tpu.memory_space<vmem>>, vector<1x96xf32>
      %447 = arith.addf %445, %446 : vector<1x96xf32>
      %448 = arith.truncf %442 : vector<1x32xf32> to vector<1x32xbf16>
      %c0_207 = arith.constant 0 : index
      %c0_208 = arith.constant 0 : index
      %449 = vector.load %arg7[%c0_207, %c0_208] : memref<32x96xbf16, #tpu.memory_space<vmem>>, vector<32x96xbf16>
      %cst_209 = arith.constant dense<0.000000e+00> : vector<1x96xf32>
      %450 = tpu.matmul %448, %449, %cst_209 {dimension_numbers = #tpu.dot_dimension_numbers<[1], [0], [0], [1], [0, 0, 1, 1], [], []>} : vector<1x32xbf16>, vector<32x96xbf16>, vector<1x96xf32> -> vector<1x96xf32>
      %c0_210 = arith.constant 0 : index
      %c0_211 = arith.constant 0 : index
      %451 = vector.load %arg9[%c0_210, %c0_211] : memref<1x96xf32, #tpu.memory_space<vmem>>, vector<1x96xf32>
      %452 = arith.addf %450, %451 : vector<1x96xf32>
      %453 = vector.extract_strided_slice %447 {offsets = [0, 0], sizes = [1, 32], strides = [1, 1]} : vector<1x96xf32> to vector<1x32xf32>
      %454 = vector.extract_strided_slice %452 {offsets = [0, 0], sizes = [1, 32], strides = [1, 1]} : vector<1x96xf32> to vector<1x32xf32>
      %455 = arith.addf %453, %454 : vector<1x32xf32>
      %456 = arith.negf %455 : vector<1x32xf32>
      %457 = math.exp %456 : vector<1x32xf32>
      %cst_212 = arith.constant 1.000000e+00 : f32
      %458 = vector.broadcast %cst_212 : f32 to vector<1x32xf32>
      %459 = arith.addf %458, %457 : vector<1x32xf32>
      %460 = arith.divf %458, %459 : vector<1x32xf32>
      %461 = vector.extract_strided_slice %447 {offsets = [0, 32], sizes = [1, 32], strides = [1, 1]} : vector<1x96xf32> to vector<1x32xf32>
      %462 = vector.extract_strided_slice %452 {offsets = [0, 32], sizes = [1, 32], strides = [1, 1]} : vector<1x96xf32> to vector<1x32xf32>
      %463 = arith.addf %461, %462 : vector<1x32xf32>
      %464 = arith.negf %463 : vector<1x32xf32>
      %465 = math.exp %464 : vector<1x32xf32>
      %cst_213 = arith.constant 1.000000e+00 : f32
      %466 = vector.broadcast %cst_213 : f32 to vector<1x32xf32>
      %467 = arith.addf %466, %465 : vector<1x32xf32>
      %468 = arith.divf %466, %467 : vector<1x32xf32>
      %469 = vector.extract_strided_slice %447 {offsets = [0, 64], sizes = [1, 32], strides = [1, 1]} : vector<1x96xf32> to vector<1x32xf32>
      %470 = vector.extract_strided_slice %452 {offsets = [0, 64], sizes = [1, 32], strides = [1, 1]} : vector<1x96xf32> to vector<1x32xf32>
      %471 = arith.mulf %460, %470 : vector<1x32xf32>
      %472 = arith.addf %469, %471 : vector<1x32xf32>
      %473 = math.tanh %472 : vector<1x32xf32>
      %cst_214 = arith.constant 1.000000e+00 : f32
      %474 = vector.broadcast %cst_214 : f32 to vector<1x32xf32>
      %475 = arith.subf %474, %468 : vector<1x32xf32>
      %476 = arith.mulf %475, %473 : vector<1x32xf32>
      %477 = arith.mulf %468, %442 : vector<1x32xf32>
      %478 = arith.addf %476, %477 : vector<1x32xf32>
      %479 = vector.broadcast %478 : vector<1x32xf32> to vector<8x32xf32>
      %480 = arith.mulf %373, %479 : vector<8x32xf32>
      %cst_215 = arith.constant dense<0.000000e+00> : vector<8xf32>
      %481 = vector.multi_reduction <add>, %480, %cst_215 [1] : vector<8x32xf32> to vector<8xf32>
      %482 = vector.shape_cast %481 : vector<8xf32> to vector<8x1xf32>
      %cst_216 = arith.constant -1.000000e+30 : f32
      %483 = vector.broadcast %cst_216 : f32 to vector<8x1xf32>
      %484 = arith.select %379, %482, %483 : vector<8x1xi1>, vector<8x1xf32>
      %cst_217 = arith.constant dense<0xFF800000> : vector<1xf32>
      %485 = vector.multi_reduction <maximumf>, %484, %cst_217 [0] : vector<8x1xf32> to vector<1xf32>
      %486 = vector.shape_cast %485 : vector<1xf32> to vector<1x1xf32>
      %487 = vector.broadcast %486 : vector<1x1xf32> to vector<8x1xf32>
      %488 = arith.subf %484, %487 : vector<8x1xf32>
      %489 = math.exp %488 : vector<8x1xf32>
      %cst_218 = arith.constant dense<0.000000e+00> : vector<1xf32>
      %490 = vector.multi_reduction <add>, %489, %cst_218 [0] : vector<8x1xf32> to vector<1xf32>
      %491 = vector.shape_cast %490 : vector<1xf32> to vector<1x1xf32>
      %492 = tpu.reciprocal %491 {approx = true} : vector<1x1xf32> -> vector<1x1xf32>
      %493 = vector.broadcast %492 : vector<1x1xf32> to vector<8x1xf32>
      %494 = arith.mulf %489, %493 : vector<8x1xf32>
      %495 = vector.broadcast %494 : vector<8x1xf32> to vector<8x32xf32>
      %496 = arith.mulf %495, %376 : vector<8x32xf32>
      %cst_219 = arith.constant dense<0.000000e+00> : vector<32xf32>
      %497 = vector.multi_reduction <add>, %496, %cst_219 [0] : vector<8x32xf32> to vector<32xf32>
      %498 = vector.shape_cast %497 : vector<32xf32> to vector<1x32xf32>
      %499 = arith.truncf %478 : vector<1x32xf32> to vector<1x32xbf16>
      %c0_220 = arith.constant 0 : index
      %c0_221 = arith.constant 0 : index
      %500 = vector.load %arg10[%c0_220, %c0_221] : memref<32x32xbf16, #tpu.memory_space<vmem>>, vector<32x32xbf16>
      %cst_222 = arith.constant dense<0.000000e+00> : vector<1x32xf32>
      %501 = tpu.matmul %499, %500, %cst_222 {dimension_numbers = #tpu.dot_dimension_numbers<[1], [0], [0], [1], [0, 0, 1, 1], [], []>} : vector<1x32xbf16>, vector<32x32xbf16>, vector<1x32xf32> -> vector<1x32xf32>
      %502 = arith.addf %501, %498 : vector<1x32xf32>
      %c0_223 = arith.constant 0 : index
      %c0_224 = arith.constant 0 : index
      %503 = vector.load %arg12[%c0_223, %c0_224] : memref<1x32xf32, #tpu.memory_space<vmem>>, vector<1x32xf32>
      %504 = arith.addf %502, %503 : vector<1x32xf32>
      %505 = math.tanh %504 : vector<1x32xf32>
      %506 = arith.truncf %505 : vector<1x32xf32> to vector<1x32xbf16>
      %c0_225 = arith.constant 0 : index
      %c0_226 = arith.constant 0 : index
      %507 = vector.load %arg13[%c0_225, %c0_226] : memref<32x128xbf16, #tpu.memory_space<vmem>>, vector<32x128xbf16>
      %cst_227 = arith.constant dense<0.000000e+00> : vector<1x128xf32>
      %508 = tpu.matmul %506, %507, %cst_227 {dimension_numbers = #tpu.dot_dimension_numbers<[1], [0], [0], [1], [0, 0, 1, 1], [], []>} : vector<1x32xbf16>, vector<32x128xbf16>, vector<1x128xf32> -> vector<1x128xf32>
      %c0_228 = arith.constant 0 : index
      %c0_229 = arith.constant 0 : index
      %509 = vector.load %arg14[%c0_228, %c0_229] : memref<1x128xf32, #tpu.memory_space<vmem>>, vector<1x128xf32>
      %510 = arith.addf %508, %509 : vector<1x128xf32>
      %c64_i32 = arith.constant 64 : i32
      %511 = vector.broadcast %c64_i32 : i32 to vector<1x128xi32>
      %512 = arith.cmpi slt, %1, %511 : vector<1x128xi32>
      %cst_230 = arith.constant -1.000000e+30 : f32
      %513 = vector.broadcast %cst_230 : f32 to vector<1x128xf32>
      %514 = arith.select %512, %510, %513 : vector<1x128xi1>, vector<1x128xf32>
      %cst_231 = arith.constant dense<0xFF800000> : vector<1xf32>
      %515 = vector.multi_reduction <maximumf>, %514, %cst_231 [1] : vector<1x128xf32> to vector<1xf32>
      %516 = vector.shape_cast %515 : vector<1xf32> to vector<1x1xf32>
      %517 = vector.broadcast %516 : vector<1x1xf32> to vector<1x128xf32>
      %518 = arith.cmpf oeq, %514, %517 : vector<1x128xf32>
      %c128_i32 = arith.constant 128 : i32
      %519 = vector.broadcast %c128_i32 : i32 to vector<1x128xi32>
      %520 = arith.select %518, %1, %519 : vector<1x128xi1>, vector<1x128xi32>
      %cst_232 = arith.constant dense<2147483647> : vector<1xi32>
      %521 = vector.multi_reduction <minsi>, %520, %cst_232 [1] : vector<1x128xi32> to vector<1xi32>
      %522 = vector.shape_cast %521 : vector<1xi32> to vector<1x1xi32>
      %523 = vector.broadcast %522 : vector<1x1xi32> to vector<1x128xi32>
      %524 = arith.cmpi eq, %1, %523 : vector<1x128xi32>
      %cst_233 = arith.constant 1.000000e+00 : f32
      %cst_234 = arith.constant 0.000000e+00 : f32
      %525 = vector.broadcast %cst_233 : f32 to vector<1x128xf32>
      %526 = vector.broadcast %cst_234 : f32 to vector<1x128xf32>
      %527 = arith.select %524, %525, %526 : vector<1x128xi1>, vector<1x128xf32>
      %528 = arith.truncf %527 : vector<1x128xf32> to vector<1x128xbf16>
      %c0_235 = arith.constant 0 : index
      %c0_236 = arith.constant 0 : index
      %529 = vector.load %arg19[%c0_235, %c0_236] : memref<1x128xbf16, #tpu.memory_space<vmem>>, vector<1x128xbf16>
      tpu.vector_store %arg19[%c0_235, %c0_236], %528 {strides = array<i32>} : memref<1x128xbf16, #tpu.memory_space<vmem>>, vector<1x128xbf16>,
      %c0_237 = arith.constant 0 : index
      %c0_238 = arith.constant 0 : index
      %530 = vector.load %arg18[%c0_237, %c0_238] : memref<1x32xf32, #tpu.memory_space<vmem>>, vector<1x32xf32>
      tpu.vector_store %arg18[%c0_237, %c0_238], %478 {strides = array<i32>} : memref<1x32xf32, #tpu.memory_space<vmem>>, vector<1x32xf32>,
      %531 = vector.shape_cast %520 : vector<1x128xi32> to vector<1x1x128xi32>
      %cst_239 = arith.constant dense<2147483647> : vector<1xi32>
      %532 = vector.multi_reduction <minsi>, %531, %cst_239 [1, 2] : vector<1x1x128xi32> to vector<1xi32>
      %533 = vector.shape_cast %532 : vector<1xi32> to vector<1x1x1xi32>
      %534 = vector.extract %533[0, 0, 0] : i32 from vector<1x1x1xi32>
      %c0_240 = arith.constant 0 : index
      %535 = memref.load %arg20[%c0_240] : memref<1xi32, #tpu.memory_space<smem>>
      %536 = arith.index_cast %535 : i32 to index
      %537 = memref.load %arg15[%536] : memref<10xi32, #tpu.memory_space<smem>>
      memref.store %534, %arg15[%536] : memref<10xi32, #tpu.memory_space<smem>>
      %c1_i32_241 = arith.constant 1 : i32
      %538 = arith.addi %535, %c1_i32_241 : i32
      %c0_242 = arith.constant 0 : index
      %539 = memref.load %arg20[%c0_242] : memref<1xi32, #tpu.memory_space<smem>>
      memref.store %538, %arg20[%c0_242] : memref<1xi32, #tpu.memory_space<smem>>
      %c2_i32_243 = arith.constant 2 : i32
      %540 = arith.cmpi eq, %534, %c2_i32_243 : i32
      %c1_i32_244 = arith.constant 1 : i32
      %c0_i32_245 = arith.constant 0 : i32
      %541 = arith.select %540, %c1_i32_244, %c0_i32_245 : i32
      %c0_246 = arith.constant 0 : index
      %542 = memref.load %arg21[%c0_246] : memref<1xi32, #tpu.memory_space<smem>>
      memref.store %541, %arg21[%c0_246] : memref<1xi32, #tpu.memory_space<smem>>
    } else {
    }
    %c0_196 = arith.constant 0 : index
    %440 = memref.load %arg20[%c0_196] : memref<1xi32, #tpu.memory_space<smem>>
    %c0_197 = arith.constant 0 : index
    %441 = memref.load %arg16[%c0_197] : memref<1xi32, #tpu.memory_space<smem>>
    memref.store %440, %arg16[%c0_197] : memref<1xi32, #tpu.memory_space<smem>>
    return
  }
}

</mosaic_0001>

<bundles_post_ra>
// kernel: _run_sampler.1
= control target key start
LH: loop header
LB: loop body
LE: loop exit
PB: predicated region body
PF: predicated region fallthrough
CT: control target
= control target key end

     0   :  { %s7684_s0 = inlined_call_operand.<no memory space> [shape: s32[1], index: 0, kind: input, shape index: {}]   ;;  %s7685_s1 = inlined_call_operand.vmem [shape: s32[8], index: 1, kind: input, shape index: {}]   ;;  %s7686_s2 = inlined_call_operand.vmem [shape: bf16[128,96], index: 2, kind: input, shape index: {}]   ;;  %s7687_s3 = inlined_call_operand.vmem [shape: bf16[32,96], index: 3, kind: input, shape index: {}]   ;;  %s7688_s4 = inlined_call_operand.vmem [shape: f32[1,96], index: 4, kind: input, shape index: {}]   ;;  %s7689_s5 = inlined_call_operand.vmem [shape: f32[1,96], index: 5, kind: input, shape index: {}]   ;;  %s7690_s6 = inlined_call_operand.vmem [shape: bf16[128,96], index: 6, kind: input, shape index: {}]   ;;  %s7691_s7 = inlined_call_operand.vmem [shape: bf16[32,96], index: 7, kind: input, shape index: {}]   ;;  %s7692_s8 = inlined_call_operand.vmem [shape: f32[1,96], index: 8, kind: input, shape index: {}]   ;;  %s7693_s9 = inlined_call_operand.vmem [shape: f32[1,96], index: 9, kind: input, shape index: {}]   ;;  %s7694_s10 = inlined_call_operand.vmem [shape: bf16[32,32], index: 10, kind: input, shape index: {}]   ;;  %s7695_s11 = inlined_call_operand.vmem [shape: bf16[32,32], index: 11, kind: input, shape index: {}]   ;;  %s7696_s12 = inlined_call_operand.vmem [shape: f32[1,32], index: 12, kind: input, shape index: {}]   ;;  %s7697_s13 = inlined_call_operand.vmem [shape: bf16[32,128], index: 13, kind: input, shape index: {}]   ;;  %s7698_s14 = inlined_call_operand.vmem [shape: f32[1,128], index: 14, kind: input, shape index: {}]   ;;  %s7699_s15 = inlined_call_operand.hbm [shape: s32[10], index: 15, kind: output, shape index: {0}]   ;;  %s7700_s16 = inlined_call_operand.hbm [shape: s32[1], index: 16, kind: output, shape index: {1}]  }
   0x1   :  { %7709 = sst [smem:[#allocation17_spill]] %s7684_s0 }
   0x2   :  { %23 = vsyncpa [#allocation10], 0 }
   0x3   :  { %24 = vsyncpa [#allocation9], 0 }
   0x4   :  { %25 = vsyncpa [#allocation13], 0  ;;  %s33_s23 = sshll.u32 %s7685_s1, 4  ;;  %s6299_s24 = smov [#allocation8]   ;;  %s34_s23 = int_to_ptr.vmem [resolvable:$true] %s33_s23 }
   0x5   :  { %36 = dma.vmem_to_smem %s34_s23, 16, %s6299_s24, [#allocation10]  }
   0x6   :  { %6293 = dma.done.wait [#allocation10], 16  }
   0x7   :  { %6294 = vsyncadd [#allocation10], 4294967280 }
   0x8   :  { %67 = sfence }
   0x9   :  { %vm72_vm0 = vcmask 261120   ;;  %v5786_v0 = vld [vmem:[%s7686_s2 + $0x38] sm:$0xff]  ;;  %v5788_v1 = vld [vmem:[%s7687_s3 + $0x8] sm:$0xff]  ;;  %v6300_v2 = vmov 0.0   ;;  %v5785_v3 = vld [vmem:[%s7686_s2 + $0x30] sm:$0xff]  ;;  %v6301_v6 = vmov 0   ;;  %v70_v10 = vlaneseq }
   0xa   :  { %73 = vst.msk [vmem:[#allocation2] sm:$0xff] %vm72_vm0, %v6300_v2  ;;  %144 = vmatpush.bf16.msra.mxu0 %v5786_v0  ;;  %183 = vmatpush.bf16.msra.mxu1 %v5788_v1  ;;  %v5787_v4 = vld [vmem:[%s7687_s3] sm:$0xff]  ;;  %v5784_v5 = vld [vmem:[%s7686_s2 + $0x28] sm:$0xff]  ;;  %v5782_v8 = vld [vmem:[%s7686_s2 + $0x18] sm:$0xff]  ;;  %s74_s23 = sld [smem:[#allocation8]]  ;;  %s6303_s0 = smov 64  }
   0xb   :  { %v5783_v7 = vld [vmem:[%s7686_s2 + $0x20] sm:$0xff]  ;;  %v5781_v9 = vld [vmem:[%s7686_s2 + $0x10] sm:$0xff]  ;;  %v5780_v11 = vld [vmem:[%s7686_s2 + $0x8] sm:$0xff]  ;;  %v6471_v12 = vand.u32 127, %v70_v10  ;;  %v6302_v15 = vmov 1.0|1.0  }
   0xc   :  { %v5779_v14 = vld [vmem:[%s7686_s2] sm:$0xff]  ;;  %s6304_s19 = smov 96   ;;  %s7710_s22 = sld [smem:[#allocation17_spill]] }
   0xd   :  { %v161_v16 = vld [vmem:[%s7689_s5] sm:$0x1] }
   0xe   :  { %145 = vmatpush.bf16.msra.mxu0 %v5785_v3  ;;  %184 = vmatpush.bf16.msra.mxu1 %v5787_v4  ;;  %v95_v22 = vld [vmem:[%s7688_s4] sm:$0x1] }
  0x10   :  { %v75_v13 = vstv %s74_s23 }
  0x11   :  { %185 = vmatmul.bf16.vlgmr.msra.gmra.mxu1 %v6301_v6  ;;  %vm76_vm1 = vcmp.eq.s32.totalorder %v6471_v12, %v75_v13 }
  0x12   :  { %146 = vmatpush.bf16.msra.mxu0 %v5784_v5  ;;  %vm4826_vm2 = vmpackc.low %vm76_vm1, %vm76_vm1  ;;  %p229_p0 = scmp.gt.s32.totalorder %s7710_s22, 0  ;;  %p4837_p1 = scmp.le.s32.totalorder %s7710_s22, 0 }
  0x13   :  { %s6305_s26 = smov (!%p4837_p1), 96  }
  0x14   :  { %s230_s23 = scalar_select %p229_p0, 1, 0 }
  0x16   :  { %147 = vmatpush.bf16.msra.mxu0 %v5783_v7  ;;  %v231_v44 = vstv %s230_s23 }
  0x17   :  { %vm232_vm7 = vcmp.eq.s32.totalorder %v231_v44, 1 }
  0x1a   :  { %148 = vmatpush.bf16.msra.mxu0 %v5782_v8 }
  0x1e   :  { %149 = vmatpush.bf16.msra.mxu0 %v5781_v9 }
  0x22   :  { %150 = vmatpush.bf16.msra.mxu0 %v5780_v11 }
  0x26   :  { %151 = vmatpush.bf16.msra.mxu0 %v5779_v14 }
  0x29   :  { %4827 = vmatmul.msk.bf16.vlgmr.msra.gmra.mxu0 %vm4826_vm2, %v6302_v15 }
  0x8e   :  { %v186_v17 = vpop.f32.mrf.mxu1 }
  0x8f   :  { %v187_v18 = vadd.f32 %v186_v17, %v161_v16 }
  0x91   :  { %211 = vrot.lane.b32.xlu0 %v187_v18, %s6303_s0 }
  0x96   :  { %v188_v19 = vpop.f32.mrf.mxu1 }
  0xa6   :  { %v153_v20 = vpop.f32.mrf.mxu0 }
  0xa7   :  { %v154_v23 = vadd.f32 %v153_v20, %v95_v22 }
  0xa9   :  { %v190_v24 = vadd.f32 %v187_v18, %v154_v23 }
  0xab   :  { %v4836_v25 = vmul.f32 -1.442695, %v190_v24 }
  0xad   :  { %6078 = vpow2.f32 %v4836_v25 }
  0xae   :  { %v155_v21 = vpop.f32.mrf.mxu0 }
  0xb3   :  { %v6079_v26 = vpop.eup %6078 }
  0xb4   :  { %v194_v27 = vadd.f32 1.0, %v6079_v26 }
  0xb6   :  { %6080 = vrcp.f32 %v194_v27  ;;  %v206_v33 = vand.u32 2147483648, %v194_v27  ;;  %vm200_vm4 = vweird.f32 %v194_v27  ;;  %v204_v34 = vand.u32 2147483647, %v194_v27 }
  0xb8   :  { %v207_v36 = vor.u32 1.1754944e-38, %v206_v33  ;;  %vm205_vm6 = vcmp.eq.f32.partialorder %v204_v34, 8.507059e+37 }
  0xbc   :  { %v6081_v28 = vpop.eup %6080 }
  0xbd   :  { %v196_v29 = vmul.f32 %v6081_v28, %v194_v27  ;;  %vm201_vm3 = vweird.f32 %v6081_v28 }
  0xbe   :  { %vm202_vm5 = vmor %vm200_vm4, %vm201_vm3 }
  0xbf   :  { %v197_v30 = vsub.f32 1.0, %v196_v29 }
  0xc1   :  { %v198_v31 = vmul.f32 %v6081_v28, %v197_v30 }
  0xc3   :  { %v199_v32 = vadd.f32 %v6081_v28, %v198_v31 }
  0xc5   :  { %v203_v35 = vsel %vm202_vm5, %v6081_v28, %v199_v32 }
  0xc6   :  { %v208_v38 = vsel %vm205_vm6, %v207_v36, %v203_v35 }
  0xc7   :  { %v221_v43 = vsub.f32 1.0, %v208_v38  ;;  %v227_v46 = vmul.f32 0.0, %v208_v38 }
 0x103   :  { %v212_v37 = vpop.permute.xlu0 %211 }
 0x104   :  { %v214_v39 = vmul.f32 %v212_v37, %v208_v38 }
 0x106   :  { %216 = vrot.lane.b32.xlu0 %v214_v39, %s6303_s0 }
 0x178   :  { %v217_v40 = vpop.permute.xlu0 %216 }
 0x179   :  { %v219_v41 = vadd.f32 %v217_v40, %v154_v23 }
 0x17b   :  { %6082 = vtanh.f32 %v219_v41 }
 0x181   :  { %v6083_v42 = vpop.eup %6082 }
 0x182   :  { %223 = vrot.lane.b32.xlu1 %v6083_v42, %s6304_s19 }
 0x1f4   :  { %v224_v45 = vpop.permute.xlu1 %223 }
 0x1f5   :  { %v226_v47 = vmul.f32 %v224_v45, %v221_v43  ;;  %236 = sbr.rel (%p4837_p1) target bundleno = 622 (0x26e), region = 69 }
 0x1f7   :  { %v228_v48 = vadd.f32 %v227_v46, %v226_v47 }
 0x1f9   :  { %v6490_v49 = vsel %vm232_vm7, %v228_v48, 0.0 }
 0x1fa   :  { %238 = vrot.lane.b32.xlu0 %v228_v48, %s6305_s26  ;;  %vm241_vm8 = vcmask 253952  }
 0x26c   :  { %v239_v50 = vpop.permute.xlu0 %238 }
 0x26d   :  { %242 = vst.msk [vmem:[#allocation2] sm:$0x1] %vm241_vm8, %v239_v50 }
 0x26e PF:  { %v326_v51 = vpack.c.bf16 %v6490_v49, %v6490_v49  ;;  %v5796_v52 = vld [vmem:[%s7686_s2 + $0x38] sm:$0xff]  ;;  %v5795_v53 = vld [vmem:[%s7686_s2 + $0x30] sm:$0xff]  ;;  %v5798_v54 = vld [vmem:[%s7687_s3 + $0x8] sm:$0xff]  ;;  %s4838_s18 = sld [smem:[#allocation8 + $0x1]] }
 0x26f   :  { %313 = vmatpush.bf16.msra.mxu2 %v5796_v52  ;;  %356 = vmatpush.bf16.msra.mxu3 %v5798_v54  ;;  %v5797_v55 = vld [vmem:[%s7687_s3] sm:$0xff]  ;;  %v5794_v56 = vld [vmem:[%s7686_s2 + $0x28] sm:$0xff]  ;;  %v5792_v58 = vld [vmem:[%s7686_s2 + $0x18] sm:$0xff]  ;;  %s7711_s26 = sld [smem:[#allocation17_spill]] }
 0x270   :  { %333 = vrot.lane.b32.xlu0 %v326_v51, %s6304_s19  ;;  %v5793_v57 = vld [vmem:[%s7686_s2 + $0x20] sm:$0xff]  ;;  %v5791_v59 = vld [vmem:[%s7686_s2 + $0x10] sm:$0xff]  ;;  %v5790_v60 = vld [vmem:[%s7686_s2 + $0x8] sm:$0xff] }
 0x271   :  { %v5789_v61 = vld [vmem:[%s7686_s2] sm:$0xff] }
 0x272   :  { %v331_v3 = vld [vmem:[%s7689_s5] sm:$0x1] }
 0x273   :  { %314 = vmatpush.bf16.msra.mxu2 %v5795_v53  ;;  %357 = vmatpush.bf16.msra.mxu3 %v5797_v55  ;;  %v264_v7 = vld [vmem:[%s7688_s4] sm:$0x1] }
 0x274   :  { %v244_v62 = vstv %s4838_s18 }
 0x275   :  { %vm245_vm9 = vcmp.eq.s32.totalorder %v6471_v12, %v244_v62  ;;  %p402_p2 = scmp.gt.s32.totalorder %s7711_s26, 1  ;;  %p4883_p3 = scmp.le.s32.totalorder %s7711_s26, 1 }
 0x276   :  { %vm4871_vm10 = vmpackc.low %vm245_vm9, %vm245_vm9  ;;  %s6306_s29 = smov (!%p4883_p3), 96  }
 0x277   :  { %315 = vmatpush.bf16.msra.mxu2 %v5794_v56  ;;  %s403_s27 = scalar_select %p402_p2, 1, 0 }
 0x279   :  { %v404_v32 = vstv %s403_s27 }
 0x27a   :  { %vm405_vm15 = vcmp.eq.s32.totalorder %v404_v32, 1 }
 0x27b   :  { %316 = vmatpush.bf16.msra.mxu2 %v5793_v57 }
 0x27f   :  { %317 = vmatpush.bf16.msra.mxu2 %v5792_v58 }
 0x283   :  { %318 = vmatpush.bf16.msra.mxu2 %v5791_v59 }
 0x287   :  { %319 = vmatpush.bf16.msra.mxu2 %v5790_v60 }
 0x28b   :  { %320 = vmatpush.bf16.msra.mxu2 %v5789_v61 }
 0x28e   :  { %4872 = vmatmul.msk.bf16.vlgmr.msra.gmra.mxu2 %vm4871_vm10, %v6302_v15 }
 0x2e2   :  { %v334_v63 = vpop.permute.xlu0 %333 }
 0x2e3   :  { %4881 = vmatmul.msk.bf16.vlgmr.msra.gmra.mxu3 %vm72_vm0, %v334_v63 }
 0x311   :  { %v322_v0 = vpop.f32.mrf.mxu2 }
 0x312   :  { %v323_v8 = vadd.f32 %v322_v0, %v264_v7 }
 0x319   :  { %v324_v1 = vpop.f32.mrf.mxu2 }
 0x366   :  { %v359_v4 = vpop.f32.mrf.mxu3 }
 0x367   :  { %v360_v5 = vadd.f32 %v359_v4, %v331_v3 }
 0x369   :  { %384 = vrot.lane.b32.xlu0 %v360_v5, %s6303_s0  ;;  %v363_v9 = vadd.f32 %v360_v5, %v323_v8 }
 0x36b   :  { %v4882_v11 = vmul.f32 -1.442695, %v363_v9 }
 0x36d   :  { %6084 = vpow2.f32 %v4882_v11 }
 0x36e   :  { %v361_v6 = vpop.f32.mrf.mxu3 }
 0x373   :  { %v6085_v13 = vpop.eup %6084 }
 0x374   :  { %v367_v14 = vadd.f32 1.0, %v6085_v13 }
 0x376   :  { %6086 = vrcp.f32 %v367_v14  ;;  %v379_v21 = vand.u32 2147483648, %v367_v14  ;;  %vm373_vm12 = vweird.f32 %v367_v14  ;;  %v377_v22 = vand.u32 2147483647, %v367_v14 }
 0x378   :  { %v380_v24 = vor.u32 1.1754944e-38, %v379_v21  ;;  %vm378_vm14 = vcmp.eq.f32.partialorder %v377_v22, 8.507059e+37 }
 0x37c   :  { %v6087_v16 = vpop.eup %6086 }
 0x37d   :  { %v369_v17 = vmul.f32 %v6087_v16, %v367_v14  ;;  %vm374_vm11 = vweird.f32 %v6087_v16 }
 0x37e   :  { %vm375_vm13 = vmor %vm373_vm12, %vm374_vm11 }
 0x37f   :  { %v370_v18 = vsub.f32 1.0, %v369_v17 }
 0x381   :  { %v371_v19 = vmul.f32 %v6087_v16, %v370_v18 }
 0x383   :  { %v372_v20 = vadd.f32 %v6087_v16, %v371_v19 }
 0x385   :  { %v376_v23 = vsel %vm375_vm13, %v6087_v16, %v372_v20 }
 0x386   :  { %v381_v26 = vsel %vm378_vm14, %v380_v24, %v376_v23 }
 0x387   :  { %v394_v31 = vsub.f32 1.0, %v381_v26  ;;  %v400_v34 = vmul.f32 %v381_v26, %v6490_v49 }
 0x3db   :  { %v385_v25 = vpop.permute.xlu0 %384 }
 0x3dc   :  { %v387_v27 = vmul.f32 %v385_v25, %v381_v26 }
 0x3de   :  { %389 = vrot.lane.b32.xlu1 %v387_v27, %s6303_s0 }
 0x450   :  { %v390_v28 = vpop.permute.xlu1 %389 }
 0x451   :  { %v392_v29 = vadd.f32 %v390_v28, %v323_v8 }
 0x453   :  { %6088 = vtanh.f32 %v392_v29 }
 0x459   :  { %v6089_v30 = vpop.eup %6088 }
 0x45a   :  { %396 = vrot.lane.b32.xlu1 %v6089_v30, %s6304_s19 }
 0x4cc   :  { %v397_v33 = vpop.permute.xlu1 %396 }
 0x4cd   :  { %v399_v35 = vmul.f32 %v397_v33, %v394_v31  ;;  %409 = sbr.rel (%p4883_p3) target bundleno = 1350 (0x546), region = 73 }
 0x4cf   :  { %v401_v36 = vadd.f32 %v400_v34, %v399_v35 }
 0x4d1   :  { %v6545_v37 = vsel %vm405_vm15, %v401_v36, %v6490_v49 }
 0x4d2   :  { %411 = vrot.lane.b32.xlu0 %v401_v36, %s6306_s29  ;;  %vm414_vm1 = vcmask 253952  }
 0x544   :  { %v412_v38 = vpop.permute.xlu0 %411 }
 0x545   :  { %415 = vst.msk [vmem:[#allocation2 + $0x1] sm:$0x1] %vm414_vm1, %v412_v38 }
 0x546 PF:  { %v499_v39 = vpack.c.bf16 %v6545_v37, %v6545_v37  ;;  %v5806_v40 = vld [vmem:[%s7686_s2 + $0x38] sm:$0xff]  ;;  %v5808_v41 = vld [vmem:[%s7687_s3 + $0x8] sm:$0xff]  ;;  %v5805_v42 = vld [vmem:[%s7686_s2 + $0x30] sm:$0xff]  ;;  %s4884_s18 = sld [smem:[#allocation8 + $0x2]] }
 0x547   :  { %486 = vmatpush.bf16.msrb.mxu1 %v5806_v40  ;;  %529 = vmatpush.bf16.msrb.mxu3 %v5808_v41  ;;  %v5807_v43 = vld [vmem:[%s7687_s3] sm:$0xff]  ;;  %v5804_v44 = vld [vmem:[%s7686_s2 + $0x28] sm:$0xff]  ;;  %v5802_v46 = vld [vmem:[%s7686_s2 + $0x18] sm:$0xff]  ;;  %s7712_s29 = sld [smem:[#allocation17_spill]] }
 0x548   :  { %506 = vrot.lane.b32.xlu0 %v499_v39, %s6304_s19  ;;  %v5803_v45 = vld [vmem:[%s7686_s2 + $0x20] sm:$0xff]  ;;  %v5801_v47 = vld [vmem:[%s7686_s2 + $0x10] sm:$0xff]  ;;  %v5800_v48 = vld [vmem:[%s7686_s2 + $0x8] sm:$0xff] }
 0x549   :  { %v5799_v49 = vld [vmem:[%s7686_s2] sm:$0xff] }
 0x54a   :  { %v504_v54 = vld [vmem:[%s7689_s5] sm:$0x1] }
 0x54b   :  { %487 = vmatpush.bf16.msrb.mxu1 %v5805_v42  ;;  %530 = vmatpush.bf16.msrb.mxu3 %v5807_v43  ;;  %v437_v58 = vld [vmem:[%s7688_s4] sm:$0x1] }
 0x54c   :  { %v417_v50 = vstv %s4884_s18 }
 0x54d   :  { %vm418_vm2 = vcmp.eq.s32.totalorder %v6471_v12, %v417_v50  ;;  %p575_p4 = scmp.gt.s32.totalorder %s7712_s29, 2  ;;  %p4929_p5 = scmp.le.s32.totalorder %s7712_s29, 2 }
 0x54e   :  { %vm4917_vm3 = vmpackc.low %vm418_vm2, %vm418_vm2  ;;  %s6307_s20 = smov (!%p4929_p5), 96  }
 0x54f   :  { %488 = vmatpush.bf16.msrb.mxu1 %v5804_v44  ;;  %s576_s30 = scalar_select %p575_p4, 1, 0 }
 0x551   :  { %v577_v20 = vstv %s576_s30 }
 0x552   :  { %vm578_vm8 = vcmp.eq.s32.totalorder %v577_v20, 1 }
 0x553   :  { %489 = vmatpush.bf16.msrb.mxu1 %v5803_v45 }
 0x557   :  { %490 = vmatpush.bf16.msrb.mxu1 %v5802_v46 }
 0x55b   :  { %491 = vmatpush.bf16.msrb.mxu1 %v5801_v47 }
 0x55f   :  { %492 = vmatpush.bf16.msrb.mxu1 %v5800_v48 }
 0x563   :  { %493 = vmatpush.bf16.msrb.mxu1 %v5799_v49 }
 0x566   :  { %4918 = vmatmul.msk.bf16.vlgmr.msrb.gmra.mxu1 %vm4917_vm3, %v6302_v15 }
 0x5ba   :  { %v507_v51 = vpop.permute.xlu0 %506 }
 0x5bb   :  { %4927 = vmatmul.msk.bf16.vlgmr.msrb.gmra.mxu3 %vm72_vm0, %v507_v51 }
 0x5e3   :  { %v495_v52 = vpop.f32.mrf.mxu1 }
 0x5e4   :  { %v496_v59 = vadd.f32 %v495_v52, %v437_v58 }
 0x5eb   :  { %v497_v53 = vpop.f32.mrf.mxu1 }
 0x63e   :  { %v532_v55 = vpop.f32.mrf.mxu3 }
 0x63f   :  { %v533_v56 = vadd.f32 %v532_v55, %v504_v54 }
 0x641   :  { %557 = vrot.lane.b32.xlu0 %v533_v56, %s6303_s0  ;;  %v536_v60 = vadd.f32 %v533_v56, %v496_v59 }
 0x643   :  { %v4928_v61 = vmul.f32 -1.442695, %v536_v60 }
 0x645   :  { %6090 = vpow2.f32 %v4928_v61 }
 0x646   :  { %v534_v57 = vpop.f32.mrf.mxu3 }
 0x64b   :  { %v6091_v62 = vpop.eup %6090 }
 0x64c   :  { %v540_v63 = vadd.f32 1.0, %v6091_v62 }
 0x64e   :  { %6092 = vrcp.f32 %v540_v63  ;;  %v552_v6 = vand.u32 2147483648, %v540_v63  ;;  %vm546_vm5 = vweird.f32 %v540_v63  ;;  %v550_v7 = vand.u32 2147483647, %v540_v63 }
 0x650   :  { %v553_v9 = vor.u32 1.1754944e-38, %v552_v6  ;;  %vm551_vm7 = vcmp.eq.f32.partialorder %v550_v7, 8.507059e+37 }
 0x654   :  { %v6093_v0 = vpop.eup %6092 }
 0x655   :  { %v542_v1 = vmul.f32 %v6093_v0, %v540_v63  ;;  %vm547_vm4 = vweird.f32 %v6093_v0 }
 0x656   :  { %vm548_vm6 = vmor %vm546_vm5, %vm547_vm4 }
 0x657   :  { %v543_v3 = vsub.f32 1.0, %v542_v1 }
 0x659   :  { %v544_v4 = vmul.f32 %v6093_v0, %v543_v3 }
 0x65b   :  { %v545_v5 = vadd.f32 %v6093_v0, %v544_v4 }
 0x65d   :  { %v549_v8 = vsel %vm548_vm6, %v6093_v0, %v545_v5 }
 0x65e   :  { %v554_v13 = vsel %vm551_vm7, %v553_v9, %v549_v8 }
 0x65f   :  { %v567_v19 = vsub.f32 1.0, %v554_v13  ;;  %v573_v22 = vmul.f32 %v554_v13, %v6545_v37 }
 0x6b3   :  { %v558_v11 = vpop.permute.xlu0 %557 }
 0x6b4   :  { %v560_v14 = vmul.f32 %v558_v11, %v554_v13 }
 0x6b6   :  { %562 = vrot.lane.b32.xlu1 %v560_v14, %s6303_s0 }
 0x728   :  { %v563_v16 = vpop.permute.xlu1 %562 }
 0x729   :  { %v565_v17 = vadd.f32 %v563_v16, %v496_v59 }
 0x72b   :  { %6094 = vtanh.f32 %v565_v17 }
 0x731   :  { %v6095_v18 = vpop.eup %6094 }
 0x732   :  { %569 = vrot.lane.b32.xlu1 %v6095_v18, %s6304_s19 }
 0x7a4   :  { %v570_v21 = vpop.permute.xlu1 %569 }
 0x7a5   :  { %v572_v23 = vmul.f32 %v570_v21, %v567_v19  ;;  %582 = sbr.rel (%p4929_p5) target bundleno = 2078 (0x81e), region = 77 }
 0x7a7   :  { %v574_v24 = vadd.f32 %v573_v22, %v572_v23 }
 0x7a9   :  { %v6600_v25 = vsel %vm578_vm8, %v574_v24, %v6545_v37 }
 0x7aa   :  { %584 = vrot.lane.b32.xlu0 %v574_v24, %s6307_s20  ;;  %vm587_vm9 = vcmask 253952  }
 0x81c   :  { %v585_v26 = vpop.permute.xlu0 %584 }
 0x81d   :  { %588 = vst.msk [vmem:[#allocation2 + $0x2] sm:$0x1] %vm587_vm9, %v585_v26 }
 0x81e PF:  { %v672_v27 = vpack.c.bf16 %v6600_v25, %v6600_v25  ;;  %v5816_v28 = vld [vmem:[%s7686_s2 + $0x38] sm:$0xff]  ;;  %v5815_v29 = vld [vmem:[%s7686_s2 + $0x30] sm:$0xff]  ;;  %v5818_v30 = vld [vmem:[%s7687_s3 + $0x8] sm:$0xff]  ;;  %s4930_s21 = sld [smem:[#allocation8 + $0x3]] }
 0x81f   :  { %659 = vmatpush.bf16.msra.mxu3 %v5816_v28  ;;  %702 = vmatpush.bf16.msrb.mxu0 %v5818_v30  ;;  %v5817_v31 = vld [vmem:[%s7687_s3] sm:$0xff]  ;;  %v5814_v32 = vld [vmem:[%s7686_s2 + $0x28] sm:$0xff]  ;;  %v5812_v34 = vld [vmem:[%s7686_s2 + $0x18] sm:$0xff]  ;;  %s7713_s20 = sld [smem:[#allocation17_spill]] }
 0x820   :  { %679 = vrot.lane.b32.xlu0 %v672_v27, %s6304_s19  ;;  %v5813_v33 = vld [vmem:[%s7686_s2 + $0x20] sm:$0xff]  ;;  %v5811_v35 = vld [vmem:[%s7686_s2 + $0x10] sm:$0xff]  ;;  %v5810_v36 = vld [vmem:[%s7686_s2 + $0x8] sm:$0xff] }
 0x821   :  { %v5809_v38 = vld [vmem:[%s7686_s2] sm:$0xff] }
 0x822   :  { %v677_v42 = vld [vmem:[%s7689_s5] sm:$0x1] }
 0x823   :  { %660 = vmatpush.bf16.msra.mxu3 %v5815_v29  ;;  %703 = vmatpush.bf16.msrb.mxu0 %v5817_v31  ;;  %v610_v46 = vld [vmem:[%s7688_s4] sm:$0x1] }
 0x824   :  { %v590_v37 = vstv %s4930_s21 }
 0x825   :  { %vm591_vm10 = vcmp.eq.s32.totalorder %v6471_v12, %v590_v37  ;;  %p748_p6 = scmp.gt.s32.totalorder %s7713_s20, 3  ;;  %p4975_p7 = scmp.le.s32.totalorder %s7713_s20, 3 }
 0x826   :  { %vm4963_vm11 = vmpackc.low %vm591_vm10, %vm591_vm10  ;;  %s6308_s24 = smov (!%p4975_p7), 96  }
 0x827   :  { %661 = vmatpush.bf16.msra.mxu3 %v5814_v32  ;;  %s749_s21 = scalar_select %p748_p6, 1, 0 }
 0x829   :  { %v750_v5 = vstv %s749_s21 }
 0x82a   :  { %vm751_vm1 = vcmp.eq.s32.totalorder %v750_v5, 1 }
 0x82b   :  { %662 = vmatpush.bf16.msra.mxu3 %v5813_v33 }
 0x82f   :  { %663 = vmatpush.bf16.msra.mxu3 %v5812_v34 }
 0x833   :  { %664 = vmatpush.bf16.msra.mxu3 %v5811_v35 }
 0x837   :  { %665 = vmatpush.bf16.msra.mxu3 %v5810_v36 }
 0x83b   :  { %666 = vmatpush.bf16.msra.mxu3 %v5809_v38 }
 0x83e   :  { %4964 = vmatmul.msk.bf16.vlgmr.msra.gmra.mxu3 %vm4963_vm11, %v6302_v15 }
 0x892   :  { %v680_v39 = vpop.permute.xlu0 %679 }
 0x893   :  { %4973 = vmatmul.msk.bf16.vlgmr.msrb.gmra.mxu0 %vm72_vm0, %v680_v39 }
 0x8c1   :  { %v668_v40 = vpop.f32.mrf.mxu3 }
 0x8c2   :  { %v669_v47 = vadd.f32 %v668_v40, %v610_v46 }
 0x8c9   :  { %v670_v41 = vpop.f32.mrf.mxu3 }
 0x910   :  { %v705_v43 = vpop.f32.mrf.mxu0 }
 0x911   :  { %v706_v44 = vadd.f32 %v705_v43, %v677_v42 }
 0x913   :  { %730 = vrot.lane.b32.xlu0 %v706_v44, %s6303_s0  ;;  %v709_v48 = vadd.f32 %v706_v44, %v669_v47 }
 0x915   :  { %v4974_v49 = vmul.f32 -1.442695, %v709_v48 }
 0x917   :  { %6096 = vpow2.f32 %v4974_v49 }
 0x918   :  { %v707_v45 = vpop.f32.mrf.mxu0 }
 0x91d   :  { %v6097_v50 = vpop.eup %6096 }
 0x91e   :  { %v713_v51 = vadd.f32 1.0, %v6097_v50 }
 0x920   :  { %6098 = vrcp.f32 %v713_v51  ;;  %v725_v57 = vand.u32 2147483648, %v713_v51  ;;  %vm719_vm13 = vweird.f32 %v713_v51  ;;  %v723_v58 = vand.u32 2147483647, %v713_v51 }
 0x922   :  { %v726_v60 = vor.u32 1.1754944e-38, %v725_v57  ;;  %vm724_vm15 = vcmp.eq.f32.partialorder %v723_v58, 8.507059e+37 }
 0x926   :  { %v6099_v52 = vpop.eup %6098 }
 0x927   :  { %v715_v53 = vmul.f32 %v6099_v52, %v713_v51  ;;  %vm720_vm12 = vweird.f32 %v6099_v52 }
 0x928   :  { %vm721_vm14 = vmor %vm719_vm13, %vm720_vm12 }
 0x929   :  { %v716_v54 = vsub.f32 1.0, %v715_v53 }
 0x92b   :  { %v717_v55 = vmul.f32 %v6099_v52, %v716_v54 }
 0x92d   :  { %v718_v56 = vadd.f32 %v6099_v52, %v717_v55 }
 0x92f   :  { %v722_v59 = vsel %vm721_vm14, %v6099_v52, %v718_v56 }
 0x930   :  { %v727_v62 = vsel %vm724_vm15, %v726_v60, %v722_v59 }
 0x931   :  { %v740_v4 = vsub.f32 1.0, %v727_v62  ;;  %v746_v7 = vmul.f32 %v727_v62, %v6600_v25 }
 0x985   :  { %v731_v61 = vpop.permute.xlu0 %730 }
 0x986   :  { %v733_v63 = vmul.f32 %v731_v61, %v727_v62 }
 0x988   :  { %735 = vrot.lane.b32.xlu1 %v733_v63, %s6303_s0 }
 0x9fa   :  { %v736_v0 = vpop.permute.xlu1 %735 }
 0x9fb   :  { %v738_v1 = vadd.f32 %v736_v0, %v669_v47 }
 0x9fd   :  { %6100 = vtanh.f32 %v738_v1 }
 0xa03   :  { %v6101_v3 = vpop.eup %6100 }
 0xa04   :  { %742 = vrot.lane.b32.xlu1 %v6101_v3, %s6304_s19 }
 0xa76   :  { %v743_v6 = vpop.permute.xlu1 %742 }
 0xa77   :  { %v745_v8 = vmul.f32 %v743_v6, %v740_v4  ;;  %755 = sbr.rel (%p4975_p7) target bundleno = 2800 (0xaf0), region = 81 }
 0xa79   :  { %v747_v9 = vadd.f32 %v746_v7, %v745_v8 }
 0xa7b   :  { %v6655_v11 = vsel %vm751_vm1, %v747_v9, %v6600_v25 }
 0xa7c   :  { %757 = vrot.lane.b32.xlu0 %v747_v9, %s6308_s24  ;;  %vm760_vm2 = vcmask 253952  }
 0xaee   :  { %v758_v13 = vpop.permute.xlu0 %757 }
 0xaef   :  { %761 = vst.msk [vmem:[#allocation2 + $0x3] sm:$0x1] %vm760_vm2, %v758_v13 }
 0xaf0 PF:  { %v845_v14 = vpack.c.bf16 %v6655_v11, %v6655_v11  ;;  %v5826_v16 = vld [vmem:[%s7686_s2 + $0x38] sm:$0xff]  ;;  %v5825_v17 = vld [vmem:[%s7686_s2 + $0x30] sm:$0xff]  ;;  %v5828_v18 = vld [vmem:[%s7687_s3 + $0x8] sm:$0xff]  ;;  %s4976_s25 = sld [smem:[#allocation8 + $0x4]] }
 0xaf1   :  { %832 = vmatpush.bf16.msrb.mxu2 %v5826_v16  ;;  %875 = vmatpush.bf16.msra.mxu1 %v5828_v18  ;;  %v5827_v19 = vld [vmem:[%s7687_s3] sm:$0xff]  ;;  %v5824_v20 = vld [vmem:[%s7686_s2 + $0x28] sm:$0xff]  ;;  %v5822_v22 = vld [vmem:[%s7686_s2 + $0x18] sm:$0xff]  ;;  %s7714_s24 = sld [smem:[#allocation17_spill]] }
 0xaf2   :  { %852 = vrot.lane.b32.xlu0 %v845_v14, %s6304_s19  ;;  %v5823_v21 = vld [vmem:[%s7686_s2 + $0x20] sm:$0xff]  ;;  %v5821_v23 = vld [vmem:[%s7686_s2 + $0x10] sm:$0xff]  ;;  %v5820_v24 = vld [vmem:[%s7686_s2 + $0x8] sm:$0xff] }
 0xaf3   :  { %v5819_v26 = vld [vmem:[%s7686_s2] sm:$0xff] }
 0xaf4   :  { %v850_v30 = vld [vmem:[%s7689_s5] sm:$0x1] }
 0xaf5   :  { %833 = vmatpush.bf16.msrb.mxu2 %v5825_v17  ;;  %876 = vmatpush.bf16.msra.mxu1 %v5827_v19  ;;  %v783_v34 = vld [vmem:[%s7688_s4] sm:$0x1] }
 0xaf6   :  { %v763_v25 = vstv %s4976_s25 }
 0xaf7   :  { %vm764_vm3 = vcmp.eq.s32.totalorder %v6471_v12, %v763_v25  ;;  %p921_p8 = scmp.gt.s32.totalorder %s7714_s24, 4  ;;  %p5021_p9 = scmp.le.s32.totalorder %s7714_s24, 4 }
 0xaf8   :  { %vm5009_vm4 = vmpackc.low %vm764_vm3, %vm764_vm3  ;;  %s6309_s28 = smov (!%p5021_p9), 96  }
 0xaf9   :  { %834 = vmatpush.bf16.msrb.mxu2 %v5824_v20  ;;  %s922_s25 = scalar_select %p921_p8, 1, 0 }
 0xafb   :  { %v923_v56 = vstv %s922_s25 }
 0xafc   :  { %vm924_vm9 = vcmp.eq.s32.totalorder %v923_v56, 1 }
 0xafd   :  { %835 = vmatpush.bf16.msrb.mxu2 %v5823_v21 }
 0xb01   :  { %836 = vmatpush.bf16.msrb.mxu2 %v5822_v22 }
 0xb05   :  { %837 = vmatpush.bf16.msrb.mxu2 %v5821_v23 }
 0xb09   :  { %838 = vmatpush.bf16.msrb.mxu2 %v5820_v24 }
 0xb0d   :  { %839 = vmatpush.bf16.msrb.mxu2 %v5819_v26 }
 0xb10   :  { %5010 = vmatmul.msk.bf16.vlgmr.msrb.gmra.mxu2 %vm5009_vm4, %v6302_v15 }
 0xb64   :  { %v853_v27 = vpop.permute.xlu0 %852 }
 0xb65   :  { %5019 = vmatmul.msk.bf16.vlgmr.msra.gmra.mxu1 %vm72_vm0, %v853_v27 }
 0xb93   :  { %v841_v28 = vpop.f32.mrf.mxu2 }
 0xb94   :  { %v842_v35 = vadd.f32 %v841_v28, %v783_v34 }
 0xb9b   :  { %v843_v29 = vpop.f32.mrf.mxu2 }
 0xbe2   :  { %v878_v31 = vpop.f32.mrf.mxu1 }
 0xbe3   :  { %v879_v32 = vadd.f32 %v878_v31, %v850_v30 }
 0xbe5   :  { %903 = vrot.lane.b32.xlu0 %v879_v32, %s6303_s0  ;;  %v882_v36 = vadd.f32 %v879_v32, %v842_v35 }
 0xbe7   :  { %v5020_v37 = vmul.f32 -1.442695, %v882_v36 }
 0xbe9   :  { %6102 = vpow2.f32 %v5020_v37 }
 0xbea   :  { %v880_v33 = vpop.f32.mrf.mxu1 }
 0xbef   :  { %v6103_v38 = vpop.eup %6102 }
 0xbf0   :  { %v886_v39 = vadd.f32 1.0, %v6103_v38 }
 0xbf2   :  { %6104 = vrcp.f32 %v886_v39  ;;  %v898_v45 = vand.u32 2147483648, %v886_v39  ;;  %vm892_vm6 = vweird.f32 %v886_v39  ;;  %v896_v46 = vand.u32 2147483647, %v886_v39 }
 0xbf4   :  { %v899_v48 = vor.u32 1.1754944e-38, %v898_v45  ;;  %vm897_vm8 = vcmp.eq.f32.partialorder %v896_v46, 8.507059e+37 }
 0xbf8   :  { %v6105_v40 = vpop.eup %6104 }
 0xbf9   :  { %v888_v41 = vmul.f32 %v6105_v40, %v886_v39  ;;  %vm893_vm5 = vweird.f32 %v6105_v40 }
 0xbfa   :  { %vm894_vm7 = vmor %vm892_vm6, %vm893_vm5 }
 0xbfb   :  { %v889_v42 = vsub.f32 1.0, %v888_v41 }
 0xbfd   :  { %v890_v43 = vmul.f32 %v6105_v40, %v889_v42 }
 0xbff   :  { %v891_v44 = vadd.f32 %v6105_v40, %v890_v43 }
 0xc01   :  { %v895_v47 = vsel %vm894_vm7, %v6105_v40, %v891_v44 }
 0xc02   :  { %v900_v50 = vsel %vm897_vm8, %v899_v48, %v895_v47 }
 0xc03   :  { %v913_v55 = vsub.f32 1.0, %v900_v50  ;;  %v919_v58 = vmul.f32 %v900_v50, %v6655_v11 }
 0xc57   :  { %v904_v49 = vpop.permute.xlu0 %903 }
 0xc58   :  { %v906_v51 = vmul.f32 %v904_v49, %v900_v50 }
 0xc5a   :  { %908 = vrot.lane.b32.xlu1 %v906_v51, %s6303_s0 }
 0xccc   :  { %v909_v52 = vpop.permute.xlu1 %908 }
 0xccd   :  { %v911_v53 = vadd.f32 %v909_v52, %v842_v35 }
 0xccf   :  { %6106 = vtanh.f32 %v911_v53 }
 0xcd5   :  { %v6107_v54 = vpop.eup %6106 }
 0xcd6   :  { %915 = vrot.lane.b32.xlu1 %v6107_v54, %s6304_s19 }
 0xd48   :  { %v916_v57 = vpop.permute.xlu1 %915 }
 0xd49   :  { %v918_v59 = vmul.f32 %v916_v57, %v913_v55  ;;  %928 = sbr.rel (%p5021_p9) target bundleno = 3522 (0xdc2), region = 85 }
 0xd4b   :  { %v920_v60 = vadd.f32 %v919_v58, %v918_v59 }
 0xd4d   :  { %v6710_v61 = vsel %vm924_vm9, %v920_v60, %v6655_v11 }
 0xd4e   :  { %930 = vrot.lane.b32.xlu0 %v920_v60, %s6309_s28  ;;  %vm933_vm10 = vcmask 253952  }
 0xdc0   :  { %v931_v62 = vpop.permute.xlu0 %930 }
 0xdc1   :  { %934 = vst.msk [vmem:[#allocation2 + $0x4] sm:$0x1] %vm933_vm10, %v931_v62 }
 0xdc2 PF:  { %v1018_v63 = vpack.c.bf16 %v6710_v61, %v6710_v61  ;;  %v5836_v0 = vld [vmem:[%s7686_s2 + $0x38] sm:$0xff]  ;;  %v5835_v1 = vld [vmem:[%s7686_s2 + $0x30] sm:$0xff]  ;;  %v5838_v3 = vld [vmem:[%s7687_s3 + $0x8] sm:$0xff]  ;;  %s5022_s21 = sld [smem:[#allocation8 + $0x5]] }
 0xdc3   :  { %1005 = vmatpush.bf16.msra.mxu0 %v5836_v0  ;;  %1048 = vmatpush.bf16.msrb.mxu1 %v5838_v3  ;;  %v5837_v4 = vld [vmem:[%s7687_s3] sm:$0xff]  ;;  %v5834_v5 = vld [vmem:[%s7686_s2 + $0x28] sm:$0xff]  ;;  %v5832_v7 = vld [vmem:[%s7686_s2 + $0x18] sm:$0xff]  ;;  %s7715_s28 = sld [smem:[#allocation17_spill]] }
 0xdc4   :  { %1025 = vrot.lane.b32.xlu0 %v1018_v63, %s6304_s19  ;;  %v5833_v6 = vld [vmem:[%s7686_s2 + $0x20] sm:$0xff]  ;;  %v5831_v8 = vld [vmem:[%s7686_s2 + $0x10] sm:$0xff]  ;;  %v5830_v9 = vld [vmem:[%s7686_s2 + $0x8] sm:$0xff] }
 0xdc5   :  { %v5829_v11 = vld [vmem:[%s7686_s2] sm:$0xff] }
 0xdc6   :  { %v1023_v18 = vld [vmem:[%s7689_s5] sm:$0x1] }
 0xdc7   :  { %1006 = vmatpush.bf16.msra.mxu0 %v5835_v1  ;;  %1049 = vmatpush.bf16.msrb.mxu1 %v5837_v4  ;;  %v956_v22 = vld [vmem:[%s7688_s4] sm:$0x1] }
 0xdc8   :  { %v936_v13 = vstv %s5022_s21 }
 0xdc9   :  { %vm937_vm11 = vcmp.eq.s32.totalorder %v6471_v12, %v936_v13  ;;  %p1094_p10 = scmp.gt.s32.totalorder %s7715_s28, 5  ;;  %p5067_p11 = scmp.le.s32.totalorder %s7715_s28, 5 }
 0xdca   :  { %vm5055_vm12 = vmpackc.low %vm937_vm11, %vm937_vm11  ;;  %s6310_s17 = smov (!%p5067_p11), 96  }
 0xdcb   :  { %1007 = vmatpush.bf16.msra.mxu0 %v5834_v5  ;;  %s1095_s1 = scalar_select %p1094_p10, 1, 0 }
 0xdcd   :  { %v1096_v44 = vstv %s1095_s1 }
 0xdce   :  { %vm1097_vm2 = vcmp.eq.s32.totalorder %v1096_v44, 1 }
 0xdcf   :  { %1008 = vmatpush.bf16.msra.mxu0 %v5833_v6 }
 0xdd3   :  { %1009 = vmatpush.bf16.msra.mxu0 %v5832_v7 }
 0xdd7   :  { %1010 = vmatpush.bf16.msra.mxu0 %v5831_v8 }
 0xddb   :  { %1011 = vmatpush.bf16.msra.mxu0 %v5830_v9 }
 0xddf   :  { %1012 = vmatpush.bf16.msra.mxu0 %v5829_v11 }
 0xde2   :  { %5056 = vmatmul.msk.bf16.vlgmr.msra.gmra.mxu0 %vm5055_vm12, %v6302_v15 }
 0xe36   :  { %v1026_v14 = vpop.permute.xlu0 %1025 }
 0xe37   :  { %5065 = vmatmul.msk.bf16.vlgmr.msrb.gmra.mxu1 %vm72_vm0, %v1026_v14 }
 0xe5f   :  { %v1014_v16 = vpop.f32.mrf.mxu0 }
 0xe60   :  { %v1015_v23 = vadd.f32 %v1014_v16, %v956_v22 }
 0xe67   :  { %v1016_v17 = vpop.f32.mrf.mxu0 }
 0xeb4   :  { %v1051_v19 = vpop.f32.mrf.mxu1 }
 0xeb5   :  { %v1052_v20 = vadd.f32 %v1051_v19, %v1023_v18 }
 0xeb7   :  { %1076 = vrot.lane.b32.xlu0 %v1052_v20, %s6303_s0  ;;  %v1055_v24 = vadd.f32 %v1052_v20, %v1015_v23 }
 0xeb9   :  { %v5066_v25 = vmul.f32 -1.442695, %v1055_v24 }
 0xebb   :  { %6108 = vpow2.f32 %v5066_v25 }
 0xebc   :  { %v1053_v21 = vpop.f32.mrf.mxu1 }
 0xec1   :  { %v6109_v26 = vpop.eup %6108 }
 0xec2   :  { %v1059_v27 = vadd.f32 1.0, %v6109_v26 }
 0xec4   :  { %6110 = vrcp.f32 %v1059_v27  ;;  %v1071_v33 = vand.u32 2147483648, %v1059_v27  ;;  %vm1065_vm14 = vweird.f32 %v1059_v27  ;;  %v1069_v34 = vand.u32 2147483647, %v1059_v27 }
 0xec6   :  { %v1072_v36 = vor.u32 1.1754944e-38, %v1071_v33  ;;  %vm1070_vm1 = vcmp.eq.f32.partialorder %v1069_v34, 8.507059e+37 }
 0xeca   :  { %v6111_v28 = vpop.eup %6110 }
 0xecb   :  { %v1061_v29 = vmul.f32 %v6111_v28, %v1059_v27  ;;  %vm1066_vm13 = vweird.f32 %v6111_v28 }
 0xecc   :  { %vm1067_vm15 = vmor %vm1065_vm14, %vm1066_vm13 }
 0xecd   :  { %v1062_v30 = vsub.f32 1.0, %v1061_v29 }
 0xecf   :  { %v1063_v31 = vmul.f32 %v6111_v28, %v1062_v30 }
 0xed1   :  { %v1064_v32 = vadd.f32 %v6111_v28, %v1063_v31 }
 0xed3   :  { %v1068_v35 = vsel %vm1067_vm15, %v6111_v28, %v1064_v32 }
 0xed4   :  { %v1073_v38 = vsel %vm1070_vm1, %v1072_v36, %v1068_v35 }
 0xed5   :  { %v1086_v43 = vsub.f32 1.0, %v1073_v38  ;;  %v1092_v46 = vmul.f32 %v1073_v38, %v6710_v61 }
 0xf29   :  { %v1077_v37 = vpop.permute.xlu0 %1076 }
 0xf2a   :  { %v1079_v39 = vmul.f32 %v1077_v37, %v1073_v38 }
 0xf2c   :  { %1081 = vrot.lane.b32.xlu1 %v1079_v39, %s6303_s0 }
 0xf9e   :  { %v1082_v40 = vpop.permute.xlu1 %1081 }
 0xf9f   :  { %v1084_v41 = vadd.f32 %v1082_v40, %v1015_v23 }
 0xfa1   :  { %6112 = vtanh.f32 %v1084_v41 }
 0xfa7   :  { %v6113_v42 = vpop.eup %6112 }
 0xfa8   :  { %1088 = vrot.lane.b32.xlu1 %v6113_v42, %s6304_s19 }
0x101a   :  { %v1089_v45 = vpop.permute.xlu1 %1088 }
0x101b   :  { %v1091_v47 = vmul.f32 %v1089_v45, %v1086_v43  ;;  %1101 = sbr.rel (%p5067_p11) target bundleno = 4244 (0x1094), region = 89 }
0x101d   :  { %v1093_v48 = vadd.f32 %v1092_v46, %v1091_v47 }
0x101f   :  { %v6765_v49 = vsel %vm1097_vm2, %v1093_v48, %v6710_v61 }
0x1020   :  { %1103 = vrot.lane.b32.xlu0 %v1093_v48, %s6310_s17  ;;  %vm1106_vm3 = vcmask 253952  }
0x1092   :  { %v1104_v50 = vpop.permute.xlu0 %1103 }
0x1093   :  { %1107 = vst.msk [vmem:[#allocation2 + $0x5] sm:$0x1] %vm1106_vm3, %v1104_v50 }
0x1094 PF:  { %v1191_v51 = vpack.c.bf16 %v6765_v49, %v6765_v49  ;;  %v5846_v52 = vld [vmem:[%s7686_s2 + $0x38] sm:$0xff]  ;;  %v5845_v53 = vld [vmem:[%s7686_s2 + $0x30] sm:$0xff]  ;;  %v5848_v54 = vld [vmem:[%s7687_s3 + $0x8] sm:$0xff]  ;;  %s5068_s25 = sld [smem:[#allocation8 + $0x6]] }
0x1095   :  { %1178 = vmatpush.bf16.msrb.mxu3 %v5846_v52  ;;  %1221 = vmatpush.bf16.msra.mxu2 %v5848_v54  ;;  %v5847_v55 = vld [vmem:[%s7687_s3] sm:$0xff]  ;;  %v5844_v56 = vld [vmem:[%s7686_s2 + $0x28] sm:$0xff]  ;;  %v5842_v58 = vld [vmem:[%s7686_s2 + $0x18] sm:$0xff]  ;;  %s7716_s17 = sld [smem:[#allocation17_spill]] }
0x1096   :  { %1198 = vrot.lane.b32.xlu0 %v1191_v51, %s6304_s19  ;;  %v5843_v57 = vld [vmem:[%s7686_s2 + $0x20] sm:$0xff]  ;;  %v5841_v59 = vld [vmem:[%s7686_s2 + $0x10] sm:$0xff]  ;;  %v5840_v60 = vld [vmem:[%s7686_s2 + $0x8] sm:$0xff] }
0x1097   :  { %v5839_v61 = vld [vmem:[%s7686_s2] sm:$0xff] }
0x1098   :  { %v1196_v3 = vld [vmem:[%s7689_s5] sm:$0x1] }
0x1099   :  { %1179 = vmatpush.bf16.msrb.mxu3 %v5845_v53  ;;  %1222 = vmatpush.bf16.msra.mxu2 %v5847_v55  ;;  %v1129_v7 = vld [vmem:[%s7688_s4] sm:$0x1] }
0x109a   :  { %v1109_v62 = vstv %s5068_s25 }
0x109b   :  { %vm1110_vm4 = vcmp.eq.s32.totalorder %v6471_v12, %v1109_v62  ;;  %p1267_p12 = scmp.gt.s32.totalorder %s7716_s17, 6  ;;  %p5113_p13 = scmp.le.s32.totalorder %s7716_s17, 6 }
0x109c   :  { %vm5101_vm5 = vmpackc.low %vm1110_vm4, %vm1110_vm4  ;;  %s6311_s22 = smov (!%p5113_p13), 96  }
0x109d   :  { %1180 = vmatpush.bf16.msrb.mxu3 %v5844_v56  ;;  %s1268_s18 = scalar_select %p1267_p12, 1, 0 }
0x109f   :  { %v1269_v32 = vstv %s1268_s18 }
0x10a0   :  { %vm1270_vm10 = vcmp.eq.s32.totalorder %v1269_v32, 1 }
0x10a1   :  { %1181 = vmatpush.bf16.msrb.mxu3 %v5843_v57 }
0x10a5   :  { %1182 = vmatpush.bf16.msrb.mxu3 %v5842_v58 }
0x10a9   :  { %1183 = vmatpush.bf16.msrb.mxu3 %v5841_v59 }
0x10ad   :  { %1184 = vmatpush.bf16.msrb.mxu3 %v5840_v60 }
0x10b1   :  { %1185 = vmatpush.bf16.msrb.mxu3 %v5839_v61 }
0x10b4   :  { %5102 = vmatmul.msk.bf16.vlgmr.msrb.gmra.mxu3 %vm5101_vm5, %v6302_v15 }
0x1108   :  { %v1199_v63 = vpop.permute.xlu0 %1198 }
0x1109   :  { %5111 = vmatmul.msk.bf16.vlgmr.msra.gmra.mxu2 %vm72_vm0, %v1199_v63 }
0x1137   :  { %v1187_v0 = vpop.f32.mrf.mxu3 }
0x1138   :  { %v1188_v8 = vadd.f32 %v1187_v0, %v1129_v7 }
0x113f   :  { %v1189_v1 = vpop.f32.mrf.mxu3 }
0x118c   :  { %v1224_v4 = vpop.f32.mrf.mxu2 }
0x118d   :  { %v1225_v5 = vadd.f32 %v1224_v4, %v1196_v3 }
0x118f   :  { %1249 = vrot.lane.b32.xlu0 %v1225_v5, %s6303_s0  ;;  %v1228_v9 = vadd.f32 %v1225_v5, %v1188_v8 }
0x1191   :  { %v5112_v11 = vmul.f32 -1.442695, %v1228_v9 }
0x1193   :  { %6114 = vpow2.f32 %v5112_v11 }
0x1194   :  { %v1226_v6 = vpop.f32.mrf.mxu2 }
0x1199   :  { %v6115_v13 = vpop.eup %6114 }
0x119a   :  { %v1232_v14 = vadd.f32 1.0, %v6115_v13 }
0x119c   :  { %6116 = vrcp.f32 %v1232_v14  ;;  %v1244_v21 = vand.u32 2147483648, %v1232_v14  ;;  %vm1238_vm7 = vweird.f32 %v1232_v14  ;;  %v1242_v22 = vand.u32 2147483647, %v1232_v14 }
0x119e   :  { %v1245_v24 = vor.u32 1.1754944e-38, %v1244_v21  ;;  %vm1243_vm9 = vcmp.eq.f32.partialorder %v1242_v22, 8.507059e+37 }
0x11a2   :  { %v6117_v16 = vpop.eup %6116 }
0x11a3   :  { %v1234_v17 = vmul.f32 %v6117_v16, %v1232_v14  ;;  %vm1239_vm6 = vweird.f32 %v6117_v16 }
0x11a4   :  { %vm1240_vm8 = vmor %vm1238_vm7, %vm1239_vm6 }
0x11a5   :  { %v1235_v18 = vsub.f32 1.0, %v1234_v17 }
0x11a7   :  { %v1236_v19 = vmul.f32 %v6117_v16, %v1235_v18 }
0x11a9   :  { %v1237_v20 = vadd.f32 %v6117_v16, %v1236_v19 }
0x11ab   :  { %v1241_v23 = vsel %vm1240_vm8, %v6117_v16, %v1237_v20 }
0x11ac   :  { %v1246_v26 = vsel %vm1243_vm9, %v1245_v24, %v1241_v23 }
0x11ad   :  { %v1259_v31 = vsub.f32 1.0, %v1246_v26  ;;  %v1265_v34 = vmul.f32 %v1246_v26, %v6765_v49 }
0x1201   :  { %v1250_v25 = vpop.permute.xlu0 %1249 }
0x1202   :  { %v1252_v27 = vmul.f32 %v1250_v25, %v1246_v26 }
0x1204   :  { %1254 = vrot.lane.b32.xlu1 %v1252_v27, %s6303_s0 }
0x1276   :  { %v1255_v28 = vpop.permute.xlu1 %1254 }
0x1277   :  { %v1257_v29 = vadd.f32 %v1255_v28, %v1188_v8 }
0x1279   :  { %6118 = vtanh.f32 %v1257_v29 }
0x127f   :  { %v6119_v30 = vpop.eup %6118 }
0x1280   :  { %1261 = vrot.lane.b32.xlu1 %v6119_v30, %s6304_s19 }
0x12f2   :  { %v1262_v33 = vpop.permute.xlu1 %1261 }
0x12f3   :  { %v1264_v35 = vmul.f32 %v1262_v33, %v1259_v31  ;;  %1274 = sbr.rel (%p5113_p13) target bundleno = 4972 (0x136c), region = 93 }
0x12f5   :  { %v1266_v36 = vadd.f32 %v1265_v34, %v1264_v35 }
0x12f7   :  { %v6820_v37 = vsel %vm1270_vm10, %v1266_v36, %v6765_v49 }
0x12f8   :  { %1276 = vrot.lane.b32.xlu0 %v1266_v36, %s6311_s22  ;;  %vm1279_vm11 = vcmask 253952  }
0x136a   :  { %v1277_v38 = vpop.permute.xlu0 %1276 }
0x136b   :  { %1280 = vst.msk [vmem:[#allocation2 + $0x6] sm:$0x1] %vm1279_vm11, %v1277_v38 }
0x136c PF:  { %v1364_v39 = vpack.c.bf16 %v6820_v37, %v6820_v37  ;;  %v5856_v40 = vld [vmem:[%s7686_s2 + $0x38] sm:$0xff]  ;;  %v5855_v41 = vld [vmem:[%s7686_s2 + $0x30] sm:$0xff]  ;;  %v5858_v42 = vld [vmem:[%s7687_s3 + $0x8] sm:$0xff]  ;;  %s5114_s28 = sld [smem:[#allocation8 + $0x7]] }
0x136d   :  { %1351 = vmatpush.bf16.msra.mxu1 %v5856_v40  ;;  %1394 = vmatpush.bf16.msrb.mxu0 %v5858_v42  ;;  %v5857_v43 = vld [vmem:[%s7687_s3] sm:$0xff]  ;;  %v5854_v44 = vld [vmem:[%s7686_s2 + $0x28] sm:$0xff]  ;;  %v5852_v46 = vld [vmem:[%s7686_s2 + $0x18] sm:$0xff]  ;;  %s7717_s17 = sld [smem:[#allocation17_spill]] }
0x136e   :  { %1371 = vrot.lane.b32.xlu0 %v1364_v39, %s6304_s19  ;;  %v5853_v45 = vld [vmem:[%s7686_s2 + $0x20] sm:$0xff]  ;;  %v5851_v47 = vld [vmem:[%s7686_s2 + $0x10] sm:$0xff]  ;;  %v5850_v48 = vld [vmem:[%s7686_s2 + $0x8] sm:$0xff] }
0x136f   :  { %v5849_v49 = vld [vmem:[%s7686_s2] sm:$0xff] }
0x1370   :  { %v1369_v54 = vld [vmem:[%s7689_s5] sm:$0x1] }
0x1371   :  { %1352 = vmatpush.bf16.msra.mxu1 %v5855_v41  ;;  %1395 = vmatpush.bf16.msrb.mxu0 %v5857_v43  ;;  %v1302_v58 = vld [vmem:[%s7688_s4] sm:$0x1] }
0x1372   :  { %v1282_v50 = vstv %s5114_s28 }
0x1373   :  { %vm1283_vm12 = vcmp.eq.s32.totalorder %v6471_v12, %v1282_v50  ;;  %p1440_p0 = scmp.gt.s32.totalorder %s7717_s17, 7  ;;  %p5159_p1 = scmp.le.s32.totalorder %s7717_s17, 7 }
0x1374   :  { %vm5147_vm13 = vmpackc.low %vm1283_vm12, %vm1283_vm12  ;;  %s6312_s22 = smov (!%p5159_p1), 96  }
0x1375   :  { %1353 = vmatpush.bf16.msra.mxu1 %v5854_v44  ;;  %s1441_s18 = scalar_select %p1440_p0, 1, 0 }
0x1377   :  { %v1442_v19 = vstv %s1441_s18 }
0x1378   :  { %vm1443_vm3 = vcmp.eq.s32.totalorder %v1442_v19, 1 }
0x1379   :  { %1354 = vmatpush.bf16.msra.mxu1 %v5853_v45 }
0x137d   :  { %1355 = vmatpush.bf16.msra.mxu1 %v5852_v46 }
0x1381   :  { %1356 = vmatpush.bf16.msra.mxu1 %v5851_v47 }
0x1385   :  { %1357 = vmatpush.bf16.msra.mxu1 %v5850_v48 }
0x1389   :  { %1358 = vmatpush.bf16.msra.mxu1 %v5849_v49 }
0x138c   :  { %5148 = vmatmul.msk.bf16.vlgmr.msra.gmra.mxu1 %vm5147_vm13, %v6302_v15 }
0x13e0   :  { %v1372_v51 = vpop.permute.xlu0 %1371 }
0x13e1   :  { %5157 = vmatmul.msk.bf16.vlgmr.msrb.gmra.mxu0 %vm72_vm0, %v1372_v51 }
0x1409   :  { %v1360_v52 = vpop.f32.mrf.mxu1 }
0x140a   :  { %v1361_v59 = vadd.f32 %v1360_v52, %v1302_v58 }
0x1411   :  { %v1362_v53 = vpop.f32.mrf.mxu1 }
0x145e   :  { %v1397_v55 = vpop.f32.mrf.mxu0 }
0x145f   :  { %v1398_v56 = vadd.f32 %v1397_v55, %v1369_v54 }
0x1461   :  { %1422 = vrot.lane.b32.xlu0 %v1398_v56, %s6303_s0  ;;  %v1401_v15 = vadd.f32 %v1398_v56, %v1361_v59 }
0x1463   :  { %v5158_v60 = vmul.f32 -1.442695, %v1401_v15 }
0x1465   :  { %6120 = vpow2.f32 %v5158_v60 }
0x1466   :  { %v1399_v57 = vpop.f32.mrf.mxu0 }
0x146b   :  { %v6121_v61 = vpop.eup %6120 }
0x146c   :  { %v1405_v62 = vadd.f32 1.0, %v6121_v61 }
0x146e   :  { %6122 = vrcp.f32 %v1405_v62  ;;  %v1417_v5 = vand.u32 2147483648, %v1405_v62  ;;  %vm1411_vm15 = vweird.f32 %v1405_v62  ;;  %v1415_v6 = vand.u32 2147483647, %v1405_v62 }
0x1470   :  { %v1418_v8 = vor.u32 1.1754944e-38, %v1417_v5  ;;  %vm1416_vm2 = vcmp.eq.f32.partialorder %v1415_v6, 8.507059e+37 }
0x1474   :  { %v6123_v63 = vpop.eup %6122 }
0x1475   :  { %v1407_v0 = vmul.f32 %v6123_v63, %v1405_v62  ;;  %vm1412_vm14 = vweird.f32 %v6123_v63 }
0x1476   :  { %vm1413_vm1 = vmor %vm1411_vm15, %vm1412_vm14 }
0x1477   :  { %v1408_v1 = vsub.f32 1.0, %v1407_v0 }
0x1479   :  { %v1409_v3 = vmul.f32 %v6123_v63, %v1408_v1 }
0x147b   :  { %v1410_v4 = vadd.f32 %v6123_v63, %v1409_v3 }
0x147d   :  { %v1414_v7 = vsel %vm1413_vm1, %v6123_v63, %v1410_v4 }
0x147e   :  { %v1419_v11 = vsel %vm1416_vm2, %v1418_v8, %v1414_v7 }
0x147f   :  { %v1432_v18 = vsub.f32 1.0, %v1419_v11  ;;  %v1438_v21 = vmul.f32 %v1419_v11, %v6820_v37 }
0x14d3   :  { %v1423_v9 = vpop.permute.xlu0 %1422 }
0x14d4   :  { %v1425_v13 = vmul.f32 %v1423_v9, %v1419_v11 }
0x14d6   :  { %1427 = vrot.lane.b32.xlu1 %v1425_v13, %s6303_s0 }
0x1548   :  { %v1428_v14 = vpop.permute.xlu1 %1427 }
0x1549   :  { %v1430_v16 = vadd.f32 %v1428_v14, %v1361_v59 }
0x154b   :  { %6124 = vtanh.f32 %v1430_v16 }
0x1551   :  { %v6125_v17 = vpop.eup %6124 }
0x1552   :  { %1434 = vrot.lane.b32.xlu1 %v6125_v17, %s6304_s19 }
0x15c4   :  { %v1435_v20 = vpop.permute.xlu1 %1434 }
0x15c5   :  { %v1437_v22 = vmul.f32 %v1435_v20, %v1432_v18  ;;  %1447 = sbr.rel (%p5159_p1) target bundleno = 5694 (0x163e), region = 97 }
0x15c7   :  { %v1439_v23 = vadd.f32 %v1438_v21, %v1437_v22 }
0x15c9   :  { %v1444_v24 = vsel %vm1443_vm3, %v1439_v23, %v6820_v37 }
0x15ca   :  { %1449 = vrot.lane.b32.xlu0 %v1439_v23, %s6312_s22  ;;  %vm1452_vm4 = vcmask 253952  }
0x163c   :  { %v1450_v25 = vpop.permute.xlu0 %1449 }
0x163d   :  { %1453 = vst.msk [vmem:[#allocation2 + $0x7] sm:$0x1] %vm1452_vm4, %v1450_v25 }
0x163e PF:  { %v5860_v26 = vld [vmem:[%s7695_s11 + $0x8] sm:$0xff]  ;;  %v1489_v27 = vshrl.u32 %v70_v10, 7  ;;  %s7718_s26 = sld [smem:[#allocation17_spill]]  ;;  %1493 = vrot.lane.b32.xlu0 %v1444_v24, %s6304_s19  ;;  %v5859_v29 = vld [vmem:[%s7695_s11] sm:$0xff]  ;;  %s6313_s1 = smov 0   ;;  %vm1498_vm6 = vcmp.eq.s32.totalorder %v6471_v12, 1 }
0x163f   :  { %1481 = vmatpush.bf16.msrb.mxu2 %v5860_v26  ;;  %1508 = sst [smem:[#allocation5]] %s6313_s1  ;;  %vm1496_vm7 = vcmask 253952   ;;  %v1499_v32 = vsel %vm1498_vm6, 1.0, %v6300_v2  ;;  %vm1501_vm8 = vcmask 1040384   ;;  %vm1502_vm9 = vsmask.f32 256 }
0x1640   :  { %1510 = sst [smem:[#allocation6]] %s6313_s1  ;;  %v1500_v33 = vpack.c.bf16 %v1499_v32, %v1499_v32  ;;  %vm6901_vm10 = vmand %vm1501_vm8, %vm1502_vm9  ;;  %v1504_v36 = vld [vmem:[#allocation4] sm:$0x1]  ;;  %v5868_v40 = vld [vmem:[%s7690_s6 + $0x38] sm:$0xff]  ;;  %s6314_s5 = smov 32   ;;  %vm1802_vm15 = vcmp.lt.s32.totalorder %v6471_v12, 64 }
0x1641   :  { %1512 = sst [smem:[#allocation11]] %s6313_s1  ;;  %v5870_v41 = vld [vmem:[%s7691_s7 + $0x8] sm:$0xff]  ;;  %1603 = vmatpush.bf16.msra.mxu0 %v5868_v40  ;;  %v5867_v42 = vld [vmem:[%s7690_s6 + $0x30] sm:$0xff]  ;;  %v5869_v43 = vld [vmem:[%s7691_s7] sm:$0xff] }
0x1642   :  { %1514 = sst [smem:[#allocation11 + $0x1]] %s6313_s1  ;;  %v1505_v37 = vsel %vm6901_vm10, %v1500_v33, %v1504_v36  ;;  %1643 = vmatpush.bf16.msra.mxu1 %v5870_v41  ;;  %v5866_v46 = vld [vmem:[%s7690_s6 + $0x28] sm:$0xff]  ;;  %v5865_v47 = vld [vmem:[%s7690_s6 + $0x20] sm:$0xff]  ;;  %v5864_v48 = vld [vmem:[%s7690_s6 + $0x18] sm:$0xff] }
0x1643   :  { %1482 = vmatpush.bf16.msrb.mxu2 %v5859_v29  ;;  %1516 = sst [smem:[#allocation11 + $0x2]] %s6313_s1  ;;  %1506 = vst [vmem:[#allocation4] sm:$0x1] %v1505_v37  ;;  %v5863_v49 = vld [vmem:[%s7690_s6 + $0x10] sm:$0xff]  ;;  %v5862_v50 = vld [vmem:[%s7690_s6 + $0x8] sm:$0xff]  ;;  %v5861_v51 = vld [vmem:[%s7690_s6] sm:$0xff] }
0x1644   :  { %v1490_v28 = vstv %s7718_s26  ;;  %v6889_v30 = vld [vmem:[#allocation2] sm:$0xff]  ;;  %1518 = sst [smem:[#allocation11 + $0x3]] %s6313_s1  ;;  %v5872_v20 = vld [vmem:[%s7694_s10 + $0x8] sm:$0xff] }
0x1645   :  { %vm6891_vm5 = vcmp.lt.s32.totalorder %v1489_v27, %v1490_v28  ;;  %v1455_v10 = vpack.c.bf16 %v6889_v30, %v6889_v30  ;;  %1520 = sst [smem:[#allocation11 + $0x4]] %s6313_s1  ;;  %1604 = vmatpush.bf16.msra.mxu0 %v5867_v42  ;;  %v1621_v53 = vld [vmem:[%s7693_s9] sm:$0x1] }
0x1646   :  { %1522 = sst [smem:[#allocation11 + $0x5]] %s6313_s1  ;;  %1644 = vmatpush.bf16.msra.mxu1 %v5869_v43  ;;  %v1554_v59 = vld [vmem:[%s7692_s8] sm:$0x1] }
0x1647   :  { %5168 = vmatmul.msk.bf16.vlgmr.msrb.gmra.mxu2 %vm72_vm0, %v1455_v10  ;;  %1524 = sst [smem:[#allocation11 + $0x6]] %s6313_s1  ;;  %v5871_v21 = vld [vmem:[%s7694_s10] sm:$0xff] }
0x1648   :  { %1526 = sst [smem:[#allocation11 + $0x7]] %s6313_s1  ;;  %1758 = vmatpush.bf16.msra.mxu2 %v5872_v20 }
0x1649   :  { %1528 = sst [smem:[#allocation11 + $0x8]] %s6313_s1  ;;  %1605 = vmatpush.bf16.msra.mxu0 %v5866_v46 }
0x164a   :  { %1530 = sst [smem:[#allocation11 + $0x9]] %s6313_s1  ;;  %v6941_v52 = vld [vmem:[#allocation4] sm:$0x1] }
0x164b   :  { %s1845_s27 = sld [smem:[#allocation5]] }
0x164c   :  { %1759 = vmatpush.bf16.msra.mxu2 %v5871_v21 }
0x164d   :  { %1606 = vmatpush.bf16.msra.mxu0 %v5865_v47 }
0x1651   :  { %1607 = vmatpush.bf16.msra.mxu0 %v5864_v48  ;;  %s1848_s28 = sadd.s32 1, %s1845_s27  ;;  %s1846_s11 = scalar_lea.smem [#allocation11], %s1845_s27 }
0x1652   :  { %1849 = sst [smem:[#allocation5]] %s1848_s28 }
0x1655   :  { %1608 = vmatpush.bf16.msra.mxu0 %v5863_v49 }
0x1659   :  { %1609 = vmatpush.bf16.msra.mxu0 %v5862_v50 }
0x165d   :  { %1610 = vmatpush.bf16.msra.mxu0 %v5861_v51 }
0x1660   :  { %1611 = vmatmul.bf16.vlgmr.msra.gmra.mxu0 %v6941_v52 }
0x16b0   :  { %v1494_v34 = vpop.permute.xlu0 %1493 }
0x16b1   :  { %1497 = vst.msk [vmem:[#allocation3] sm:$0x1] %vm1496_vm7, %v1494_v34 }
0x16b8   :  { %v1536_v44 = vld [vmem:[#allocation3] sm:$0x1] }
0x16b9   :  { %v1616_v45 = vpack.c.bf16 %v1536_v44, %v1536_v44  ;;  %v6126_v19 = vld [vmem:[#allocation3] ss:$0 sm:$0xff] }
0x16bb   :  { %5210 = vmatmul.msk.bf16.vlgmr.msra.gmra.mxu1 %vm72_vm0, %v1616_v45 }
0x16ca   :  { %v6908_v38 = vpop.f32.mrf.mxu2 }
0x16d2   :  { %v1486_v39 = vpop.f32.mrf.mxu2 }
0x16dd   :  { %v1612_v57 = vpop.f32.mrf.mxu0 }
0x16de   :  { %v1613_v15 = vadd.f32 %v1612_v57, %v1554_v59  ;;  %v5874_v57 = vld [vmem:[%s7697_s13 + $0x8] sm:$0xff]  ;;  %v5873_v59 = vld [vmem:[%s7697_s13] sm:$0xff] }
0x16df   :  { %1795 = vmatpush.bf16.msra.mxu3 %v5874_v57 }
0x16e3   :  { %1796 = vmatpush.bf16.msra.mxu3 %v5873_v59 }
0x16e5   :  { %v1614_v58 = vpop.f32.mrf.mxu0 }
0x1738   :  { %v1646_v54 = vpop.f32.mrf.mxu1 }
0x1739   :  { %v1647_v55 = vadd.f32 %v1646_v54, %v1621_v53 }
0x173b   :  { %1671 = vrot.lane.b32.xlu0 %v1647_v55, %s6303_s0  ;;  %v1650_v60 = vadd.f32 %v1647_v55, %v1613_v15 }
0x173d   :  { %v5211_v61 = vmul.f32 -1.442695, %v1650_v60 }
0x173f   :  { %6127 = vpow2.f32 %v5211_v61 }
0x1740   :  { %v1648_v56 = vpop.f32.mrf.mxu1 }
0x1745   :  { %v6128_v62 = vpop.eup %6127 }
0x1746   :  { %v1654_v63 = vadd.f32 1.0, %v6128_v62 }
0x1748   :  { %6129 = vrcp.f32 %v1654_v63  ;;  %v1666_v6 = vand.u32 2147483648, %v1654_v63  ;;  %vm1660_vm12 = vweird.f32 %v1654_v63  ;;  %v1664_v7 = vand.u32 2147483647, %v1654_v63 }
0x174a   :  { %v1667_v9 = vor.u32 1.1754944e-38, %v1666_v6  ;;  %vm1665_vm14 = vcmp.eq.f32.partialorder %v1664_v7, 8.507059e+37  ;;  %v1765_v6 = vld [vmem:[%s7696_s12] sm:$0x1] }
0x174e   :  { %v6130_v0 = vpop.eup %6129 }
0x174f   :  { %v1656_v1 = vmul.f32 %v6130_v0, %v1654_v63  ;;  %vm1661_vm11 = vweird.f32 %v6130_v0 }
0x1750   :  { %vm1662_vm13 = vmor %vm1660_vm12, %vm1661_vm11 }
0x1751   :  { %v1657_v3 = vsub.f32 1.0, %v1656_v1 }
0x1753   :  { %v1658_v4 = vmul.f32 %v6130_v0, %v1657_v3 }
0x1755   :  { %v1659_v5 = vadd.f32 %v6130_v0, %v1658_v4 }
0x1757   :  { %v1663_v8 = vsel %vm1662_vm13, %v6130_v0, %v1659_v5 }
0x1758   :  { %v1668_v13 = vsel %vm1665_vm14, %v1667_v9, %v1663_v8 }
0x1759   :  { %v1681_v23 = vsub.f32 1.0, %v1668_v13 }
0x17ad   :  { %v1672_v11 = vpop.permute.xlu0 %1671 }
0x17ae   :  { %v1674_v14 = vmul.f32 %v1672_v11, %v1668_v13 }
0x17b0   :  { %1676 = vrot.lane.b32.xlu0 %v1674_v14, %s6303_s0 }
0x1822   :  { %v1677_v16 = vpop.permute.xlu0 %1676 }
0x1823   :  { %v1679_v17 = vadd.f32 %v1677_v16, %v1613_v15 }
0x1825   :  { %6131 = vtanh.f32 %v1679_v17 }
0x182b   :  { %v6132_v18 = vpop.eup %6131 }
0x182c   :  { %1683 = vrot.lane.b32.xlu1 %v6132_v18, %s6304_s19 }
0x1834   :  { %1689 = vrot.lane.b32.xlu1 %v6126_v19, %s6314_s5 }
0x189e   :  { %v1684_v22 = vpop.permute.xlu1 %1683 }
0x189f   :  { %v1686_v25 = vmul.f32 %v1684_v22, %v1681_v23 }
0x18a6   :  { %v1690_v24 = vpop.permute.xlu1 %1689 }
0x18a7   :  { %v1692_v26 = vmul.f32 %v1690_v24, %v1668_v13  ;;  %v1773_v13 = vld [vmem:[%s7698_s14] sm:$0x1] }
0x18a9   :  { %v1693_v27 = vadd.f32 %v1692_v26, %v1686_v25 }
0x18ab   :  { %v1729_v28 = vpack.c.bf16 %v1693_v27, %v1693_v27  ;;  %v1694_v29 = vperm.slane %v1693_v27, 0 }
0x18ad   :  { %1735 = vrot.lane.b32.xlu2 %v1729_v28, %s6304_s19 }
0x18b5   :  { %1696 = vrot.lane.b32.xlu2 %v1694_v29, %s6304_s19 }
0x1907   :  { %v1736_v10 = vpop.permute.xlu2 %1735 }
0x1908   :  { %5220 = vmatmul.msk.bf16.vlgmr.msra.gmra.mxu2 %vm72_vm0, %v1736_v10 }
0x190f   :  { %v1697_v32 = vpop.permute.xlu2 %1696 }
0x1910   :  { %v1699_v33 = vmul.f32 %v1697_v32, %v6889_v30 }
0x1912   :  { %v1700_v34 = vsel %vm72_vm0, %v1699_v33, 0.0 }
0x1913   :  { %1701 = vadd.xlane.f32.xlu0 %v1700_v34 }
0x1927   :  { %1831 = vrot.lane.b32.xlu0 %v1693_v27, %s6304_s19 }
0x1986   :  { %v1702_v36 = vpop.xlane.xlu0 %1701 }
0x1987   :  { %v1703_v37 = vsel %vm6891_vm5, %v1702_v36, -1e+30 }
0x1988   :  { %v1704_v39 = vrot.slane %v1703_v37, 4 }
0x198a   :  { %v1705_v40 = vmax.f32 %v1703_v37, %v1704_v39 }
0x198b   :  { %v1761_v41 = vpop.f32.mrf.mxu2 }
0x198c   :  { %v1706_v42 = vrot.slane %v1705_v40, 2 }
0x198e   :  { %v1707_v43 = vmax.f32 %v1705_v40, %v1706_v42 }
0x1990   :  { %v1708_v44 = vrot.slane %v1707_v43, 1 }
0x1992   :  { %v1709_v45 = vmax.f32 %v1707_v43, %v1708_v44 }
0x1993   :  { %v1763_v46 = vpop.f32.mrf.mxu2 }
0x1994   :  { %v1710_v47 = vsub.f32 %v1703_v37, %v1709_v45 }
0x1996   :  { %v1711_v48 = vmul.f32 1.442695, %v1710_v47 }
0x1998   :  { %6133 = vpow2.f32 %v1711_v48 }
0x1999   :  { %v1832_v49 = vpop.permute.xlu0 %1831 }
0x199a   :  { %1834 = vst.msk [vmem:[#allocation3] sm:$0x1] %vm1496_vm7, %v1832_v49 }
0x199e   :  { %v6134_v50 = vpop.eup %6133 }
0x199f   :  { %v1713_v51 = vrot.slane %v6134_v50, 4 }
0x19a1   :  { %v1714_v53 = vadd.f32 %v6134_v50, %v1713_v51 }
0x19a3   :  { %v1715_v54 = vrot.slane %v1714_v53, 2 }
0x19a5   :  { %v1716_v55 = vadd.f32 %v1715_v54, %v1714_v53 }
0x19a7   :  { %v1717_v56 = vrot.slane %v1716_v55, 1 }
0x19a9   :  { %v1718_v58 = vadd.f32 %v1717_v56, %v1716_v55 }
0x19ab   :  { %6135 = vrcp.f32 %v1718_v58 }
0x19b1   :  { %v6136_v15 = vpop.eup %6135 }
0x19b2   :  { %v1720_v60 = vmul.f32 %v6136_v15, %v6134_v50 }
0x19b4   :  { %v1721_v61 = vmul.f32 %v1720_v60, %v6908_v38 }
0x19b6   :  { %v1722_v62 = vsel %vm72_vm0, %v1721_v61, 0.0 }
0x19b7   :  { %v1723_v63 = vrot.slane %v1722_v62, 4 }
0x19b9   :  { %v1724_v0 = vadd.f32 %v1723_v63, %v1722_v62 }
0x19bb   :  { %v1725_v1 = vrot.slane %v1724_v0, 2 }
0x19bd   :  { %v1726_v3 = vadd.f32 %v1725_v1, %v1724_v0 }
0x19bf   :  { %v1727_v4 = vrot.slane %v1726_v3, 1 }
0x19c1   :  { %v1728_v5 = vadd.f32 %v1727_v4, %v1726_v3 }
0x19c3   :  { %v1762_v7 = vadd.f32 %v1761_v41, %v1728_v5 }
0x19c5   :  { %v1766_v8 = vadd.f32 %v1765_v6, %v1762_v7 }
0x19c7   :  { %6137 = vtanh.f32 %v1766_v8 }
0x19cd   :  { %v6138_v9 = vpop.eup %6137 }
0x19ce   :  { %v1768_v11 = vpack.c.bf16 %v6138_v9, %v6138_v9 }
0x19d0   :  { %5229 = vmatmul.msk.bf16.vlgmr.msra.gmra.mxu3 %vm72_vm0, %v1768_v11 }
0x1a53   :  { %v1798_v14 = vpop.f32.mrf.mxu3 }
0x1a54   :  { %v1799_v16 = vadd.f32 %v1798_v14, %v1773_v13 }
0x1a56   :  { %v1803_v17 = vsel %vm1802_vm15, %v1799_v16, -1e+30 }
0x1a57   :  { %v1805_v18 = vsel %vm1501_vm8, %v1803_v17, -inf }
0x1a58   :  { %1806 = vmax.xlane.f32.xlu1 %v1805_v18 }
0x1a5b   :  { %v1800_v19 = vpop.f32.mrf.mxu3 }
0x1acb   :  { %v1807_v20 = vpop.xlane.xlu1 %1806 }
0x1acc   :  { %vm1808_vm1 = vcmp.eq.f32.partialorder %v1803_v17, %v1807_v20 }
0x1acd   :  { %v1809_v21 = vsel %vm1808_vm1, %v6471_v12, 128 }
0x1ace   :  { %v1810_v22 = vsel %vm1501_vm8, %v1809_v21, 2147483647 }
0x1acf   :  { %v1812_v23 = vshra.s32 %v1810_v22, 16  ;;  %v1811_v25 = vand.u32 65535, %v1810_v22 }
0x1ad1   :  { %v1814_v24 = vcvt.s32.f32 %v1812_v23  ;;  %v1813_v27 = vcvt.s32.f32 %v1811_v25 }
0x1ad3   :  { %1815 = vmin.xlane.f32.xlu2 %v1814_v24 }
0x1b46   :  { %v1816_v26 = vpop.xlane.xlu2 %1815 }
0x1b47   :  { %vm1817_vm2 = vcmp.eq.f32.partialorder %v1814_v24, %v1816_v26  ;;  %v1822_v29 = vcvt.f32.s32 %v1816_v26 }
0x1b48   :  { %v1818_v28 = vsel %vm1817_vm2, %v1813_v27, inf }
0x1b49   :  { %1819 = vmin.xlane.f32.xlu2 %v1818_v28  ;;  %v1823_v32 = vshll.u32 %v1822_v29, 16 }
0x1bbc   :  { %v1820_v10 = vpop.xlane.xlu2 %1819 }
0x1bbd   :  { %v1821_v33 = vcvt.f32.s32 %v1820_v10 }
0x1bbf   :  { %v1824_v34 = vadd.s32 %v1823_v32, %v1821_v33 }
0x1bc1   :  { %vm1825_vm3 = vcmp.eq.s32.totalorder %v6471_v12, %v1824_v34  ;;  %v1835_v36 = vrot.slane %v1824_v34, 4 }
0x1bc2   :  { %v1826_v37 = vsel %vm1825_vm3, 1.0, %v6300_v2 }
0x1bc3   :  { %v1827_v39 = vpack.c.bf16 %v1826_v37, %v1826_v37  ;;  %vm1836_vm4 = vcmp.lt.s32.totalorder %v1824_v34, %v1835_v36 }
0x1bc4   :  { %v1837_v40 = vsel %vm1836_vm4, %v1824_v34, %v1835_v36 }
0x1bc5   :  { %v1828_v41 = vsel %vm6901_vm10, %v1827_v39, %v6941_v52  ;;  %v1838_v42 = vrot.slane %v1837_v40, 2 }
0x1bc6   :  { %1829 = vst [vmem:[#allocation4] sm:$0x1] %v1828_v41 }
0x1bc7   :  { %vm1839_vm6 = vcmp.lt.s32.totalorder %v1837_v40, %v1838_v42 }
0x1bc8   :  { %v1840_v43 = vsel %vm1839_vm6, %v1837_v40, %v1838_v42 }
0x1bc9   :  { %v1841_v44 = vrot.slane %v1840_v43, 1 }
0x1bcb   :  { %vm1842_vm9 = vcmp.lt.s32.totalorder %v1840_v43, %v1841_v44 }
0x1bcc   :  { %v1843_v45 = vsel %vm1842_vm9, %v1840_v43, %v1841_v44 }
0x1bcd   :  { %6001 = vpush %v1843_v45 }
0x1bfe   :  { %s6002_s1 = spop %6001 }
0x1bff   :  { %1847 = sst [smem:[%s1846_s11]] %s6002_s1  ;;  %p1850_p2 = scmp.eq.s32.totalorder %s6002_s1, 2 }
0x1c01   :  { %s1851_s29 = scalar_select %p1850_p2, 1, 0 }
0x1c03   :  { %1852 = sst [smem:[#allocation6]] %s1851_s29 }
0x1c04   :  { %s1853_s2 = sld [smem:[#allocation6]] }
0x1c0a   :  { %p5230_p3 = scmp.ne.s32.totalorder %s1853_s2, 0 }
0x1c0b   :  { %s6315_s4 = smov (!%p5230_p3), 64   ;;  %s6316_s18 = smov (!%p5230_p3), 96  }
0x1c0c   :  { %1857 = sbr.rel (%p5230_p3) target bundleno = 8546 (0x2162), region = 105  ;;  %s6317_s20 = smov (!%p5230_p3), 32  }
0x1c0d   :  { %s2167_s11 = sld [smem:[#allocation5]] (!%p5230_p3) }
0x1c11   :  { %v5882_v2 = vld [vmem:[%s7690_s6 + $0x38] sm:$0xff]  ;;  %v5884_v52 = vld [vmem:[%s7691_s7 + $0x8] sm:$0xff]  ;;  %v5881_v46 = vld [vmem:[%s7690_s6 + $0x30] sm:$0xff] }
0x1c12   :  { %1925 = vmatpush.bf16.msra.mxu0 %v5882_v2  ;;  %1965 = vmatpush.bf16.msra.mxu1 %v5884_v52  ;;  %v5883_v47 = vld [vmem:[%s7691_s7] sm:$0xff]  ;;  %v1858_v48 = vld [vmem:[#allocation3] sm:$0x1]  ;;  %v5878_v53 = vld [vmem:[%s7690_s6 + $0x18] sm:$0xff] }
0x1c13   :  { %v1938_v49 = vpack.c.bf16 %v1858_v48, %v1858_v48  ;;  %v5880_v50 = vld [vmem:[%s7690_s6 + $0x28] sm:$0xff]  ;;  %v5879_v51 = vld [vmem:[%s7690_s6 + $0x20] sm:$0xff]  ;;  %v5877_v54 = vld [vmem:[%s7690_s6 + $0x10] sm:$0xff]  ;;  %s2170_s29 = sadd.s32 1, %s2167_s11  ;;  %s2168_s30 = scalar_lea.smem [#allocation11], %s2167_s11 }
0x1c14   :  { %v5876_v55 = vld [vmem:[%s7690_s6 + $0x8] sm:$0xff]  ;;  %v5875_v56 = vld [vmem:[%s7690_s6] sm:$0xff]  ;;  %2171 = sst [smem:[#allocation5]] %s2170_s29 }
0x1c15   :  { %v7025_v57 = vld [vmem:[#allocation4] sm:$0x1]  ;;  %v1943_v58 = vld [vmem:[%s7693_s9] sm:$0x1]  ;;  %v6139_v24 = vld [vmem:[#allocation3] ss:$0 sm:$0xff] }
0x1c16   :  { %1926 = vmatpush.bf16.msra.mxu0 %v5881_v46  ;;  %1966 = vmatpush.bf16.msra.mxu1 %v5883_v47  ;;  %v1876_v63 = vld [vmem:[%s7692_s8] sm:$0x1]  ;;  %v5886_v25 = vld [vmem:[%s7694_s10 + $0x8] sm:$0xff] }
0x1c17   :  { %2080 = vmatpush.bf16.msra.mxu2 %v5886_v25  ;;  %v5885_v26 = vld [vmem:[%s7694_s10] sm:$0xff] }
0x1c19   :  { %5271 = vmatmul.msk.bf16.vlgmr.msra.gmra.mxu1 %vm72_vm0, %v1938_v49 }
0x1c1a   :  { %1927 = vmatpush.bf16.msra.mxu0 %v5880_v50 }
0x1c1b   :  { %2081 = vmatpush.bf16.msra.mxu2 %v5885_v26 }
0x1c1e   :  { %1928 = vmatpush.bf16.msra.mxu0 %v5879_v51 }
0x1c22   :  { %1929 = vmatpush.bf16.msra.mxu0 %v5878_v53 }
0x1c26   :  { %1930 = vmatpush.bf16.msra.mxu0 %v5877_v54 }
0x1c2a   :  { %1931 = vmatpush.bf16.msra.mxu0 %v5876_v55 }
0x1c2e   :  { %1932 = vmatpush.bf16.msra.mxu0 %v5875_v56 }
0x1c31   :  { %1933 = vmatmul.bf16.vlgmr.msra.gmra.mxu0 %v7025_v57 }
0x1c96   :  { %v1968_v59 = vpop.f32.mrf.mxu1 }
0x1c97   :  { %v1969_v15 = vadd.f32 %v1968_v59, %v1943_v58 }
0x1c99   :  { %1993 = vrot.lane.b32.xlu0 %v1969_v15, %s6315_s4 }
0x1c9e   :  { %v1970_v60 = vpop.f32.mrf.mxu1 }
0x1c9f   :  { %v5888_v60 = vld [vmem:[%s7697_s13 + $0x8] sm:$0xff] }
0x1ca0   :  { %2117 = vmatpush.bf16.msra.mxu3 %v5888_v60 }
0x1cae   :  { %v1934_v61 = vpop.f32.mrf.mxu0 }
0x1caf   :  { %v1935_v0 = vadd.f32 %v1934_v61, %v1876_v63 }
0x1cb1   :  { %v1972_v1 = vadd.f32 %v1969_v15, %v1935_v0 }
0x1cb3   :  { %v5272_v3 = vmul.f32 -1.442695, %v1972_v1 }
0x1cb5   :  { %6140 = vpow2.f32 %v5272_v3 }
0x1cb6   :  { %v1936_v62 = vpop.f32.mrf.mxu0 }
0x1cb7   :  { %v5887_v62 = vld [vmem:[%s7697_s13] sm:$0xff] }
0x1cb8   :  { %2118 = vmatpush.bf16.msra.mxu3 %v5887_v62 }
0x1cbb   :  { %v6141_v4 = vpop.eup %6140 }
0x1cbc   :  { %v1976_v5 = vadd.f32 1.0, %v6141_v4 }
0x1cbe   :  { %6142 = vrcp.f32 %v1976_v5  ;;  %v1988_v13 = vand.u32 2147483648, %v1976_v5  ;;  %vm1982_vm12 = vweird.f32 %v1976_v5  ;;  %v1986_v14 = vand.u32 2147483647, %v1976_v5 }
0x1cc0   :  { %v1989_v17 = vor.u32 1.1754944e-38, %v1988_v13  ;;  %vm1987_vm14 = vcmp.eq.f32.partialorder %v1986_v14, 8.507059e+37 }
0x1cc4   :  { %v6143_v6 = vpop.eup %6142 }
0x1cc5   :  { %v1978_v7 = vmul.f32 %v6143_v6, %v1976_v5  ;;  %vm1983_vm11 = vweird.f32 %v6143_v6 }
0x1cc6   :  { %vm1984_vm13 = vmor %vm1982_vm12, %vm1983_vm11 }
0x1cc7   :  { %v1979_v8 = vsub.f32 1.0, %v1978_v7 }
0x1cc9   :  { %v1980_v9 = vmul.f32 %v6143_v6, %v1979_v8 }
0x1ccb   :  { %v1981_v11 = vadd.f32 %v6143_v6, %v1980_v9 }
0x1ccd   :  { %v1985_v16 = vsel %vm1984_vm13, %v6143_v6, %v1981_v11  ;;  %v2087_v11 = vld [vmem:[%s7696_s12] sm:$0x1] }
0x1cce   :  { %v1990_v19 = vsel %vm1987_vm14, %v1989_v17, %v1985_v16 }
0x1ccf   :  { %v2003_v28 = vsub.f32 1.0, %v1990_v19 }
0x1d0b   :  { %v1994_v18 = vpop.permute.xlu0 %1993 }
0x1d0c   :  { %v1996_v20 = vmul.f32 %v1994_v18, %v1990_v19  ;;  %v2095_v18 = vld [vmem:[%s7698_s14] sm:$0x1] }
0x1d0e   :  { %1998 = vrot.lane.b32.xlu0 %v1996_v20, %s6315_s4 }
0x1d80   :  { %v1999_v21 = vpop.permute.xlu0 %1998 }
0x1d81   :  { %v2001_v22 = vadd.f32 %v1999_v21, %v1935_v0 }
0x1d83   :  { %6144 = vtanh.f32 %v2001_v22 }
0x1d89   :  { %v6145_v23 = vpop.eup %6144 }
0x1d8a   :  { %2005 = vrot.lane.b32.xlu1 %v6145_v23, %s6316_s18 }
0x1d92   :  { %2011 = vrot.lane.b32.xlu1 %v6139_v24, %s6317_s20 }
0x1dfc   :  { %v2006_v27 = vpop.permute.xlu1 %2005 }
0x1dfd   :  { %v2008_v10 = vmul.f32 %v2006_v27, %v2003_v28 }
0x1e04   :  { %v2012_v29 = vpop.permute.xlu1 %2011 }
0x1e05   :  { %v2014_v32 = vmul.f32 %v2012_v29, %v1990_v19 }
0x1e07   :  { %v2015_v33 = vadd.f32 %v2014_v32, %v2008_v10 }
0x1e09   :  { %v2051_v34 = vpack.c.bf16 %v2015_v33, %v2015_v33  ;;  %v2016_v36 = vperm.slane %v2015_v33, 0 }
0x1e0b   :  { %2057 = vrot.lane.b32.xlu2 %v2051_v34, %s6316_s18 }
0x1e13   :  { %2018 = vrot.lane.b32.xlu2 %v2016_v36, %s6316_s18 }
0x1e65   :  { %v2058_v37 = vpop.permute.xlu2 %2057 }
0x1e66   :  { %5281 = vmatmul.msk.bf16.vlgmr.msra.gmra.mxu2 %vm72_vm0, %v2058_v37 }
0x1e6d   :  { %v2019_v39 = vpop.permute.xlu2 %2018 }
0x1e6e   :  { %v2021_v40 = vmul.f32 %v2019_v39, %v6889_v30 }
0x1e70   :  { %v2022_v41 = vsel %vm72_vm0, %v2021_v40, 0.0 }
0x1e71   :  { %2023 = vadd.xlane.f32.xlu0 %v2022_v41 }
0x1e85   :  { %2153 = vrot.lane.b32.xlu0 %v2015_v33, %s6316_s18 }
0x1ee4   :  { %v2024_v42 = vpop.xlane.xlu0 %2023 }
0x1ee5   :  { %v2025_v43 = vsel %vm6891_vm5, %v2024_v42, -1e+30  ;;  %v6318_v42 = vmov 0.0  }
0x1ee6   :  { %v2026_v44 = vrot.slane %v2025_v43, 4 }
0x1ee8   :  { %v2027_v45 = vmax.f32 %v2025_v43, %v2026_v44 }
0x1ee9   :  { %v2083_v2 = vpop.f32.mrf.mxu2 }
0x1eea   :  { %v2028_v52 = vrot.slane %v2027_v45, 2 }
0x1eec   :  { %v2029_v46 = vmax.f32 %v2027_v45, %v2028_v52 }
0x1eee   :  { %v2030_v47 = vrot.slane %v2029_v46, 1 }
0x1ef0   :  { %v2031_v48 = vmax.f32 %v2029_v46, %v2030_v47 }
0x1ef1   :  { %v2085_v49 = vpop.f32.mrf.mxu2 }
0x1ef2   :  { %v2032_v50 = vsub.f32 %v2025_v43, %v2031_v48 }
0x1ef4   :  { %v2033_v51 = vmul.f32 1.442695, %v2032_v50 }
0x1ef6   :  { %6146 = vpow2.f32 %v2033_v51 }
0x1ef7   :  { %v2154_v53 = vpop.permute.xlu0 %2153 }
0x1ef8   :  { %2156 = vst.msk [vmem:[#allocation3] sm:$0x1] %vm1496_vm7, %v2154_v53 }
0x1efc   :  { %v6147_v54 = vpop.eup %6146 }
0x1efd   :  { %v2035_v55 = vrot.slane %v6147_v54, 4 }
0x1eff   :  { %v2036_v56 = vadd.f32 %v6147_v54, %v2035_v55 }
0x1f01   :  { %v2037_v58 = vrot.slane %v2036_v56, 2 }
0x1f03   :  { %v2038_v59 = vadd.f32 %v2037_v58, %v2036_v56 }
0x1f05   :  { %v2039_v15 = vrot.slane %v2038_v59, 1 }
0x1f07   :  { %v2040_v61 = vadd.f32 %v2039_v15, %v2038_v59 }
0x1f09   :  { %6148 = vrcp.f32 %v2040_v61 }
0x1f0f   :  { %v6149_v63 = vpop.eup %6148 }
0x1f10   :  { %v2042_v0 = vmul.f32 %v6149_v63, %v6147_v54 }
0x1f12   :  { %v2043_v1 = vmul.f32 %v2042_v0, %v6908_v38 }
0x1f14   :  { %v2044_v3 = vsel %vm72_vm0, %v2043_v1, 0.0 }
0x1f15   :  { %v2045_v4 = vrot.slane %v2044_v3, 4 }
0x1f17   :  { %v2046_v5 = vadd.f32 %v2045_v4, %v2044_v3 }
0x1f19   :  { %v2047_v6 = vrot.slane %v2046_v5, 2 }
0x1f1b   :  { %v2048_v7 = vadd.f32 %v2047_v6, %v2046_v5 }
0x1f1d   :  { %v2049_v8 = vrot.slane %v2048_v7, 1 }
0x1f1f   :  { %v2050_v9 = vadd.f32 %v2049_v8, %v2048_v7 }
0x1f21   :  { %v2084_v13 = vadd.f32 %v2083_v2, %v2050_v9 }
0x1f23   :  { %v2088_v14 = vadd.f32 %v2087_v11, %v2084_v13 }
0x1f25   :  { %6150 = vtanh.f32 %v2088_v14 }
0x1f2b   :  { %v6151_v16 = vpop.eup %6150 }
0x1f2c   :  { %v2090_v17 = vpack.c.bf16 %v6151_v16, %v6151_v16 }
0x1f2e   :  { %5290 = vmatmul.msk.bf16.vlgmr.msra.gmra.mxu3 %vm72_vm0, %v2090_v17 }
0x1fb1   :  { %v2120_v19 = vpop.f32.mrf.mxu3 }
0x1fb2   :  { %v2121_v20 = vadd.f32 %v2120_v19, %v2095_v18 }
0x1fb4   :  { %v2125_v21 = vsel %vm1802_vm15, %v2121_v20, -1e+30 }
0x1fb5   :  { %v2127_v22 = vsel %vm1501_vm8, %v2125_v21, -inf }
0x1fb6   :  { %2128 = vmax.xlane.f32.xlu1 %v2127_v22 }
0x1fb9   :  { %v2122_v23 = vpop.f32.mrf.mxu3 }
0x2029   :  { %v2129_v24 = vpop.xlane.xlu1 %2128 }
0x202a   :  { %vm2130_vm1 = vcmp.eq.f32.partialorder %v2125_v21, %v2129_v24 }
0x202b   :  { %v2131_v25 = vsel %vm2130_vm1, %v6471_v12, 128 }
0x202c   :  { %v2132_v26 = vsel %vm1501_vm8, %v2131_v25, 2147483647 }
0x202d   :  { %v2134_v27 = vshra.s32 %v2132_v26, 16  ;;  %v2133_v29 = vand.u32 65535, %v2132_v26 }
0x202f   :  { %v2136_v28 = vcvt.s32.f32 %v2134_v27  ;;  %v2135_v32 = vcvt.s32.f32 %v2133_v29 }
0x2031   :  { %2137 = vmin.xlane.f32.xlu2 %v2136_v28 }
0x20a4   :  { %v2138_v10 = vpop.xlane.xlu2 %2137 }
0x20a5   :  { %vm2139_vm2 = vcmp.eq.f32.partialorder %v2136_v28, %v2138_v10  ;;  %v2144_v34 = vcvt.f32.s32 %v2138_v10 }
0x20a6   :  { %v2140_v33 = vsel %vm2139_vm2, %v2135_v32, inf }
0x20a7   :  { %2141 = vmin.xlane.f32.xlu2 %v2140_v33  ;;  %v2145_v37 = vshll.u32 %v2144_v34, 16 }
0x211a   :  { %v2142_v36 = vpop.xlane.xlu2 %2141 }
0x211b   :  { %v2143_v39 = vcvt.f32.s32 %v2142_v36 }
0x211d   :  { %v2146_v40 = vadd.s32 %v2145_v37, %v2143_v39 }
0x211f   :  { %vm2147_vm3 = vcmp.eq.s32.totalorder %v6471_v12, %v2146_v40  ;;  %v2157_v41 = vrot.slane %v2146_v40, 4 }
0x2120   :  { %v2148_v43 = vsel %vm2147_vm3, 1.0, %v6318_v42 }
0x2121   :  { %v2149_v44 = vpack.c.bf16 %v2148_v43, %v2148_v43  ;;  %vm2158_vm4 = vcmp.lt.s32.totalorder %v2146_v40, %v2157_v41 }
0x2122   :  { %v2159_v45 = vsel %vm2158_vm4, %v2146_v40, %v2157_v41 }
0x2123   :  { %v2150_v2 = vsel %vm6901_vm10, %v2149_v44, %v7025_v57  ;;  %v2160_v52 = vrot.slane %v2159_v45, 2 }
0x2124   :  { %2151 = vst [vmem:[#allocation4] sm:$0x1] %v2150_v2 }
0x2125   :  { %vm2161_vm6 = vcmp.lt.s32.totalorder %v2159_v45, %v2160_v52 }
0x2126   :  { %v2162_v46 = vsel %vm2161_vm6, %v2159_v45, %v2160_v52 }
0x2127   :  { %v2163_v47 = vrot.slane %v2162_v46, 1 }
0x2129   :  { %vm2164_vm9 = vcmp.lt.s32.totalorder %v2162_v46, %v2163_v47 }
0x212a   :  { %v2165_v48 = vsel %vm2164_vm9, %v2162_v46, %v2163_v47 }
0x212b   :  { %6003 = vpush %v2165_v48 }
0x215c   :  { %s6004_s2 = spop %6003 }
0x215d   :  { %2169 = sst [smem:[%s2168_s30]] %s6004_s2  ;;  %p2172_p4 = scmp.eq.s32.totalorder %s6004_s2, 2 }
0x215f   :  { %s2173_s4 = scalar_select %p2172_p4, 1, 0 }
0x2161   :  { %2174 = sst [smem:[#allocation6]] %s2173_s4 }
0x2162 PF:  { %s2175_s5 = sld [smem:[#allocation6]] }
0x2168   :  { %p5291_p5 = scmp.ne.s32.totalorder %s2175_s5, 0 }
0x2169   :  { %s6319_s18 = smov (!%p5291_p5), 64   ;;  %s6320_s0 = smov (!%p5291_p5), 96  }
0x216a   :  { %2179 = sbr.rel (%p5291_p5) target bundleno = 9920 (0x26c0), region = 109  ;;  %s6321_s19 = smov (!%p5291_p5), 32  }
0x216b   :  { %s2489_s30 = sld [smem:[#allocation5]] (!%p5291_p5) }
0x216f   :  { %v5896_v57 = vld [vmem:[%s7690_s6 + $0x38] sm:$0xff]  ;;  %v5898_v49 = vld [vmem:[%s7691_s7 + $0x8] sm:$0xff]  ;;  %v5895_v50 = vld [vmem:[%s7690_s6 + $0x30] sm:$0xff] }
0x2170   :  { %2247 = vmatpush.bf16.msra.mxu0 %v5896_v57  ;;  %2287 = vmatpush.bf16.msra.mxu1 %v5898_v49  ;;  %v5897_v51 = vld [vmem:[%s7691_s7] sm:$0xff]  ;;  %v2180_v53 = vld [vmem:[#allocation3] sm:$0x1]  ;;  %v5892_v58 = vld [vmem:[%s7690_s6 + $0x18] sm:$0xff] }
0x2171   :  { %v2260_v54 = vpack.c.bf16 %v2180_v53, %v2180_v53  ;;  %v5894_v55 = vld [vmem:[%s7690_s6 + $0x28] sm:$0xff]  ;;  %v5893_v56 = vld [vmem:[%s7690_s6 + $0x20] sm:$0xff]  ;;  %v5891_v59 = vld [vmem:[%s7690_s6 + $0x10] sm:$0xff]  ;;  %s2492_s4 = sadd.s32 1, %s2489_s30  ;;  %s2490_s17 = scalar_lea.smem [#allocation11], %s2489_s30 }
0x2172   :  { %v5890_v15 = vld [vmem:[%s7690_s6 + $0x8] sm:$0xff]  ;;  %v5889_v60 = vld [vmem:[%s7690_s6] sm:$0xff]  ;;  %2493 = sst [smem:[#allocation5]] %s2492_s4 }
0x2173   :  { %v7101_v61 = vld [vmem:[#allocation4] sm:$0x1]  ;;  %v2265_v62 = vld [vmem:[%s7693_s9] sm:$0x1]  ;;  %v6152_v29 = vld [vmem:[#allocation3] ss:$0 sm:$0xff] }
0x2174   :  { %2248 = vmatpush.bf16.msra.mxu0 %v5895_v50  ;;  %2288 = vmatpush.bf16.msra.mxu1 %v5897_v51  ;;  %v2198_v5 = vld [vmem:[%s7692_s8] sm:$0x1]  ;;  %v5900_v10 = vld [vmem:[%s7694_s10 + $0x8] sm:$0xff] }
0x2175   :  { %2402 = vmatpush.bf16.msra.mxu2 %v5900_v10  ;;  %v5899_v32 = vld [vmem:[%s7694_s10] sm:$0xff] }
0x2177   :  { %5332 = vmatmul.msk.bf16.vlgmr.msra.gmra.mxu1 %vm72_vm0, %v2260_v54 }
0x2178   :  { %2249 = vmatpush.bf16.msra.mxu0 %v5894_v55 }
0x2179   :  { %2403 = vmatpush.bf16.msra.mxu2 %v5899_v32 }
0x217c   :  { %2250 = vmatpush.bf16.msra.mxu0 %v5893_v56 }
0x2180   :  { %2251 = vmatpush.bf16.msra.mxu0 %v5892_v58 }
0x2184   :  { %2252 = vmatpush.bf16.msra.mxu0 %v5891_v59 }
0x2188   :  { %2253 = vmatpush.bf16.msra.mxu0 %v5890_v15 }
0x218c   :  { %2254 = vmatpush.bf16.msra.mxu0 %v5889_v60 }
0x218f   :  { %2255 = vmatmul.bf16.vlgmr.msra.gmra.mxu0 %v7101_v61 }
0x21f4   :  { %v2290_v63 = vpop.f32.mrf.mxu1 }
0x21f5   :  { %v2291_v0 = vadd.f32 %v2290_v63, %v2265_v62 }
0x21f7   :  { %2315 = vrot.lane.b32.xlu0 %v2291_v0, %s6319_s18 }
0x21fc   :  { %v2292_v1 = vpop.f32.mrf.mxu1 }
0x21fd   :  { %v5902_v1 = vld [vmem:[%s7697_s13 + $0x8] sm:$0xff] }
0x21fe   :  { %2439 = vmatpush.bf16.msra.mxu3 %v5902_v1 }
0x220c   :  { %v2256_v3 = vpop.f32.mrf.mxu0 }
0x220d   :  { %v2257_v6 = vadd.f32 %v2256_v3, %v2198_v5 }
0x220f   :  { %v2294_v7 = vadd.f32 %v2291_v0, %v2257_v6 }
0x2211   :  { %v5333_v8 = vmul.f32 -1.442695, %v2294_v7 }
0x2213   :  { %6153 = vpow2.f32 %v5333_v8 }
0x2214   :  { %v2258_v4 = vpop.f32.mrf.mxu0 }
0x2215   :  { %v5901_v4 = vld [vmem:[%s7697_s13] sm:$0xff] }
0x2216   :  { %2440 = vmatpush.bf16.msra.mxu3 %v5901_v4 }
0x2219   :  { %v6154_v9 = vpop.eup %6153 }
0x221a   :  { %v2298_v11 = vadd.f32 1.0, %v6154_v9 }
0x221c   :  { %6155 = vrcp.f32 %v2298_v11  ;;  %v2310_v19 = vand.u32 2147483648, %v2298_v11  ;;  %vm2304_vm12 = vweird.f32 %v2298_v11  ;;  %v2308_v20 = vand.u32 2147483647, %v2298_v11 }
0x221e   :  { %v2311_v22 = vor.u32 1.1754944e-38, %v2310_v19  ;;  %vm2309_vm14 = vcmp.eq.f32.partialorder %v2308_v20, 8.507059e+37 }
0x2222   :  { %v6156_v13 = vpop.eup %6155 }
0x2223   :  { %v2300_v14 = vmul.f32 %v6156_v13, %v2298_v11  ;;  %vm2305_vm11 = vweird.f32 %v6156_v13 }
0x2224   :  { %vm2306_vm13 = vmor %vm2304_vm12, %vm2305_vm11 }
0x2225   :  { %v2301_v16 = vsub.f32 1.0, %v2300_v14 }
0x2227   :  { %v2302_v17 = vmul.f32 %v6156_v13, %v2301_v16 }
0x2229   :  { %v2303_v18 = vadd.f32 %v6156_v13, %v2302_v17 }
0x222b   :  { %v2307_v21 = vsel %vm2306_vm13, %v6156_v13, %v2303_v18  ;;  %v2409_v18 = vld [vmem:[%s7696_s12] sm:$0x1] }
0x222c   :  { %v2312_v24 = vsel %vm2309_vm14, %v2311_v22, %v2307_v21 }
0x222d   :  { %v2325_v34 = vsub.f32 1.0, %v2312_v24 }
0x2269   :  { %v2316_v23 = vpop.permute.xlu0 %2315 }
0x226a   :  { %v2318_v25 = vmul.f32 %v2316_v23, %v2312_v24  ;;  %v2417_v23 = vld [vmem:[%s7698_s14] sm:$0x1] }
0x226c   :  { %2320 = vrot.lane.b32.xlu0 %v2318_v25, %s6319_s18 }
0x22de   :  { %v2321_v26 = vpop.permute.xlu0 %2320 }
0x22df   :  { %v2323_v27 = vadd.f32 %v2321_v26, %v2257_v6 }
0x22e1   :  { %6157 = vtanh.f32 %v2323_v27 }
0x22e7   :  { %v6158_v28 = vpop.eup %6157 }
0x22e8   :  { %2327 = vrot.lane.b32.xlu1 %v6158_v28, %s6320_s0 }
0x22f0   :  { %2333 = vrot.lane.b32.xlu1 %v6152_v29, %s6321_s19 }
0x235a   :  { %v2328_v33 = vpop.permute.xlu1 %2327 }
0x235b   :  { %v2330_v37 = vmul.f32 %v2328_v33, %v2325_v34 }
0x2362   :  { %v2334_v36 = vpop.permute.xlu1 %2333 }
0x2363   :  { %v2336_v39 = vmul.f32 %v2334_v36, %v2312_v24 }
0x2365   :  { %v2337_v40 = vadd.f32 %v2336_v39, %v2330_v37 }
0x2367   :  { %v2373_v41 = vpack.c.bf16 %v2337_v40, %v2337_v40  ;;  %v2338_v42 = vperm.slane %v2337_v40, 0 }
0x2369   :  { %2379 = vrot.lane.b32.xlu2 %v2373_v41, %s6320_s0 }
0x2371   :  { %2340 = vrot.lane.b32.xlu2 %v2338_v42, %s6320_s0 }
0x23c3   :  { %v2380_v43 = vpop.permute.xlu2 %2379 }
0x23c4   :  { %5342 = vmatmul.msk.bf16.vlgmr.msra.gmra.mxu2 %vm72_vm0, %v2380_v43 }
0x23cb   :  { %v2341_v44 = vpop.permute.xlu2 %2340 }
0x23cc   :  { %v2343_v45 = vmul.f32 %v2341_v44, %v6889_v30 }
0x23ce   :  { %v2344_v2 = vsel %vm72_vm0, %v2343_v45, 0.0 }
0x23cf   :  { %2345 = vadd.xlane.f32.xlu0 %v2344_v2 }
0x23e3   :  { %2475 = vrot.lane.b32.xlu0 %v2337_v40, %s6320_s0 }
0x2442   :  { %v2346_v52 = vpop.xlane.xlu0 %2345 }
0x2443   :  { %v2347_v46 = vsel %vm6891_vm5, %v2346_v52, -1e+30  ;;  %v6322_v52 = vmov 0.0  }
0x2444   :  { %v2348_v47 = vrot.slane %v2347_v46, 4 }
0x2446   :  { %v2349_v48 = vmax.f32 %v2347_v46, %v2348_v47 }
0x2447   :  { %v2405_v57 = vpop.f32.mrf.mxu2 }
0x2448   :  { %v2350_v49 = vrot.slane %v2349_v48, 2 }
0x244a   :  { %v2351_v50 = vmax.f32 %v2349_v48, %v2350_v49 }
0x244c   :  { %v2352_v51 = vrot.slane %v2351_v50, 1 }
0x244e   :  { %v2353_v53 = vmax.f32 %v2351_v50, %v2352_v51 }
0x244f   :  { %v2407_v54 = vpop.f32.mrf.mxu2 }
0x2450   :  { %v2354_v55 = vsub.f32 %v2347_v46, %v2353_v53 }
0x2452   :  { %v2355_v56 = vmul.f32 1.442695, %v2354_v55 }
0x2454   :  { %6159 = vpow2.f32 %v2355_v56 }
0x2455   :  { %v2476_v58 = vpop.permute.xlu0 %2475 }
0x2456   :  { %2478 = vst.msk [vmem:[#allocation3] sm:$0x1] %vm1496_vm7, %v2476_v58 }
0x245a   :  { %v6160_v59 = vpop.eup %6159 }
0x245b   :  { %v2357_v15 = vrot.slane %v6160_v59, 4 }
0x245d   :  { %v2358_v60 = vadd.f32 %v6160_v59, %v2357_v15 }
0x245f   :  { %v2359_v62 = vrot.slane %v2358_v60, 2 }
0x2461   :  { %v2360_v63 = vadd.f32 %v2359_v62, %v2358_v60 }
0x2463   :  { %v2361_v0 = vrot.slane %v2360_v63, 1 }
0x2465   :  { %v2362_v3 = vadd.f32 %v2361_v0, %v2360_v63 }
0x2467   :  { %6161 = vrcp.f32 %v2362_v3 }
0x246d   :  { %v6162_v5 = vpop.eup %6161 }
0x246e   :  { %v2364_v6 = vmul.f32 %v6162_v5, %v6160_v59 }
0x2470   :  { %v2365_v7 = vmul.f32 %v2364_v6, %v6908_v38 }
0x2472   :  { %v2366_v8 = vsel %vm72_vm0, %v2365_v7, 0.0 }
0x2473   :  { %v2367_v9 = vrot.slane %v2366_v8, 4 }
0x2475   :  { %v2368_v11 = vadd.f32 %v2367_v9, %v2366_v8 }
0x2477   :  { %v2369_v13 = vrot.slane %v2368_v11, 2 }
0x2479   :  { %v2370_v14 = vadd.f32 %v2369_v13, %v2368_v11 }
0x247b   :  { %v2371_v16 = vrot.slane %v2370_v14, 1 }
0x247d   :  { %v2372_v17 = vadd.f32 %v2371_v16, %v2370_v14 }
0x247f   :  { %v2406_v19 = vadd.f32 %v2405_v57, %v2372_v17 }
0x2481   :  { %v2410_v20 = vadd.f32 %v2409_v18, %v2406_v19 }
0x2483   :  { %6163 = vtanh.f32 %v2410_v20 }
0x2489   :  { %v6164_v21 = vpop.eup %6163 }
0x248a   :  { %v2412_v22 = vpack.c.bf16 %v6164_v21, %v6164_v21 }
0x248c   :  { %5351 = vmatmul.msk.bf16.vlgmr.msra.gmra.mxu3 %vm72_vm0, %v2412_v22 }
0x250f   :  { %v2442_v24 = vpop.f32.mrf.mxu3 }
0x2510   :  { %v2443_v25 = vadd.f32 %v2442_v24, %v2417_v23 }
0x2512   :  { %v2447_v26 = vsel %vm1802_vm15, %v2443_v25, -1e+30 }
0x2513   :  { %v2449_v27 = vsel %vm1501_vm8, %v2447_v26, -inf }
0x2514   :  { %2450 = vmax.xlane.f32.xlu1 %v2449_v27 }
0x2517   :  { %v2444_v28 = vpop.f32.mrf.mxu3 }
0x2587   :  { %v2451_v29 = vpop.xlane.xlu1 %2450 }
0x2588   :  { %vm2452_vm1 = vcmp.eq.f32.partialorder %v2447_v26, %v2451_v29 }
0x2589   :  { %v2453_v10 = vsel %vm2452_vm1, %v6471_v12, 128 }
0x258a   :  { %v2454_v32 = vsel %vm1501_vm8, %v2453_v10, 2147483647 }
0x258b   :  { %v2456_v33 = vshra.s32 %v2454_v32, 16  ;;  %v2455_v36 = vand.u32 65535, %v2454_v32 }
0x258d   :  { %v2458_v34 = vcvt.s32.f32 %v2456_v33  ;;  %v2457_v39 = vcvt.s32.f32 %v2455_v36 }
0x258f   :  { %2459 = vmin.xlane.f32.xlu2 %v2458_v34 }
0x2602   :  { %v2460_v37 = vpop.xlane.xlu2 %2459 }
0x2603   :  { %vm2461_vm2 = vcmp.eq.f32.partialorder %v2458_v34, %v2460_v37  ;;  %v2466_v41 = vcvt.f32.s32 %v2460_v37 }
0x2604   :  { %v2462_v40 = vsel %vm2461_vm2, %v2457_v39, inf }
0x2605   :  { %2463 = vmin.xlane.f32.xlu2 %v2462_v40  ;;  %v2467_v43 = vshll.u32 %v2466_v41, 16 }
0x2678   :  { %v2464_v42 = vpop.xlane.xlu2 %2463 }
0x2679   :  { %v2465_v44 = vcvt.f32.s32 %v2464_v42 }
0x267b   :  { %v2468_v45 = vadd.s32 %v2467_v43, %v2465_v44 }
0x267d   :  { %vm2469_vm3 = vcmp.eq.s32.totalorder %v6471_v12, %v2468_v45  ;;  %v2479_v2 = vrot.slane %v2468_v45, 4 }
0x267e   :  { %v2470_v46 = vsel %vm2469_vm3, 1.0, %v6322_v52 }
0x267f   :  { %v2471_v47 = vpack.c.bf16 %v2470_v46, %v2470_v46  ;;  %vm2480_vm4 = vcmp.lt.s32.totalorder %v2468_v45, %v2479_v2 }
0x2680   :  { %v2481_v48 = vsel %vm2480_vm4, %v2468_v45, %v2479_v2 }
0x2681   :  { %v2472_v57 = vsel %vm6901_vm10, %v2471_v47, %v7101_v61  ;;  %v2482_v49 = vrot.slane %v2481_v48, 2 }
0x2682   :  { %2473 = vst [vmem:[#allocation4] sm:$0x1] %v2472_v57 }
0x2683   :  { %vm2483_vm6 = vcmp.lt.s32.totalorder %v2481_v48, %v2482_v49 }
0x2684   :  { %v2484_v50 = vsel %vm2483_vm6, %v2481_v48, %v2482_v49 }
0x2685   :  { %v2485_v51 = vrot.slane %v2484_v50, 1 }
0x2687   :  { %vm2486_vm9 = vcmp.lt.s32.totalorder %v2484_v50, %v2485_v51 }
0x2688   :  { %v2487_v53 = vsel %vm2486_vm9, %v2484_v50, %v2485_v51 }
0x2689   :  { %6005 = vpush %v2487_v53 }
0x26ba   :  { %s6006_s5 = spop %6005 }
0x26bb   :  { %2491 = sst [smem:[%s2490_s17]] %s6006_s5  ;;  %p2494_p6 = scmp.eq.s32.totalorder %s6006_s5, 2 }
0x26bd   :  { %s2495_s18 = scalar_select %p2494_p6, 1, 0 }
0x26bf   :  { %2496 = sst [smem:[#allocation6]] %s2495_s18 }
0x26c0 PF:  { %s2497_s20 = sld [smem:[#allocation6]] }
0x26c6   :  { %p5352_p7 = scmp.ne.s32.totalorder %s2497_s20, 0 }
0x26c7   :  { %s6323_s0 = smov (!%p5352_p7), 64   ;;  %s6324_s23 = smov (!%p5352_p7), 96  }
0x26c8   :  { %2501 = sbr.rel (%p5352_p7) target bundleno = 11294 (0x2c1e), region = 113  ;;  %s6325_s24 = smov (!%p5352_p7), 32  }
0x26c9   :  { %s2811_s17 = sld [smem:[#allocation5]] (!%p5352_p7) }
0x26cd   :  { %v5910_v61 = vld [vmem:[%s7690_s6 + $0x38] sm:$0xff]  ;;  %v5912_v54 = vld [vmem:[%s7691_s7 + $0x8] sm:$0xff]  ;;  %v5909_v55 = vld [vmem:[%s7690_s6 + $0x30] sm:$0xff] }
0x26ce   :  { %2569 = vmatpush.bf16.msra.mxu0 %v5910_v61  ;;  %2609 = vmatpush.bf16.msra.mxu1 %v5912_v54  ;;  %v5911_v56 = vld [vmem:[%s7691_s7] sm:$0xff]  ;;  %v2502_v58 = vld [vmem:[#allocation3] sm:$0x1]  ;;  %v5906_v62 = vld [vmem:[%s7690_s6 + $0x18] sm:$0xff] }
0x26cf   :  { %v2582_v59 = vpack.c.bf16 %v2502_v58, %v2502_v58  ;;  %v5908_v15 = vld [vmem:[%s7690_s6 + $0x28] sm:$0xff]  ;;  %v5907_v60 = vld [vmem:[%s7690_s6 + $0x20] sm:$0xff]  ;;  %v5905_v63 = vld [vmem:[%s7690_s6 + $0x10] sm:$0xff]  ;;  %s2814_s18 = sadd.s32 1, %s2811_s17  ;;  %s2812_s21 = scalar_lea.smem [#allocation11], %s2811_s17 }
0x26d0   :  { %v5904_v0 = vld [vmem:[%s7690_s6 + $0x8] sm:$0xff]  ;;  %v5903_v1 = vld [vmem:[%s7690_s6] sm:$0xff]  ;;  %2815 = sst [smem:[#allocation5]] %s2814_s18 }
0x26d1   :  { %v7177_v3 = vld [vmem:[#allocation4] sm:$0x1]  ;;  %v2587_v4 = vld [vmem:[%s7693_s9] sm:$0x1]  ;;  %v6165_v36 = vld [vmem:[#allocation3] ss:$0 sm:$0xff] }
0x26d2   :  { %2570 = vmatpush.bf16.msra.mxu0 %v5909_v55  ;;  %2610 = vmatpush.bf16.msra.mxu1 %v5911_v56  ;;  %v2520_v11 = vld [vmem:[%s7692_s8] sm:$0x1]  ;;  %v5914_v37 = vld [vmem:[%s7694_s10 + $0x8] sm:$0xff] }
0x26d3   :  { %2724 = vmatpush.bf16.msra.mxu2 %v5914_v37  ;;  %v5913_v39 = vld [vmem:[%s7694_s10] sm:$0xff] }
0x26d5   :  { %5393 = vmatmul.msk.bf16.vlgmr.msra.gmra.mxu1 %vm72_vm0, %v2582_v59 }
0x26d6   :  { %2571 = vmatpush.bf16.msra.mxu0 %v5908_v15 }
0x26d7   :  { %2725 = vmatpush.bf16.msra.mxu2 %v5913_v39 }
0x26da   :  { %2572 = vmatpush.bf16.msra.mxu0 %v5907_v60 }
0x26de   :  { %2573 = vmatpush.bf16.msra.mxu0 %v5906_v62 }
0x26e2   :  { %2574 = vmatpush.bf16.msra.mxu0 %v5905_v63 }
0x26e6   :  { %2575 = vmatpush.bf16.msra.mxu0 %v5904_v0 }
0x26ea   :  { %2576 = vmatpush.bf16.msra.mxu0 %v5903_v1 }
0x26ed   :  { %2577 = vmatmul.bf16.vlgmr.msra.gmra.mxu0 %v7177_v3 }
0x2752   :  { %v2612_v5 = vpop.f32.mrf.mxu1 }
0x2753   :  { %v2613_v6 = vadd.f32 %v2612_v5, %v2587_v4 }
0x2755   :  { %2637 = vrot.lane.b32.xlu0 %v2613_v6, %s6323_s0 }
0x275a   :  { %v2614_v7 = vpop.f32.mrf.mxu1 }
0x275b   :  { %v5916_v7 = vld [vmem:[%s7697_s13 + $0x8] sm:$0xff] }
0x275c   :  { %2761 = vmatpush.bf16.msra.mxu3 %v5916_v7 }
0x276a   :  { %v2578_v8 = vpop.f32.mrf.mxu0 }
0x276b   :  { %v2579_v13 = vadd.f32 %v2578_v8, %v2520_v11 }
0x276d   :  { %v2616_v14 = vadd.f32 %v2613_v6, %v2579_v13 }
0x276f   :  { %v5394_v16 = vmul.f32 -1.442695, %v2616_v14 }
0x2771   :  { %6166 = vpow2.f32 %v5394_v16 }
0x2772   :  { %v2580_v9 = vpop.f32.mrf.mxu0 }
0x2773   :  { %v5915_v9 = vld [vmem:[%s7697_s13] sm:$0xff] }
0x2774   :  { %2762 = vmatpush.bf16.msra.mxu3 %v5915_v9 }
0x2777   :  { %v6167_v17 = vpop.eup %6166 }
0x2778   :  { %v2620_v18 = vadd.f32 1.0, %v6167_v17 }
0x277a   :  { %6168 = vrcp.f32 %v2620_v18  ;;  %v2632_v24 = vand.u32 2147483648, %v2620_v18  ;;  %vm2626_vm12 = vweird.f32 %v2620_v18  ;;  %v2630_v25 = vand.u32 2147483647, %v2620_v18 }
0x277c   :  { %v2633_v27 = vor.u32 1.1754944e-38, %v2632_v24  ;;  %vm2631_vm14 = vcmp.eq.f32.partialorder %v2630_v25, 8.507059e+37 }
0x2780   :  { %v6169_v19 = vpop.eup %6168 }
0x2781   :  { %v2622_v20 = vmul.f32 %v6169_v19, %v2620_v18  ;;  %vm2627_vm11 = vweird.f32 %v6169_v19 }
0x2782   :  { %vm2628_vm13 = vmor %vm2626_vm12, %vm2627_vm11 }
0x2783   :  { %v2623_v21 = vsub.f32 1.0, %v2622_v20 }
0x2785   :  { %v2624_v22 = vmul.f32 %v6169_v19, %v2623_v21 }
0x2787   :  { %v2625_v23 = vadd.f32 %v6169_v19, %v2624_v22 }
0x2789   :  { %v2629_v26 = vsel %vm2628_vm13, %v6169_v19, %v2625_v23  ;;  %v2731_v23 = vld [vmem:[%s7696_s12] sm:$0x1] }
0x278a   :  { %v2634_v29 = vsel %vm2631_vm14, %v2633_v27, %v2629_v26 }
0x278b   :  { %v2647_v41 = vsub.f32 1.0, %v2634_v29 }
0x27c7   :  { %v2638_v28 = vpop.permute.xlu0 %2637 }
0x27c8   :  { %v2640_v10 = vmul.f32 %v2638_v28, %v2634_v29  ;;  %v2739_v28 = vld [vmem:[%s7698_s14] sm:$0x1] }
0x27ca   :  { %2642 = vrot.lane.b32.xlu0 %v2640_v10, %s6323_s0 }
0x283c   :  { %v2643_v32 = vpop.permute.xlu0 %2642 }
0x283d   :  { %v2645_v33 = vadd.f32 %v2643_v32, %v2579_v13 }
0x283f   :  { %6170 = vtanh.f32 %v2645_v33 }
0x2845   :  { %v6171_v34 = vpop.eup %6170 }
0x2846   :  { %2649 = vrot.lane.b32.xlu1 %v6171_v34, %s6324_s23 }
0x284e   :  { %2655 = vrot.lane.b32.xlu1 %v6165_v36, %s6325_s24 }
0x28b8   :  { %v2650_v40 = vpop.permute.xlu1 %2649 }
0x28b9   :  { %v2652_v43 = vmul.f32 %v2650_v40, %v2647_v41 }
0x28c0   :  { %v2656_v42 = vpop.permute.xlu1 %2655 }
0x28c1   :  { %v2658_v44 = vmul.f32 %v2656_v42, %v2634_v29 }
0x28c3   :  { %v2659_v45 = vadd.f32 %v2658_v44, %v2652_v43 }
0x28c5   :  { %v2695_v2 = vpack.c.bf16 %v2659_v45, %v2659_v45  ;;  %v2660_v52 = vperm.slane %v2659_v45, 0 }
0x28c7   :  { %2701 = vrot.lane.b32.xlu2 %v2695_v2, %s6324_s23 }
0x28cf   :  { %2662 = vrot.lane.b32.xlu2 %v2660_v52, %s6324_s23 }
0x2921   :  { %v2702_v46 = vpop.permute.xlu2 %2701 }
0x2922   :  { %5403 = vmatmul.msk.bf16.vlgmr.msra.gmra.mxu2 %vm72_vm0, %v2702_v46 }
0x2929   :  { %v2663_v47 = vpop.permute.xlu2 %2662 }
0x292a   :  { %v2665_v48 = vmul.f32 %v2663_v47, %v6889_v30 }
0x292c   :  { %v2666_v57 = vsel %vm72_vm0, %v2665_v48, 0.0 }
0x292d   :  { %2667 = vadd.xlane.f32.xlu0 %v2666_v57 }
0x2941   :  { %2797 = vrot.lane.b32.xlu0 %v2659_v45, %s6324_s23 }
0x29a0   :  { %v2668_v49 = vpop.xlane.xlu0 %2667 }
0x29a1   :  { %v2669_v50 = vsel %vm6891_vm5, %v2668_v49, -1e+30  ;;  %v6326_v49 = vmov 0.0  }
0x29a2   :  { %v2670_v51 = vrot.slane %v2669_v50, 4 }
0x29a4   :  { %v2671_v53 = vmax.f32 %v2669_v50, %v2670_v51 }
0x29a5   :  { %v2727_v61 = vpop.f32.mrf.mxu2 }
0x29a6   :  { %v2672_v54 = vrot.slane %v2671_v53, 2 }
0x29a8   :  { %v2673_v55 = vmax.f32 %v2671_v53, %v2672_v54 }
0x29aa   :  { %v2674_v56 = vrot.slane %v2673_v55, 1 }
0x29ac   :  { %v2675_v58 = vmax.f32 %v2673_v55, %v2674_v56 }
0x29ad   :  { %v2729_v59 = vpop.f32.mrf.mxu2 }
0x29ae   :  { %v2676_v15 = vsub.f32 %v2669_v50, %v2675_v58 }
0x29b0   :  { %v2677_v60 = vmul.f32 1.442695, %v2676_v15 }
0x29b2   :  { %6172 = vpow2.f32 %v2677_v60 }
0x29b3   :  { %v2798_v62 = vpop.permute.xlu0 %2797 }
0x29b4   :  { %2800 = vst.msk [vmem:[#allocation3] sm:$0x1] %vm1496_vm7, %v2798_v62 }
0x29b8   :  { %v6173_v63 = vpop.eup %6172 }
0x29b9   :  { %v2679_v0 = vrot.slane %v6173_v63, 4 }
0x29bb   :  { %v2680_v1 = vadd.f32 %v6173_v63, %v2679_v0 }
0x29bd   :  { %v2681_v4 = vrot.slane %v2680_v1, 2 }
0x29bf   :  { %v2682_v5 = vadd.f32 %v2681_v4, %v2680_v1 }
0x29c1   :  { %v2683_v6 = vrot.slane %v2682_v5, 1 }
0x29c3   :  { %v2684_v8 = vadd.f32 %v2683_v6, %v2682_v5 }
0x29c5   :  { %6174 = vrcp.f32 %v2684_v8 }
0x29cb   :  { %v6175_v11 = vpop.eup %6174 }
0x29cc   :  { %v2686_v13 = vmul.f32 %v6175_v11, %v6173_v63 }
0x29ce   :  { %v2687_v14 = vmul.f32 %v2686_v13, %v6908_v38 }
0x29d0   :  { %v2688_v16 = vsel %vm72_vm0, %v2687_v14, 0.0 }
0x29d1   :  { %v2689_v17 = vrot.slane %v2688_v16, 4 }
0x29d3   :  { %v2690_v18 = vadd.f32 %v2689_v17, %v2688_v16 }
0x29d5   :  { %v2691_v19 = vrot.slane %v2690_v18, 2 }
0x29d7   :  { %v2692_v20 = vadd.f32 %v2691_v19, %v2690_v18 }
0x29d9   :  { %v2693_v21 = vrot.slane %v2692_v20, 1 }
0x29db   :  { %v2694_v22 = vadd.f32 %v2693_v21, %v2692_v20 }
0x29dd   :  { %v2728_v24 = vadd.f32 %v2727_v61, %v2694_v22 }
0x29df   :  { %v2732_v25 = vadd.f32 %v2731_v23, %v2728_v24 }
0x29e1   :  { %6176 = vtanh.f32 %v2732_v25 }
0x29e7   :  { %v6177_v26 = vpop.eup %6176 }
0x29e8   :  { %v2734_v27 = vpack.c.bf16 %v6177_v26, %v6177_v26 }
0x29ea   :  { %5412 = vmatmul.msk.bf16.vlgmr.msra.gmra.mxu3 %vm72_vm0, %v2734_v27 }
0x2a6d   :  { %v2764_v29 = vpop.f32.mrf.mxu3 }
0x2a6e   :  { %v2765_v10 = vadd.f32 %v2764_v29, %v2739_v28 }
0x2a70   :  { %v2769_v32 = vsel %vm1802_vm15, %v2765_v10, -1e+30 }
0x2a71   :  { %v2771_v33 = vsel %vm1501_vm8, %v2769_v32, -inf }
0x2a72   :  { %2772 = vmax.xlane.f32.xlu1 %v2771_v33 }
0x2a75   :  { %v2766_v34 = vpop.f32.mrf.mxu3 }
0x2ae5   :  { %v2773_v36 = vpop.xlane.xlu1 %2772 }
0x2ae6   :  { %vm2774_vm1 = vcmp.eq.f32.partialorder %v2769_v32, %v2773_v36 }
0x2ae7   :  { %v2775_v37 = vsel %vm2774_vm1, %v6471_v12, 128 }
0x2ae8   :  { %v2776_v39 = vsel %vm1501_vm8, %v2775_v37, 2147483647 }
0x2ae9   :  { %v2778_v40 = vshra.s32 %v2776_v39, 16  ;;  %v2777_v42 = vand.u32 65535, %v2776_v39 }
0x2aeb   :  { %v2780_v41 = vcvt.s32.f32 %v2778_v40  ;;  %v2779_v44 = vcvt.s32.f32 %v2777_v42 }
0x2aed   :  { %2781 = vmin.xlane.f32.xlu2 %v2780_v41 }
0x2b60   :  { %v2782_v43 = vpop.xlane.xlu2 %2781 }
0x2b61   :  { %vm2783_vm2 = vcmp.eq.f32.partialorder %v2780_v41, %v2782_v43  ;;  %v2788_v2 = vcvt.f32.s32 %v2782_v43 }
0x2b62   :  { %v2784_v45 = vsel %vm2783_vm2, %v2779_v44, inf }
0x2b63   :  { %2785 = vmin.xlane.f32.xlu2 %v2784_v45  ;;  %v2789_v46 = vshll.u32 %v2788_v2, 16 }
0x2bd6   :  { %v2786_v52 = vpop.xlane.xlu2 %2785 }
0x2bd7   :  { %v2787_v47 = vcvt.f32.s32 %v2786_v52 }
0x2bd9   :  { %v2790_v48 = vadd.s32 %v2789_v46, %v2787_v47 }
0x2bdb   :  { %vm2791_vm3 = vcmp.eq.s32.totalorder %v6471_v12, %v2790_v48  ;;  %v2801_v57 = vrot.slane %v2790_v48, 4 }
0x2bdc   :  { %v2792_v50 = vsel %vm2791_vm3, 1.0, %v6326_v49 }
0x2bdd   :  { %v2793_v51 = vpack.c.bf16 %v2792_v50, %v2792_v50  ;;  %vm2802_vm4 = vcmp.lt.s32.totalorder %v2790_v48, %v2801_v57 }
0x2bde   :  { %v2803_v53 = vsel %vm2802_vm4, %v2790_v48, %v2801_v57 }
0x2bdf   :  { %v2794_v61 = vsel %vm6901_vm10, %v2793_v51, %v7177_v3  ;;  %v2804_v54 = vrot.slane %v2803_v53, 2 }
0x2be0   :  { %2795 = vst [vmem:[#allocation4] sm:$0x1] %v2794_v61 }
0x2be1   :  { %vm2805_vm6 = vcmp.lt.s32.totalorder %v2803_v53, %v2804_v54 }
0x2be2   :  { %v2806_v55 = vsel %vm2805_vm6, %v2803_v53, %v2804_v54 }
0x2be3   :  { %v2807_v56 = vrot.slane %v2806_v55, 1 }
0x2be5   :  { %vm2808_vm9 = vcmp.lt.s32.totalorder %v2806_v55, %v2807_v56 }
0x2be6   :  { %v2809_v58 = vsel %vm2808_vm9, %v2806_v55, %v2807_v56 }
0x2be7   :  { %6007 = vpush %v2809_v58 }
0x2c18   :  { %s6008_s20 = spop %6007 }
0x2c19   :  { %2813 = sst [smem:[%s2812_s21]] %s6008_s20  ;;  %p2816_p8 = scmp.eq.s32.totalorder %s6008_s20, 2 }
0x2c1b   :  { %s2817_s0 = scalar_select %p2816_p8, 1, 0 }
0x2c1d   :  { %2818 = sst [smem:[#allocation6]] %s2817_s0 }
0x2c1e PF:  { %s2819_s19 = sld [smem:[#allocation6]] }
0x2c24   :  { %p5413_p9 = scmp.ne.s32.totalorder %s2819_s19, 0 }
0x2c25   :  { %s6327_s23 = smov (!%p5413_p9), 64   ;;  %s6328_s25 = smov (!%p5413_p9), 96  }
0x2c26   :  { %2823 = sbr.rel (%p5413_p9) target bundleno = 12668 (0x317c), region = 117  ;;  %s6329_s26 = smov (!%p5413_p9), 32  }
0x2c27   :  { %s3133_s21 = sld [smem:[#allocation5]] (!%p5413_p9) }
0x2c2b   :  { %v5924_v3 = vld [vmem:[%s7690_s6 + $0x38] sm:$0xff]  ;;  %v5926_v59 = vld [vmem:[%s7691_s7 + $0x8] sm:$0xff]  ;;  %v5923_v15 = vld [vmem:[%s7690_s6 + $0x30] sm:$0xff] }
0x2c2c   :  { %2891 = vmatpush.bf16.msra.mxu0 %v5924_v3  ;;  %2931 = vmatpush.bf16.msra.mxu1 %v5926_v59  ;;  %v5925_v60 = vld [vmem:[%s7691_s7] sm:$0xff]  ;;  %v2824_v62 = vld [vmem:[#allocation3] sm:$0x1]  ;;  %v5920_v4 = vld [vmem:[%s7690_s6 + $0x18] sm:$0xff] }
0x2c2d   :  { %v2904_v63 = vpack.c.bf16 %v2824_v62, %v2824_v62  ;;  %v5922_v0 = vld [vmem:[%s7690_s6 + $0x28] sm:$0xff]  ;;  %v5921_v1 = vld [vmem:[%s7690_s6 + $0x20] sm:$0xff]  ;;  %v5919_v5 = vld [vmem:[%s7690_s6 + $0x10] sm:$0xff]  ;;  %s3136_s0 = sadd.s32 1, %s3133_s21  ;;  %s3134_s22 = scalar_lea.smem [#allocation11], %s3133_s21 }
0x2c2e   :  { %v5918_v6 = vld [vmem:[%s7690_s6 + $0x8] sm:$0xff]  ;;  %v5917_v7 = vld [vmem:[%s7690_s6] sm:$0xff]  ;;  %3137 = sst [smem:[#allocation5]] %s3136_s0 }
0x2c2f   :  { %v7253_v8 = vld [vmem:[#allocation4] sm:$0x1]  ;;  %v2909_v9 = vld [vmem:[%s7693_s9] sm:$0x1]  ;;  %v6178_v42 = vld [vmem:[#allocation3] ss:$0 sm:$0xff] }
0x2c30   :  { %2892 = vmatpush.bf16.msra.mxu0 %v5923_v15  ;;  %2932 = vmatpush.bf16.msra.mxu1 %v5925_v60  ;;  %v2842_v18 = vld [vmem:[%s7692_s8] sm:$0x1]  ;;  %v5928_v43 = vld [vmem:[%s7694_s10 + $0x8] sm:$0xff] }
0x2c31   :  { %3046 = vmatpush.bf16.msra.mxu2 %v5928_v43  ;;  %v5927_v44 = vld [vmem:[%s7694_s10] sm:$0xff] }
0x2c33   :  { %5454 = vmatmul.msk.bf16.vlgmr.msra.gmra.mxu1 %vm72_vm0, %v2904_v63 }
0x2c34   :  { %2893 = vmatpush.bf16.msra.mxu0 %v5922_v0 }
0x2c35   :  { %3047 = vmatpush.bf16.msra.mxu2 %v5927_v44 }
0x2c38   :  { %2894 = vmatpush.bf16.msra.mxu0 %v5921_v1 }
0x2c3c   :  { %2895 = vmatpush.bf16.msra.mxu0 %v5920_v4 }
0x2c40   :  { %2896 = vmatpush.bf16.msra.mxu0 %v5919_v5 }
0x2c44   :  { %2897 = vmatpush.bf16.msra.mxu0 %v5918_v6 }
0x2c48   :  { %2898 = vmatpush.bf16.msra.mxu0 %v5917_v7 }
0x2c4b   :  { %2899 = vmatmul.bf16.vlgmr.msra.gmra.mxu0 %v7253_v8 }
0x2cb0   :  { %v2934_v11 = vpop.f32.mrf.mxu1 }
0x2cb1   :  { %v2935_v13 = vadd.f32 %v2934_v11, %v2909_v9 }
0x2cb3   :  { %2959 = vrot.lane.b32.xlu0 %v2935_v13, %s6327_s23 }
0x2cb8   :  { %v2936_v14 = vpop.f32.mrf.mxu1 }
0x2cb9   :  { %v5930_v14 = vld [vmem:[%s7697_s13 + $0x8] sm:$0xff] }
0x2cba   :  { %3083 = vmatpush.bf16.msra.mxu3 %v5930_v14 }
0x2cc8   :  { %v2900_v16 = vpop.f32.mrf.mxu0 }
0x2cc9   :  { %v2901_v19 = vadd.f32 %v2900_v16, %v2842_v18 }
0x2ccb   :  { %v2938_v20 = vadd.f32 %v2935_v13, %v2901_v19 }
0x2ccd   :  { %v5455_v21 = vmul.f32 -1.442695, %v2938_v20 }
0x2ccf   :  { %6179 = vpow2.f32 %v5455_v21 }
0x2cd0   :  { %v2902_v17 = vpop.f32.mrf.mxu0 }
0x2cd1   :  { %v5929_v17 = vld [vmem:[%s7697_s13] sm:$0xff] }
0x2cd2   :  { %3084 = vmatpush.bf16.msra.mxu3 %v5929_v17 }
0x2cd5   :  { %v6180_v22 = vpop.eup %6179 }
0x2cd6   :  { %v2942_v23 = vadd.f32 1.0, %v6180_v22 }
0x2cd8   :  { %6181 = vrcp.f32 %v2942_v23  ;;  %v2954_v29 = vand.u32 2147483648, %v2942_v23  ;;  %vm2948_vm12 = vweird.f32 %v2942_v23  ;;  %v2952_v10 = vand.u32 2147483647, %v2942_v23 }
0x2cda   :  { %v2955_v33 = vor.u32 1.1754944e-38, %v2954_v29  ;;  %vm2953_vm14 = vcmp.eq.f32.partialorder %v2952_v10, 8.507059e+37 }
0x2cde   :  { %v6182_v24 = vpop.eup %6181 }
0x2cdf   :  { %v2944_v25 = vmul.f32 %v6182_v24, %v2942_v23  ;;  %vm2949_vm11 = vweird.f32 %v6182_v24 }
0x2ce0   :  { %vm2950_vm13 = vmor %vm2948_vm12, %vm2949_vm11 }
0x2ce1   :  { %v2945_v26 = vsub.f32 1.0, %v2944_v25 }
0x2ce3   :  { %v2946_v27 = vmul.f32 %v6182_v24, %v2945_v26 }
0x2ce5   :  { %v2947_v28 = vadd.f32 %v6182_v24, %v2946_v27 }
0x2ce7   :  { %v2951_v32 = vsel %vm2950_vm13, %v6182_v24, %v2947_v28  ;;  %v3053_v28 = vld [vmem:[%s7696_s12] sm:$0x1] }
0x2ce8   :  { %v2956_v36 = vsel %vm2953_vm14, %v2955_v33, %v2951_v32 }
0x2ce9   :  { %v2969_v2 = vsub.f32 1.0, %v2956_v36 }
0x2d25   :  { %v2960_v34 = vpop.permute.xlu0 %2959 }
0x2d26   :  { %v2962_v37 = vmul.f32 %v2960_v34, %v2956_v36  ;;  %v3061_v34 = vld [vmem:[%s7698_s14] sm:$0x1] }
0x2d28   :  { %2964 = vrot.lane.b32.xlu0 %v2962_v37, %s6327_s23 }
0x2d9a   :  { %v2965_v39 = vpop.permute.xlu0 %2964 }
0x2d9b   :  { %v2967_v40 = vadd.f32 %v2965_v39, %v2901_v19 }
0x2d9d   :  { %6183 = vtanh.f32 %v2967_v40 }
0x2da3   :  { %v6184_v41 = vpop.eup %6183 }
0x2da4   :  { %2971 = vrot.lane.b32.xlu1 %v6184_v41, %s6328_s25 }
0x2dac   :  { %2977 = vrot.lane.b32.xlu1 %v6178_v42, %s6329_s26 }
0x2e16   :  { %v2972_v45 = vpop.permute.xlu1 %2971 }
0x2e17   :  { %v2974_v46 = vmul.f32 %v2972_v45, %v2969_v2 }
0x2e1e   :  { %v2978_v52 = vpop.permute.xlu1 %2977 }
0x2e1f   :  { %v2980_v47 = vmul.f32 %v2978_v52, %v2956_v36 }
0x2e21   :  { %v2981_v48 = vadd.f32 %v2980_v47, %v2974_v46 }
0x2e23   :  { %v3017_v57 = vpack.c.bf16 %v2981_v48, %v2981_v48  ;;  %v2982_v49 = vperm.slane %v2981_v48, 0 }
0x2e25   :  { %3023 = vrot.lane.b32.xlu2 %v3017_v57, %s6328_s25 }
0x2e2d   :  { %2984 = vrot.lane.b32.xlu2 %v2982_v49, %s6328_s25 }
0x2e7f   :  { %v3024_v50 = vpop.permute.xlu2 %3023 }
0x2e80   :  { %5464 = vmatmul.msk.bf16.vlgmr.msra.gmra.mxu2 %vm72_vm0, %v3024_v50 }
0x2e87   :  { %v2985_v51 = vpop.permute.xlu2 %2984 }
0x2e88   :  { %v2987_v53 = vmul.f32 %v2985_v51, %v6889_v30 }
0x2e8a   :  { %v2988_v61 = vsel %vm72_vm0, %v2987_v53, 0.0 }
0x2e8b   :  { %2989 = vadd.xlane.f32.xlu0 %v2988_v61 }
0x2e9f   :  { %3119 = vrot.lane.b32.xlu0 %v2981_v48, %s6328_s25 }
0x2efe   :  { %v2990_v54 = vpop.xlane.xlu0 %2989 }
0x2eff   :  { %v2991_v55 = vsel %vm6891_vm5, %v2990_v54, -1e+30  ;;  %v6330_v54 = vmov 0.0  }
0x2f00   :  { %v2992_v56 = vrot.slane %v2991_v55, 4 }
0x2f02   :  { %v2993_v58 = vmax.f32 %v2991_v55, %v2992_v56 }
0x2f03   :  { %v3049_v3 = vpop.f32.mrf.mxu2 }
0x2f04   :  { %v2994_v59 = vrot.slane %v2993_v58, 2 }
0x2f06   :  { %v2995_v15 = vmax.f32 %v2993_v58, %v2994_v59 }
0x2f08   :  { %v2996_v60 = vrot.slane %v2995_v15, 1 }
0x2f0a   :  { %v2997_v62 = vmax.f32 %v2995_v15, %v2996_v60 }
0x2f0b   :  { %v3051_v63 = vpop.f32.mrf.mxu2 }
0x2f0c   :  { %v2998_v0 = vsub.f32 %v2991_v55, %v2997_v62 }
0x2f0e   :  { %v2999_v1 = vmul.f32 1.442695, %v2998_v0 }
0x2f10   :  { %6185 = vpow2.f32 %v2999_v1 }
0x2f11   :  { %v3120_v4 = vpop.permute.xlu0 %3119 }
0x2f12   :  { %3122 = vst.msk [vmem:[#allocation3] sm:$0x1] %vm1496_vm7, %v3120_v4 }
0x2f16   :  { %v6186_v5 = vpop.eup %6185 }
0x2f17   :  { %v3001_v6 = vrot.slane %v6186_v5, 4 }
0x2f19   :  { %v3002_v7 = vadd.f32 %v6186_v5, %v3001_v6 }
0x2f1b   :  { %v3003_v9 = vrot.slane %v3002_v7, 2 }
0x2f1d   :  { %v3004_v11 = vadd.f32 %v3003_v9, %v3002_v7 }
0x2f1f   :  { %v3005_v13 = vrot.slane %v3004_v11, 1 }
0x2f21   :  { %v3006_v16 = vadd.f32 %v3005_v13, %v3004_v11 }
0x2f23   :  { %6187 = vrcp.f32 %v3006_v16 }
0x2f29   :  { %v6188_v18 = vpop.eup %6187 }
0x2f2a   :  { %v3008_v19 = vmul.f32 %v6188_v18, %v6186_v5 }
0x2f2c   :  { %v3009_v20 = vmul.f32 %v3008_v19, %v6908_v38 }
0x2f2e   :  { %v3010_v21 = vsel %vm72_vm0, %v3009_v20, 0.0 }
0x2f2f   :  { %v3011_v22 = vrot.slane %v3010_v21, 4 }
0x2f31   :  { %v3012_v23 = vadd.f32 %v3011_v22, %v3010_v21 }
0x2f33   :  { %v3013_v24 = vrot.slane %v3012_v23, 2 }
0x2f35   :  { %v3014_v25 = vadd.f32 %v3013_v24, %v3012_v23 }
0x2f37   :  { %v3015_v26 = vrot.slane %v3014_v25, 1 }
0x2f39   :  { %v3016_v27 = vadd.f32 %v3015_v26, %v3014_v25 }
0x2f3b   :  { %v3050_v29 = vadd.f32 %v3049_v3, %v3016_v27 }
0x2f3d   :  { %v3054_v10 = vadd.f32 %v3053_v28, %v3050_v29 }
0x2f3f   :  { %6189 = vtanh.f32 %v3054_v10 }
0x2f45   :  { %v6190_v32 = vpop.eup %6189 }
0x2f46   :  { %v3056_v33 = vpack.c.bf16 %v6190_v32, %v6190_v32 }
0x2f48   :  { %5473 = vmatmul.msk.bf16.vlgmr.msra.gmra.mxu3 %vm72_vm0, %v3056_v33 }
0x2fcb   :  { %v3086_v36 = vpop.f32.mrf.mxu3 }
0x2fcc   :  { %v3087_v37 = vadd.f32 %v3086_v36, %v3061_v34 }
0x2fce   :  { %v3091_v39 = vsel %vm1802_vm15, %v3087_v37, -1e+30 }
0x2fcf   :  { %v3093_v40 = vsel %vm1501_vm8, %v3091_v39, -inf }
0x2fd0   :  { %3094 = vmax.xlane.f32.xlu1 %v3093_v40 }
0x2fd3   :  { %v3088_v41 = vpop.f32.mrf.mxu3 }
0x3043   :  { %v3095_v42 = vpop.xlane.xlu1 %3094 }
0x3044   :  { %vm3096_vm1 = vcmp.eq.f32.partialorder %v3091_v39, %v3095_v42 }
0x3045   :  { %v3097_v43 = vsel %vm3096_vm1, %v6471_v12, 128 }
0x3046   :  { %v3098_v44 = vsel %vm1501_vm8, %v3097_v43, 2147483647 }
0x3047   :  { %v3100_v45 = vshra.s32 %v3098_v44, 16  ;;  %v3099_v52 = vand.u32 65535, %v3098_v44 }
0x3049   :  { %v3102_v2 = vcvt.s32.f32 %v3100_v45  ;;  %v3101_v47 = vcvt.s32.f32 %v3099_v52 }
0x304b   :  { %3103 = vmin.xlane.f32.xlu2 %v3102_v2 }
0x30be   :  { %v3104_v46 = vpop.xlane.xlu2 %3103 }
0x30bf   :  { %vm3105_vm2 = vcmp.eq.f32.partialorder %v3102_v2, %v3104_v46  ;;  %v3110_v57 = vcvt.f32.s32 %v3104_v46 }
0x30c0   :  { %v3106_v48 = vsel %vm3105_vm2, %v3101_v47, inf }
0x30c1   :  { %3107 = vmin.xlane.f32.xlu2 %v3106_v48  ;;  %v3111_v50 = vshll.u32 %v3110_v57, 16 }
0x3134   :  { %v3108_v49 = vpop.xlane.xlu2 %3107 }
0x3135   :  { %v3109_v51 = vcvt.f32.s32 %v3108_v49 }
0x3137   :  { %v3112_v53 = vadd.s32 %v3111_v50, %v3109_v51 }
0x3139   :  { %vm3113_vm3 = vcmp.eq.s32.totalorder %v6471_v12, %v3112_v53  ;;  %v3123_v61 = vrot.slane %v3112_v53, 4 }
0x313a   :  { %v3114_v55 = vsel %vm3113_vm3, 1.0, %v6330_v54 }
0x313b   :  { %v3115_v56 = vpack.c.bf16 %v3114_v55, %v3114_v55  ;;  %vm3124_vm4 = vcmp.lt.s32.totalorder %v3112_v53, %v3123_v61 }
0x313c   :  { %v3125_v58 = vsel %vm3124_vm4, %v3112_v53, %v3123_v61 }
0x313d   :  { %v3116_v3 = vsel %vm6901_vm10, %v3115_v56, %v7253_v8  ;;  %v3126_v59 = vrot.slane %v3125_v58, 2 }
0x313e   :  { %3117 = vst [vmem:[#allocation4] sm:$0x1] %v3116_v3 }
0x313f   :  { %vm3127_vm6 = vcmp.lt.s32.totalorder %v3125_v58, %v3126_v59 }
0x3140   :  { %v3128_v15 = vsel %vm3127_vm6, %v3125_v58, %v3126_v59 }
0x3141   :  { %v3129_v60 = vrot.slane %v3128_v15, 1 }
0x3143   :  { %vm3130_vm9 = vcmp.lt.s32.totalorder %v3128_v15, %v3129_v60 }
0x3144   :  { %v3131_v62 = vsel %vm3130_vm9, %v3128_v15, %v3129_v60 }
0x3145   :  { %6009 = vpush %v3131_v62 }
0x3176   :  { %s6010_s19 = spop %6009 }
0x3177   :  { %3135 = sst [smem:[%s3134_s22]] %s6010_s19  ;;  %p3138_p10 = scmp.eq.s32.totalorder %s6010_s19, 2 }
0x3179   :  { %s3139_s23 = scalar_select %p3138_p10, 1, 0 }
0x317b   :  { %3140 = sst [smem:[#allocation6]] %s3139_s23 }
0x317c PF:  { %s3141_s24 = sld [smem:[#allocation6]] }
0x3182   :  { %p5474_p11 = scmp.ne.s32.totalorder %s3141_s24, 0 }
0x3183   :  { %s6331_s25 = smov (!%p5474_p11), 64   ;;  %s6332_s28 = smov (!%p5474_p11), 96  }
0x3184   :  { %3145 = sbr.rel (%p5474_p11) target bundleno = 14042 (0x36da), region = 121  ;;  %s6333_s1 = smov (!%p5474_p11), 32  }
0x3185   :  { %s3455_s22 = sld [smem:[#allocation5]] (!%p5474_p11) }
0x3189   :  { %v5938_v8 = vld [vmem:[%s7690_s6 + $0x38] sm:$0xff]  ;;  %v5940_v63 = vld [vmem:[%s7691_s7 + $0x8] sm:$0xff]  ;;  %v5937_v0 = vld [vmem:[%s7690_s6 + $0x30] sm:$0xff] }
0x318a   :  { %3213 = vmatpush.bf16.msra.mxu0 %v5938_v8  ;;  %3253 = vmatpush.bf16.msra.mxu1 %v5940_v63  ;;  %v5939_v1 = vld [vmem:[%s7691_s7] sm:$0xff]  ;;  %v3146_v4 = vld [vmem:[#allocation3] sm:$0x1]  ;;  %v5934_v9 = vld [vmem:[%s7690_s6 + $0x18] sm:$0xff] }
0x318b   :  { %v3226_v5 = vpack.c.bf16 %v3146_v4, %v3146_v4  ;;  %v5936_v6 = vld [vmem:[%s7690_s6 + $0x28] sm:$0xff]  ;;  %v5935_v7 = vld [vmem:[%s7690_s6 + $0x20] sm:$0xff]  ;;  %v5933_v11 = vld [vmem:[%s7690_s6 + $0x10] sm:$0xff]  ;;  %s3458_s23 = sadd.s32 1, %s3455_s22  ;;  %s3456_s3 = scalar_lea.smem [#allocation11], %s3455_s22 }
0x318c   :  { %v5932_v13 = vld [vmem:[%s7690_s6 + $0x8] sm:$0xff]  ;;  %v5931_v14 = vld [vmem:[%s7690_s6] sm:$0xff]  ;;  %3459 = sst [smem:[#allocation5]] %s3458_s23 }
0x318d   :  { %v7329_v16 = vld [vmem:[#allocation4] sm:$0x1]  ;;  %v3231_v17 = vld [vmem:[%s7693_s9] sm:$0x1]  ;;  %v6191_v52 = vld [vmem:[#allocation3] ss:$0 sm:$0xff] }
0x318e   :  { %3214 = vmatpush.bf16.msra.mxu0 %v5937_v0  ;;  %3254 = vmatpush.bf16.msra.mxu1 %v5939_v1  ;;  %v3164_v23 = vld [vmem:[%s7692_s8] sm:$0x1]  ;;  %v5942_v46 = vld [vmem:[%s7694_s10 + $0x8] sm:$0xff] }
0x318f   :  { %3368 = vmatpush.bf16.msra.mxu2 %v5942_v46  ;;  %v5941_v47 = vld [vmem:[%s7694_s10] sm:$0xff] }
0x3191   :  { %5515 = vmatmul.msk.bf16.vlgmr.msra.gmra.mxu1 %vm72_vm0, %v3226_v5 }
0x3192   :  { %3215 = vmatpush.bf16.msra.mxu0 %v5936_v6 }
0x3193   :  { %3369 = vmatpush.bf16.msra.mxu2 %v5941_v47 }
0x3196   :  { %3216 = vmatpush.bf16.msra.mxu0 %v5935_v7 }
0x319a   :  { %3217 = vmatpush.bf16.msra.mxu0 %v5934_v9 }
0x319e   :  { %3218 = vmatpush.bf16.msra.mxu0 %v5933_v11 }
0x31a2   :  { %3219 = vmatpush.bf16.msra.mxu0 %v5932_v13 }
0x31a6   :  { %3220 = vmatpush.bf16.msra.mxu0 %v5931_v14 }
0x31a9   :  { %3221 = vmatmul.bf16.vlgmr.msra.gmra.mxu0 %v7329_v16 }
0x320e   :  { %v3256_v18 = vpop.f32.mrf.mxu1 }
0x320f   :  { %v3257_v19 = vadd.f32 %v3256_v18, %v3231_v17 }
0x3211   :  { %3281 = vrot.lane.b32.xlu0 %v3257_v19, %s6331_s25 }
0x3216   :  { %v3258_v20 = vpop.f32.mrf.mxu1 }
0x3217   :  { %v5944_v20 = vld [vmem:[%s7697_s13 + $0x8] sm:$0xff] }
0x3218   :  { %3405 = vmatpush.bf16.msra.mxu3 %v5944_v20 }
0x3226   :  { %v3222_v21 = vpop.f32.mrf.mxu0 }
0x3227   :  { %v3223_v24 = vadd.f32 %v3222_v21, %v3164_v23 }
0x3229   :  { %v3260_v25 = vadd.f32 %v3257_v19, %v3223_v24 }
0x322b   :  { %v5516_v26 = vmul.f32 -1.442695, %v3260_v25 }
0x322d   :  { %6192 = vpow2.f32 %v5516_v26 }
0x322e   :  { %v3224_v22 = vpop.f32.mrf.mxu0 }
0x322f   :  { %v5943_v22 = vld [vmem:[%s7697_s13] sm:$0xff] }
0x3230   :  { %3406 = vmatpush.bf16.msra.mxu3 %v5943_v22 }
0x3233   :  { %v6193_v27 = vpop.eup %6192 }
0x3234   :  { %v3264_v28 = vadd.f32 1.0, %v6193_v27 }
0x3236   :  { %6194 = vrcp.f32 %v3264_v28  ;;  %v3276_v36 = vand.u32 2147483648, %v3264_v28  ;;  %vm3270_vm12 = vweird.f32 %v3264_v28  ;;  %v3274_v37 = vand.u32 2147483647, %v3264_v28 }
0x3238   :  { %v3277_v40 = vor.u32 1.1754944e-38, %v3276_v36  ;;  %vm3275_vm14 = vcmp.eq.f32.partialorder %v3274_v37, 8.507059e+37 }
0x323c   :  { %v6195_v29 = vpop.eup %6194 }
0x323d   :  { %v3266_v10 = vmul.f32 %v6195_v29, %v3264_v28  ;;  %vm3271_vm11 = vweird.f32 %v6195_v29 }
0x323e   :  { %vm3272_vm13 = vmor %vm3270_vm12, %vm3271_vm11 }
0x323f   :  { %v3267_v32 = vsub.f32 1.0, %v3266_v10 }
0x3241   :  { %v3268_v33 = vmul.f32 %v6195_v29, %v3267_v32 }
0x3243   :  { %v3269_v34 = vadd.f32 %v6195_v29, %v3268_v33 }
0x3245   :  { %v3273_v39 = vsel %vm3272_vm13, %v6195_v29, %v3269_v34  ;;  %v3375_v34 = vld [vmem:[%s7696_s12] sm:$0x1] }
0x3246   :  { %v3278_v42 = vsel %vm3275_vm14, %v3277_v40, %v3273_v39 }
0x3247   :  { %v3291_v57 = vsub.f32 1.0, %v3278_v42 }
0x3283   :  { %v3282_v41 = vpop.permute.xlu0 %3281 }
0x3284   :  { %v3284_v43 = vmul.f32 %v3282_v41, %v3278_v42  ;;  %v3383_v41 = vld [vmem:[%s7698_s14] sm:$0x1] }
0x3286   :  { %3286 = vrot.lane.b32.xlu0 %v3284_v43, %s6331_s25 }
0x32f8   :  { %v3287_v44 = vpop.permute.xlu0 %3286 }
0x32f9   :  { %v3289_v45 = vadd.f32 %v3287_v44, %v3223_v24 }
0x32fb   :  { %6196 = vtanh.f32 %v3289_v45 }
0x3301   :  { %v6197_v2 = vpop.eup %6196 }
0x3302   :  { %3293 = vrot.lane.b32.xlu1 %v6197_v2, %s6332_s28 }
0x330a   :  { %3299 = vrot.lane.b32.xlu1 %v6191_v52, %s6333_s1 }
0x3374   :  { %v3294_v48 = vpop.permute.xlu1 %3293 }
0x3375   :  { %v3296_v50 = vmul.f32 %v3294_v48, %v3291_v57 }
0x337c   :  { %v3300_v49 = vpop.permute.xlu1 %3299 }
0x337d   :  { %v3302_v51 = vmul.f32 %v3300_v49, %v3278_v42 }
0x337f   :  { %v3303_v53 = vadd.f32 %v3302_v51, %v3296_v50 }
0x3381   :  { %v3339_v61 = vpack.c.bf16 %v3303_v53, %v3303_v53  ;;  %v3304_v54 = vperm.slane %v3303_v53, 0 }
0x3383   :  { %3345 = vrot.lane.b32.xlu2 %v3339_v61, %s6332_s28 }
0x338b   :  { %3306 = vrot.lane.b32.xlu2 %v3304_v54, %s6332_s28 }
0x33dd   :  { %v3346_v55 = vpop.permute.xlu2 %3345 }
0x33de   :  { %5525 = vmatmul.msk.bf16.vlgmr.msra.gmra.mxu2 %vm72_vm0, %v3346_v55 }
0x33e5   :  { %v3307_v56 = vpop.permute.xlu2 %3306 }
0x33e6   :  { %v3309_v58 = vmul.f32 %v3307_v56, %v6889_v30 }
0x33e8   :  { %v3310_v3 = vsel %vm72_vm0, %v3309_v58, 0.0 }
0x33e9   :  { %3311 = vadd.xlane.f32.xlu0 %v3310_v3 }
0x33fd   :  { %3441 = vrot.lane.b32.xlu0 %v3303_v53, %s6332_s28 }
0x345c   :  { %v3312_v59 = vpop.xlane.xlu0 %3311 }
0x345d   :  { %v3313_v15 = vsel %vm6891_vm5, %v3312_v59, -1e+30  ;;  %v6334_v59 = vmov 0.0  }
0x345e   :  { %v3314_v60 = vrot.slane %v3313_v15, 4 }
0x3460   :  { %v3315_v62 = vmax.f32 %v3313_v15, %v3314_v60 }
0x3461   :  { %v3371_v8 = vpop.f32.mrf.mxu2 }
0x3462   :  { %v3316_v63 = vrot.slane %v3315_v62, 2 }
0x3464   :  { %v3317_v0 = vmax.f32 %v3315_v62, %v3316_v63 }
0x3466   :  { %v3318_v1 = vrot.slane %v3317_v0, 1 }
0x3468   :  { %v3319_v4 = vmax.f32 %v3317_v0, %v3318_v1 }
0x3469   :  { %v3373_v5 = vpop.f32.mrf.mxu2 }
0x346a   :  { %v3320_v6 = vsub.f32 %v3313_v15, %v3319_v4 }
0x346c   :  { %v3321_v7 = vmul.f32 1.442695, %v3320_v6 }
0x346e   :  { %6198 = vpow2.f32 %v3321_v7 }
0x346f   :  { %v3442_v9 = vpop.permute.xlu0 %3441 }
0x3470   :  { %3444 = vst.msk [vmem:[#allocation3] sm:$0x1] %vm1496_vm7, %v3442_v9 }
0x3474   :  { %v6199_v11 = vpop.eup %6198 }
0x3475   :  { %v3323_v13 = vrot.slane %v6199_v11, 4 }
0x3477   :  { %v3324_v14 = vadd.f32 %v6199_v11, %v3323_v13 }
0x3479   :  { %v3325_v17 = vrot.slane %v3324_v14, 2 }
0x347b   :  { %v3326_v18 = vadd.f32 %v3325_v17, %v3324_v14 }
0x347d   :  { %v3327_v19 = vrot.slane %v3326_v18, 1 }
0x347f   :  { %v3328_v21 = vadd.f32 %v3327_v19, %v3326_v18 }
0x3481   :  { %6200 = vrcp.f32 %v3328_v21 }
0x3487   :  { %v6201_v23 = vpop.eup %6200 }
0x3488   :  { %v3330_v24 = vmul.f32 %v6201_v23, %v6199_v11 }
0x348a   :  { %v3331_v25 = vmul.f32 %v3330_v24, %v6908_v38 }
0x348c   :  { %v3332_v26 = vsel %vm72_vm0, %v3331_v25, 0.0 }
0x348d   :  { %v3333_v27 = vrot.slane %v3332_v26, 4 }
0x348f   :  { %v3334_v28 = vadd.f32 %v3333_v27, %v3332_v26 }
0x3491   :  { %v3335_v29 = vrot.slane %v3334_v28, 2 }
0x3493   :  { %v3336_v10 = vadd.f32 %v3335_v29, %v3334_v28 }
0x3495   :  { %v3337_v32 = vrot.slane %v3336_v10, 1 }
0x3497   :  { %v3338_v33 = vadd.f32 %v3337_v32, %v3336_v10 }
0x3499   :  { %v3372_v36 = vadd.f32 %v3371_v8, %v3338_v33 }
0x349b   :  { %v3376_v37 = vadd.f32 %v3375_v34, %v3372_v36 }
0x349d   :  { %6202 = vtanh.f32 %v3376_v37 }
0x34a3   :  { %v6203_v39 = vpop.eup %6202 }
0x34a4   :  { %v3378_v40 = vpack.c.bf16 %v6203_v39, %v6203_v39 }
0x34a6   :  { %5534 = vmatmul.msk.bf16.vlgmr.msra.gmra.mxu3 %vm72_vm0, %v3378_v40 }
0x3529   :  { %v3408_v42 = vpop.f32.mrf.mxu3 }
0x352a   :  { %v3409_v43 = vadd.f32 %v3408_v42, %v3383_v41 }
0x352c   :  { %v3413_v44 = vsel %vm1802_vm15, %v3409_v43, -1e+30 }
0x352d   :  { %v3415_v45 = vsel %vm1501_vm8, %v3413_v44, -inf }
0x352e   :  { %3416 = vmax.xlane.f32.xlu1 %v3415_v45 }
0x3531   :  { %v3410_v2 = vpop.f32.mrf.mxu3 }
0x35a1   :  { %v3417_v52 = vpop.xlane.xlu1 %3416 }
0x35a2   :  { %vm3418_vm1 = vcmp.eq.f32.partialorder %v3413_v44, %v3417_v52 }
0x35a3   :  { %v3419_v46 = vsel %vm3418_vm1, %v6471_v12, 128 }
0x35a4   :  { %v3420_v47 = vsel %vm1501_vm8, %v3419_v46, 2147483647 }
0x35a5   :  { %v3422_v48 = vshra.s32 %v3420_v47, 16  ;;  %v3421_v49 = vand.u32 65535, %v3420_v47 }
0x35a7   :  { %v3424_v57 = vcvt.s32.f32 %v3422_v48  ;;  %v3423_v51 = vcvt.s32.f32 %v3421_v49 }
0x35a9   :  { %3425 = vmin.xlane.f32.xlu2 %v3424_v57 }
0x361c   :  { %v3426_v50 = vpop.xlane.xlu2 %3425 }
0x361d   :  { %vm3427_vm2 = vcmp.eq.f32.partialorder %v3424_v57, %v3426_v50  ;;  %v3432_v61 = vcvt.f32.s32 %v3426_v50 }
0x361e   :  { %v3428_v53 = vsel %vm3427_vm2, %v3423_v51, inf }
0x361f   :  { %3429 = vmin.xlane.f32.xlu2 %v3428_v53  ;;  %v3433_v55 = vshll.u32 %v3432_v61, 16 }
0x3692   :  { %v3430_v54 = vpop.xlane.xlu2 %3429 }
0x3693   :  { %v3431_v56 = vcvt.f32.s32 %v3430_v54 }
0x3695   :  { %v3434_v58 = vadd.s32 %v3433_v55, %v3431_v56 }
0x3697   :  { %vm3435_vm3 = vcmp.eq.s32.totalorder %v6471_v12, %v3434_v58  ;;  %v3445_v3 = vrot.slane %v3434_v58, 4 }
0x3698   :  { %v3436_v15 = vsel %vm3435_vm3, 1.0, %v6334_v59 }
0x3699   :  { %v3437_v60 = vpack.c.bf16 %v3436_v15, %v3436_v15  ;;  %vm3446_vm4 = vcmp.lt.s32.totalorder %v3434_v58, %v3445_v3 }
0x369a   :  { %v3447_v62 = vsel %vm3446_vm4, %v3434_v58, %v3445_v3 }
0x369b   :  { %v3438_v8 = vsel %vm6901_vm10, %v3437_v60, %v7329_v16  ;;  %v3448_v63 = vrot.slane %v3447_v62, 2 }
0x369c   :  { %3439 = vst [vmem:[#allocation4] sm:$0x1] %v3438_v8 }
0x369d   :  { %vm3449_vm6 = vcmp.lt.s32.totalorder %v3447_v62, %v3448_v63 }
0x369e   :  { %v3450_v0 = vsel %vm3449_vm6, %v3447_v62, %v3448_v63 }
0x369f   :  { %v3451_v1 = vrot.slane %v3450_v0, 1 }
0x36a1   :  { %vm3452_vm9 = vcmp.lt.s32.totalorder %v3450_v0, %v3451_v1 }
0x36a2   :  { %v3453_v4 = vsel %vm3452_vm9, %v3450_v0, %v3451_v1 }
0x36a3   :  { %6011 = vpush %v3453_v4 }
0x36d4   :  { %s6012_s24 = spop %6011 }
0x36d5   :  { %3457 = sst [smem:[%s3456_s3]] %s6012_s24  ;;  %p3460_p12 = scmp.eq.s32.totalorder %s6012_s24, 2 }
0x36d7   :  { %s3461_s25 = scalar_select %p3460_p12, 1, 0 }
0x36d9   :  { %3462 = sst [smem:[#allocation6]] %s3461_s25 }
0x36da PF:  { %s3463_s26 = sld [smem:[#allocation6]] }
0x36e0   :  { %p5535_p13 = scmp.ne.s32.totalorder %s3463_s26, 0 }
0x36e1   :  { %s6335_s28 = smov (!%p5535_p13), 64   ;;  %s6336_s29 = smov (!%p5535_p13), 96  }
0x36e2   :  { %3467 = sbr.rel (%p5535_p13) target bundleno = 15416 (0x3c38), region = 125  ;;  %s6337_s2 = smov (!%p5535_p13), 32  }
0x36e3   :  { %s3777_s3 = sld [smem:[#allocation5]] (!%p5535_p13) }
0x36e7   :  { %v5952_v16 = vld [vmem:[%s7690_s6 + $0x38] sm:$0xff]  ;;  %v5954_v5 = vld [vmem:[%s7691_s7 + $0x8] sm:$0xff]  ;;  %v5951_v6 = vld [vmem:[%s7690_s6 + $0x30] sm:$0xff] }
0x36e8   :  { %3535 = vmatpush.bf16.msra.mxu0 %v5952_v16  ;;  %3575 = vmatpush.bf16.msra.mxu1 %v5954_v5  ;;  %v5953_v7 = vld [vmem:[%s7691_s7] sm:$0xff]  ;;  %v3468_v9 = vld [vmem:[#allocation3] sm:$0x1]  ;;  %v5948_v17 = vld [vmem:[%s7690_s6 + $0x18] sm:$0xff] }
0x36e9   :  { %v3548_v11 = vpack.c.bf16 %v3468_v9, %v3468_v9  ;;  %v5950_v13 = vld [vmem:[%s7690_s6 + $0x28] sm:$0xff]  ;;  %v5949_v14 = vld [vmem:[%s7690_s6 + $0x20] sm:$0xff]  ;;  %v5947_v18 = vld [vmem:[%s7690_s6 + $0x10] sm:$0xff]  ;;  %s3780_s25 = sadd.s32 1, %s3777_s3  ;;  %s3778_s27 = scalar_lea.smem [#allocation11], %s3777_s3 }
0x36ea   :  { %v5946_v19 = vld [vmem:[%s7690_s6 + $0x8] sm:$0xff]  ;;  %v5945_v20 = vld [vmem:[%s7690_s6] sm:$0xff]  ;;  %3781 = sst [smem:[#allocation5]] %s3780_s25 }
0x36eb   :  { %v7405_v21 = vld [vmem:[#allocation4] sm:$0x1]  ;;  %v3553_v22 = vld [vmem:[%s7693_s9] sm:$0x1]  ;;  %v6204_v49 = vld [vmem:[#allocation3] ss:$0 sm:$0xff] }
0x36ec   :  { %3536 = vmatpush.bf16.msra.mxu0 %v5951_v6  ;;  %3576 = vmatpush.bf16.msra.mxu1 %v5953_v7  ;;  %v3486_v28 = vld [vmem:[%s7692_s8] sm:$0x1]  ;;  %v5956_v50 = vld [vmem:[%s7694_s10 + $0x8] sm:$0xff] }
0x36ed   :  { %3690 = vmatpush.bf16.msra.mxu2 %v5956_v50  ;;  %v5955_v51 = vld [vmem:[%s7694_s10] sm:$0xff] }
0x36ef   :  { %5576 = vmatmul.msk.bf16.vlgmr.msra.gmra.mxu1 %vm72_vm0, %v3548_v11 }
0x36f0   :  { %3537 = vmatpush.bf16.msra.mxu0 %v5950_v13 }
0x36f1   :  { %3691 = vmatpush.bf16.msra.mxu2 %v5955_v51 }
0x36f4   :  { %3538 = vmatpush.bf16.msra.mxu0 %v5949_v14 }
0x36f8   :  { %3539 = vmatpush.bf16.msra.mxu0 %v5948_v17 }
0x36fc   :  { %3540 = vmatpush.bf16.msra.mxu0 %v5947_v18 }
0x3700   :  { %3541 = vmatpush.bf16.msra.mxu0 %v5946_v19 }
0x3704   :  { %3542 = vmatpush.bf16.msra.mxu0 %v5945_v20 }
0x3707   :  { %3543 = vmatmul.bf16.vlgmr.msra.gmra.mxu0 %v7405_v21 }
0x376c   :  { %v3578_v23 = vpop.f32.mrf.mxu1 }
0x376d   :  { %v3579_v24 = vadd.f32 %v3578_v23, %v3553_v22 }
0x376f   :  { %3603 = vrot.lane.b32.xlu0 %v3579_v24, %s6335_s28 }
0x3774   :  { %v3580_v25 = vpop.f32.mrf.mxu1 }
0x3775   :  { %v5958_v25 = vld [vmem:[%s7697_s13 + $0x8] sm:$0xff] }
0x3776   :  { %3727 = vmatpush.bf16.msra.mxu3 %v5958_v25 }
0x3784   :  { %v3544_v26 = vpop.f32.mrf.mxu0 }
0x3785   :  { %v3545_v29 = vadd.f32 %v3544_v26, %v3486_v28 }
0x3787   :  { %v3582_v10 = vadd.f32 %v3579_v24, %v3545_v29 }
0x3789   :  { %v5577_v32 = vmul.f32 -1.442695, %v3582_v10 }
0x378b   :  { %6205 = vpow2.f32 %v5577_v32 }
0x378c   :  { %v3546_v27 = vpop.f32.mrf.mxu0 }
0x378d   :  { %v5957_v27 = vld [vmem:[%s7697_s13] sm:$0xff] }
0x378e   :  { %3728 = vmatpush.bf16.msra.mxu3 %v5957_v27 }
0x3791   :  { %v6206_v33 = vpop.eup %6205 }
0x3792   :  { %v3586_v34 = vadd.f32 1.0, %v6206_v33 }
0x3794   :  { %6207 = vrcp.f32 %v3586_v34  ;;  %v3598_v42 = vand.u32 2147483648, %v3586_v34  ;;  %vm3592_vm12 = vweird.f32 %v3586_v34  ;;  %v3596_v43 = vand.u32 2147483647, %v3586_v34 }
0x3796   :  { %v3599_v45 = vor.u32 1.1754944e-38, %v3598_v42  ;;  %vm3597_vm14 = vcmp.eq.f32.partialorder %v3596_v43, 8.507059e+37 }
0x379a   :  { %v6208_v36 = vpop.eup %6207 }
0x379b   :  { %v3588_v37 = vmul.f32 %v6208_v36, %v3586_v34  ;;  %vm3593_vm11 = vweird.f32 %v6208_v36 }
0x379c   :  { %vm3594_vm13 = vmor %vm3592_vm12, %vm3593_vm11 }
0x379d   :  { %v3589_v39 = vsub.f32 1.0, %v3588_v37 }
0x379f   :  { %v3590_v40 = vmul.f32 %v6208_v36, %v3589_v39 }
0x37a1   :  { %v3591_v41 = vadd.f32 %v6208_v36, %v3590_v40 }
0x37a3   :  { %v3595_v44 = vsel %vm3594_vm13, %v6208_v36, %v3591_v41  ;;  %v3697_v41 = vld [vmem:[%s7696_s12] sm:$0x1] }
0x37a4   :  { %v3600_v52 = vsel %vm3597_vm14, %v3599_v45, %v3595_v44 }
0x37a5   :  { %v3613_v61 = vsub.f32 1.0, %v3600_v52 }
0x37e1   :  { %v3604_v2 = vpop.permute.xlu0 %3603 }
0x37e2   :  { %v3606_v46 = vmul.f32 %v3604_v2, %v3600_v52  ;;  %v3705_v2 = vld [vmem:[%s7698_s14] sm:$0x1] }
0x37e4   :  { %3608 = vrot.lane.b32.xlu0 %v3606_v46, %s6335_s28 }
0x3856   :  { %v3609_v47 = vpop.permute.xlu0 %3608 }
0x3857   :  { %v3611_v48 = vadd.f32 %v3609_v47, %v3545_v29 }
0x3859   :  { %6209 = vtanh.f32 %v3611_v48 }
0x385f   :  { %v6210_v57 = vpop.eup %6209 }
0x3860   :  { %3615 = vrot.lane.b32.xlu1 %v6210_v57, %s6336_s29 }
0x3868   :  { %3621 = vrot.lane.b32.xlu1 %v6204_v49, %s6337_s2 }
0x38d2   :  { %v3616_v53 = vpop.permute.xlu1 %3615 }
0x38d3   :  { %v3618_v55 = vmul.f32 %v3616_v53, %v3613_v61 }
0x38da   :  { %v3622_v54 = vpop.permute.xlu1 %3621 }
0x38db   :  { %v3624_v56 = vmul.f32 %v3622_v54, %v3600_v52 }
0x38dd   :  { %v3625_v58 = vadd.f32 %v3624_v56, %v3618_v55 }
0x38df   :  { %v3661_v3 = vpack.c.bf16 %v3625_v58, %v3625_v58  ;;  %v3626_v59 = vperm.slane %v3625_v58, 0 }
0x38e1   :  { %3667 = vrot.lane.b32.xlu2 %v3661_v3, %s6336_s29 }
0x38e9   :  { %3628 = vrot.lane.b32.xlu2 %v3626_v59, %s6336_s29 }
0x393b   :  { %v3668_v15 = vpop.permute.xlu2 %3667 }
0x393c   :  { %5586 = vmatmul.msk.bf16.vlgmr.msra.gmra.mxu2 %vm72_vm0, %v3668_v15 }
0x3943   :  { %v3629_v60 = vpop.permute.xlu2 %3628 }
0x3944   :  { %v3631_v62 = vmul.f32 %v3629_v60, %v6889_v30 }
0x3946   :  { %v3632_v8 = vsel %vm72_vm0, %v3631_v62, 0.0 }
0x3947   :  { %3633 = vadd.xlane.f32.xlu0 %v3632_v8 }
0x395b   :  { %3763 = vrot.lane.b32.xlu0 %v3625_v58, %s6336_s29 }
0x39ba   :  { %v3634_v63 = vpop.xlane.xlu0 %3633 }
0x39bb   :  { %v3635_v0 = vsel %vm6891_vm5, %v3634_v63, -1e+30  ;;  %v6338_v63 = vmov 0.0  }
0x39bc   :  { %v3636_v1 = vrot.slane %v3635_v0, 4 }
0x39be   :  { %v3637_v4 = vmax.f32 %v3635_v0, %v3636_v1 }
0x39bf   :  { %v3693_v16 = vpop.f32.mrf.mxu2 }
0x39c0   :  { %v3638_v5 = vrot.slane %v3637_v4, 2 }
0x39c2   :  { %v3639_v6 = vmax.f32 %v3637_v4, %v3638_v5 }
0x39c4   :  { %v3640_v7 = vrot.slane %v3639_v6, 1 }
0x39c6   :  { %v3641_v9 = vmax.f32 %v3639_v6, %v3640_v7 }
0x39c7   :  { %v3695_v11 = vpop.f32.mrf.mxu2 }
0x39c8   :  { %v3642_v13 = vsub.f32 %v3635_v0, %v3641_v9 }
0x39ca   :  { %v3643_v14 = vmul.f32 1.442695, %v3642_v13 }
0x39cc   :  { %6211 = vpow2.f32 %v3643_v14 }
0x39cd   :  { %v3764_v17 = vpop.permute.xlu0 %3763 }
0x39ce   :  { %3766 = vst.msk [vmem:[#allocation3] sm:$0x1] %vm1496_vm7, %v3764_v17 }
0x39d2   :  { %v6212_v18 = vpop.eup %6211 }
0x39d3   :  { %v3645_v19 = vrot.slane %v6212_v18, 4 }
0x39d5   :  { %v3646_v20 = vadd.f32 %v6212_v18, %v3645_v19 }
0x39d7   :  { %v3647_v22 = vrot.slane %v3646_v20, 2 }
0x39d9   :  { %v3648_v23 = vadd.f32 %v3647_v22, %v3646_v20 }
0x39db   :  { %v3649_v24 = vrot.slane %v3648_v23, 1 }
0x39dd   :  { %v3650_v26 = vadd.f32 %v3649_v24, %v3648_v23 }
0x39df   :  { %6213 = vrcp.f32 %v3650_v26 }
0x39e5   :  { %v6214_v28 = vpop.eup %6213 }
0x39e6   :  { %v3652_v29 = vmul.f32 %v6214_v28, %v6212_v18 }
0x39e8   :  { %v3653_v10 = vmul.f32 %v3652_v29, %v6908_v38 }
0x39ea   :  { %v3654_v32 = vsel %vm72_vm0, %v3653_v10, 0.0 }
0x39eb   :  { %v3655_v33 = vrot.slane %v3654_v32, 4 }
0x39ed   :  { %v3656_v34 = vadd.f32 %v3655_v33, %v3654_v32 }
0x39ef   :  { %v3657_v36 = vrot.slane %v3656_v34, 2 }
0x39f1   :  { %v3658_v37 = vadd.f32 %v3657_v36, %v3656_v34 }
0x39f3   :  { %v3659_v39 = vrot.slane %v3658_v37, 1 }
0x39f5   :  { %v3660_v40 = vadd.f32 %v3659_v39, %v3658_v37 }
0x39f7   :  { %v3694_v42 = vadd.f32 %v3693_v16, %v3660_v40 }
0x39f9   :  { %v3698_v43 = vadd.f32 %v3697_v41, %v3694_v42 }
0x39fb   :  { %6215 = vtanh.f32 %v3698_v43 }
0x3a01   :  { %v6216_v44 = vpop.eup %6215 }
0x3a02   :  { %v3700_v45 = vpack.c.bf16 %v6216_v44, %v6216_v44 }
0x3a04   :  { %5595 = vmatmul.msk.bf16.vlgmr.msra.gmra.mxu3 %vm72_vm0, %v3700_v45 }
0x3a87   :  { %v3730_v52 = vpop.f32.mrf.mxu3 }
0x3a88   :  { %v3731_v46 = vadd.f32 %v3730_v52, %v3705_v2 }
0x3a8a   :  { %v3735_v47 = vsel %vm1802_vm15, %v3731_v46, -1e+30 }
0x3a8b   :  { %v3737_v48 = vsel %vm1501_vm8, %v3735_v47, -inf }
0x3a8c   :  { %3738 = vmax.xlane.f32.xlu1 %v3737_v48 }
0x3a8f   :  { %v3732_v57 = vpop.f32.mrf.mxu3 }
0x3aff   :  { %v3739_v49 = vpop.xlane.xlu1 %3738 }
0x3b00   :  { %vm3740_vm1 = vcmp.eq.f32.partialorder %v3735_v47, %v3739_v49 }
0x3b01   :  { %v3741_v50 = vsel %vm3740_vm1, %v6471_v12, 128 }
0x3b02   :  { %v3742_v51 = vsel %vm1501_vm8, %v3741_v50, 2147483647 }
0x3b03   :  { %v3744_v53 = vshra.s32 %v3742_v51, 16  ;;  %v3743_v54 = vand.u32 65535, %v3742_v51 }
0x3b05   :  { %v3746_v61 = vcvt.s32.f32 %v3744_v53  ;;  %v3745_v56 = vcvt.s32.f32 %v3743_v54 }
0x3b07   :  { %3747 = vmin.xlane.f32.xlu2 %v3746_v61 }
0x3b7a   :  { %v3748_v55 = vpop.xlane.xlu2 %3747 }
0x3b7b   :  { %vm3749_vm2 = vcmp.eq.f32.partialorder %v3746_v61, %v3748_v55  ;;  %v3754_v3 = vcvt.f32.s32 %v3748_v55 }
0x3b7c   :  { %v3750_v58 = vsel %vm3749_vm2, %v3745_v56, inf }
0x3b7d   :  { %3751 = vmin.xlane.f32.xlu2 %v3750_v58  ;;  %v3755_v15 = vshll.u32 %v3754_v3, 16 }
0x3bf0   :  { %v3752_v59 = vpop.xlane.xlu2 %3751 }
0x3bf1   :  { %v3753_v60 = vcvt.f32.s32 %v3752_v59 }
0x3bf3   :  { %v3756_v62 = vadd.s32 %v3755_v15, %v3753_v60 }
0x3bf5   :  { %vm3757_vm3 = vcmp.eq.s32.totalorder %v6471_v12, %v3756_v62  ;;  %v3767_v8 = vrot.slane %v3756_v62, 4 }
0x3bf6   :  { %v3758_v0 = vsel %vm3757_vm3, 1.0, %v6338_v63 }
0x3bf7   :  { %v3759_v1 = vpack.c.bf16 %v3758_v0, %v3758_v0  ;;  %vm3768_vm4 = vcmp.lt.s32.totalorder %v3756_v62, %v3767_v8 }
0x3bf8   :  { %v3769_v4 = vsel %vm3768_vm4, %v3756_v62, %v3767_v8 }
0x3bf9   :  { %v3760_v16 = vsel %vm6901_vm10, %v3759_v1, %v7405_v21  ;;  %v3770_v5 = vrot.slane %v3769_v4, 2 }
0x3bfa   :  { %3761 = vst [vmem:[#allocation4] sm:$0x1] %v3760_v16 }
0x3bfb   :  { %vm3771_vm6 = vcmp.lt.s32.totalorder %v3769_v4, %v3770_v5 }
0x3bfc   :  { %v3772_v6 = vsel %vm3771_vm6, %v3769_v4, %v3770_v5 }
0x3bfd   :  { %v3773_v7 = vrot.slane %v3772_v6, 1 }
0x3bff   :  { %vm3774_vm9 = vcmp.lt.s32.totalorder %v3772_v6, %v3773_v7 }
0x3c00   :  { %v3775_v9 = vsel %vm3774_vm9, %v3772_v6, %v3773_v7 }
0x3c01   :  { %6013 = vpush %v3775_v9 }
0x3c32   :  { %s6014_s26 = spop %6013 }
0x3c33   :  { %3779 = sst [smem:[%s3778_s27]] %s6014_s26  ;;  %p3782_p0 = scmp.eq.s32.totalorder %s6014_s26, 2 }
0x3c35   :  { %s3783_s28 = scalar_select %p3782_p0, 1, 0 }
0x3c37   :  { %3784 = sst [smem:[#allocation6]] %s3783_s28 }
0x3c38 PF:  { %s3785_s1 = sld [smem:[#allocation6]] }
0x3c3e   :  { %p5596_p1 = scmp.ne.s32.totalorder %s3785_s1, 0 }
0x3c3f   :  { %s6339_s29 = smov (!%p5596_p1), 64   ;;  %s6340_s4 = smov (!%p5596_p1), 96  }
0x3c40   :  { %3789 = sbr.rel (%p5596_p1) target bundleno = 16790 (0x4196), region = 129  ;;  %s6341_s5 = smov (!%p5596_p1), 32  }
0x3c41   :  { %s4099_s27 = sld [smem:[#allocation5]] (!%p5596_p1) }
0x3c45   :  { %v5966_v21 = vld [vmem:[%s7690_s6 + $0x38] sm:$0xff]  ;;  %v5968_v11 = vld [vmem:[%s7691_s7 + $0x8] sm:$0xff]  ;;  %v5965_v13 = vld [vmem:[%s7690_s6 + $0x30] sm:$0xff] }
0x3c46   :  { %3857 = vmatpush.bf16.msra.mxu0 %v5966_v21  ;;  %3897 = vmatpush.bf16.msra.mxu1 %v5968_v11  ;;  %v5967_v14 = vld [vmem:[%s7691_s7] sm:$0xff]  ;;  %v3790_v17 = vld [vmem:[#allocation3] sm:$0x1]  ;;  %v5962_v22 = vld [vmem:[%s7690_s6 + $0x18] sm:$0xff] }
0x3c47   :  { %v3870_v18 = vpack.c.bf16 %v3790_v17, %v3790_v17  ;;  %v5964_v19 = vld [vmem:[%s7690_s6 + $0x28] sm:$0xff]  ;;  %v5963_v20 = vld [vmem:[%s7690_s6 + $0x20] sm:$0xff]  ;;  %v5961_v23 = vld [vmem:[%s7690_s6 + $0x10] sm:$0xff]  ;;  %s4102_s28 = sadd.s32 1, %s4099_s27  ;;  %s4100_s11 = scalar_lea.smem [#allocation11], %s4099_s27 }
0x3c48   :  { %v5960_v24 = vld [vmem:[%s7690_s6 + $0x8] sm:$0xff]  ;;  %v5959_v25 = vld [vmem:[%s7690_s6] sm:$0xff]  ;;  %4103 = sst [smem:[#allocation5]] %s4102_s28 }
0x3c49   :  { %v7481_v26 = vld [vmem:[#allocation4] sm:$0x1]  ;;  %v3875_v27 = vld [vmem:[%s7693_s9] sm:$0x1]  ;;  %v6217_v54 = vld [vmem:[#allocation3] ss:$0 sm:$0xff] }
0x3c4a   :  { %3858 = vmatpush.bf16.msra.mxu0 %v5965_v13  ;;  %3898 = vmatpush.bf16.msra.mxu1 %v5967_v14  ;;  %v3808_v34 = vld [vmem:[%s7692_s8] sm:$0x1]  ;;  %v5970_v55 = vld [vmem:[%s7694_s10 + $0x8] sm:$0xff] }
0x3c4b   :  { %4012 = vmatpush.bf16.msra.mxu2 %v5970_v55  ;;  %v5969_v56 = vld [vmem:[%s7694_s10] sm:$0xff] }
0x3c4d   :  { %5637 = vmatmul.msk.bf16.vlgmr.msra.gmra.mxu1 %vm72_vm0, %v3870_v18 }
0x3c4e   :  { %3859 = vmatpush.bf16.msra.mxu0 %v5964_v19 }
0x3c4f   :  { %4013 = vmatpush.bf16.msra.mxu2 %v5969_v56 }
0x3c52   :  { %3860 = vmatpush.bf16.msra.mxu0 %v5963_v20 }
0x3c56   :  { %3861 = vmatpush.bf16.msra.mxu0 %v5962_v22 }
0x3c5a   :  { %3862 = vmatpush.bf16.msra.mxu0 %v5961_v23 }
0x3c5e   :  { %3863 = vmatpush.bf16.msra.mxu0 %v5960_v24 }
0x3c62   :  { %3864 = vmatpush.bf16.msra.mxu0 %v5959_v25 }
0x3c65   :  { %3865 = vmatmul.bf16.vlgmr.msra.gmra.mxu0 %v7481_v26 }
0x3cca   :  { %v3900_v28 = vpop.f32.mrf.mxu1 }
0x3ccb   :  { %v3901_v29 = vadd.f32 %v3900_v28, %v3875_v27 }
0x3ccd   :  { %3925 = vrot.lane.b32.xlu0 %v3901_v29, %s6339_s29 }
0x3cd2   :  { %v3902_v10 = vpop.f32.mrf.mxu1 }
0x3cd3   :  { %v5972_v10 = vld [vmem:[%s7697_s13 + $0x8] sm:$0xff] }
0x3cd4   :  { %4049 = vmatpush.bf16.msra.mxu3 %v5972_v10 }
0x3ce2   :  { %v3866_v32 = vpop.f32.mrf.mxu0 }
0x3ce3   :  { %v3867_v36 = vadd.f32 %v3866_v32, %v3808_v34 }
0x3ce5   :  { %v3904_v37 = vadd.f32 %v3901_v29, %v3867_v36 }
0x3ce7   :  { %v5638_v39 = vmul.f32 -1.442695, %v3904_v37 }
0x3ce9   :  { %6218 = vpow2.f32 %v5638_v39 }
0x3cea   :  { %v3868_v33 = vpop.f32.mrf.mxu0 }
0x3ceb   :  { %v5971_v33 = vld [vmem:[%s7697_s13] sm:$0xff] }
0x3cec   :  { %4050 = vmatpush.bf16.msra.mxu3 %v5971_v33 }
0x3cef   :  { %v6219_v40 = vpop.eup %6218 }
0x3cf0   :  { %v3908_v41 = vadd.f32 1.0, %v6219_v40 }
0x3cf2   :  { %6220 = vrcp.f32 %v3908_v41  ;;  %v3920_v52 = vand.u32 2147483648, %v3908_v41  ;;  %vm3914_vm12 = vweird.f32 %v3908_v41  ;;  %v3918_v46 = vand.u32 2147483647, %v3908_v41 }
0x3cf4   :  { %v3921_v48 = vor.u32 1.1754944e-38, %v3920_v52  ;;  %vm3919_vm14 = vcmp.eq.f32.partialorder %v3918_v46, 8.507059e+37 }
0x3cf8   :  { %v6221_v42 = vpop.eup %6220 }
0x3cf9   :  { %v3910_v43 = vmul.f32 %v6221_v42, %v3908_v41  ;;  %vm3915_vm11 = vweird.f32 %v6221_v42 }
0x3cfa   :  { %vm3916_vm13 = vmor %vm3914_vm12, %vm3915_vm11 }
0x3cfb   :  { %v3911_v44 = vsub.f32 1.0, %v3910_v43 }
0x3cfd   :  { %v3912_v45 = vmul.f32 %v6221_v42, %v3911_v44 }
0x3cff   :  { %v3913_v2 = vadd.f32 %v6221_v42, %v3912_v45 }
0x3d01   :  { %v3917_v47 = vsel %vm3916_vm13, %v6221_v42, %v3913_v2  ;;  %v4019_v2 = vld [vmem:[%s7696_s12] sm:$0x1] }
0x3d02   :  { %v3922_v49 = vsel %vm3919_vm14, %v3921_v48, %v3917_v47 }
0x3d03   :  { %v3935_v3 = vsub.f32 1.0, %v3922_v49 }
0x3d3f   :  { %v3926_v57 = vpop.permute.xlu0 %3925 }
0x3d40   :  { %v3928_v50 = vmul.f32 %v3926_v57, %v3922_v49  ;;  %v4027_v57 = vld [vmem:[%s7698_s14] sm:$0x1] }
0x3d42   :  { %3930 = vrot.lane.b32.xlu0 %v3928_v50, %s6339_s29 }
0x3db4   :  { %v3931_v51 = vpop.permute.xlu0 %3930 }
0x3db5   :  { %v3933_v53 = vadd.f32 %v3931_v51, %v3867_v36 }
0x3db7   :  { %6222 = vtanh.f32 %v3933_v53 }
0x3dbd   :  { %v6223_v61 = vpop.eup %6222 }
0x3dbe   :  { %3937 = vrot.lane.b32.xlu1 %v6223_v61, %s6340_s4 }
0x3dc6   :  { %3943 = vrot.lane.b32.xlu1 %v6217_v54, %s6341_s5 }
0x3e30   :  { %v3938_v58 = vpop.permute.xlu1 %3937 }
0x3e31   :  { %v3940_v15 = vmul.f32 %v3938_v58, %v3935_v3 }
0x3e38   :  { %v3944_v59 = vpop.permute.xlu1 %3943 }
0x3e39   :  { %v3946_v60 = vmul.f32 %v3944_v59, %v3922_v49 }
0x3e3b   :  { %v3947_v62 = vadd.f32 %v3946_v60, %v3940_v15 }
0x3e3d   :  { %v3983_v8 = vpack.c.bf16 %v3947_v62, %v3947_v62  ;;  %v3948_v63 = vperm.slane %v3947_v62, 0 }
0x3e3f   :  { %3989 = vrot.lane.b32.xlu2 %v3983_v8, %s6340_s4 }
0x3e47   :  { %3950 = vrot.lane.b32.xlu2 %v3948_v63, %s6340_s4 }
0x3e99   :  { %v3990_v0 = vpop.permute.xlu2 %3989 }
0x3e9a   :  { %5647 = vmatmul.msk.bf16.vlgmr.msra.gmra.mxu2 %vm72_vm0, %v3990_v0 }
0x3ea1   :  { %v3951_v1 = vpop.permute.xlu2 %3950 }
0x3ea2   :  { %v3953_v4 = vmul.f32 %v3951_v1, %v6889_v30 }
0x3ea4   :  { %v3954_v16 = vsel %vm72_vm0, %v3953_v4, 0.0 }
0x3ea5   :  { %3955 = vadd.xlane.f32.xlu0 %v3954_v16 }
0x3eb9   :  { %4085 = vrot.lane.b32.xlu0 %v3947_v62, %s6340_s4 }
0x3f18   :  { %v3956_v5 = vpop.xlane.xlu0 %3955 }
0x3f19   :  { %v3957_v6 = vsel %vm6891_vm5, %v3956_v5, -1e+30  ;;  %v6342_v5 = vmov 0.0  }
0x3f1a   :  { %v3958_v7 = vrot.slane %v3957_v6, 4 }
0x3f1c   :  { %v3959_v9 = vmax.f32 %v3957_v6, %v3958_v7 }
0x3f1d   :  { %v4015_v21 = vpop.f32.mrf.mxu2 }
0x3f1e   :  { %v3960_v11 = vrot.slane %v3959_v9, 2 }
0x3f20   :  { %v3961_v13 = vmax.f32 %v3959_v9, %v3960_v11 }
0x3f22   :  { %v3962_v14 = vrot.slane %v3961_v13, 1 }
0x3f24   :  { %v3963_v17 = vmax.f32 %v3961_v13, %v3962_v14 }
0x3f25   :  { %v4017_v18 = vpop.f32.mrf.mxu2 }
0x3f26   :  { %v3964_v19 = vsub.f32 %v3957_v6, %v3963_v17 }
0x3f28   :  { %v3965_v20 = vmul.f32 1.442695, %v3964_v19 }
0x3f2a   :  { %6224 = vpow2.f32 %v3965_v20 }
0x3f2b   :  { %v4086_v22 = vpop.permute.xlu0 %4085 }
0x3f2c   :  { %4088 = vst.msk [vmem:[#allocation3] sm:$0x1] %vm1496_vm7, %v4086_v22 }
0x3f30   :  { %v6225_v23 = vpop.eup %6224 }
0x3f31   :  { %v3967_v24 = vrot.slane %v6225_v23, 4 }
0x3f33   :  { %v3968_v25 = vadd.f32 %v6225_v23, %v3967_v24 }
0x3f35   :  { %v3969_v27 = vrot.slane %v3968_v25, 2 }
0x3f37   :  { %v3970_v28 = vadd.f32 %v3969_v27, %v3968_v25 }
0x3f39   :  { %v3971_v29 = vrot.slane %v3970_v28, 1 }
0x3f3b   :  { %v3972_v32 = vadd.f32 %v3971_v29, %v3970_v28 }
0x3f3d   :  { %6226 = vrcp.f32 %v3972_v32 }
0x3f43   :  { %v6227_v34 = vpop.eup %6226 }
0x3f44   :  { %v3974_v36 = vmul.f32 %v6227_v34, %v6225_v23 }
0x3f46   :  { %v3975_v37 = vmul.f32 %v3974_v36, %v6908_v38 }
0x3f48   :  { %v3976_v39 = vsel %vm72_vm0, %v3975_v37, 0.0 }
0x3f49   :  { %v3977_v40 = vrot.slane %v3976_v39, 4 }
0x3f4b   :  { %v3978_v41 = vadd.f32 %v3977_v40, %v3976_v39 }
0x3f4d   :  { %v3979_v42 = vrot.slane %v3978_v41, 2 }
0x3f4f   :  { %v3980_v43 = vadd.f32 %v3979_v42, %v3978_v41 }
0x3f51   :  { %v3981_v44 = vrot.slane %v3980_v43, 1 }
0x3f53   :  { %v3982_v45 = vadd.f32 %v3981_v44, %v3980_v43 }
0x3f55   :  { %v4016_v52 = vadd.f32 %v4015_v21, %v3982_v45 }
0x3f57   :  { %v4020_v46 = vadd.f32 %v4019_v2, %v4016_v52 }
0x3f59   :  { %6228 = vtanh.f32 %v4020_v46 }
0x3f5f   :  { %v6229_v47 = vpop.eup %6228 }
0x3f60   :  { %v4022_v48 = vpack.c.bf16 %v6229_v47, %v6229_v47 }
0x3f62   :  { %5656 = vmatmul.msk.bf16.vlgmr.msra.gmra.mxu3 %vm72_vm0, %v4022_v48 }
0x3fe5   :  { %v4052_v49 = vpop.f32.mrf.mxu3 }
0x3fe6   :  { %v4053_v50 = vadd.f32 %v4052_v49, %v4027_v57 }
0x3fe8   :  { %v4057_v51 = vsel %vm1802_vm15, %v4053_v50, -1e+30 }
0x3fe9   :  { %v4059_v53 = vsel %vm1501_vm8, %v4057_v51, -inf }
0x3fea   :  { %4060 = vmax.xlane.f32.xlu1 %v4059_v53 }
0x3fed   :  { %v4054_v61 = vpop.f32.mrf.mxu3 }
0x405d   :  { %v4061_v54 = vpop.xlane.xlu1 %4060 }
0x405e   :  { %vm4062_vm1 = vcmp.eq.f32.partialorder %v4057_v51, %v4061_v54 }
0x405f   :  { %v4063_v55 = vsel %vm4062_vm1, %v6471_v12, 128 }
0x4060   :  { %v4064_v56 = vsel %vm1501_vm8, %v4063_v55, 2147483647 }
0x4061   :  { %v4066_v58 = vshra.s32 %v4064_v56, 16  ;;  %v4065_v59 = vand.u32 65535, %v4064_v56 }
0x4063   :  { %v4068_v3 = vcvt.s32.f32 %v4066_v58  ;;  %v4067_v60 = vcvt.s32.f32 %v4065_v59 }
0x4065   :  { %4069 = vmin.xlane.f32.xlu2 %v4068_v3 }
0x40d8   :  { %v4070_v15 = vpop.xlane.xlu2 %4069 }
0x40d9   :  { %vm4071_vm2 = vcmp.eq.f32.partialorder %v4068_v3, %v4070_v15  ;;  %v4076_v8 = vcvt.f32.s32 %v4070_v15 }
0x40da   :  { %v4072_v62 = vsel %vm4071_vm2, %v4067_v60, inf }
0x40db   :  { %4073 = vmin.xlane.f32.xlu2 %v4072_v62  ;;  %v4077_v0 = vshll.u32 %v4076_v8, 16 }
0x414e   :  { %v4074_v63 = vpop.xlane.xlu2 %4073 }
0x414f   :  { %v4075_v1 = vcvt.f32.s32 %v4074_v63 }
0x4151   :  { %v4078_v4 = vadd.s32 %v4077_v0, %v4075_v1 }
0x4153   :  { %vm4079_vm3 = vcmp.eq.s32.totalorder %v6471_v12, %v4078_v4  ;;  %v4089_v16 = vrot.slane %v4078_v4, 4 }
0x4154   :  { %v4080_v6 = vsel %vm4079_vm3, 1.0, %v6342_v5 }
0x4155   :  { %v4081_v7 = vpack.c.bf16 %v4080_v6, %v4080_v6  ;;  %vm4090_vm4 = vcmp.lt.s32.totalorder %v4078_v4, %v4089_v16 }
0x4156   :  { %v4091_v9 = vsel %vm4090_vm4, %v4078_v4, %v4089_v16 }
0x4157   :  { %v4082_v21 = vsel %vm6901_vm10, %v4081_v7, %v7481_v26  ;;  %v4092_v11 = vrot.slane %v4091_v9, 2 }
0x4158   :  { %4083 = vst [vmem:[#allocation4] sm:$0x1] %v4082_v21 }
0x4159   :  { %vm4093_vm6 = vcmp.lt.s32.totalorder %v4091_v9, %v4092_v11 }
0x415a   :  { %v4094_v13 = vsel %vm4093_vm6, %v4091_v9, %v4092_v11 }
0x415b   :  { %v4095_v14 = vrot.slane %v4094_v13, 1 }
0x415d   :  { %vm4096_vm9 = vcmp.lt.s32.totalorder %v4094_v13, %v4095_v14 }
0x415e   :  { %v4097_v17 = vsel %vm4096_vm9, %v4094_v13, %v4095_v14 }
0x415f   :  { %6015 = vpush %v4097_v17 }
0x4190   :  { %s6016_s1 = spop %6015 }
0x4191   :  { %4101 = sst [smem:[%s4100_s11]] %s6016_s1  ;;  %p4104_p2 = scmp.eq.s32.totalorder %s6016_s1, 2 }
0x4193   :  { %s4105_s29 = scalar_select %p4104_p2, 1, 0 }
0x4195   :  { %4106 = sst [smem:[#allocation6]] %s4105_s29 }
0x4196 PF:  { %s4107_s2 = sld [smem:[#allocation6]] }
0x419c   :  { %p5657_p3 = scmp.ne.s32.totalorder %s4107_s2, 0 }
0x419d   :  { %s6343_s4 = smov (!%p5657_p3), 64   ;;  %s6344_s18 = smov (!%p5657_p3), 96  }
0x419e   :  { %4111 = sbr.rel (%p5657_p3) target bundleno = 18164 (0x46f4), region = 133  ;;  %s6345_s20 = smov (!%p5657_p3), 32  }
0x419f   :  { %s4421_s11 = sld [smem:[#allocation5]] (!%p5657_p3) }
0x41a3   :  { %v5980_v26 = vld [vmem:[%s7690_s6 + $0x38] sm:$0xff]  ;;  %v5982_v18 = vld [vmem:[%s7691_s7 + $0x8] sm:$0xff]  ;;  %v5979_v19 = vld [vmem:[%s7690_s6 + $0x30] sm:$0xff] }
0x41a4   :  { %4179 = vmatpush.bf16.msra.mxu0 %v5980_v26  ;;  %4219 = vmatpush.bf16.msra.mxu1 %v5982_v18  ;;  %v5981_v20 = vld [vmem:[%s7691_s7] sm:$0xff]  ;;  %v4112_v22 = vld [vmem:[#allocation3] sm:$0x1]  ;;  %v5976_v27 = vld [vmem:[%s7690_s6 + $0x18] sm:$0xff] }
0x41a5   :  { %v4192_v23 = vpack.c.bf16 %v4112_v22, %v4112_v22  ;;  %v5978_v24 = vld [vmem:[%s7690_s6 + $0x28] sm:$0xff]  ;;  %v5977_v25 = vld [vmem:[%s7690_s6 + $0x20] sm:$0xff]  ;;  %v5975_v28 = vld [vmem:[%s7690_s6 + $0x10] sm:$0xff]  ;;  %s4424_s29 = sadd.s32 1, %s4421_s11  ;;  %s4422_s30 = scalar_lea.smem [#allocation11], %s4421_s11 }
0x41a6   :  { %v5974_v29 = vld [vmem:[%s7690_s6 + $0x8] sm:$0xff]  ;;  %v5973_v10 = vld [vmem:[%s7690_s6] sm:$0xff]  ;;  %4425 = sst [smem:[#allocation5]] %s4424_s29 }
0x41a7   :  { %v7557_v32 = vld [vmem:[#allocation4] sm:$0x1]  ;;  %v4197_v33 = vld [vmem:[%s7693_s9] sm:$0x1]  ;;  %v6230_v59 = vld [vmem:[#allocation3] ss:$0 sm:$0xff] }
0x41a8   :  { %4180 = vmatpush.bf16.msra.mxu0 %v5979_v19  ;;  %4220 = vmatpush.bf16.msra.mxu1 %v5981_v20  ;;  %v4130_v41 = vld [vmem:[%s7692_s8] sm:$0x1]  ;;  %v5984_v15 = vld [vmem:[%s7694_s10 + $0x8] sm:$0xff] }
0x41a9   :  { %4334 = vmatpush.bf16.msra.mxu2 %v5984_v15  ;;  %v5983_v60 = vld [vmem:[%s7694_s10] sm:$0xff] }
0x41ab   :  { %5698 = vmatmul.msk.bf16.vlgmr.msra.gmra.mxu1 %vm72_vm0, %v4192_v23 }
0x41ac   :  { %4181 = vmatpush.bf16.msra.mxu0 %v5978_v24 }
0x41ad   :  { %4335 = vmatpush.bf16.msra.mxu2 %v5983_v60 }
0x41b0   :  { %4182 = vmatpush.bf16.msra.mxu0 %v5977_v25 }
0x41b4   :  { %4183 = vmatpush.bf16.msra.mxu0 %v5976_v27 }
0x41b8   :  { %4184 = vmatpush.bf16.msra.mxu0 %v5975_v28 }
0x41bc   :  { %4185 = vmatpush.bf16.msra.mxu0 %v5974_v29 }
0x41c0   :  { %4186 = vmatpush.bf16.msra.mxu0 %v5973_v10 }
0x41c3   :  { %4187 = vmatmul.bf16.vlgmr.msra.gmra.mxu0 %v7557_v32 }
0x4228   :  { %v4222_v34 = vpop.f32.mrf.mxu1 }
0x4229   :  { %v4223_v36 = vadd.f32 %v4222_v34, %v4197_v33 }
0x422b   :  { %4247 = vrot.lane.b32.xlu0 %v4223_v36, %s6343_s4 }
0x4230   :  { %v4224_v37 = vpop.f32.mrf.mxu1 }
0x4231   :  { %v5986_v37 = vld [vmem:[%s7697_s13 + $0x8] sm:$0xff] }
0x4232   :  { %4371 = vmatpush.bf16.msra.mxu3 %v5986_v37 }
0x4240   :  { %v4188_v39 = vpop.f32.mrf.mxu0 }
0x4241   :  { %v4189_v42 = vadd.f32 %v4188_v39, %v4130_v41 }
0x4243   :  { %v4226_v43 = vadd.f32 %v4223_v36, %v4189_v42 }
0x4245   :  { %v5699_v44 = vmul.f32 -1.442695, %v4226_v43 }
0x4247   :  { %6231 = vpow2.f32 %v5699_v44 }
0x4248   :  { %v4190_v40 = vpop.f32.mrf.mxu0 }
0x4249   :  { %v5985_v40 = vld [vmem:[%s7697_s13] sm:$0xff] }
0x424a   :  { %4372 = vmatpush.bf16.msra.mxu3 %v5985_v40 }
0x424d   :  { %v6232_v45 = vpop.eup %6231 }
0x424e   :  { %v4230_v2 = vadd.f32 1.0, %v6232_v45 }
0x4250   :  { %6233 = vrcp.f32 %v4230_v2  ;;  %v4242_v49 = vand.u32 2147483648, %v4230_v2  ;;  %vm4236_vm12 = vweird.f32 %v4230_v2  ;;  %v4240_v50 = vand.u32 2147483647, %v4230_v2 }
0x4252   :  { %v4243_v53 = vor.u32 1.1754944e-38, %v4242_v49  ;;  %vm4241_vm14 = vcmp.eq.f32.partialorder %v4240_v50, 8.507059e+37 }
0x4256   :  { %v6234_v52 = vpop.eup %6233 }
0x4257   :  { %v4232_v46 = vmul.f32 %v6234_v52, %v4230_v2  ;;  %vm4237_vm11 = vweird.f32 %v6234_v52 }
0x4258   :  { %vm4238_vm13 = vmor %vm4236_vm12, %vm4237_vm11 }
0x4259   :  { %v4233_v47 = vsub.f32 1.0, %v4232_v46 }
0x425b   :  { %v4234_v48 = vmul.f32 %v6234_v52, %v4233_v47 }
0x425d   :  { %v4235_v57 = vadd.f32 %v6234_v52, %v4234_v48 }
0x425f   :  { %v4239_v51 = vsel %vm4238_vm13, %v6234_v52, %v4235_v57  ;;  %v4341_v57 = vld [vmem:[%s7696_s12] sm:$0x1] }
0x4260   :  { %v4244_v54 = vsel %vm4241_vm14, %v4243_v53, %v4239_v51 }
0x4261   :  { %v4257_v8 = vsub.f32 1.0, %v4244_v54 }
0x429d   :  { %v4248_v61 = vpop.permute.xlu0 %4247 }
0x429e   :  { %v4250_v55 = vmul.f32 %v4248_v61, %v4244_v54  ;;  %v4349_v61 = vld [vmem:[%s7698_s14] sm:$0x1] }
0x42a0   :  { %4252 = vrot.lane.b32.xlu0 %v4250_v55, %s6343_s4 }
0x4312   :  { %v4253_v56 = vpop.permute.xlu0 %4252 }
0x4313   :  { %v4255_v58 = vadd.f32 %v4253_v56, %v4189_v42 }
0x4315   :  { %6235 = vtanh.f32 %v4255_v58 }
0x431b   :  { %v6236_v3 = vpop.eup %6235 }
0x431c   :  { %4259 = vrot.lane.b32.xlu1 %v6236_v3, %s6344_s18 }
0x4324   :  { %4265 = vrot.lane.b32.xlu1 %v6230_v59, %s6345_s20 }
0x438e   :  { %v4260_v62 = vpop.permute.xlu1 %4259 }
0x438f   :  { %v4262_v0 = vmul.f32 %v4260_v62, %v4257_v8 }
0x4396   :  { %v4266_v63 = vpop.permute.xlu1 %4265 }
0x4397   :  { %v4268_v1 = vmul.f32 %v4266_v63, %v4244_v54 }
0x4399   :  { %v4269_v4 = vadd.f32 %v4268_v1, %v4262_v0 }
0x439b   :  { %v4305_v16 = vpack.c.bf16 %v4269_v4, %v4269_v4  ;;  %v4270_v5 = vperm.slane %v4269_v4, 0 }
0x439d   :  { %4311 = vrot.lane.b32.xlu2 %v4305_v16, %s6344_s18 }
0x43a5   :  { %4272 = vrot.lane.b32.xlu2 %v4270_v5, %s6344_s18 }
0x43f7   :  { %v4312_v6 = vpop.permute.xlu2 %4311 }
0x43f8   :  { %5708 = vmatmul.msk.bf16.vlgmr.msra.gmra.mxu2 %vm72_vm0, %v4312_v6 }
0x43ff   :  { %v4273_v7 = vpop.permute.xlu2 %4272 }
0x4400   :  { %v4275_v9 = vmul.f32 %v4273_v7, %v6889_v30 }
0x4402   :  { %v4276_v21 = vsel %vm72_vm0, %v4275_v9, 0.0 }
0x4403   :  { %4277 = vadd.xlane.f32.xlu0 %v4276_v21 }
0x4417   :  { %4407 = vrot.lane.b32.xlu0 %v4269_v4, %s6344_s18 }
0x4476   :  { %v4278_v11 = vpop.xlane.xlu0 %4277 }
0x4477   :  { %v4279_v13 = vsel %vm6891_vm5, %v4278_v11, -1e+30  ;;  %v6346_v11 = vmov 0.0  }
0x4478   :  { %v4280_v14 = vrot.slane %v4279_v13, 4 }
0x447a   :  { %v4281_v17 = vmax.f32 %v4279_v13, %v4280_v14 }
0x447b   :  { %v4337_v26 = vpop.f32.mrf.mxu2 }
0x447c   :  { %v4282_v18 = vrot.slane %v4281_v17, 2 }
0x447e   :  { %v4283_v19 = vmax.f32 %v4281_v17, %v4282_v18 }
0x4480   :  { %v4284_v20 = vrot.slane %v4283_v19, 1 }
0x4482   :  { %v4285_v22 = vmax.f32 %v4283_v19, %v4284_v20 }
0x4483   :  { %v4339_v23 = vpop.f32.mrf.mxu2 }
0x4484   :  { %v4286_v24 = vsub.f32 %v4279_v13, %v4285_v22 }
0x4486   :  { %v4287_v25 = vmul.f32 1.442695, %v4286_v24 }
0x4488   :  { %6237 = vpow2.f32 %v4287_v25 }
0x4489   :  { %v4408_v27 = vpop.permute.xlu0 %4407 }
0x448a   :  { %4410 = vst.msk [vmem:[#allocation3] sm:$0x1] %vm1496_vm7, %v4408_v27 }
0x448e   :  { %v6238_v28 = vpop.eup %6237 }
0x448f   :  { %v4289_v29 = vrot.slane %v6238_v28, 4 }
0x4491   :  { %v4290_v10 = vadd.f32 %v6238_v28, %v4289_v29 }
0x4493   :  { %v4291_v33 = vrot.slane %v4290_v10, 2 }
0x4495   :  { %v4292_v34 = vadd.f32 %v4291_v33, %v4290_v10 }
0x4497   :  { %v4293_v36 = vrot.slane %v4292_v34, 1 }
0x4499   :  { %v4294_v39 = vadd.f32 %v4293_v36, %v4292_v34 }
0x449b   :  { %6239 = vrcp.f32 %v4294_v39 }
0x44a1   :  { %v6240_v41 = vpop.eup %6239 }
0x44a2   :  { %v4296_v42 = vmul.f32 %v6240_v41, %v6238_v28 }
0x44a4   :  { %v4297_v43 = vmul.f32 %v4296_v42, %v6908_v38 }
0x44a6   :  { %v4298_v44 = vsel %vm72_vm0, %v4297_v43, 0.0 }
0x44a7   :  { %v4299_v45 = vrot.slane %v4298_v44, 4 }
0x44a9   :  { %v4300_v2 = vadd.f32 %v4299_v45, %v4298_v44 }
0x44ab   :  { %v4301_v52 = vrot.slane %v4300_v2, 2 }
0x44ad   :  { %v4302_v46 = vadd.f32 %v4301_v52, %v4300_v2 }
0x44af   :  { %v4303_v47 = vrot.slane %v4302_v46, 1 }
0x44b1   :  { %v4304_v48 = vadd.f32 %v4303_v47, %v4302_v46 }
0x44b3   :  { %v4338_v49 = vadd.f32 %v4337_v26, %v4304_v48 }
0x44b5   :  { %v4342_v50 = vadd.f32 %v4341_v57, %v4338_v49 }
0x44b7   :  { %6241 = vtanh.f32 %v4342_v50 }
0x44bd   :  { %v6242_v51 = vpop.eup %6241 }
0x44be   :  { %v4344_v53 = vpack.c.bf16 %v6242_v51, %v6242_v51 }
0x44c0   :  { %5717 = vmatmul.msk.bf16.vlgmr.msra.gmra.mxu3 %vm72_vm0, %v4344_v53 }
0x4543   :  { %v4374_v54 = vpop.f32.mrf.mxu3 }
0x4544   :  { %v4375_v55 = vadd.f32 %v4374_v54, %v4349_v61 }
0x4546   :  { %v4379_v56 = vsel %vm1802_vm15, %v4375_v55, -1e+30 }
0x4547   :  { %v4381_v58 = vsel %vm1501_vm8, %v4379_v56, -inf }
0x4548   :  { %4382 = vmax.xlane.f32.xlu1 %v4381_v58 }
0x454b   :  { %v4376_v3 = vpop.f32.mrf.mxu3 }
0x45bb   :  { %v4383_v59 = vpop.xlane.xlu1 %4382 }
0x45bc   :  { %vm4384_vm1 = vcmp.eq.f32.partialorder %v4379_v56, %v4383_v59 }
0x45bd   :  { %v4385_v15 = vsel %vm4384_vm1, %v6471_v12, 128 }
0x45be   :  { %v4386_v60 = vsel %vm1501_vm8, %v4385_v15, 2147483647 }
0x45bf   :  { %v4388_v62 = vshra.s32 %v4386_v60, 16  ;;  %v4387_v63 = vand.u32 65535, %v4386_v60 }
0x45c1   :  { %v4390_v8 = vcvt.s32.f32 %v4388_v62  ;;  %v4389_v1 = vcvt.s32.f32 %v4387_v63 }
0x45c3   :  { %4391 = vmin.xlane.f32.xlu2 %v4390_v8 }
0x4636   :  { %v4392_v0 = vpop.xlane.xlu2 %4391 }
0x4637   :  { %vm4393_vm2 = vcmp.eq.f32.partialorder %v4390_v8, %v4392_v0  ;;  %v4398_v16 = vcvt.f32.s32 %v4392_v0 }
0x4638   :  { %v4394_v4 = vsel %vm4393_vm2, %v4389_v1, inf }
0x4639   :  { %4395 = vmin.xlane.f32.xlu2 %v4394_v4  ;;  %v4399_v6 = vshll.u32 %v4398_v16, 16 }
0x46ac   :  { %v4396_v5 = vpop.xlane.xlu2 %4395 }
0x46ad   :  { %v4397_v7 = vcvt.f32.s32 %v4396_v5 }
0x46af   :  { %v4400_v9 = vadd.s32 %v4399_v6, %v4397_v7 }
0x46b1   :  { %vm4401_vm3 = vcmp.eq.s32.totalorder %v6471_v12, %v4400_v9  ;;  %v4411_v21 = vrot.slane %v4400_v9, 4 }
0x46b2   :  { %v4402_v13 = vsel %vm4401_vm3, 1.0, %v6346_v11 }
0x46b3   :  { %v4403_v14 = vpack.c.bf16 %v4402_v13, %v4402_v13  ;;  %vm4412_vm4 = vcmp.lt.s32.totalorder %v4400_v9, %v4411_v21 }
0x46b4   :  { %v4413_v17 = vsel %vm4412_vm4, %v4400_v9, %v4411_v21 }
0x46b5   :  { %v4404_v26 = vsel %vm6901_vm10, %v4403_v14, %v7557_v32  ;;  %v4414_v18 = vrot.slane %v4413_v17, 2 }
0x46b6   :  { %4405 = vst [vmem:[#allocation4] sm:$0x1] %v4404_v26 }
0x46b7   :  { %vm4415_vm6 = vcmp.lt.s32.totalorder %v4413_v17, %v4414_v18 }
0x46b8   :  { %v4416_v19 = vsel %vm4415_vm6, %v4413_v17, %v4414_v18 }
0x46b9   :  { %v4417_v20 = vrot.slane %v4416_v19, 1 }
0x46bb   :  { %vm4418_vm9 = vcmp.lt.s32.totalorder %v4416_v19, %v4417_v20 }
0x46bc   :  { %v4419_v22 = vsel %vm4418_vm9, %v4416_v19, %v4417_v20 }
0x46bd   :  { %6017 = vpush %v4419_v22 }
0x46ee   :  { %s6018_s2 = spop %6017 }
0x46ef   :  { %4423 = sst [smem:[%s4422_s30]] %s6018_s2  ;;  %p4426_p4 = scmp.eq.s32.totalorder %s6018_s2, 2 }
0x46f1   :  { %s4427_s4 = scalar_select %p4426_p4, 1, 0 }
0x46f3   :  { %4428 = sst [smem:[#allocation6]] %s4427_s4 }
0x46f4 PF:  { %s4429_s5 = sld [smem:[#allocation6]] }
0x46fa   :  { %p5718_p5 = scmp.ne.s32.totalorder %s4429_s5, 0 }
0x46fb   :  { %s6347_s17 = smov (!%p5718_p5), 64  }
0x46fc   :  { %4433 = sbr.rel (%p5718_p5) target bundleno = 19538 (0x4c52), region = 137 }
0x4701   :  { %v5994_v32 = vld [vmem:[%s7690_s6 + $0x38] sm:$0xff]  ;;  %v5996_v23 = vld [vmem:[%s7691_s7 + $0x8] sm:$0xff]  ;;  %v5993_v24 = vld [vmem:[%s7690_s6 + $0x30] sm:$0xff] }
0x4702   :  { %4501 = vmatpush.bf16.msra.mxu0 %v5994_v32  ;;  %4541 = vmatpush.bf16.msra.mxu1 %v5996_v23  ;;  %v5995_v25 = vld [vmem:[%s7691_s7] sm:$0xff]  ;;  %v4434_v27 = vld [vmem:[#allocation3] sm:$0x1]  ;;  %v5990_v33 = vld [vmem:[%s7690_s6 + $0x18] sm:$0xff] }
0x4703   :  { %v4514_v28 = vpack.c.bf16 %v4434_v27, %v4434_v27  ;;  %v5992_v29 = vld [vmem:[%s7690_s6 + $0x28] sm:$0xff]  ;;  %v5991_v10 = vld [vmem:[%s7690_s6 + $0x20] sm:$0xff]  ;;  %v5989_v34 = vld [vmem:[%s7690_s6 + $0x10] sm:$0xff] }
0x4704   :  { %v5988_v36 = vld [vmem:[%s7690_s6 + $0x8] sm:$0xff]  ;;  %v5987_v37 = vld [vmem:[%s7690_s6] sm:$0xff]  ;;  %s6348_s6 = smov 96  }
0x4705   :  { %v7633_v39 = vld [vmem:[#allocation4] sm:$0x1]  ;;  %v4519_v40 = vld [vmem:[%s7693_s9] sm:$0x1]  ;;  %v6243_v63 = vld [vmem:[#allocation3] ss:$0 sm:$0xff] }
0x4706   :  { %4502 = vmatpush.bf16.msra.mxu0 %v5993_v24  ;;  %4542 = vmatpush.bf16.msra.mxu1 %v5995_v25  ;;  %v4452_v2 = vld [vmem:[%s7692_s8] sm:$0x1]  ;;  %s6349_s8 = smov 32   ;;  %v5998_v0 = vld [vmem:[%s7694_s10 + $0x8] sm:$0xff] }
0x4707   :  { %4656 = vmatpush.bf16.msra.mxu2 %v5998_v0  ;;  %v5997_v1 = vld [vmem:[%s7694_s10] sm:$0xff] }
0x4709   :  { %5759 = vmatmul.msk.bf16.vlgmr.msra.gmra.mxu1 %vm72_vm0, %v4514_v28 }
0x470a   :  { %4503 = vmatpush.bf16.msra.mxu0 %v5992_v29 }
0x470b   :  { %4657 = vmatpush.bf16.msra.mxu2 %v5997_v1 }
0x470e   :  { %4504 = vmatpush.bf16.msra.mxu0 %v5991_v10 }
0x4712   :  { %4505 = vmatpush.bf16.msra.mxu0 %v5990_v33 }
0x4716   :  { %4506 = vmatpush.bf16.msra.mxu0 %v5989_v34 }
0x471a   :  { %4507 = vmatpush.bf16.msra.mxu0 %v5988_v36 }
0x471e   :  { %4508 = vmatpush.bf16.msra.mxu0 %v5987_v37 }
0x4721   :  { %4509 = vmatmul.bf16.vlgmr.msra.gmra.mxu0 %v7633_v39 }
0x4786   :  { %v4544_v41 = vpop.f32.mrf.mxu1 }
0x4787   :  { %v4545_v42 = vadd.f32 %v4544_v41, %v4519_v40  ;;  %v6000_v41 = vld [vmem:[%s7697_s13 + $0x8] sm:$0xff] }
0x4788   :  { %4693 = vmatpush.bf16.msra.mxu3 %v6000_v41 }
0x4789   :  { %4569 = vrot.lane.b32.xlu0 %v4545_v42, %s6347_s17 }
0x478e   :  { %v4546_v43 = vpop.f32.mrf.mxu1 }
0x478f   :  { %v5999_v43 = vld [vmem:[%s7697_s13] sm:$0xff] }
0x4790   :  { %4694 = vmatpush.bf16.msra.mxu3 %v5999_v43 }
0x479e   :  { %v4510_v44 = vpop.f32.mrf.mxu0 }
0x479f   :  { %v4511_v52 = vadd.f32 %v4510_v44, %v4452_v2 }
0x47a1   :  { %v4548_v46 = vadd.f32 %v4545_v42, %v4511_v52 }
0x47a3   :  { %v5760_v47 = vmul.f32 -1.442695, %v4548_v46 }
0x47a5   :  { %6244 = vpow2.f32 %v5760_v47 }
0x47a6   :  { %v4512_v45 = vpop.f32.mrf.mxu0 }
0x47ab   :  { %v6245_v48 = vpop.eup %6244 }
0x47ac   :  { %v4552_v57 = vadd.f32 1.0, %v6245_v48 }
0x47ae   :  { %6246 = vrcp.f32 %v4552_v57  ;;  %v4564_v54 = vand.u32 2147483648, %v4552_v57  ;;  %vm4558_vm12 = vweird.f32 %v4552_v57  ;;  %v4562_v55 = vand.u32 2147483647, %v4552_v57 }
0x47b0   :  { %v4565_v58 = vor.u32 1.1754944e-38, %v4564_v54  ;;  %vm4563_vm14 = vcmp.eq.f32.partialorder %v4562_v55, 8.507059e+37 }
0x47b4   :  { %v6247_v49 = vpop.eup %6246 }
0x47b5   :  { %v4554_v50 = vmul.f32 %v6247_v49, %v4552_v57  ;;  %vm4559_vm11 = vweird.f32 %v6247_v49 }
0x47b6   :  { %vm4560_vm13 = vmor %vm4558_vm12, %vm4559_vm11 }
0x47b7   :  { %v4555_v51 = vsub.f32 1.0, %v4554_v50 }
0x47b9   :  { %v4556_v53 = vmul.f32 %v6247_v49, %v4555_v51  ;;  %v4663_v51 = vld [vmem:[%s7696_s12] sm:$0x1]  ;;  %s4743_s12 = sld [smem:[#allocation5]] }
0x47bb   :  { %v4557_v61 = vadd.f32 %v6247_v49, %v4556_v53 }
0x47bd   :  { %v4561_v56 = vsel %vm4560_vm13, %v6247_v49, %v4557_v61 }
0x47be   :  { %v4566_v59 = vsel %vm4563_vm14, %v4565_v58, %v4561_v56 }
0x47bf   :  { %v4579_v16 = vsub.f32 1.0, %v4566_v59  ;;  %s4744_s28 = scalar_lea.smem [#allocation11], %s4743_s12 }
0x47fb   :  { %v4570_v3 = vpop.permute.xlu0 %4569 }
0x47fc   :  { %v4572_v15 = vmul.f32 %v4570_v3, %v4566_v59 }
0x47fe   :  { %4574 = vrot.lane.b32.xlu0 %v4572_v15, %s6347_s17 }
0x4870   :  { %v4575_v60 = vpop.permute.xlu0 %4574 }
0x4871   :  { %v4577_v62 = vadd.f32 %v4575_v60, %v4511_v52 }
0x4873   :  { %6248 = vtanh.f32 %v4577_v62 }
0x4879   :  { %v6249_v8 = vpop.eup %6248 }
0x487a   :  { %4581 = vrot.lane.b32.xlu1 %v6249_v8, %s6348_s6 }
0x4882   :  { %4587 = vrot.lane.b32.xlu1 %v6243_v63, %s6349_s8 }
0x48ec   :  { %v4582_v4 = vpop.permute.xlu1 %4581 }
0x48ed   :  { %v4584_v6 = vmul.f32 %v4582_v4, %v4579_v16 }
0x48f4   :  { %v4588_v5 = vpop.permute.xlu1 %4587 }
0x48f5   :  { %v4590_v7 = vmul.f32 %v4588_v5, %v4566_v59 }
0x48f7   :  { %v4591_v9 = vadd.f32 %v4590_v7, %v4584_v6 }
0x48f9   :  { %v4627_v21 = vpack.c.bf16 %v4591_v9, %v4591_v9  ;;  %v4592_v11 = vperm.slane %v4591_v9, 0 }
0x48fb   :  { %4633 = vrot.lane.b32.xlu2 %v4627_v21, %s6348_s6 }
0x4903   :  { %4594 = vrot.lane.b32.xlu2 %v4592_v11, %s6348_s6 }
0x4955   :  { %v4634_v13 = vpop.permute.xlu2 %4633 }
0x4956   :  { %5769 = vmatmul.msk.bf16.vlgmr.msra.gmra.mxu2 %vm72_vm0, %v4634_v13 }
0x495d   :  { %v4595_v14 = vpop.permute.xlu2 %4594 }
0x495e   :  { %v4597_v17 = vmul.f32 %v4595_v14, %v6889_v30  ;;  %v6350_v14 = vmov 0.0  }
0x4960   :  { %v4598_v26 = vsel %vm72_vm0, %v4597_v17, 0.0 }
0x4961   :  { %4599 = vadd.xlane.f32.xlu0 %v4598_v26 }
0x4975   :  { %4729 = vrot.lane.b32.xlu0 %v4591_v9, %s6348_s6 }
0x49d4   :  { %v4600_v18 = vpop.xlane.xlu0 %4599 }
0x49d5   :  { %v4601_v19 = vsel %vm6891_vm5, %v4600_v18, -1e+30 }
0x49d6   :  { %v4602_v20 = vrot.slane %v4601_v19, 4 }
0x49d8   :  { %v4603_v22 = vmax.f32 %v4601_v19, %v4602_v20 }
0x49d9   :  { %v4659_v32 = vpop.f32.mrf.mxu2 }
0x49da   :  { %v4604_v23 = vrot.slane %v4603_v22, 2 }
0x49dc   :  { %v4605_v24 = vmax.f32 %v4603_v22, %v4604_v23 }
0x49de   :  { %v4606_v25 = vrot.slane %v4605_v24, 1 }
0x49e0   :  { %v4607_v27 = vmax.f32 %v4605_v24, %v4606_v25 }
0x49e1   :  { %v4661_v28 = vpop.f32.mrf.mxu2 }
0x49e2   :  { %v4608_v29 = vsub.f32 %v4601_v19, %v4607_v27 }
0x49e4   :  { %v4609_v10 = vmul.f32 1.442695, %v4608_v29 }
0x49e6   :  { %6250 = vpow2.f32 %v4609_v10 }
0x49e7   :  { %v4730_v30 = vpop.permute.xlu0 %4729 }
0x49e8   :  { %4732 = vst.msk [vmem:[#allocation3] sm:$0x1] %vm1496_vm7, %v4730_v30 }
0x49ec   :  { %v6251_v33 = vpop.eup %6250 }
0x49ed   :  { %v4611_v34 = vrot.slane %v6251_v33, 4 }
0x49ef   :  { %v4612_v36 = vadd.f32 %v6251_v33, %v4611_v34 }
0x49f1   :  { %v4613_v37 = vrot.slane %v4612_v36, 2 }
0x49f3   :  { %v4614_v31 = vadd.f32 %v4613_v37, %v4612_v36 }
0x49f5   :  { %v4615_v40 = vrot.slane %v4614_v31, 1 }
0x49f7   :  { %v4616_v42 = vadd.f32 %v4615_v40, %v4614_v31 }
0x49f9   :  { %6252 = vrcp.f32 %v4616_v42 }
0x49ff   :  { %v6253_v44 = vpop.eup %6252 }
0x4a00   :  { %v4618_v45 = vmul.f32 %v6253_v44, %v6251_v33 }
0x4a02   :  { %v4619_v2 = vmul.f32 %v4618_v45, %v6908_v38  ;;  %v4671_v38 = vld [vmem:[%s7698_s14] sm:$0x1]  ;;  %s4746_s14 = sadd.s32 1, %s4743_s12 }
0x4a03   :  { %4747 = sst [smem:[#allocation5]] %s4746_s14 }
0x4a04   :  { %v4620_v52 = vsel %vm72_vm0, %v4619_v2, 0.0 }
0x4a05   :  { %v4621_v46 = vrot.slane %v4620_v52, 4 }
0x4a07   :  { %v4622_v47 = vadd.f32 %v4621_v46, %v4620_v52 }
0x4a09   :  { %v4623_v48 = vrot.slane %v4622_v47, 2 }
0x4a0b   :  { %v4624_v57 = vadd.f32 %v4623_v48, %v4622_v47 }
0x4a0d   :  { %v4625_v49 = vrot.slane %v4624_v57, 1 }
0x4a0f   :  { %v4626_v50 = vadd.f32 %v4625_v49, %v4624_v57 }
0x4a11   :  { %v4660_v53 = vadd.f32 %v4659_v32, %v4626_v50 }
0x4a13   :  { %v4664_v61 = vadd.f32 %v4663_v51, %v4660_v53 }
0x4a15   :  { %6254 = vtanh.f32 %v4664_v61 }
0x4a1b   :  { %v6255_v54 = vpop.eup %6254 }
0x4a1c   :  { %v4666_v55 = vpack.c.bf16 %v6255_v54, %v6255_v54 }
0x4a1e   :  { %5778 = vmatmul.msk.bf16.vlgmr.msra.gmra.mxu3 %vm72_vm0, %v4666_v55 }
0x4aa1   :  { %v4696_v56 = vpop.f32.mrf.mxu3 }
0x4aa2   :  { %v4697_v58 = vadd.f32 %v4696_v56, %v4671_v38 }
0x4aa4   :  { %v4701_v3 = vsel %vm1802_vm15, %v4697_v58, -1e+30 }
0x4aa5   :  { %v4703_v59 = vsel %vm1501_vm8, %v4701_v3, -inf }
0x4aa6   :  { %4704 = vmax.xlane.f32.xlu1 %v4703_v59 }
0x4aa9   :  { %v4698_v15 = vpop.f32.mrf.mxu3 }
0x4b19   :  { %v4705_v60 = vpop.xlane.xlu1 %4704 }
0x4b1a   :  { %vm4706_vm5 = vcmp.eq.f32.partialorder %v4701_v3, %v4705_v60 }
0x4b1b   :  { %v4707_v62 = vsel %vm4706_vm5, %v6471_v12, 128 }
0x4b1c   :  { %v4708_v8 = vsel %vm1501_vm8, %v4707_v62, 2147483647 }
0x4b1d   :  { %v4710_v63 = vshra.s32 %v4708_v8, 16  ;;  %v4709_v1 = vand.u32 65535, %v4708_v8 }
0x4b1f   :  { %v4712_v0 = vcvt.s32.f32 %v4710_v63  ;;  %v4711_v16 = vcvt.s32.f32 %v4709_v1 }
0x4b21   :  { %4713 = vmin.xlane.f32.xlu2 %v4712_v0 }
0x4b94   :  { %v4714_v4 = vpop.xlane.xlu2 %4713 }
0x4b95   :  { %vm4715_vm0 = vcmp.eq.f32.partialorder %v4712_v0, %v4714_v4  ;;  %v4720_v6 = vcvt.f32.s32 %v4714_v4 }
0x4b96   :  { %v4716_v5 = vsel %vm4715_vm0, %v4711_v16, inf }
0x4b97   :  { %4717 = vmin.xlane.f32.xlu2 %v4716_v5  ;;  %v4721_v9 = vshll.u32 %v4720_v6, 16 }
0x4c0a   :  { %v4718_v7 = vpop.xlane.xlu2 %4717 }
0x4c0b   :  { %v4719_v21 = vcvt.f32.s32 %v4718_v7 }
0x4c0d   :  { %v4722_v11 = vadd.s32 %v4721_v9, %v4719_v21 }
0x4c0f   :  { %vm4723_vm7 = vcmp.eq.s32.totalorder %v6471_v12, %v4722_v11  ;;  %v4733_v13 = vrot.slane %v4722_v11, 4 }
0x4c10   :  { %v4724_v17 = vsel %vm4723_vm7, 1.0, %v6350_v14 }
0x4c11   :  { %v4725_v26 = vpack.c.bf16 %v4724_v17, %v4724_v17  ;;  %vm4734_vm8 = vcmp.lt.s32.totalorder %v4722_v11, %v4733_v13 }
0x4c12   :  { %v4735_v18 = vsel %vm4734_vm8, %v4722_v11, %v4733_v13 }
0x4c13   :  { %v4726_v19 = vsel %vm6901_vm10, %v4725_v26, %v7633_v39  ;;  %v4736_v20 = vrot.slane %v4735_v18, 2 }
0x4c14   :  { %4727 = vst [vmem:[#allocation4] sm:$0x1] %v4726_v19 }
0x4c15   :  { %vm4737_vm15 = vcmp.lt.s32.totalorder %v4735_v18, %v4736_v20 }
0x4c16   :  { %v4738_v22 = vsel %vm4737_vm15, %v4735_v18, %v4736_v20 }
0x4c17   :  { %v4739_v32 = vrot.slane %v4738_v22, 1 }
0x4c19   :  { %vm4740_vm1 = vcmp.lt.s32.totalorder %v4738_v22, %v4739_v32 }
0x4c1a   :  { %v4741_v23 = vsel %vm4740_vm1, %v4738_v22, %v4739_v32 }
0x4c1b   :  { %6019 = vpush %v4741_v23 }
0x4c4c   :  { %s6020_s27 = spop %6019 }
0x4c4d   :  { %4745 = sst [smem:[%s4744_s28]] %s6020_s27  ;;  %p4748_p6 = scmp.eq.s32.totalorder %s6020_s27, 2 }
0x4c4f   :  { %s4749_s7 = scalar_select %p4748_p6, 1, 0 }
0x4c51   :  { %4750 = sst [smem:[#allocation6]] %s4749_s7 }
0x4c52 PF:  { %s4759_s29 = sshll.u32 %s7699_s15, 4  ;;  %s4751_s2 = sld [smem:[#allocation5]]  ;;  %s4760_s29 = int_to_ptr.hbm [resolvable:$true] %s4759_s29 }
0x4c53   :  { %s6351_s30 = smov [#allocation11]   ;;  %s4768_s17 = sshll.u32 %s7700_s16, 4  ;;  %s4769_s17 = int_to_ptr.hbm [resolvable:$true] %s4768_s17 }
0x4c54   :  { %4762 = dma.smem_to_hbm %s6351_s30, 16, %s4760_s29, [#allocation9]  }
0x4c55   :  { %s6352_s18 = smov [#allocation12]  }
0x4c58   :  { %4753 = sst [smem:[#allocation12]] %s4751_s2 }
0x4c59   :  { %4771 = dma.smem_to_hbm %s6352_s18, 16, %s4769_s17, [#allocation13]  }
0x4c5a   :  { %6295 = dma.done.wait [#allocation9], 16  }
0x4c5b   :  { %6296 = vsyncadd [#allocation9], 4294967280 }
0x4c5c   :  { %6297 = dma.done.wait [#allocation13], 16  }
0x4c5d   :  { %6298 = vsyncadd [#allocation13], 4294967280 }
0x4c5e   :  { %4780 = sfence }
0x4c5f   :  { %4781 = vsyncpa [#allocation9], 1 }
0x4c60   :  { %4782 = vsyncpa [#allocation13], 1 }
0x4c61   :  { %4783 = vsyncpa [#allocation10], 1 }

</bundles_post_ra>
